<compile_context>
chip_gen: v5e
topology: v5e:2x2
jax: 0.10.0
libtpu: 0.0.40
codegen_flags: <defaults>
</compile_context>

<pallas_src>
import jax
import jax.numpy as jnp
from jax.experimental import pallas as pl
from jax.experimental.pallas import tpu as pltpu

IMG_HW = 64
IN_FEATS = IMG_HW * IMG_HW      # 4096
HIDDEN = 512
LATENT_DIM = 32                 # stand-in for args.latent_dim
OUT_PAD = 128                   # lane-dense padded output width
PAD_ROWS = 8                    # one sublane group


def encoder_kernel(x_ref, w1_ref, b1_ref, w2_ref, b2_ref, w3_ref, b3_ref, o_ref):
    # Broadcast the single real row across 8 sublanes (avoids a host-side
    # zero-pad slab); only row 0 of the result is consumed by the wrapper.
    x = jnp.broadcast_to(x_ref[...], (PAD_ROWS, IN_FEATS)).astype(jnp.bfloat16)

    # Linear(4096 -> 512) + LeakyReLU(0.2); bf16 operands, f32 MXU accumulation.
    h = jnp.dot(x, w1_ref[...], preferred_element_type=jnp.float32) + b1_ref[...]
    h = jnp.maximum(h, 0.2 * h)

    # Linear(512 -> 512) + LeakyReLU(0.2)
    h = jnp.dot(h.astype(jnp.bfloat16), w2_ref[...],
                preferred_element_type=jnp.float32) + b2_ref[...]
    h = jnp.maximum(h, 0.2 * h)

    # Linear(512 -> latent_dim); columns zero-padded to 128 for a dense store.
    o_ref[...] = jnp.dot(h.astype(jnp.bfloat16), w3_ref[...],
                         preferred_element_type=jnp.float32) + b3_ref[...]


def encoder_forward(img, params):
    """img: float32 [B, C, 64, 64] (NCHW). Returns float32 [1, LATENT_DIM]."""
    w1, b1, w2, b2, w3, b3 = params

    # Matches img[0, 0, :, :].reshape(1, -1) in the PyTorch module.
    x = img[0, 0, :, :].reshape(1, IN_FEATS).astype(jnp.float32)

    vmem_spec = pl.BlockSpec(memory_space=pltpu.MemorySpace.VMEM)

    out_pad = pl.pallas_call(
        encoder_kernel,
        out_shape=jax.ShapeDtypeStruct((PAD_ROWS, OUT_PAD), jnp.float32),
        in_specs=[vmem_spec] * 7,
        out_specs=vmem_spec,
        compiler_params=pltpu.CompilerParams(vmem_limit_bytes=32 << 20),
    )(x, w1, b1, w2, b2, w3, b3)

    # Only row 0 / the first LATENT_DIM columns are real data.
    return out_pad[0:1, :LATENT_DIM]


def init_params(key):
    """nn.Linear-style U(-1/sqrt(fan_in), 1/sqrt(fan_in)); weights kept bf16."""
    ks = jax.random.split(key, 6)

    def lin(kw, kb, fan_in, fan_out, pad_out=None):
        bound = 1.0 / jnp.sqrt(jnp.float32(fan_in))
        w = jax.random.uniform(kw, (fan_in, fan_out), jnp.float32, -bound, bound)
        b = jax.random.uniform(kb, (1, fan_out), jnp.float32, -bound, bound)
        if pad_out is not None and pad_out > fan_out:
            w = jnp.pad(w, ((0, 0), (0, pad_out - fan_out)))
            b = jnp.pad(b, ((0, 0), (0, pad_out - fan_out)))
        # Stream weights as bf16 (halves HBM traffic); biases stay f32 (tiny).
        return w.astype(jnp.bfloat16), b

    w1, b1 = lin(ks[0], ks[1], IN_FEATS, HIDDEN)
    w2, b2 = lin(ks[2], ks[3], HIDDEN, HIDDEN)
    w3, b3 = lin(ks[4], ks[5], HIDDEN, LATENT_DIM, pad_out=OUT_PAD)
    return (w1, b1, w2, b2, w3, b3)


if __name__ == "__main__":
    key = jax.random.PRNGKey(0)
    k_img, k_params = jax.random.split(key)

    # Forward requires the selected image slice to be 64x64 (= 4096 flat).
    img = jax.random.normal(k_img, (2, 1, IMG_HW, IMG_HW), jnp.float32)
    params = init_params(k_params)

    out = encoder_forward(img, params)
    out = jax.block_until_ready(out)

    # Pure-JAX reference using the same bf16 weights / f32 accumulation.
    w1, b1, w2, b2, w3, b3 = params
    x = img[0, 0, :, :].reshape(1, -1)
    h = jnp.dot(x.astype(jnp.bfloat16), w1, preferred_element_type=jnp.float32) + b1
    h = jnp.maximum(h, 0.2 * h)
    h = jnp.dot(h.astype(jnp.bfloat16), w2, preferred_element_type=jnp.float32) + b2
    h = jnp.maximum(h, 0.2 * h)
    ref = (jnp.dot(h.astype(jnp.bfloat16), w3, preferred_element_type=jnp.float32)
           + b3)[:, :LATENT_DIM]

    assert out.shape == (1, LATENT_DIM)
    assert jnp.allclose(out, ref, atol=2e-3, rtol=2e-3)
    print("KERNEL_OK")
</pallas_src>

<mosaic_0001>
module attributes {stable_mosaic.version = 11 : i64} {
  func.func @encoder_kernel(%arg0: memref<1x4096xf32, #tpu.memory_space<vmem>>, %arg1: memref<4096x512xbf16, #tpu.memory_space<vmem>>, %arg2: memref<1x512xf32, #tpu.memory_space<vmem>>, %arg3: memref<512x512xbf16, #tpu.memory_space<vmem>>, %arg4: memref<1x512xf32, #tpu.memory_space<vmem>>, %arg5: memref<512x128xbf16, #tpu.memory_space<vmem>>, %arg6: memref<1x128xf32, #tpu.memory_space<vmem>>, %arg7: memref<8x128xf32, #tpu.memory_space<vmem>>) attributes {dimension_semantics = [], scalar_prefetch = 0 : i64, scratch_operands = 0 : i64, tpu.core_type = #tpu.core_type<tc>} {
    %c0 = arith.constant 0 : index
    %c0_0 = arith.constant 0 : index
    %0 = vector.load %arg0[%c0, %c0_0] : memref<1x4096xf32, #tpu.memory_space<vmem>>, vector<1x4096xf32>
    %1 = vector.shape_cast %0 : vector<1x4096xf32> to vector<1x4096xf32>
    %2 = vector.broadcast %1 : vector<1x4096xf32> to vector<8x4096xf32>
    %3 = arith.truncf %2 : vector<8x4096xf32> to vector<8x4096xbf16>
    %c0_1 = arith.constant 0 : index
    %c0_2 = arith.constant 0 : index
    %4 = vector.load %arg1[%c0_1, %c0_2] : memref<4096x512xbf16, #tpu.memory_space<vmem>>, vector<4096x512xbf16>
    %cst = arith.constant dense<0.000000e+00> : vector<8x512xf32>
    %5 = tpu.matmul %3, %4, %cst {dimension_numbers = #tpu.dot_dimension_numbers<[1], [0], [0], [1], [0, 0, 1, 1], [], []>} : vector<8x4096xbf16>, vector<4096x512xbf16>, vector<8x512xf32> -> vector<8x512xf32>
    %c0_3 = arith.constant 0 : index
    %c0_4 = arith.constant 0 : index
    %6 = vector.load %arg2[%c0_3, %c0_4] : memref<1x512xf32, #tpu.memory_space<vmem>>, vector<1x512xf32>
    %7 = vector.broadcast %6 : vector<1x512xf32> to vector<8x512xf32>
    %8 = arith.addf %5, %7 : vector<8x512xf32>
    %cst_5 = arith.constant 2.000000e-01 : f32
    %9 = vector.broadcast %cst_5 : f32 to vector<8x512xf32>
    %10 = arith.mulf %9, %8 : vector<8x512xf32>
    %11 = arith.maximumf %8, %10 : vector<8x512xf32>
    %12 = arith.truncf %11 : vector<8x512xf32> to vector<8x512xbf16>
    %c0_6 = arith.constant 0 : index
    %c0_7 = arith.constant 0 : index
    %13 = vector.load %arg3[%c0_6, %c0_7] : memref<512x512xbf16, #tpu.memory_space<vmem>>, vector<512x512xbf16>
    %cst_8 = arith.constant dense<0.000000e+00> : vector<8x512xf32>
    %14 = tpu.matmul %12, %13, %cst_8 {dimension_numbers = #tpu.dot_dimension_numbers<[1], [0], [0], [1], [0, 0, 1, 1], [], []>} : vector<8x512xbf16>, vector<512x512xbf16>, vector<8x512xf32> -> vector<8x512xf32>
    %c0_9 = arith.constant 0 : index
    %c0_10 = arith.constant 0 : index
    %15 = vector.load %arg4[%c0_9, %c0_10] : memref<1x512xf32, #tpu.memory_space<vmem>>, vector<1x512xf32>
    %16 = vector.broadcast %15 : vector<1x512xf32> to vector<8x512xf32>
    %17 = arith.addf %14, %16 : vector<8x512xf32>
    %cst_11 = arith.constant 2.000000e-01 : f32
    %18 = vector.broadcast %cst_11 : f32 to vector<8x512xf32>
    %19 = arith.mulf %18, %17 : vector<8x512xf32>
    %20 = arith.maximumf %17, %19 : vector<8x512xf32>
    %21 = arith.truncf %20 : vector<8x512xf32> to vector<8x512xbf16>
    %c0_12 = arith.constant 0 : index
    %c0_13 = arith.constant 0 : index
    %22 = vector.load %arg5[%c0_12, %c0_13] : memref<512x128xbf16, #tpu.memory_space<vmem>>, vector<512x128xbf16>
    %cst_14 = arith.constant dense<0.000000e+00> : vector<8x128xf32>
    %23 = tpu.matmul %21, %22, %cst_14 {dimension_numbers = #tpu.dot_dimension_numbers<[1], [0], [0], [1], [0, 0, 1, 1], [], []>} : vector<8x512xbf16>, vector<512x128xbf16>, vector<8x128xf32> -> vector<8x128xf32>
    %c0_15 = arith.constant 0 : index
    %c0_16 = arith.constant 0 : index
    %24 = vector.load %arg6[%c0_15, %c0_16] : memref<1x128xf32, #tpu.memory_space<vmem>>, vector<1x128xf32>
    %25 = vector.broadcast %24 : vector<1x128xf32> to vector<8x128xf32>
    %26 = arith.addf %23, %25 : vector<8x128xf32>
    %c0_17 = arith.constant 0 : index
    %c0_18 = arith.constant 0 : index
    %27 = vector.load %arg7[%c0_17, %c0_18] : memref<8x128xf32, #tpu.memory_space<vmem>>, vector<8x128xf32>
    tpu.vector_store %arg7[%c0_17, %c0_18], %26 {strides = array<i32>} : memref<8x128xf32, #tpu.memory_space<vmem>>, vector<8x128xf32>,
    return
  }
}

</mosaic_0001>

<bundles_post_ra>
// kernel: tpu_custom_call.1
= control target key start
LH: loop header
LB: loop body
LE: loop exit
PB: predicated region body
PF: predicated region fallthrough
CT: control target
= control target key end

     0   :  { %12 = vsyncpa [#allocation3], 0  ;;  %s15989_s0 = inlined_call_operand.hbm [shape: f32[1,4096], index: 0, kind: input, shape index: {}]   ;;  %s15990_s1 = inlined_call_operand.hbm [shape: bf16[4096,512], index: 1, kind: input, shape index: {}]   ;;  %s15991_s2 = inlined_call_operand.hbm [shape: f32[1,512], index: 2, kind: input, shape index: {}]   ;;  %s15992_s3 = inlined_call_operand.hbm [shape: bf16[512,512], index: 3, kind: input, shape index: {}]   ;;  %s15993_s4 = inlined_call_operand.hbm [shape: f32[1,512], index: 4, kind: input, shape index: {}]   ;;  %s15994_s5 = inlined_call_operand.hbm [shape: bf16[512,128], index: 5, kind: input, shape index: {}]   ;;  %s15995_s6 = inlined_call_operand.hbm [shape: f32[1,128], index: 6, kind: input, shape index: {}]   ;;  %s15996_s7 = inlined_call_operand.hbm [shape: f32[8,128], index: 7, kind: output, shape index: {}]  }
   0x1   :  { %13 = vsyncpa [#allocation6], 0 }
   0x2   :  { %14 = vsyncpa [#allocation9], 0 }
   0x3   :  { %15 = vsyncpa [#allocation12], 0  ;;  %s32_s26 = sshll.u32 %s15990_s1, 4  ;;  %s33_s26 = int_to_ptr.hbm [resolvable:$true] %s32_s26 }
   0x4   :  { %16 = vsyncpa [#allocation4], 0  ;;  %s15531_s27 = smov [#allocation5]   ;;  %s56_s8 = sshll.u32 %s15992_s3, 4  ;;  %s57_s8 = int_to_ptr.hbm [resolvable:$true] %s56_s8 }
   0x5   :  { %s34_s28 = sshll.u32 %s15531_s27, 4  ;;  %s15532_s9 = smov 256   ;;  %s35_s28 = int_to_ptr.vmem [resolvable:$true] %s34_s28 }
   0x6   :  { %s15533_s10 = smov 16   ;;  %s15534_s11 = smov [#allocation8]  }
   0x7   :  { %40 = dma.hbm_to_vmem [thread:$0]  %s33_s26, 131072, %s35_s28, [#allocation6], %s15532_s9, %s15532_s9, %s15533_s10  }
   0x8   :  { %s58_s12 = sshll.u32 %s15534_s11, 4  ;;  %s80_s15 = sshll.u32 %s15994_s5, 4  ;;  %s59_s12 = int_to_ptr.vmem [resolvable:$true] %s58_s12  ;;  %s81_s15 = int_to_ptr.hbm [resolvable:$true] %s80_s15 }
   0x9   :  { %64 = dma.hbm_to_vmem [thread:$0]  %s57_s8, 16384, %s59_s12, [#allocation9], %s15532_s9, %s15532_s9, %s15533_s10  }
   0xa   :  { %s15535_s1 = smov [#allocation11]   ;;  %s22_s3 = sshll.u32 %s15989_s0, 4  ;;  %s23_s3 = int_to_ptr.hbm [resolvable:$true] %s22_s3 }
   0xb   :  { %s82_s16 = sshll.u32 %s15535_s1, 4  ;;  %s15536_s19 = smov 64   ;;  %s83_s16 = int_to_ptr.vmem [resolvable:$true] %s82_s16 }
   0xc   :  { %s15537_s20 = smov 4   ;;  %s15538_s21 = smov [#allocation2]  }
   0xd   :  { %88 = dma.hbm_to_vmem [thread:$0]  %s81_s15, 4096, %s83_s16, [#allocation12], %s15536_s19, %s15536_s19, %s15537_s20  }
   0xe   :  { %s24_s22 = sshll.u32 %s15538_s21, 4  ;;  %s46_s5 = sshll.u32 %s15991_s2, 4  ;;  %s25_s22 = int_to_ptr.vmem [resolvable:$true] %s24_s22  ;;  %s47_s5 = int_to_ptr.hbm [resolvable:$true] %s46_s5 }
   0xf   :  { %27 = dma.hbm_to_vmem [thread:$0]  %s23_s3, 512, %s25_s22, [#allocation3]  }
  0x10   :  { %s70_s27 = sshll.u32 %s15993_s4, 4  ;;  %s15539_s28 = smov [#allocation7]   ;;  %s71_s27 = int_to_ptr.hbm [resolvable:$true] %s70_s27 }
  0x11   :  { %s48_s29 = sshll.u32 %s15539_s28, 4  ;;  %s15540_s0 = smov [#allocation10]   ;;  %s49_s29 = int_to_ptr.vmem [resolvable:$true] %s48_s29 }
  0x12   :  { %51 = dma.hbm_to_vmem [thread:$0]  %s47_s5, 64, %s49_s29, [#allocation6]  }
  0x13   :  { %s72_s30 = sshll.u32 %s15540_s0, 4  ;;  %s94_s10 = sshll.u32 %s15995_s6, 4  ;;  %s73_s30 = int_to_ptr.vmem [resolvable:$true] %s72_s30  ;;  %s95_s10 = int_to_ptr.hbm [resolvable:$true] %s94_s10 }
  0x14   :  { %75 = dma.hbm_to_vmem [thread:$0]  %s71_s27, 64, %s73_s30, [#allocation9]  }
  0x15   :  { %s15541_s2 = smov [#allocation13]  }
  0x16   :  { %s96_s11 = sshll.u32 %s15541_s2, 4  ;;  %s97_s11 = int_to_ptr.vmem [resolvable:$true] %s96_s11 }
  0x17   :  { %99 = dma.hbm_to_vmem [thread:$0]  %s95_s10, 16, %s97_s11, [#allocation12]  }
  0x18   :  { %15521 = dma.done.wait [#allocation3], 512  }
  0x19   :  { %15522 = vsyncadd [#allocation3], 4294966784 }
  0x1a   :  { %15523 = dma.done.wait [#allocation6], 131136  }
  0x1b   :  { %15524 = vsyncadd [#allocation6], 4294836160 }
  0x1c   :  { %15525 = dma.done.wait [#allocation9], 16448  }
  0x1d   :  { %15526 = vsyncadd [#allocation9], 4294950848 }
  0x1e   :  { %15527 = dma.done.wait [#allocation12], 4112  }
  0x1f   :  { %15528 = vsyncadd [#allocation12], 4294963184  ;;  %v9507_v0 = vld [vmem:[#allocation5 + $0xe0] sm:$0xf]  ;;  %v14159_v1 = vld [vmem:[#allocation5 + $0xec] sm:$0xf0] }
  0x20   :  { %v9635_v2 = vld [vmem:[#allocation5 + $0x1e0] sm:$0xf]  ;;  %v9508_v3 = vor.u32 %v14159_v1, %v9507_v0  ;;  %v14191_v4 = vld [vmem:[#allocation5 + $0x1ec] sm:$0xf0]  ;;  %s15542_s4 = smov [#allocation14]   ;;  %s9380_s14 = sshll.u32 %s15996_s7, 4  ;;  %s9381_s14 = int_to_ptr.hbm [resolvable:$true] %s9380_s14 }
  0x21   :  { %v9763_v5 = vld [vmem:[#allocation5 + $0x2e0] sm:$0xf]  ;;  %v14223_v6 = vld [vmem:[#allocation5 + $0x2ec] sm:$0xf0]  ;;  %v9636_v7 = vor.u32 %v14191_v4, %v9635_v2  ;;  %s9378_s6 = sshll.u32 %s15542_s4, 4  ;;  %s9379_s6 = int_to_ptr.vmem [resolvable:$true] %s9378_s6 }
  0x22   :  { %v9764_v8 = vor.u32 %v14223_v6, %v9763_v5  ;;  %v9891_v9 = vld [vmem:[#allocation5 + $0x3e0] sm:$0xf]  ;;  %v14255_v10 = vld [vmem:[#allocation5 + $0x3ec] sm:$0xf0]  ;;  %6386 = vmatpush.bf16.msra.mxu0 %v9508_v3 }
  0x23   :  { %v9491_v11 = vld [vmem:[#allocation5 + $0xc0] sm:$0xf]  ;;  %v9892_v12 = vor.u32 %v14255_v10, %v9891_v9  ;;  %v14155_v13 = vld [vmem:[#allocation5 + $0xcc] sm:$0xf0]  ;;  %6399 = vmatpush.bf16.msra.mxu1 %v9636_v7 }
  0x24   :  { %v9619_v14 = vld [vmem:[#allocation5 + $0x1c0] sm:$0xf]  ;;  %v14187_v15 = vld [vmem:[#allocation5 + $0x1cc] sm:$0xf0]  ;;  %6412 = vmatpush.bf16.msra.mxu2 %v9764_v8  ;;  %v9492_v16 = vor.u32 %v14155_v13, %v9491_v11 }
  0x25   :  { %v9620_v17 = vor.u32 %v14187_v15, %v9619_v14  ;;  %v9747_v18 = vld [vmem:[#allocation5 + $0x2c0] sm:$0xf]  ;;  %v14219_v19 = vld [vmem:[#allocation5 + $0x2cc] sm:$0xf0]  ;;  %6425 = vmatpush.bf16.msra.mxu3 %v9892_v12 }
  0x26   :  { %v9875_v20 = vld [vmem:[#allocation5 + $0x3c0] sm:$0xf]  ;;  %v9748_v21 = vor.u32 %v14219_v19, %v9747_v18  ;;  %v14251_v22 = vld [vmem:[#allocation5 + $0x3cc] sm:$0xf0]  ;;  %6387 = vmatpush.bf16.msra.mxu0 %v9492_v16 }
  0x27   :  { %v9475_v23 = vld [vmem:[#allocation5 + $0xa0] sm:$0xf]  ;;  %v14151_v24 = vld [vmem:[#allocation5 + $0xac] sm:$0xf0]  ;;  %v9876_v25 = vor.u32 %v14251_v22, %v9875_v20  ;;  %6400 = vmatpush.bf16.msra.mxu1 %v9620_v17 }
  0x28   :  { %v9603_v26 = vld [vmem:[#allocation5 + $0x1a0] sm:$0xf]  ;;  %v14183_v27 = vld [vmem:[#allocation5 + $0x1ac] sm:$0xf0]  ;;  %v9476_v29 = vor.u32 %v14151_v24, %v9475_v23  ;;  %6413 = vmatpush.bf16.msra.mxu2 %v9748_v21 }
  0x29   :  { %v9731_v28 = vld [vmem:[#allocation5 + $0x2a0] sm:$0xf]  ;;  %v14215_v30 = vld [vmem:[#allocation5 + $0x2ac] sm:$0xf0]  ;;  %v9604_v33 = vor.u32 %v14183_v27, %v9603_v26  ;;  %6426 = vmatpush.bf16.msra.mxu3 %v9876_v25 }
  0x2a   :  { %v9859_v31 = vld [vmem:[#allocation5 + $0x3a0] sm:$0xf]  ;;  %v14247_v32 = vld [vmem:[#allocation5 + $0x3ac] sm:$0xf0]  ;;  %v9732_v34 = vor.u32 %v14215_v30, %v9731_v28  ;;  %6388 = vmatpush.bf16.msra.mxu0 %v9476_v29 }
  0x2b   :  { %v9459_v35 = vld [vmem:[#allocation5 + $0x80] sm:$0xf]  ;;  %v14147_v36 = vld [vmem:[#allocation5 + $0x8c] sm:$0xf0]  ;;  %v9860_v38 = vor.u32 %v14247_v32, %v9859_v31  ;;  %6401 = vmatpush.bf16.msra.mxu1 %v9604_v33 }
  0x2c   :  { %v9587_v37 = vld [vmem:[#allocation5 + $0x180] sm:$0xf]  ;;  %v14179_v39 = vld [vmem:[#allocation5 + $0x18c] sm:$0xf0]  ;;  %v9460_v44 = vor.u32 %v14147_v36, %v9459_v35  ;;  %6414 = vmatpush.bf16.msra.mxu2 %v9732_v34 }
  0x2d   :  { %v9715_v40 = vld [vmem:[#allocation5 + $0x280] sm:$0xf]  ;;  %v14211_v41 = vld [vmem:[#allocation5 + $0x28c] sm:$0xf0]  ;;  %v9588_v45 = vor.u32 %v14179_v39, %v9587_v37  ;;  %6427 = vmatpush.bf16.msra.mxu3 %v9860_v38 }
  0x2e   :  { %v9843_v42 = vld [vmem:[#allocation5 + $0x380] sm:$0xf]  ;;  %v14243_v43 = vld [vmem:[#allocation5 + $0x38c] sm:$0xf0]  ;;  %v9716_v46 = vor.u32 %v14211_v41, %v9715_v40  ;;  %6389 = vmatpush.bf16.msra.mxu0 %v9460_v44 }
  0x2f   :  { %v9443_v47 = vld [vmem:[#allocation5 + $0x60] sm:$0xf]  ;;  %v14143_v48 = vld [vmem:[#allocation5 + $0x6c] sm:$0xf0]  ;;  %v9844_v50 = vor.u32 %v14243_v43, %v9843_v42  ;;  %6402 = vmatpush.bf16.msra.mxu1 %v9588_v45 }
  0x30   :  { %v9571_v49 = vld [vmem:[#allocation5 + $0x160] sm:$0xf]  ;;  %v14175_v51 = vld [vmem:[#allocation5 + $0x16c] sm:$0xf0]  ;;  %v9444_v56 = vor.u32 %v14143_v48, %v9443_v47  ;;  %6415 = vmatpush.bf16.msra.mxu2 %v9716_v46 }
  0x31   :  { %v9699_v52 = vld [vmem:[#allocation5 + $0x260] sm:$0xf]  ;;  %v14207_v53 = vld [vmem:[#allocation5 + $0x26c] sm:$0xf0]  ;;  %v9572_v57 = vor.u32 %v14175_v51, %v9571_v49  ;;  %6428 = vmatpush.bf16.msra.mxu3 %v9844_v50 }
  0x32   :  { %v9827_v54 = vld [vmem:[#allocation5 + $0x360] sm:$0xf]  ;;  %v14239_v55 = vld [vmem:[#allocation5 + $0x36c] sm:$0xf0]  ;;  %v9700_v58 = vor.u32 %v14207_v53, %v9699_v52  ;;  %6390 = vmatpush.bf16.msra.mxu0 %v9444_v56 }
  0x33   :  { %v9427_v59 = vld [vmem:[#allocation5 + $0x40] sm:$0xf]  ;;  %v14139_v60 = vld [vmem:[#allocation5 + $0x4c] sm:$0xf0]  ;;  %v9828_v62 = vor.u32 %v14239_v55, %v9827_v54  ;;  %6403 = vmatpush.bf16.msra.mxu1 %v9572_v57 }
  0x34   :  { %v9555_v61 = vld [vmem:[#allocation5 + $0x140] sm:$0xf]  ;;  %v14171_v63 = vld [vmem:[#allocation5 + $0x14c] sm:$0xf0]  ;;  %v9428_v4 = vor.u32 %v14139_v60, %v9427_v59  ;;  %6416 = vmatpush.bf16.msra.mxu2 %v9700_v58 }
  0x35   :  { %v9683_v0 = vld [vmem:[#allocation5 + $0x240] sm:$0xf]  ;;  %v14203_v1 = vld [vmem:[#allocation5 + $0x24c] sm:$0xf0]  ;;  %v9556_v5 = vor.u32 %v14171_v63, %v9555_v61  ;;  %6429 = vmatpush.bf16.msra.mxu3 %v9828_v62 }
  0x36   :  { %v9811_v2 = vld [vmem:[#allocation5 + $0x340] sm:$0xf]  ;;  %v14235_v3 = vld [vmem:[#allocation5 + $0x34c] sm:$0xf0]  ;;  %v9684_v6 = vor.u32 %v14203_v1, %v9683_v0  ;;  %6391 = vmatpush.bf16.msra.mxu0 %v9428_v4 }
  0x37   :  { %v9411_v7 = vld [vmem:[#allocation5 + $0x20] sm:$0xf]  ;;  %v14135_v8 = vld [vmem:[#allocation5 + $0x2c] sm:$0xf0]  ;;  %v9812_v10 = vor.u32 %v14235_v3, %v9811_v2  ;;  %6404 = vmatpush.bf16.msra.mxu1 %v9556_v5 }
  0x38   :  { %v9539_v9 = vld [vmem:[#allocation5 + $0x120] sm:$0xf]  ;;  %v14167_v11 = vld [vmem:[#allocation5 + $0x12c] sm:$0xf0]  ;;  %v9412_v16 = vor.u32 %v14135_v8, %v9411_v7  ;;  %6417 = vmatpush.bf16.msra.mxu2 %v9684_v6 }
  0x39   :  { %v9667_v12 = vld [vmem:[#allocation5 + $0x220] sm:$0xf]  ;;  %v14199_v13 = vld [vmem:[#allocation5 + $0x22c] sm:$0xf0]  ;;  %v9540_v19 = vor.u32 %v14167_v11, %v9539_v9  ;;  %6430 = vmatpush.bf16.msra.mxu3 %v9812_v10 }
  0x3a   :  { %v9795_v14 = vld [vmem:[#allocation5 + $0x320] sm:$0xf]  ;;  %v14231_v15 = vld [vmem:[#allocation5 + $0x32c] sm:$0xf0]  ;;  %v9668_v20 = vor.u32 %v14199_v13, %v9667_v12  ;;  %6392 = vmatpush.bf16.msra.mxu0 %v9412_v16 }
  0x3b   :  { %v9395_v17 = vld [vmem:[#allocation5] sm:$0xf]  ;;  %v14131_v18 = vld [vmem:[#allocation5 + $0xc] sm:$0xf0]  ;;  %v9796_v24 = vor.u32 %v14231_v15, %v9795_v14  ;;  %6405 = vmatpush.bf16.msra.mxu1 %v9540_v19 }
  0x3c   :  { %v9523_v21 = vld [vmem:[#allocation5 + $0x100] sm:$0xf]  ;;  %v14163_v22 = vld [vmem:[#allocation5 + $0x10c] sm:$0xf0]  ;;  %v9396_v31 = vor.u32 %v14131_v18, %v9395_v17  ;;  %6418 = vmatpush.bf16.msra.mxu2 %v9668_v20 }
  0x3d   :  { %v9651_v23 = vld [vmem:[#allocation5 + $0x200] sm:$0xf]  ;;  %v14195_v25 = vld [vmem:[#allocation5 + $0x20c] sm:$0xf0]  ;;  %v9524_v35 = vor.u32 %v14163_v22, %v9523_v21  ;;  %6431 = vmatpush.bf16.msra.mxu3 %v9796_v24 }
  0x3e   :  { %v9779_v26 = vld [vmem:[#allocation5 + $0x300] sm:$0xf]  ;;  %v14227_v27 = vld [vmem:[#allocation5 + $0x30c] sm:$0xf0]  ;;  %v9652_v36 = vor.u32 %v14195_v25, %v9651_v23  ;;  %6393 = vmatpush.bf16.msra.mxu0 %v9396_v31 }
  0x3f   :  { %v10019_v28 = vld [vmem:[#allocation5 + $0x4e0] sm:$0xf]  ;;  %v14287_v29 = vld [vmem:[#allocation5 + $0x4ec] sm:$0xf0]  ;;  %v9780_v39 = vor.u32 %v14227_v27, %v9779_v26  ;;  %6406 = vmatpush.bf16.msra.mxu1 %v9524_v35 }
  0x40   :  { %v10147_v30 = vld [vmem:[#allocation5 + $0x5e0] sm:$0xf]  ;;  %v14319_v32 = vld [vmem:[#allocation5 + $0x5ec] sm:$0xf0]  ;;  %v10020_v40 = vor.u32 %v14287_v29, %v10019_v28  ;;  %6419 = vmatpush.bf16.msra.mxu2 %v9652_v36 }
  0x41   :  { %v10275_v33 = vld [vmem:[#allocation5 + $0x6e0] sm:$0xf]  ;;  %v14351_v34 = vld [vmem:[#allocation5 + $0x6ec] sm:$0xf0]  ;;  %v10148_v41 = vor.u32 %v14319_v32, %v10147_v30  ;;  %6432 = vmatpush.bf16.msra.mxu3 %v9780_v39 }
  0x42   :  { %v10403_v37 = vld [vmem:[#allocation5 + $0x7e0] sm:$0xf]  ;;  %v14383_v38 = vld [vmem:[#allocation5 + $0x7ec] sm:$0xf0]  ;;  %v10276_v42 = vor.u32 %v14351_v34, %v10275_v33  ;;  %6438 = vmatpush.bf16.msrb.mxu0 %v10020_v40 }
  0x43   :  { %v10003_v43 = vld [vmem:[#allocation5 + $0x4c0] sm:$0xf]  ;;  %v14283_v44 = vld [vmem:[#allocation5 + $0x4cc] sm:$0xf0]  ;;  %v10404_v46 = vor.u32 %v14383_v38, %v10403_v37  ;;  %6451 = vmatpush.bf16.msrb.mxu1 %v10148_v41 }
  0x44   :  { %v10131_v45 = vld [vmem:[#allocation5 + $0x5c0] sm:$0xf]  ;;  %v14315_v47 = vld [vmem:[#allocation5 + $0x5cc] sm:$0xf0]  ;;  %v10004_v52 = vor.u32 %v14283_v44, %v10003_v43  ;;  %6464 = vmatpush.bf16.msrb.mxu2 %v10276_v42 }
  0x45   :  { %v10259_v48 = vld [vmem:[#allocation5 + $0x6c0] sm:$0xf]  ;;  %v14347_v49 = vld [vmem:[#allocation5 + $0x6cc] sm:$0xf0]  ;;  %v10132_v54 = vor.u32 %v14315_v47, %v10131_v45  ;;  %6477 = vmatpush.bf16.msrb.mxu3 %v10404_v46 }
  0x46   :  { %v10387_v50 = vld [vmem:[#allocation5 + $0x7c0] sm:$0xf]  ;;  %v14379_v51 = vld [vmem:[#allocation5 + $0x7cc] sm:$0xf0]  ;;  %v10260_v55 = vor.u32 %v14347_v49, %v10259_v48  ;;  %6439 = vmatpush.bf16.msrb.mxu0 %v10004_v52 }
  0x47   :  { %v9987_v53 = vld [vmem:[#allocation5 + $0x4a0] sm:$0xf]  ;;  %v14279_v56 = vld [vmem:[#allocation5 + $0x4ac] sm:$0xf0]  ;;  %v10388_v59 = vor.u32 %v14379_v51, %v10387_v50  ;;  %6452 = vmatpush.bf16.msrb.mxu1 %v10132_v54 }
  0x48   :  { %v10115_v57 = vld [vmem:[#allocation5 + $0x5a0] sm:$0xf]  ;;  %v14311_v58 = vld [vmem:[#allocation5 + $0x5ac] sm:$0xf0]  ;;  %v9988_v0 = vor.u32 %v14279_v56, %v9987_v53  ;;  %6465 = vmatpush.bf16.msrb.mxu2 %v10260_v55 }
  0x49   :  { %v10243_v60 = vld [vmem:[#allocation5 + $0x6a0] sm:$0xf]  ;;  %v14343_v61 = vld [vmem:[#allocation5 + $0x6ac] sm:$0xf0]  ;;  %v10116_v1 = vor.u32 %v14311_v58, %v10115_v57  ;;  %6478 = vmatpush.bf16.msrb.mxu3 %v10388_v59 }
  0x4a   :  { %v10371_v62 = vld [vmem:[#allocation5 + $0x7a0] sm:$0xf]  ;;  %v14375_v63 = vld [vmem:[#allocation5 + $0x7ac] sm:$0xf0]  ;;  %v10244_v5 = vor.u32 %v14343_v61, %v10243_v60  ;;  %6440 = vmatpush.bf16.msrb.mxu0 %v9988_v0 }
  0x4b   :  { %v9971_v2 = vld [vmem:[#allocation5 + $0x480] sm:$0xf]  ;;  %v14275_v3 = vld [vmem:[#allocation5 + $0x48c] sm:$0xf0]  ;;  %v10372_v10 = vor.u32 %v14375_v63, %v10371_v62  ;;  %6453 = vmatpush.bf16.msrb.mxu1 %v10116_v1 }
  0x4c   :  { %v15604_v4 = vld [vmem:[#allocation2] sm:$0xff]  ;;  %v14307_v11 = vld [vmem:[#allocation5 + $0x58c] sm:$0xf0]  ;;  %v9972_v19 = vor.u32 %v14275_v3, %v9971_v2  ;;  %6466 = vmatpush.bf16.msrb.mxu2 %v10244_v5 }
  0x4d   :  { %v10099_v6 = vld [vmem:[#allocation5 + $0x580] sm:$0xf]  ;;  %v138_v7 = vperm.slane %v15604_v4, 2  ;;  %v136_v8 = vperm.slane %v15604_v4, 0  ;;  %v139_v9 = vperm.slane %v15604_v4, 3  ;;  %v137_v20 = vperm.slane %v15604_v4, 1  ;;  %6479 = vmatpush.bf16.msrb.mxu3 %v10372_v10 }
  0x4e   :  { %v10227_v12 = vld [vmem:[#allocation5 + $0x680] sm:$0xf]  ;;  %v14339_v13 = vld [vmem:[#allocation5 + $0x68c] sm:$0xf0]  ;;  %v10100_v21 = vor.u32 %v14307_v11, %v10099_v6  ;;  %6441 = vmatpush.bf16.msrb.mxu0 %v9972_v19  ;;  %v142_v60 = vperm.slane %v15604_v4, 6 }
  0x4f   :  { %v10355_v14 = vld [vmem:[#allocation5 + $0x780] sm:$0xf]  ;;  %v14371_v15 = vld [vmem:[#allocation5 + $0x78c] sm:$0xf0]  ;;  %v15609_v16 = vpack.c.bf16 %v138_v7, %v138_v7  ;;  %v15611_v17 = vpack.c.bf16 %v136_v8, %v136_v8  ;;  %v15613_v18 = vpack.c.bf16 %v139_v9, %v139_v9  ;;  %v10228_v22 = vor.u32 %v14339_v13, %v10227_v12 }
  0x50   :  { %v9955_v23 = vld [vmem:[#allocation5 + $0x460] sm:$0xf]  ;;  %v14271_v24 = vld [vmem:[#allocation5 + $0x46c] sm:$0xf0]  ;;  %v10356_v26 = vor.u32 %v14371_v15, %v10355_v14  ;;  %v15617_v30 = vpack.c.bf16 %v137_v20, %v137_v20  ;;  %6454 = vmatpush.bf16.msrb.mxu1 %v10100_v21  ;;  %v140_v21 = vperm.slane %v15604_v4, 4 }
  0x51   :  { %v10083_v25 = vld [vmem:[#allocation5 + $0x560] sm:$0xf]  ;;  %v14303_v27 = vld [vmem:[#allocation5 + $0x56c] sm:$0xf0]  ;;  %6420 = vmatmul.bf16.vlgmr.msra.gmra.mxu2 %v15609_v16  ;;  %6394 = vmatmul.bf16.vlgmr.msra.gmra.mxu0 %v15611_v17  ;;  %v9956_v33 = vor.u32 %v14271_v24, %v9955_v23 }
  0x52   :  { %v10211_v28 = vld [vmem:[#allocation5 + $0x660] sm:$0xf]  ;;  %v14335_v29 = vld [vmem:[#allocation5 + $0x66c] sm:$0xf0]  ;;  %6433 = vmatmul.bf16.vlgmr.msra.gmra.mxu3 %v15613_v18  ;;  %6407 = vmatmul.bf16.vlgmr.msra.gmra.mxu1 %v15617_v30  ;;  %v10084_v34 = vor.u32 %v14303_v27, %v10083_v25  ;;  %v141_v25 = vperm.slane %v15604_v4, 5 }
  0x53   :  { %v10339_v31 = vld [vmem:[#allocation5 + $0x760] sm:$0xf]  ;;  %v14367_v32 = vld [vmem:[#allocation5 + $0x76c] sm:$0xf0]  ;;  %6467 = vmatpush.bf16.msrb.mxu2 %v10228_v22  ;;  %v10212_v35 = vor.u32 %v14335_v29, %v10211_v28  ;;  %6480 = vmatpush.bf16.msrb.mxu3 %v10356_v26  ;;  %v143_v22 = vperm.slane %v15604_v4, 7 }
  0x54   :  { %v9939_v36 = vld [vmem:[#allocation5 + $0x440] sm:$0xf]  ;;  %v14267_v37 = vld [vmem:[#allocation5 + $0x44c] sm:$0xf0]  ;;  %v10340_v39 = vor.u32 %v14367_v32, %v10339_v31  ;;  %6442 = vmatpush.bf16.msrb.mxu0 %v9956_v33  ;;  %6455 = vmatpush.bf16.msrb.mxu1 %v10084_v34 }
  0x55   :  { %v10067_v38 = vld [vmem:[#allocation5 + $0x540] sm:$0xf]  ;;  %v14299_v40 = vld [vmem:[#allocation5 + $0x54c] sm:$0xf0]  ;;  %v9940_v45 = vor.u32 %v14267_v37, %v9939_v36  ;;  %v15626_v36 = vpack.c.bf16 %v142_v60, %v142_v60 }
  0x56   :  { %v10195_v41 = vld [vmem:[#allocation5 + $0x640] sm:$0xf]  ;;  %v14331_v42 = vld [vmem:[#allocation5 + $0x64c] sm:$0xf0]  ;;  %v10068_v46 = vor.u32 %v14299_v40, %v10067_v38  ;;  %v15630_v40 = vpack.c.bf16 %v143_v22, %v143_v22 }
  0x57   :  { %v10323_v43 = vld [vmem:[#allocation5 + $0x740] sm:$0xf]  ;;  %v14363_v44 = vld [vmem:[#allocation5 + $0x74c] sm:$0xf0]  ;;  %6468 = vmatpush.bf16.msrb.mxu2 %v10212_v35  ;;  %v10196_v47 = vor.u32 %v14331_v42, %v10195_v41  ;;  %6481 = vmatpush.bf16.msrb.mxu3 %v10340_v39  ;;  %v15628_v39 = vpack.c.bf16 %v140_v21, %v140_v21  ;;  %v15632_v41 = vpack.c.bf16 %v141_v25, %v141_v25 }
  0x58   :  { %v9923_v48 = vld [vmem:[#allocation5 + $0x420] sm:$0xf]  ;;  %v14263_v49 = vld [vmem:[#allocation5 + $0x42c] sm:$0xf0]  ;;  %v10324_v51 = vor.u32 %v14363_v44, %v10323_v43  ;;  %6443 = vmatpush.bf16.msrb.mxu0 %v9940_v45  ;;  %6456 = vmatpush.bf16.msrb.mxu1 %v10068_v46 }
  0x59   :  { %v10051_v50 = vld [vmem:[#allocation5 + $0x520] sm:$0xf]  ;;  %v14295_v52 = vld [vmem:[#allocation5 + $0x52c] sm:$0xf0]  ;;  %v9924_v57 = vor.u32 %v14263_v49, %v9923_v48 }
  0x5a   :  { %v10179_v53 = vld [vmem:[#allocation5 + $0x620] sm:$0xf]  ;;  %v14327_v54 = vld [vmem:[#allocation5 + $0x62c] sm:$0xf0]  ;;  %v10052_v61 = vor.u32 %v14295_v52, %v10051_v50 }
  0x5b   :  { %v10307_v55 = vld [vmem:[#allocation5 + $0x720] sm:$0xf]  ;;  %v14359_v56 = vld [vmem:[#allocation5 + $0x72c] sm:$0xf0]  ;;  %6469 = vmatpush.bf16.msrb.mxu2 %v10196_v47  ;;  %v10180_v62 = vor.u32 %v14327_v54, %v10179_v53  ;;  %6482 = vmatpush.bf16.msrb.mxu3 %v10324_v51 }
  0x5c   :  { %v9907_v58 = vld [vmem:[#allocation5 + $0x400] sm:$0xf]  ;;  %v14259_v59 = vld [vmem:[#allocation5 + $0x40c] sm:$0xf0]  ;;  %v10308_v2 = vor.u32 %v14359_v56, %v10307_v55  ;;  %6444 = vmatpush.bf16.msrb.mxu0 %v9924_v57  ;;  %6457 = vmatpush.bf16.msrb.mxu1 %v10052_v61 }
  0x5d   :  { %v10035_v63 = vld [vmem:[#allocation5 + $0x500] sm:$0xf]  ;;  %v14291_v0 = vld [vmem:[#allocation5 + $0x50c] sm:$0xf0]  ;;  %v9908_v10 = vor.u32 %v14259_v59, %v9907_v58 }
  0x5e   :  { %v10163_v1 = vld [vmem:[#allocation5 + $0x600] sm:$0xf]  ;;  %v14323_v3 = vld [vmem:[#allocation5 + $0x60c] sm:$0xf0]  ;;  %v10036_v14 = vor.u32 %v14291_v0, %v10035_v63 }
  0x5f   :  { %v10291_v5 = vld [vmem:[#allocation5 + $0x700] sm:$0xf]  ;;  %v14355_v6 = vld [vmem:[#allocation5 + $0x70c] sm:$0xf0]  ;;  %6470 = vmatpush.bf16.msrb.mxu2 %v10180_v62  ;;  %v10164_v15 = vor.u32 %v14323_v3, %v10163_v1  ;;  %6483 = vmatpush.bf16.msrb.mxu3 %v10308_v2 }
  0x60   :  { %v10531_v7 = vld [vmem:[#allocation5 + $0x8e0] sm:$0xf]  ;;  %v14415_v8 = vld [vmem:[#allocation5 + $0x8ec] sm:$0xf0]  ;;  %v10292_v23 = vor.u32 %v14355_v6, %v10291_v5  ;;  %6445 = vmatpush.bf16.msrb.mxu0 %v9908_v10  ;;  %6458 = vmatpush.bf16.msrb.mxu1 %v10036_v14 }
  0x61   :  { %v10659_v9 = vld [vmem:[#allocation5 + $0x9e0] sm:$0xf]  ;;  %v14447_v11 = vld [vmem:[#allocation5 + $0x9ec] sm:$0xf0]  ;;  %v10532_v24 = vor.u32 %v14415_v8, %v10531_v7 }
  0x62   :  { %v10787_v12 = vld [vmem:[#allocation5 + $0xae0] sm:$0xf]  ;;  %v14479_v13 = vld [vmem:[#allocation5 + $0xaec] sm:$0xf0]  ;;  %v10660_v26 = vor.u32 %v14447_v11, %v10659_v9 }
  0x63   :  { %v10915_v19 = vld [vmem:[#allocation5 + $0xbe0] sm:$0xf]  ;;  %v14511_v20 = vld [vmem:[#allocation5 + $0xbec] sm:$0xf0]  ;;  %v10788_v27 = vor.u32 %v14479_v13, %v10787_v12  ;;  %6471 = vmatpush.bf16.msrb.mxu2 %v10164_v15  ;;  %6484 = vmatpush.bf16.msrb.mxu3 %v10292_v23 }
  0x64   :  { %v10515_v28 = vld [vmem:[#allocation5 + $0x8c0] sm:$0xf]  ;;  %v14411_v29 = vld [vmem:[#allocation5 + $0x8cc] sm:$0xf0]  ;;  %v10916_v32 = vor.u32 %v14511_v20, %v10915_v19  ;;  %6490 = vmatpush.bf16.msra.mxu0 %v10532_v24  ;;  %6503 = vmatpush.bf16.msra.mxu1 %v10660_v26 }
  0x65   :  { %v10643_v31 = vld [vmem:[#allocation5 + $0x9c0] sm:$0xf]  ;;  %v14443_v33 = vld [vmem:[#allocation5 + $0x9cc] sm:$0xf0]  ;;  %v10516_v4 = vor.u32 %v14411_v29, %v10515_v28  ;;  %6446 = vmatmul.bf16.vlgmr.msrb.gmra.mxu0 %v15628_v39  ;;  %6459 = vmatmul.bf16.vlgmr.msrb.gmra.mxu1 %v15632_v41 }
  0x66   :  { %v10771_v34 = vld [vmem:[#allocation5 + $0xac0] sm:$0xf]  ;;  %v14475_v35 = vld [vmem:[#allocation5 + $0xacc] sm:$0xf0]  ;;  %v10644_v42 = vor.u32 %v14443_v33, %v10643_v31  ;;  %6472 = vmatmul.bf16.vlgmr.msrb.gmra.mxu2 %v15626_v36  ;;  %6485 = vmatmul.bf16.vlgmr.msrb.gmra.mxu3 %v15630_v40 }
  0x67   :  { %v10899_v37 = vld [vmem:[#allocation5 + $0xbc0] sm:$0xf]  ;;  %v14507_v38 = vld [vmem:[#allocation5 + $0xbcc] sm:$0xf0]  ;;  %6516 = vmatpush.bf16.msra.mxu2 %v10788_v27  ;;  %v10772_v43 = vor.u32 %v14475_v35, %v10771_v34  ;;  %6529 = vmatpush.bf16.msra.mxu3 %v10916_v32 }
  0x68   :  { %v10499_v44 = vld [vmem:[#allocation5 + $0x8a0] sm:$0xf]  ;;  %v14407_v45 = vld [vmem:[#allocation5 + $0x8ac] sm:$0xf0]  ;;  %v10900_v47 = vor.u32 %v14507_v38, %v10899_v37  ;;  %6491 = vmatpush.bf16.msra.mxu0 %v10516_v4  ;;  %6504 = vmatpush.bf16.msra.mxu1 %v10644_v42 }
  0x69   :  { %v10627_v46 = vld [vmem:[#allocation5 + $0x9a0] sm:$0xf]  ;;  %v14439_v48 = vld [vmem:[#allocation5 + $0x9ac] sm:$0xf0]  ;;  %v10500_v53 = vor.u32 %v14407_v45, %v10499_v44 }
  0x6a   :  { %v10755_v49 = vld [vmem:[#allocation5 + $0xaa0] sm:$0xf]  ;;  %v14471_v50 = vld [vmem:[#allocation5 + $0xaac] sm:$0xf0]  ;;  %v10628_v54 = vor.u32 %v14439_v48, %v10627_v46 }
  0x6b   :  { %v10883_v51 = vld [vmem:[#allocation5 + $0xba0] sm:$0xf]  ;;  %v14503_v52 = vld [vmem:[#allocation5 + $0xbac] sm:$0xf0]  ;;  %6517 = vmatpush.bf16.msra.mxu2 %v10772_v43  ;;  %v10756_v55 = vor.u32 %v14471_v50, %v10755_v49  ;;  %6530 = vmatpush.bf16.msra.mxu3 %v10900_v47 }
  0x6c   :  { %v10483_v56 = vld [vmem:[#allocation5 + $0x880] sm:$0xf]  ;;  %v14403_v57 = vld [vmem:[#allocation5 + $0x88c] sm:$0xf0]  ;;  %v10884_v59 = vor.u32 %v14503_v52, %v10883_v51  ;;  %6492 = vmatpush.bf16.msra.mxu0 %v10500_v53  ;;  %6505 = vmatpush.bf16.msra.mxu1 %v10628_v54 }
  0x6d   :  { %v10611_v58 = vld [vmem:[#allocation5 + $0x980] sm:$0xf]  ;;  %v14435_v60 = vld [vmem:[#allocation5 + $0x98c] sm:$0xf0]  ;;  %v10484_v1 = vor.u32 %v14403_v57, %v10483_v56 }
  0x6e   :  { %v10739_v61 = vld [vmem:[#allocation5 + $0xa80] sm:$0xf]  ;;  %v14467_v62 = vld [vmem:[#allocation5 + $0xa8c] sm:$0xf0]  ;;  %v10612_v2 = vor.u32 %v14435_v60, %v10611_v58 }
  0x6f   :  { %v10867_v63 = vld [vmem:[#allocation5 + $0xb80] sm:$0xf]  ;;  %v14499_v0 = vld [vmem:[#allocation5 + $0xb8c] sm:$0xf0]  ;;  %6518 = vmatpush.bf16.msra.mxu2 %v10756_v55  ;;  %v10740_v3 = vor.u32 %v14467_v62, %v10739_v61  ;;  %6531 = vmatpush.bf16.msra.mxu3 %v10884_v59  ;;  %v15638_v55 = vld [vmem:[#allocation2 + $0x8] sm:$0xff] }
  0x70   :  { %v10467_v5 = vld [vmem:[#allocation5 + $0x860] sm:$0xf]  ;;  %v14399_v6 = vld [vmem:[#allocation5 + $0x86c] sm:$0xf0]  ;;  %v10868_v8 = vor.u32 %v14499_v0, %v10867_v63  ;;  %6493 = vmatpush.bf16.msra.mxu0 %v10484_v1  ;;  %6506 = vmatpush.bf16.msra.mxu1 %v10612_v2  ;;  %v144_v1 = vperm.slane %v15638_v55, 0 }
  0x71   :  { %v10595_v7 = vld [vmem:[#allocation5 + $0x960] sm:$0xf]  ;;  %v14431_v9 = vld [vmem:[#allocation5 + $0x96c] sm:$0xf0]  ;;  %v10468_v14 = vor.u32 %v14399_v6, %v10467_v5 }
  0x72   :  { %v10723_v10 = vld [vmem:[#allocation5 + $0xa60] sm:$0xf]  ;;  %v14463_v11 = vld [vmem:[#allocation5 + $0xa6c] sm:$0xf0]  ;;  %v10596_v15 = vor.u32 %v14431_v9, %v10595_v7  ;;  %v146_v7 = vperm.slane %v15638_v55, 2 }
  0x73   :  { %v10851_v12 = vld [vmem:[#allocation5 + $0xb60] sm:$0xf]  ;;  %v14495_v13 = vld [vmem:[#allocation5 + $0xb6c] sm:$0xf0]  ;;  %6519 = vmatpush.bf16.msra.mxu2 %v10740_v3  ;;  %v10724_v19 = vor.u32 %v14463_v11, %v10723_v10  ;;  %6532 = vmatpush.bf16.msra.mxu3 %v10868_v8  ;;  %v145_v8 = vperm.slane %v15638_v55, 1  ;;  %v147_v11 = vperm.slane %v15638_v55, 3 }
  0x74   :  { %v10451_v20 = vld [vmem:[#allocation5 + $0x840] sm:$0xf]  ;;  %v14395_v21 = vld [vmem:[#allocation5 + $0x84c] sm:$0xf0]  ;;  %v10852_v23 = vor.u32 %v14495_v13, %v10851_v12  ;;  %6494 = vmatpush.bf16.msra.mxu0 %v10468_v14  ;;  %6507 = vmatpush.bf16.msra.mxu1 %v10596_v15 }
  0x75   :  { %v10579_v22 = vld [vmem:[#allocation5 + $0x940] sm:$0xf]  ;;  %v14427_v24 = vld [vmem:[#allocation5 + $0x94c] sm:$0xf0]  ;;  %v10452_v29 = vor.u32 %v14395_v21, %v10451_v20  ;;  %v15644_v21 = vpack.c.bf16 %v144_v1, %v144_v1 }
  0x76   :  { %v10707_v25 = vld [vmem:[#allocation5 + $0xa40] sm:$0xf]  ;;  %v14459_v26 = vld [vmem:[#allocation5 + $0xa4c] sm:$0xf0]  ;;  %v10580_v32 = vor.u32 %v14427_v24, %v10579_v22 }
  0x77   :  { %v10835_v27 = vld [vmem:[#allocation5 + $0xb40] sm:$0xf]  ;;  %v14491_v28 = vld [vmem:[#allocation5 + $0xb4c] sm:$0xf0]  ;;  %6520 = vmatpush.bf16.msra.mxu2 %v10724_v19  ;;  %v10708_v33 = vor.u32 %v14459_v26, %v10707_v25  ;;  %6533 = vmatpush.bf16.msra.mxu3 %v10852_v23  ;;  %v15646_v25 = vpack.c.bf16 %v146_v7, %v146_v7  ;;  %v15648_v26 = vpack.c.bf16 %v145_v8, %v145_v8 }
  0x78   :  { %v10435_v31 = vld [vmem:[#allocation5 + $0x820] sm:$0xf]  ;;  %v14391_v34 = vld [vmem:[#allocation5 + $0x82c] sm:$0xf0]  ;;  %v10836_v38 = vor.u32 %v14491_v28, %v10835_v27  ;;  %6495 = vmatpush.bf16.msra.mxu0 %v10452_v29  ;;  %6508 = vmatpush.bf16.msra.mxu1 %v10580_v32  ;;  %v15650_v29 = vpack.c.bf16 %v147_v11, %v147_v11 }
  0x79   :  { %v10563_v35 = vld [vmem:[#allocation5 + $0x920] sm:$0xf]  ;;  %v14423_v37 = vld [vmem:[#allocation5 + $0x92c] sm:$0xf0]  ;;  %v10436_v47 = vor.u32 %v14391_v34, %v10435_v31 }
  0x7a   :  { %v10691_v4 = vld [vmem:[#allocation5 + $0xa20] sm:$0xf]  ;;  %v14455_v42 = vld [vmem:[#allocation5 + $0xa2c] sm:$0xf0]  ;;  %v10564_v51 = vor.u32 %v14423_v37, %v10563_v35 }
  0x7b   :  { %v10819_v43 = vld [vmem:[#allocation5 + $0xb20] sm:$0xf]  ;;  %v14487_v44 = vld [vmem:[#allocation5 + $0xb2c] sm:$0xf0]  ;;  %6521 = vmatpush.bf16.msra.mxu2 %v10708_v33  ;;  %v10692_v52 = vor.u32 %v14455_v42, %v10691_v4  ;;  %6534 = vmatpush.bf16.msra.mxu3 %v10836_v38 }
  0x7c   :  { %v10419_v45 = vld [vmem:[#allocation5 + $0x800] sm:$0xf]  ;;  %v14387_v46 = vld [vmem:[#allocation5 + $0x80c] sm:$0xf0]  ;;  %v10820_v56 = vor.u32 %v14487_v44, %v10819_v43  ;;  %6496 = vmatpush.bf16.msra.mxu0 %v10436_v47  ;;  %6509 = vmatpush.bf16.msra.mxu1 %v10564_v51 }
  0x7d   :  { %v10547_v48 = vld [vmem:[#allocation5 + $0x900] sm:$0xf]  ;;  %v14419_v49 = vld [vmem:[#allocation5 + $0x90c] sm:$0xf0]  ;;  %v10420_v62 = vor.u32 %v14387_v46, %v10419_v45 }
  0x7e   :  { %v10675_v50 = vld [vmem:[#allocation5 + $0xa00] sm:$0xf]  ;;  %v14451_v53 = vld [vmem:[#allocation5 + $0xa0c] sm:$0xf0]  ;;  %v10548_v2 = vor.u32 %v14419_v49, %v10547_v48 }
  0x7f   :  { %v10803_v54 = vld [vmem:[#allocation5 + $0xb00] sm:$0xf]  ;;  %v14483_v57 = vld [vmem:[#allocation5 + $0xb0c] sm:$0xf0]  ;;  %6522 = vmatpush.bf16.msra.mxu2 %v10692_v52  ;;  %v10676_v3 = vor.u32 %v14451_v53, %v10675_v50  ;;  %6535 = vmatpush.bf16.msra.mxu3 %v10820_v56 }
  0x80   :  { %v11043_v58 = vld [vmem:[#allocation5 + $0xce0] sm:$0xf]  ;;  %v14543_v59 = vld [vmem:[#allocation5 + $0xcec] sm:$0xf0]  ;;  %v10804_v9 = vor.u32 %v14483_v57, %v10803_v54  ;;  %6497 = vmatpush.bf16.msra.mxu0 %v10420_v62  ;;  %6510 = vmatpush.bf16.msra.mxu1 %v10548_v2 }
  0x81   :  { %v11171_v60 = vld [vmem:[#allocation5 + $0xde0] sm:$0xf]  ;;  %v14575_v61 = vld [vmem:[#allocation5 + $0xdec] sm:$0xf0]  ;;  %v11044_v10 = vor.u32 %v14543_v59, %v11043_v58 }
  0x82   :  { %v11299_v63 = vld [vmem:[#allocation5 + $0xee0] sm:$0xf]  ;;  %v14607_v0 = vld [vmem:[#allocation5 + $0xeec] sm:$0xf0]  ;;  %v11172_v12 = vor.u32 %v14575_v61, %v11171_v60 }
  0x83   :  { %v11427_v5 = vld [vmem:[#allocation5 + $0xfe0] sm:$0xf]  ;;  %v14639_v6 = vld [vmem:[#allocation5 + $0xfec] sm:$0xf0]  ;;  %v11300_v13 = vor.u32 %v14607_v0, %v11299_v63  ;;  %6523 = vmatpush.bf16.msra.mxu2 %v10676_v3  ;;  %6536 = vmatpush.bf16.msra.mxu3 %v10804_v9 }
  0x84   :  { %v11027_v14 = vld [vmem:[#allocation5 + $0xcc0] sm:$0xf]  ;;  %v14539_v15 = vld [vmem:[#allocation5 + $0xccc] sm:$0xf0]  ;;  %v11428_v20 = vor.u32 %v14639_v6, %v11427_v5  ;;  %6542 = vmatpush.bf16.msrb.mxu0 %v11044_v10  ;;  %6555 = vmatpush.bf16.msrb.mxu1 %v11172_v12 }
  0x85   :  { %v11155_v19 = vld [vmem:[#allocation5 + $0xdc0] sm:$0xf]  ;;  %v14571_v22 = vld [vmem:[#allocation5 + $0xdcc] sm:$0xf0]  ;;  %v11028_v31 = vor.u32 %v14539_v15, %v11027_v14  ;;  %6498 = vmatmul.bf16.vlgmr.msra.gmra.mxu0 %v15644_v21  ;;  %6511 = vmatmul.bf16.vlgmr.msra.gmra.mxu1 %v15648_v26 }
  0x86   :  { %v11283_v23 = vld [vmem:[#allocation5 + $0xec0] sm:$0xf]  ;;  %v14603_v24 = vld [vmem:[#allocation5 + $0xecc] sm:$0xf0]  ;;  %v11156_v32 = vor.u32 %v14571_v22, %v11155_v19  ;;  %6524 = vmatmul.bf16.vlgmr.msra.gmra.mxu2 %v15646_v25  ;;  %6537 = vmatmul.bf16.vlgmr.msra.gmra.mxu3 %v15650_v29 }
  0x87   :  { %v11411_v27 = vld [vmem:[#allocation5 + $0xfc0] sm:$0xf]  ;;  %v14635_v28 = vld [vmem:[#allocation5 + $0xfcc] sm:$0xf0]  ;;  %6568 = vmatpush.bf16.msrb.mxu2 %v11300_v13  ;;  %v11284_v33 = vor.u32 %v14603_v24, %v11283_v23  ;;  %6581 = vmatpush.bf16.msrb.mxu3 %v11428_v20 }
  0x88   :  { %v11011_v34 = vld [vmem:[#allocation5 + $0xca0] sm:$0xf]  ;;  %v14535_v35 = vld [vmem:[#allocation5 + $0xcac] sm:$0xf0]  ;;  %v11412_v38 = vor.u32 %v14635_v28, %v11411_v27  ;;  %6543 = vmatpush.bf16.msrb.mxu0 %v11028_v31  ;;  %6556 = vmatpush.bf16.msrb.mxu1 %v11156_v32 }
  0x89   :  { %v11139_v37 = vld [vmem:[#allocation5 + $0xda0] sm:$0xf]  ;;  %v14567_v4 = vld [vmem:[#allocation5 + $0xdac] sm:$0xf0]  ;;  %v11012_v46 = vor.u32 %v14535_v35, %v11011_v34 }
  0x8a   :  { %v11267_v42 = vld [vmem:[#allocation5 + $0xea0] sm:$0xf]  ;;  %v14599_v43 = vld [vmem:[#allocation5 + $0xeac] sm:$0xf0]  ;;  %v11140_v47 = vor.u32 %v14567_v4, %v11139_v37 }
  0x8b   :  { %v11395_v44 = vld [vmem:[#allocation5 + $0xfa0] sm:$0xf]  ;;  %v14631_v45 = vld [vmem:[#allocation5 + $0xfac] sm:$0xf0]  ;;  %6569 = vmatpush.bf16.msrb.mxu2 %v11284_v33  ;;  %v11268_v48 = vor.u32 %v14599_v43, %v11267_v42  ;;  %6582 = vmatpush.bf16.msrb.mxu3 %v11412_v38 }
  0x8c   :  { %v10995_v49 = vld [vmem:[#allocation5 + $0xc80] sm:$0xf]  ;;  %v14531_v50 = vld [vmem:[#allocation5 + $0xc8c] sm:$0xf0]  ;;  %v11396_v52 = vor.u32 %v14631_v45, %v11395_v44  ;;  %6544 = vmatpush.bf16.msrb.mxu0 %v11012_v46  ;;  %6557 = vmatpush.bf16.msrb.mxu1 %v11140_v47 }
  0x8d   :  { %v11123_v51 = vld [vmem:[#allocation5 + $0xd80] sm:$0xf]  ;;  %v14563_v53 = vld [vmem:[#allocation5 + $0xd8c] sm:$0xf0]  ;;  %v10996_v59 = vor.u32 %v14531_v50, %v10995_v49 }
  0x8e   :  { %v11251_v54 = vld [vmem:[#allocation5 + $0xe80] sm:$0xf]  ;;  %v14595_v56 = vld [vmem:[#allocation5 + $0xe8c] sm:$0xf0]  ;;  %v11124_v60 = vor.u32 %v14563_v53, %v11123_v51 }
  0x8f   :  { %v11379_v57 = vld [vmem:[#allocation5 + $0xf80] sm:$0xf]  ;;  %v14627_v58 = vld [vmem:[#allocation5 + $0xf8c] sm:$0xf0]  ;;  %6570 = vmatpush.bf16.msrb.mxu2 %v11268_v48  ;;  %v11252_v61 = vor.u32 %v14595_v56, %v11251_v54  ;;  %6583 = vmatpush.bf16.msrb.mxu3 %v11396_v52 }
  0x90   :  { %v10979_v62 = vld [vmem:[#allocation5 + $0xc60] sm:$0xf]  ;;  %v14527_v63 = vld [vmem:[#allocation5 + $0xc6c] sm:$0xf0]  ;;  %v11380_v1 = vor.u32 %v14627_v58, %v11379_v57  ;;  %6545 = vmatpush.bf16.msrb.mxu0 %v10996_v59  ;;  %6558 = vmatpush.bf16.msrb.mxu1 %v11124_v60 }
  0x91   :  { %v11107_v0 = vld [vmem:[#allocation5 + $0xd60] sm:$0xf]  ;;  %v14559_v2 = vld [vmem:[#allocation5 + $0xd6c] sm:$0xf0]  ;;  %v10980_v8 = vor.u32 %v14527_v63, %v10979_v62  ;;  %v148_v63 = vperm.slane %v15638_v55, 4 }
  0x92   :  { %v11235_v3 = vld [vmem:[#allocation5 + $0xe60] sm:$0xf]  ;;  %v14591_v5 = vld [vmem:[#allocation5 + $0xe6c] sm:$0xf0]  ;;  %v11108_v9 = vor.u32 %v14559_v2, %v11107_v0 }
  0x93   :  { %v11363_v6 = vld [vmem:[#allocation5 + $0xf60] sm:$0xf]  ;;  %v14623_v7 = vld [vmem:[#allocation5 + $0xf6c] sm:$0xf0]  ;;  %6571 = vmatpush.bf16.msrb.mxu2 %v11252_v61  ;;  %v11236_v10 = vor.u32 %v14591_v5, %v11235_v3  ;;  %6584 = vmatpush.bf16.msrb.mxu3 %v11380_v1  ;;  %v150_v5 = vperm.slane %v15638_v55, 6 }
  0x94   :  { %v10963_v11 = vld [vmem:[#allocation5 + $0xc40] sm:$0xf]  ;;  %v14523_v12 = vld [vmem:[#allocation5 + $0xc4c] sm:$0xf0]  ;;  %v11364_v14 = vor.u32 %v14623_v7, %v11363_v6  ;;  %6546 = vmatpush.bf16.msrb.mxu0 %v10980_v8  ;;  %6559 = vmatpush.bf16.msrb.mxu1 %v11108_v9  ;;  %v149_v6 = vperm.slane %v15638_v55, 5  ;;  %v151_v9 = vperm.slane %v15638_v55, 7 }
  0x95   :  { %v11091_v13 = vld [vmem:[#allocation5 + $0xd40] sm:$0xf]  ;;  %v14555_v15 = vld [vmem:[#allocation5 + $0xd4c] sm:$0xf0]  ;;  %v10964_v24 = vor.u32 %v14523_v12, %v10963_v11 }
  0x96   :  { %v11219_v19 = vld [vmem:[#allocation5 + $0xe40] sm:$0xf]  ;;  %v14587_v20 = vld [vmem:[#allocation5 + $0xe4c] sm:$0xf0]  ;;  %v11092_v27 = vor.u32 %v14555_v15, %v11091_v13 }
  0x97   :  { %v11347_v22 = vld [vmem:[#allocation5 + $0xf40] sm:$0xf]  ;;  %v14619_v23 = vld [vmem:[#allocation5 + $0xf4c] sm:$0xf0]  ;;  %6572 = vmatpush.bf16.msrb.mxu2 %v11236_v10  ;;  %v11220_v28 = vor.u32 %v14587_v20, %v11219_v19  ;;  %6585 = vmatpush.bf16.msrb.mxu3 %v11364_v14  ;;  %v15660_v19 = vpack.c.bf16 %v148_v63, %v148_v63 }
  0x98   :  { %v10947_v31 = vld [vmem:[#allocation5 + $0xc20] sm:$0xf]  ;;  %v14519_v32 = vld [vmem:[#allocation5 + $0xc2c] sm:$0xf0]  ;;  %v11348_v34 = vor.u32 %v14619_v23, %v11347_v22  ;;  %6547 = vmatpush.bf16.msrb.mxu0 %v10964_v24  ;;  %6560 = vmatpush.bf16.msrb.mxu1 %v11092_v27  ;;  %v15662_v24 = vpack.c.bf16 %v150_v5, %v150_v5  ;;  %v15664_v27 = vpack.c.bf16 %v149_v6, %v149_v6 }
  0x99   :  { %v11075_v33 = vld [vmem:[#allocation5 + $0xd20] sm:$0xf]  ;;  %v14551_v35 = vld [vmem:[#allocation5 + $0xd2c] sm:$0xf0]  ;;  %v10948_v43 = vor.u32 %v14519_v32, %v10947_v31  ;;  %v15666_v31 = vpack.c.bf16 %v151_v9, %v151_v9 }
  0x9a   :  { %v11203_v37 = vld [vmem:[#allocation5 + $0xe20] sm:$0xf]  ;;  %v14583_v38 = vld [vmem:[#allocation5 + $0xe2c] sm:$0xf0]  ;;  %v11076_v47 = vor.u32 %v14551_v35, %v11075_v33 }
  0x9b   :  { %v11331_v4 = vld [vmem:[#allocation5 + $0xf20] sm:$0xf]  ;;  %v14615_v42 = vld [vmem:[#allocation5 + $0xf2c] sm:$0xf0]  ;;  %6573 = vmatpush.bf16.msrb.mxu2 %v11220_v28  ;;  %v11204_v48 = vor.u32 %v14583_v38, %v11203_v37  ;;  %6586 = vmatpush.bf16.msrb.mxu3 %v11348_v34 }
  0x9c   :  { %v10931_v44 = vld [vmem:[#allocation5 + $0xc00] sm:$0xf]  ;;  %v14515_v45 = vld [vmem:[#allocation5 + $0xc0c] sm:$0xf0]  ;;  %v11332_v52 = vor.u32 %v14615_v42, %v11331_v4  ;;  %6548 = vmatpush.bf16.msrb.mxu0 %v10948_v43  ;;  %6561 = vmatpush.bf16.msrb.mxu1 %v11076_v47 }
  0x9d   :  { %v11059_v46 = vld [vmem:[#allocation5 + $0xd00] sm:$0xf]  ;;  %v14547_v49 = vld [vmem:[#allocation5 + $0xd0c] sm:$0xf0]  ;;  %v10932_v60 = vor.u32 %v14515_v45, %v10931_v44 }
  0x9e   :  { %v11187_v50 = vld [vmem:[#allocation5 + $0xe00] sm:$0xf]  ;;  %v14579_v51 = vld [vmem:[#allocation5 + $0xe0c] sm:$0xf0]  ;;  %v11060_v0 = vor.u32 %v14547_v49, %v11059_v46 }
  0x9f   :  { %v11315_v53 = vld [vmem:[#allocation5 + $0xf00] sm:$0xf]  ;;  %v14611_v54 = vld [vmem:[#allocation5 + $0xf0c] sm:$0xf0]  ;;  %6574 = vmatpush.bf16.msrb.mxu2 %v11204_v48  ;;  %v11188_v1 = vor.u32 %v14579_v51, %v11187_v50  ;;  %6587 = vmatpush.bf16.msrb.mxu3 %v11332_v52 }
  0xa0   :  { %v11555_v56 = vld [vmem:[#allocation5 + $0x10e0] sm:$0xf]  ;;  %v14671_v57 = vld [vmem:[#allocation5 + $0x10ec] sm:$0xf0]  ;;  %v11316_v7 = vor.u32 %v14611_v54, %v11315_v53  ;;  %6549 = vmatpush.bf16.msrb.mxu0 %v10932_v60  ;;  %6562 = vmatpush.bf16.msrb.mxu1 %v11060_v0 }
  0xa1   :  { %v11683_v58 = vld [vmem:[#allocation5 + $0x11e0] sm:$0xf]  ;;  %v14703_v59 = vld [vmem:[#allocation5 + $0x11ec] sm:$0xf0]  ;;  %v11556_v8 = vor.u32 %v14671_v57, %v11555_v56 }
  0xa2   :  { %v11811_v61 = vld [vmem:[#allocation5 + $0x12e0] sm:$0xf]  ;;  %v14735_v62 = vld [vmem:[#allocation5 + $0x12ec] sm:$0xf0]  ;;  %v11684_v10 = vor.u32 %v14703_v59, %v11683_v58 }
  0xa3   :  { %v11939_v2 = vld [vmem:[#allocation5 + $0x13e0] sm:$0xf]  ;;  %v14767_v3 = vld [vmem:[#allocation5 + $0x13ec] sm:$0xf0]  ;;  %v11812_v11 = vor.u32 %v14735_v62, %v11811_v61  ;;  %6575 = vmatpush.bf16.msrb.mxu2 %v11188_v1  ;;  %6588 = vmatpush.bf16.msrb.mxu3 %v11316_v7 }
  0xa4   :  { %v11539_v12 = vld [vmem:[#allocation5 + $0x10c0] sm:$0xf]  ;;  %v14667_v13 = vld [vmem:[#allocation5 + $0x10cc] sm:$0xf0]  ;;  %v11940_v15 = vor.u32 %v14767_v3, %v11939_v2  ;;  %6594 = vmatpush.bf16.msra.mxu0 %v11556_v8  ;;  %6607 = vmatpush.bf16.msra.mxu1 %v11684_v10 }
  0xa5   :  { %v11667_v14 = vld [vmem:[#allocation5 + $0x11c0] sm:$0xf]  ;;  %v14699_v20 = vld [vmem:[#allocation5 + $0x11cc] sm:$0xf0]  ;;  %v11540_v32 = vor.u32 %v14667_v13, %v11539_v12  ;;  %6550 = vmatmul.bf16.vlgmr.msrb.gmra.mxu0 %v15660_v19  ;;  %6563 = vmatmul.bf16.vlgmr.msrb.gmra.mxu1 %v15664_v27 }
  0xa6   :  { %v11795_v22 = vld [vmem:[#allocation5 + $0x12c0] sm:$0xf]  ;;  %v14731_v23 = vld [vmem:[#allocation5 + $0x12cc] sm:$0xf0]  ;;  %v11668_v33 = vor.u32 %v14699_v20, %v11667_v14  ;;  %6576 = vmatmul.bf16.vlgmr.msrb.gmra.mxu2 %v15662_v24  ;;  %6589 = vmatmul.bf16.vlgmr.msrb.gmra.mxu3 %v15666_v31 }
  0xa7   :  { %v11923_v28 = vld [vmem:[#allocation5 + $0x13c0] sm:$0xf]  ;;  %v14763_v55 = vld [vmem:[#allocation5 + $0x13cc] sm:$0xf0]  ;;  %6620 = vmatpush.bf16.msra.mxu2 %v11812_v11  ;;  %v11796_v34 = vor.u32 %v14731_v23, %v11795_v22  ;;  %6633 = vmatpush.bf16.msra.mxu3 %v11940_v15 }
  0xa8   :  { %v11523_v35 = vld [vmem:[#allocation5 + $0x10a0] sm:$0xf]  ;;  %v14663_v37 = vld [vmem:[#allocation5 + $0x10ac] sm:$0xf0]  ;;  %v11924_v4 = vor.u32 %v14763_v55, %v11923_v28  ;;  %6595 = vmatpush.bf16.msra.mxu0 %v11540_v32  ;;  %6608 = vmatpush.bf16.msra.mxu1 %v11668_v33 }
  0xa9   :  { %v11651_v38 = vld [vmem:[#allocation5 + $0x11a0] sm:$0xf]  ;;  %v14695_v42 = vld [vmem:[#allocation5 + $0x11ac] sm:$0xf0]  ;;  %v11524_v47 = vor.u32 %v14663_v37, %v11523_v35 }
  0xaa   :  { %v11779_v43 = vld [vmem:[#allocation5 + $0x12a0] sm:$0xf]  ;;  %v14727_v44 = vld [vmem:[#allocation5 + $0x12ac] sm:$0xf0]  ;;  %v11652_v48 = vor.u32 %v14695_v42, %v11651_v38 }
  0xab   :  { %v11907_v45 = vld [vmem:[#allocation5 + $0x13a0] sm:$0xf]  ;;  %v14759_v46 = vld [vmem:[#allocation5 + $0x13ac] sm:$0xf0]  ;;  %6621 = vmatpush.bf16.msra.mxu2 %v11796_v34  ;;  %v11780_v49 = vor.u32 %v14727_v44, %v11779_v43  ;;  %6634 = vmatpush.bf16.msra.mxu3 %v11924_v4 }
  0xac   :  { %v11507_v50 = vld [vmem:[#allocation5 + $0x1080] sm:$0xf]  ;;  %v14659_v51 = vld [vmem:[#allocation5 + $0x108c] sm:$0xf0]  ;;  %v11908_v53 = vor.u32 %v14759_v46, %v11907_v45  ;;  %6596 = vmatpush.bf16.msra.mxu0 %v11524_v47  ;;  %6609 = vmatpush.bf16.msra.mxu1 %v11652_v48 }
  0xad   :  { %v11635_v52 = vld [vmem:[#allocation5 + $0x1180] sm:$0xf]  ;;  %v14691_v54 = vld [vmem:[#allocation5 + $0x118c] sm:$0xf0]  ;;  %v11508_v60 = vor.u32 %v14659_v51, %v11507_v50 }
  0xae   :  { %v11763_v56 = vld [vmem:[#allocation5 + $0x1280] sm:$0xf]  ;;  %v14723_v57 = vld [vmem:[#allocation5 + $0x128c] sm:$0xf0]  ;;  %v11636_v61 = vor.u32 %v14691_v54, %v11635_v52 }
  0xaf   :  { %v11891_v58 = vld [vmem:[#allocation5 + $0x1380] sm:$0xf]  ;;  %v14755_v59 = vld [vmem:[#allocation5 + $0x138c] sm:$0xf0]  ;;  %6622 = vmatpush.bf16.msra.mxu2 %v11780_v49  ;;  %v11764_v62 = vor.u32 %v14723_v57, %v11763_v56  ;;  %6635 = vmatpush.bf16.msra.mxu3 %v11908_v53 }
  0xb0   :  { %v11491_v63 = vld [vmem:[#allocation5 + $0x1060] sm:$0xf]  ;;  %v14655_v0 = vld [vmem:[#allocation5 + $0x106c] sm:$0xf0]  ;;  %v11892_v2 = vor.u32 %v14755_v59, %v11891_v58  ;;  %6597 = vmatpush.bf16.msra.mxu0 %v11508_v60  ;;  %6610 = vmatpush.bf16.msra.mxu1 %v11636_v61 }
  0xb1   :  { %v11619_v1 = vld [vmem:[#allocation5 + $0x1160] sm:$0xf]  ;;  %v14687_v3 = vld [vmem:[#allocation5 + $0x116c] sm:$0xf0]  ;;  %v11492_v9 = vor.u32 %v14655_v0, %v11491_v63 }
  0xb2   :  { %v11747_v5 = vld [vmem:[#allocation5 + $0x1260] sm:$0xf]  ;;  %v14719_v6 = vld [vmem:[#allocation5 + $0x126c] sm:$0xf0]  ;;  %v11620_v10 = vor.u32 %v14687_v3, %v11619_v1 }
  0xb3   :  { %v11875_v7 = vld [vmem:[#allocation5 + $0x1360] sm:$0xf]  ;;  %v14751_v8 = vld [vmem:[#allocation5 + $0x136c] sm:$0xf0]  ;;  %6623 = vmatpush.bf16.msra.mxu2 %v11764_v62  ;;  %v11748_v11 = vor.u32 %v14719_v6, %v11747_v5  ;;  %6636 = vmatpush.bf16.msra.mxu3 %v11892_v2 }
  0xb4   :  { %v11475_v12 = vld [vmem:[#allocation5 + $0x1040] sm:$0xf]  ;;  %v14651_v13 = vld [vmem:[#allocation5 + $0x104c] sm:$0xf0]  ;;  %v11876_v15 = vor.u32 %v14751_v8, %v11875_v7  ;;  %6598 = vmatpush.bf16.msra.mxu0 %v11492_v9  ;;  %6611 = vmatpush.bf16.msra.mxu1 %v11620_v10 }
  0xb5   :  { %v11603_v14 = vld [vmem:[#allocation5 + $0x1140] sm:$0xf]  ;;  %v14683_v20 = vld [vmem:[#allocation5 + $0x114c] sm:$0xf0]  ;;  %v11476_v32 = vor.u32 %v14651_v13, %v11475_v12 }
  0xb6   :  { %v11731_v22 = vld [vmem:[#allocation5 + $0x1240] sm:$0xf]  ;;  %v14715_v23 = vld [vmem:[#allocation5 + $0x124c] sm:$0xf0]  ;;  %v11604_v33 = vor.u32 %v14683_v20, %v11603_v14 }
  0xb7   :  { %v11859_v28 = vld [vmem:[#allocation5 + $0x1340] sm:$0xf]  ;;  %v14747_v55 = vld [vmem:[#allocation5 + $0x134c] sm:$0xf0]  ;;  %6624 = vmatpush.bf16.msra.mxu2 %v11748_v11  ;;  %v11732_v34 = vor.u32 %v14715_v23, %v11731_v22  ;;  %6637 = vmatpush.bf16.msra.mxu3 %v11876_v15 }
  0xb8   :  { %v11459_v35 = vld [vmem:[#allocation5 + $0x1020] sm:$0xf]  ;;  %v14647_v37 = vld [vmem:[#allocation5 + $0x102c] sm:$0xf0]  ;;  %v11860_v4 = vor.u32 %v14747_v55, %v11859_v28  ;;  %6599 = vmatpush.bf16.msra.mxu0 %v11476_v32  ;;  %6612 = vmatpush.bf16.msra.mxu1 %v11604_v33 }
  0xb9   :  { %v11587_v38 = vld [vmem:[#allocation5 + $0x1120] sm:$0xf]  ;;  %v14679_v42 = vld [vmem:[#allocation5 + $0x112c] sm:$0xf0]  ;;  %v11460_v48 = vor.u32 %v14647_v37, %v11459_v35 }
  0xba   :  { %v11715_v43 = vld [vmem:[#allocation5 + $0x1220] sm:$0xf]  ;;  %v14711_v44 = vld [vmem:[#allocation5 + $0x122c] sm:$0xf0]  ;;  %v11588_v52 = vor.u32 %v14679_v42, %v11587_v38 }
  0xbb   :  { %v11843_v45 = vld [vmem:[#allocation5 + $0x1320] sm:$0xf]  ;;  %v14743_v46 = vld [vmem:[#allocation5 + $0x132c] sm:$0xf0]  ;;  %6625 = vmatpush.bf16.msra.mxu2 %v11732_v34  ;;  %v11716_v53 = vor.u32 %v14711_v44, %v11715_v43  ;;  %6638 = vmatpush.bf16.msra.mxu3 %v11860_v4 }
  0xbc   :  { %v11443_v47 = vld [vmem:[#allocation5 + $0x1000] sm:$0xf]  ;;  %v14643_v49 = vld [vmem:[#allocation5 + $0x100c] sm:$0xf0]  ;;  %v11844_v58 = vor.u32 %v14743_v46, %v11843_v45  ;;  %6600 = vmatpush.bf16.msra.mxu0 %v11460_v48  ;;  %6613 = vmatpush.bf16.msra.mxu1 %v11588_v52 }
  0xbd   :  { %v11571_v50 = vld [vmem:[#allocation5 + $0x1100] sm:$0xf]  ;;  %v14675_v51 = vld [vmem:[#allocation5 + $0x110c] sm:$0xf0]  ;;  %v11444_v1 = vor.u32 %v14643_v49, %v11443_v47 }
  0xbe   :  { %v11699_v54 = vld [vmem:[#allocation5 + $0x1200] sm:$0xf]  ;;  %v14707_v56 = vld [vmem:[#allocation5 + $0x120c] sm:$0xf0]  ;;  %v11572_v6 = vor.u32 %v14675_v51, %v11571_v50 }
  0xbf   :  { %v15672_v57 = vld [vmem:[#allocation2 + $0x10] sm:$0xff]  ;;  %v11827_v59 = vld [vmem:[#allocation5 + $0x1300] sm:$0xf]  ;;  %6626 = vmatpush.bf16.msra.mxu2 %v11716_v53  ;;  %v11700_v7 = vor.u32 %v14707_v56, %v11699_v54  ;;  %6639 = vmatpush.bf16.msra.mxu3 %v11844_v58 }
  0xc0   :  { %v14739_v60 = vld [vmem:[#allocation5 + $0x130c] sm:$0xf0]  ;;  %v12067_v61 = vld [vmem:[#allocation5 + $0x14e0] sm:$0xf]  ;;  %v152_v5 = vperm.slane %v15672_v57, 0  ;;  %v154_v10 = vperm.slane %v15672_v57, 2  ;;  %6601 = vmatpush.bf16.msra.mxu0 %v11444_v1  ;;  %6614 = vmatpush.bf16.msra.mxu1 %v11572_v6 }
  0xc1   :  { %v14799_v62 = vld [vmem:[#allocation5 + $0x14ec] sm:$0xf0]  ;;  %v12195_v63 = vld [vmem:[#allocation5 + $0x15e0] sm:$0xf]  ;;  %v153_v11 = vperm.slane %v15672_v57, 1  ;;  %v11828_v12 = vor.u32 %v14739_v60, %v11827_v59  ;;  %v155_v14 = vperm.slane %v15672_v57, 3 }
  0xc2   :  { %v14831_v0 = vld [vmem:[#allocation5 + $0x15ec] sm:$0xf0]  ;;  %v12323_v2 = vld [vmem:[#allocation5 + $0x16e0] sm:$0xf]  ;;  %v12068_v13 = vor.u32 %v14799_v62, %v12067_v61  ;;  %v15678_v32 = vpack.c.bf16 %v152_v5, %v152_v5  ;;  %v15680_v37 = vpack.c.bf16 %v154_v10, %v154_v10 }
  0xc3   :  { %v14863_v3 = vld [vmem:[#allocation5 + $0x16ec] sm:$0xf0]  ;;  %v12451_v8 = vld [vmem:[#allocation5 + $0x17e0] sm:$0xf]  ;;  %v12196_v15 = vor.u32 %v14831_v0, %v12195_v63  ;;  %6627 = vmatpush.bf16.msra.mxu2 %v11700_v7  ;;  %v15682_v38 = vpack.c.bf16 %v153_v11, %v153_v11  ;;  %6640 = vmatpush.bf16.msra.mxu3 %v11828_v12  ;;  %v15684_v43 = vpack.c.bf16 %v155_v14, %v155_v14 }
  0xc4   :  { %v14895_v9 = vld [vmem:[#allocation5 + $0x17ec] sm:$0xf0]  ;;  %v12324_v20 = vor.u32 %v14863_v3, %v12323_v2  ;;  %v12051_v22 = vld [vmem:[#allocation5 + $0x14c0] sm:$0xf]  ;;  %6646 = vmatpush.bf16.msrb.mxu0 %v12068_v13 }
  0xc5   :  { %v14795_v23 = vld [vmem:[#allocation5 + $0x14cc] sm:$0xf0]  ;;  %v12179_v28 = vld [vmem:[#allocation5 + $0x15c0] sm:$0xf]  ;;  %v12452_v55 = vor.u32 %v14895_v9, %v12451_v8  ;;  %6659 = vmatpush.bf16.msrb.mxu1 %v12196_v15  ;;  %6602 = vmatmul.bf16.vlgmr.msra.gmra.mxu0 %v15678_v32 }
  0xc6   :  { %v14827_v33 = vld [vmem:[#allocation5 + $0x15cc] sm:$0xf0]  ;;  %v12307_v34 = vld [vmem:[#allocation5 + $0x16c0] sm:$0xf]  ;;  %v12052_v44 = vor.u32 %v14795_v23, %v12051_v22  ;;  %6628 = vmatmul.bf16.vlgmr.msra.gmra.mxu2 %v15680_v37  ;;  %6615 = vmatmul.bf16.vlgmr.msra.gmra.mxu1 %v15682_v38 }
  0xc7   :  { %v14859_v35 = vld [vmem:[#allocation5 + $0x16cc] sm:$0xf0]  ;;  %v12435_v4 = vld [vmem:[#allocation5 + $0x17c0] sm:$0xf]  ;;  %6672 = vmatpush.bf16.msrb.mxu2 %v12324_v20  ;;  %v12180_v45 = vor.u32 %v14827_v33, %v12179_v28  ;;  %6685 = vmatpush.bf16.msrb.mxu3 %v12452_v55 }
  0xc8   :  { %v14891_v42 = vld [vmem:[#allocation5 + $0x17cc] sm:$0xf0]  ;;  %v12308_v46 = vor.u32 %v14859_v35, %v12307_v34  ;;  %v12035_v47 = vld [vmem:[#allocation5 + $0x14a0] sm:$0xf]  ;;  %6641 = vmatmul.bf16.vlgmr.msra.gmra.mxu3 %v15684_v43  ;;  %6647 = vmatpush.bf16.msrb.mxu0 %v12052_v44 }
  0xc9   :  { %v14791_v48 = vld [vmem:[#allocation5 + $0x14ac] sm:$0xf0]  ;;  %v12163_v49 = vld [vmem:[#allocation5 + $0x15a0] sm:$0xf]  ;;  %v12436_v50 = vor.u32 %v14891_v42, %v12435_v4  ;;  %6660 = vmatpush.bf16.msrb.mxu1 %v12180_v45 }
  0xca   :  { %v14823_v51 = vld [vmem:[#allocation5 + $0x15ac] sm:$0xf0]  ;;  %v12291_v52 = vld [vmem:[#allocation5 + $0x16a0] sm:$0xf]  ;;  %v12036_v58 = vor.u32 %v14791_v48, %v12035_v47 }
  0xcb   :  { %v14855_v53 = vld [vmem:[#allocation5 + $0x16ac] sm:$0xf0]  ;;  %v12419_v54 = vld [vmem:[#allocation5 + $0x17a0] sm:$0xf]  ;;  %6673 = vmatpush.bf16.msrb.mxu2 %v12308_v46  ;;  %v12164_v59 = vor.u32 %v14823_v51, %v12163_v49  ;;  %6686 = vmatpush.bf16.msrb.mxu3 %v12436_v50 }
  0xcc   :  { %v14887_v56 = vld [vmem:[#allocation5 + $0x17ac] sm:$0xf0]  ;;  %v12292_v60 = vor.u32 %v14855_v53, %v12291_v52  ;;  %v12019_v61 = vld [vmem:[#allocation5 + $0x1480] sm:$0xf]  ;;  %6648 = vmatpush.bf16.msrb.mxu0 %v12036_v58 }
  0xcd   :  { %v14787_v62 = vld [vmem:[#allocation5 + $0x148c] sm:$0xf0]  ;;  %v12147_v63 = vld [vmem:[#allocation5 + $0x1580] sm:$0xf]  ;;  %v12420_v0 = vor.u32 %v14887_v56, %v12419_v54  ;;  %6661 = vmatpush.bf16.msrb.mxu1 %v12164_v59 }
  0xce   :  { %v14819_v1 = vld [vmem:[#allocation5 + $0x158c] sm:$0xf0]  ;;  %v12275_v2 = vld [vmem:[#allocation5 + $0x1680] sm:$0xf]  ;;  %v12020_v7 = vor.u32 %v14787_v62, %v12019_v61  ;;  %v6395_v52 = vpop.f32.mrf.mxu0 }
  0xcf   :  { %v14851_v3 = vld [vmem:[#allocation5 + $0x168c] sm:$0xf0]  ;;  %v12403_v5 = vld [vmem:[#allocation5 + $0x1780] sm:$0xf]  ;;  %6674 = vmatpush.bf16.msrb.mxu2 %v12292_v60  ;;  %v12148_v9 = vor.u32 %v14819_v1, %v12147_v63  ;;  %6687 = vmatpush.bf16.msrb.mxu3 %v12420_v0  ;;  %v6408_v61 = vpop.f32.mrf.mxu1 }
  0xd0   :  { %v14883_v6 = vld [vmem:[#allocation5 + $0x178c] sm:$0xf0]  ;;  %v12003_v8 = vld [vmem:[#allocation5 + $0x1460] sm:$0xf]  ;;  %v12276_v10 = vor.u32 %v14851_v3, %v12275_v2  ;;  %6649 = vmatpush.bf16.msrb.mxu0 %v12020_v7 }
  0xd1   :  { %v14783_v11 = vld [vmem:[#allocation5 + $0x146c] sm:$0xf0]  ;;  %v12131_v12 = vld [vmem:[#allocation5 + $0x1560] sm:$0xf]  ;;  %v12404_v14 = vor.u32 %v14883_v6, %v12403_v5  ;;  %6662 = vmatpush.bf16.msrb.mxu1 %v12148_v9 }
  0xd2   :  { %v14815_v13 = vld [vmem:[#allocation5 + $0x156c] sm:$0xf0]  ;;  %v12259_v15 = vld [vmem:[#allocation5 + $0x1660] sm:$0xf]  ;;  %v12004_v55 = vor.u32 %v14783_v11, %v12003_v8 }
  0xd3   :  { %v14847_v20 = vld [vmem:[#allocation5 + $0x166c] sm:$0xf0]  ;;  %v1256_v22 = vld [vmem:[#allocation7] sm:$0xf]  ;;  %6675 = vmatpush.bf16.msrb.mxu2 %v12276_v10  ;;  %v12132_v34 = vor.u32 %v14815_v13, %v12131_v12  ;;  %6688 = vmatpush.bf16.msrb.mxu3 %v12404_v14 }
  0xd4   :  { %v12387_v23 = vld [vmem:[#allocation5 + $0x1760] sm:$0xf]  ;;  %v14879_v28 = vld [vmem:[#allocation5 + $0x176c] sm:$0xf0]  ;;  %v12260_v35 = vor.u32 %v14847_v20, %v12259_v15  ;;  %v1258_v44 = vperm.slane %v1256_v22, 0  ;;  %6650 = vmatpush.bf16.msrb.mxu0 %v12004_v55  ;;  %v6421_v15 = vpop.f32.mrf.mxu2 }
  0xd5   :  { %v11987_v33 = vld [vmem:[#allocation5 + $0x1440] sm:$0xf]  ;;  %v14779_v4 = vld [vmem:[#allocation5 + $0x144c] sm:$0xf0]  ;;  %v12388_v45 = vor.u32 %v14879_v28, %v12387_v23  ;;  %6663 = vmatpush.bf16.msrb.mxu1 %v12132_v34 }
  0xd6   :  { %v12115_v42 = vld [vmem:[#allocation5 + $0x1540] sm:$0xf]  ;;  %v14811_v46 = vld [vmem:[#allocation5 + $0x154c] sm:$0xf0]  ;;  %v11988_v51 = vor.u32 %v14779_v4, %v11987_v33  ;;  %v6396_v60 = vadd.f32 %v6395_v52, %v1258_v44  ;;  %v6434_v33 = vpop.f32.mrf.mxu3 }
  0xd7   :  { %v12243_v47 = vld [vmem:[#allocation5 + $0x1640] sm:$0xf]  ;;  %v14843_v48 = vld [vmem:[#allocation5 + $0x164c] sm:$0xf0]  ;;  %6676 = vmatpush.bf16.msrb.mxu2 %v12260_v35  ;;  %v12116_v53 = vor.u32 %v14811_v46, %v12115_v42  ;;  %6689 = vmatpush.bf16.msrb.mxu3 %v12388_v45  ;;  %v156_v46 = vperm.slane %v15672_v57, 4 }
  0xd8   :  { %v12371_v49 = vld [vmem:[#allocation5 + $0x1740] sm:$0xf]  ;;  %v14875_v50 = vld [vmem:[#allocation5 + $0x174c] sm:$0xf0]  ;;  %v12244_v54 = vor.u32 %v14843_v48, %v12243_v47  ;;  %v6409_v5 = vadd.f32 %v6408_v61, %v6396_v60  ;;  %6651 = vmatpush.bf16.msrb.mxu0 %v11988_v51  ;;  %v6397_v48 = vpop.f32.mrf.mxu0  ;;  %v159_v60 = vperm.slane %v15672_v57, 7 }
  0xd9   :  { %v11971_v56 = vld [vmem:[#allocation5 + $0x1420] sm:$0xf]  ;;  %v14775_v58 = vld [vmem:[#allocation5 + $0x142c] sm:$0xf0]  ;;  %v12372_v62 = vor.u32 %v14875_v50, %v12371_v49  ;;  %6664 = vmatpush.bf16.msrb.mxu1 %v12116_v53  ;;  %v158_v53 = vperm.slane %v15672_v57, 6 }
  0xda   :  { %v12099_v59 = vld [vmem:[#allocation5 + $0x1520] sm:$0xf]  ;;  %v14807_v63 = vld [vmem:[#allocation5 + $0x152c] sm:$0xf0]  ;;  %v11972_v6 = vor.u32 %v14775_v58, %v11971_v56  ;;  %v6422_v55 = vadd.f32 %v6421_v15, %v6409_v5  ;;  %v6410_v56 = vpop.f32.mrf.mxu1 }
  0xdb   :  { %v12227_v0 = vld [vmem:[#allocation5 + $0x1620] sm:$0xf]  ;;  %v14839_v1 = vld [vmem:[#allocation5 + $0x162c] sm:$0xf0]  ;;  %6677 = vmatpush.bf16.msrb.mxu2 %v12244_v54  ;;  %v12100_v10 = vor.u32 %v14807_v63, %v12099_v59  ;;  %6690 = vmatpush.bf16.msrb.mxu3 %v12372_v62  ;;  %v157_v54 = vperm.slane %v15672_v57, 5 }
  0xdc   :  { %v12355_v2 = vld [vmem:[#allocation5 + $0x1720] sm:$0xf]  ;;  %v14871_v3 = vld [vmem:[#allocation5 + $0x172c] sm:$0xf0]  ;;  %v12228_v11 = vor.u32 %v14839_v1, %v12227_v0  ;;  %6652 = vmatpush.bf16.msrb.mxu0 %v11972_v6  ;;  %v15691_v47 = vadd.f32 %v6434_v33, %v6422_v55 }
  0xdd   :  { %v11955_v7 = vld [vmem:[#allocation5 + $0x1400] sm:$0xf]  ;;  %v14771_v8 = vld [vmem:[#allocation5 + $0x140c] sm:$0xf0]  ;;  %v12356_v20 = vor.u32 %v14871_v3, %v12355_v2  ;;  %6665 = vmatpush.bf16.msrb.mxu1 %v12100_v10  ;;  %v15696_v3 = vpack.c.bf16 %v156_v46, %v156_v46 }
  0xde   :  { %v12083_v9 = vld [vmem:[#allocation5 + $0x1500] sm:$0xf]  ;;  %v14803_v12 = vld [vmem:[#allocation5 + $0x150c] sm:$0xf0]  ;;  %v11956_v42 = vor.u32 %v14771_v8, %v11955_v7  ;;  %v15698_v8 = vpack.c.bf16 %v158_v53, %v158_v53 }
  0xdf   :  { %v12211_v13 = vld [vmem:[#allocation5 + $0x1600] sm:$0xf]  ;;  %v14835_v14 = vld [vmem:[#allocation5 + $0x160c] sm:$0xf0]  ;;  %6678 = vmatpush.bf16.msrb.mxu2 %v12228_v11  ;;  %v12084_v49 = vor.u32 %v14803_v12, %v12083_v9  ;;  %6691 = vmatpush.bf16.msrb.mxu3 %v12356_v20  ;;  %v15700_v9 = vpack.c.bf16 %v157_v54, %v157_v54  ;;  %v6423_v11 = vpop.f32.mrf.mxu2  ;;  %v15702_v12 = vpack.c.bf16 %v159_v60, %v159_v60 }
  0xe0   :  { %v12339_v22 = vld [vmem:[#allocation5 + $0x1700] sm:$0xf]  ;;  %v14867_v23 = vld [vmem:[#allocation5 + $0x170c] sm:$0xf0]  ;;  %v12212_v50 = vor.u32 %v14835_v14, %v12211_v13  ;;  %6653 = vmatpush.bf16.msrb.mxu0 %v11956_v42  ;;  %v6436_v14 = vpop.f32.mrf.mxu3 }
  0xe1   :  { %v12579_v28 = vld [vmem:[#allocation5 + $0x18e0] sm:$0xf]  ;;  %v14927_v34 = vld [vmem:[#allocation5 + $0x18ec] sm:$0xf0]  ;;  %v12340_v58 = vor.u32 %v14867_v23, %v12339_v22  ;;  %6666 = vmatpush.bf16.msrb.mxu1 %v12084_v49 }
  0xe2   :  { %v12707_v35 = vld [vmem:[#allocation5 + $0x19e0] sm:$0xf]  ;;  %v14959_v4 = vld [vmem:[#allocation5 + $0x19ec] sm:$0xf0]  ;;  %v12580_v59 = vor.u32 %v14927_v34, %v12579_v28  ;;  %v6447_v60 = vpop.f32.mrf.mxu0 }
  0xe3   :  { %v12835_v44 = vld [vmem:[#allocation5 + $0x1ae0] sm:$0xf]  ;;  %v14991_v45 = vld [vmem:[#allocation5 + $0x1aec] sm:$0xf0]  ;;  %v12708_v61 = vor.u32 %v14959_v4, %v12707_v35  ;;  %6679 = vmatpush.bf16.msrb.mxu2 %v12212_v50  ;;  %6692 = vmatpush.bf16.msrb.mxu3 %v12340_v58 }
  0xe4   :  { %v12963_v51 = vld [vmem:[#allocation5 + $0x1be0] sm:$0xf]  ;;  %v15023_v52 = vld [vmem:[#allocation5 + $0x1bec] sm:$0xf0]  ;;  %v12836_v62 = vor.u32 %v14991_v45, %v12835_v44  ;;  %6698 = vmatpush.bf16.msra.mxu0 %v12580_v59  ;;  %6667 = vmatmul.bf16.vlgmr.msrb.gmra.mxu1 %v15700_v9 }
  0xe5   :  { %v12563_v63 = vld [vmem:[#allocation5 + $0x18c0] sm:$0xf]  ;;  %v14923_v0 = vld [vmem:[#allocation5 + $0x18cc] sm:$0xf0]  ;;  %v12964_v2 = vor.u32 %v15023_v52, %v12963_v51  ;;  %6711 = vmatpush.bf16.msra.mxu1 %v12708_v61  ;;  %6654 = vmatmul.bf16.vlgmr.msrb.gmra.mxu0 %v15696_v3 }
  0xe6   :  { %v12691_v1 = vld [vmem:[#allocation5 + $0x19c0] sm:$0xf]  ;;  %v14955_v5 = vld [vmem:[#allocation5 + $0x19cc] sm:$0xf0]  ;;  %v12564_v13 = vor.u32 %v14923_v0, %v12563_v63  ;;  %6680 = vmatmul.bf16.vlgmr.msrb.gmra.mxu2 %v15698_v8  ;;  %6693 = vmatmul.bf16.vlgmr.msrb.gmra.mxu3 %v15702_v12 }
  0xe7   :  { %v12819_v6 = vld [vmem:[#allocation5 + $0x1ac0] sm:$0xf]  ;;  %v14987_v7 = vld [vmem:[#allocation5 + $0x1acc] sm:$0xf0]  ;;  %6724 = vmatpush.bf16.msra.mxu2 %v12836_v62  ;;  %v12692_v15 = vor.u32 %v14955_v5, %v12691_v1  ;;  %6737 = vmatpush.bf16.msra.mxu3 %v12964_v2  ;;  %v6448_v2 = vadd.f32 %v6447_v60, %v15691_v47  ;;  %v6460_v5 = vpop.f32.mrf.mxu1 }
  0xe8   :  { %v12947_v10 = vld [vmem:[#allocation5 + $0x1bc0] sm:$0xf]  ;;  %v15019_v57 = vld [vmem:[#allocation5 + $0x1bcc] sm:$0xf0]  ;;  %v12820_v20 = vor.u32 %v14987_v7, %v12819_v6  ;;  %6699 = vmatpush.bf16.msra.mxu0 %v12564_v13 }
  0xe9   :  { %v12547_v22 = vld [vmem:[#allocation5 + $0x18a0] sm:$0xf]  ;;  %v14919_v23 = vld [vmem:[#allocation5 + $0x18ac] sm:$0xf0]  ;;  %v12948_v55 = vor.u32 %v15019_v57, %v12947_v10  ;;  %6712 = vmatpush.bf16.msra.mxu1 %v12692_v15  ;;  %v6461_v14 = vadd.f32 %v6460_v5, %v6448_v2 }
  0xea   :  { %v12675_v28 = vld [vmem:[#allocation5 + $0x19a0] sm:$0xf]  ;;  %v14951_v33 = vld [vmem:[#allocation5 + $0x19ac] sm:$0xf0]  ;;  %v12548_v44 = vor.u32 %v14919_v23, %v12547_v22 }
  0xeb   :  { %v12803_v34 = vld [vmem:[#allocation5 + $0x1aa0] sm:$0xf]  ;;  %v14983_v35 = vld [vmem:[#allocation5 + $0x1aac] sm:$0xf0]  ;;  %6725 = vmatpush.bf16.msra.mxu2 %v12820_v20  ;;  %v12676_v45 = vor.u32 %v14951_v33, %v12675_v28  ;;  %6738 = vmatpush.bf16.msra.mxu3 %v12948_v55  ;;  %v6473_v33 = vpop.f32.mrf.mxu2 }
  0xec   :  { %v12931_v4 = vld [vmem:[#allocation5 + $0x1ba0] sm:$0xf]  ;;  %v15015_v42 = vld [vmem:[#allocation5 + $0x1bac] sm:$0xf0]  ;;  %v12804_v46 = vor.u32 %v14983_v35, %v12803_v34  ;;  %6700 = vmatpush.bf16.msra.mxu0 %v12548_v44  ;;  %v6486_v44 = vpop.f32.mrf.mxu3 }
  0xed   :  { %v12531_v48 = vld [vmem:[#allocation5 + $0x1880] sm:$0xf]  ;;  %v14915_v49 = vld [vmem:[#allocation5 + $0x188c] sm:$0xf0]  ;;  %v12932_v51 = vor.u32 %v15015_v42, %v12931_v4  ;;  %6713 = vmatpush.bf16.msra.mxu1 %v12676_v45  ;;  %v6474_v42 = vadd.f32 %v6473_v33, %v6461_v14  ;;  %v15711_v14 = vld [vmem:[#allocation2 + $0x18] sm:$0xff] }
  0xee   :  { %v12659_v50 = vld [vmem:[#allocation5 + $0x1980] sm:$0xf]  ;;  %v14947_v52 = vld [vmem:[#allocation5 + $0x198c] sm:$0xf0]  ;;  %v12532_v59 = vor.u32 %v14915_v49, %v12531_v48 }
  0xef   :  { %v12787_v53 = vld [vmem:[#allocation5 + $0x1a80] sm:$0xf]  ;;  %v14979_v54 = vld [vmem:[#allocation5 + $0x1a8c] sm:$0xf0]  ;;  %6726 = vmatpush.bf16.msra.mxu2 %v12804_v46  ;;  %v12660_v61 = vor.u32 %v14947_v52, %v12659_v50  ;;  %6739 = vmatpush.bf16.msra.mxu3 %v12932_v51  ;;  %v15709_v49 = vadd.f32 %v6486_v44, %v6474_v42  ;;  %v6449_v50 = vpop.f32.mrf.mxu0  ;;  %v160_v44 = vperm.slane %v15711_v14, 0 }
  0xf0   :  { %v12915_v56 = vld [vmem:[#allocation5 + $0x1b80] sm:$0xf]  ;;  %v15011_v58 = vld [vmem:[#allocation5 + $0x1b8c] sm:$0xf0]  ;;  %v12788_v62 = vor.u32 %v14979_v54, %v12787_v53  ;;  %6701 = vmatpush.bf16.msra.mxu0 %v12532_v59 }
  0xf1   :  { %v12515_v63 = vld [vmem:[#allocation5 + $0x1860] sm:$0xf]  ;;  %v14911_v0 = vld [vmem:[#allocation5 + $0x186c] sm:$0xf0]  ;;  %v12916_v6 = vor.u32 %v15011_v58, %v12915_v56  ;;  %6714 = vmatpush.bf16.msra.mxu1 %v12660_v61  ;;  %v6462_v58 = vpop.f32.mrf.mxu1 }
  0xf2   :  { %v12643_v1 = vld [vmem:[#allocation5 + $0x1960] sm:$0xf]  ;;  %v14943_v7 = vld [vmem:[#allocation5 + $0x196c] sm:$0xf0]  ;;  %v12516_v15 = vor.u32 %v14911_v0, %v12515_v63 }
  0xf3   :  { %v12771_v10 = vld [vmem:[#allocation5 + $0x1a60] sm:$0xf]  ;;  %v14975_v57 = vld [vmem:[#allocation5 + $0x1a6c] sm:$0xf0]  ;;  %6727 = vmatpush.bf16.msra.mxu2 %v12788_v62  ;;  %v12644_v20 = vor.u32 %v14943_v7, %v12643_v1  ;;  %6740 = vmatpush.bf16.msra.mxu3 %v12916_v6 }
  0xf4   :  { %v12899_v11 = vld [vmem:[#allocation5 + $0x1b60] sm:$0xf]  ;;  %v15007_v13 = vld [vmem:[#allocation5 + $0x1b6c] sm:$0xf0]  ;;  %v12772_v22 = vor.u32 %v14975_v57, %v12771_v10  ;;  %6702 = vmatpush.bf16.msra.mxu0 %v12516_v15  ;;  %v6475_v15 = vpop.f32.mrf.mxu2 }
  0xf5   :  { %v12499_v23 = vld [vmem:[#allocation5 + $0x1840] sm:$0xf]  ;;  %v14907_v28 = vld [vmem:[#allocation5 + $0x184c] sm:$0xf0]  ;;  %v12900_v47 = vor.u32 %v15007_v13, %v12899_v11  ;;  %6715 = vmatpush.bf16.msra.mxu1 %v12644_v20 }
  0xf6   :  { %v12627_v55 = vld [vmem:[#allocation5 + $0x1940] sm:$0xf]  ;;  %v14939_v34 = vld [vmem:[#allocation5 + $0x194c] sm:$0xf0]  ;;  %v12500_v48 = vor.u32 %v14907_v28, %v12499_v23 }
  0xf7   :  { %v12755_v35 = vld [vmem:[#allocation5 + $0x1a40] sm:$0xf]  ;;  %v14971_v4 = vld [vmem:[#allocation5 + $0x1a4c] sm:$0xf0]  ;;  %6728 = vmatpush.bf16.msra.mxu2 %v12772_v22  ;;  %v12628_v51 = vor.u32 %v14939_v34, %v12627_v55  ;;  %6741 = vmatpush.bf16.msra.mxu3 %v12900_v47  ;;  %v6488_v55 = vpop.f32.mrf.mxu3 }
  0xf8   :  { %v12883_v45 = vld [vmem:[#allocation5 + $0x1b40] sm:$0xf]  ;;  %v15003_v46 = vld [vmem:[#allocation5 + $0x1b4c] sm:$0xf0]  ;;  %v12756_v52 = vor.u32 %v14971_v4, %v12755_v35  ;;  %6703 = vmatpush.bf16.msra.mxu0 %v12500_v48 }
  0xf9   :  { %v12483_v53 = vld [vmem:[#allocation5 + $0x1820] sm:$0xf]  ;;  %v14903_v54 = vld [vmem:[#allocation5 + $0x182c] sm:$0xf0]  ;;  %v12884_v59 = vor.u32 %v15003_v46, %v12883_v45  ;;  %6716 = vmatpush.bf16.msra.mxu1 %v12628_v51  ;;  %v162_v51 = vperm.slane %v15711_v14, 2 }
  0xfa   :  { %v12611_v56 = vld [vmem:[#allocation5 + $0x1920] sm:$0xf]  ;;  %v14935_v60 = vld [vmem:[#allocation5 + $0x192c] sm:$0xf0]  ;;  %v12484_v2 = vor.u32 %v14903_v54, %v12483_v53 }
  0xfb   :  { %v12739_v61 = vld [vmem:[#allocation5 + $0x1a20] sm:$0xf]  ;;  %v14967_v62 = vld [vmem:[#allocation5 + $0x1a2c] sm:$0xf0]  ;;  %6729 = vmatpush.bf16.msra.mxu2 %v12756_v52  ;;  %v12612_v10 = vor.u32 %v14935_v60, %v12611_v56  ;;  %6742 = vmatpush.bf16.msra.mxu3 %v12884_v59  ;;  %v161_v52 = vperm.slane %v15711_v14, 1  ;;  %v163_v56 = vperm.slane %v15711_v14, 3 }
  0xfc   :  { %v12867_v63 = vld [vmem:[#allocation5 + $0x1b20] sm:$0xf]  ;;  %v14999_v0 = vld [vmem:[#allocation5 + $0x1b2c] sm:$0xf0]  ;;  %v12740_v57 = vor.u32 %v14967_v62, %v12739_v61  ;;  %6704 = vmatpush.bf16.msra.mxu0 %v12484_v2 }
  0xfd   :  { %v12467_v1 = vld [vmem:[#allocation5 + $0x1800] sm:$0xf]  ;;  %v14899_v5 = vld [vmem:[#allocation5 + $0x180c] sm:$0xf0]  ;;  %v12868_v20 = vor.u32 %v14999_v0, %v12867_v63  ;;  %6717 = vmatpush.bf16.msra.mxu1 %v12612_v10  ;;  %v15717_v0 = vpack.c.bf16 %v160_v44, %v160_v44 }
  0xfe   :  { %v12595_v6 = vld [vmem:[#allocation5 + $0x1900] sm:$0xf]  ;;  %v14931_v7 = vld [vmem:[#allocation5 + $0x190c] sm:$0xf0]  ;;  %v12468_v35 = vor.u32 %v14899_v5, %v12467_v1 }
  0xff   :  { %v12723_v11 = vld [vmem:[#allocation5 + $0x1a00] sm:$0xf]  ;;  %v14963_v13 = vld [vmem:[#allocation5 + $0x1a0c] sm:$0xf0]  ;;  %6730 = vmatpush.bf16.msra.mxu2 %v12740_v57  ;;  %v12596_v45 = vor.u32 %v14931_v7, %v12595_v6  ;;  %6743 = vmatpush.bf16.msra.mxu3 %v12868_v20  ;;  %v15719_v6 = vpack.c.bf16 %v162_v51, %v162_v51  ;;  %v15721_v7 = vpack.c.bf16 %v161_v52, %v161_v52 }
 0x100   :  { %v12851_v22 = vld [vmem:[#allocation5 + $0x1b00] sm:$0xf]  ;;  %v14995_v23 = vld [vmem:[#allocation5 + $0x1b0c] sm:$0xf0]  ;;  %v12724_v46 = vor.u32 %v14963_v13, %v12723_v11  ;;  %6705 = vmatpush.bf16.msra.mxu0 %v12468_v35  ;;  %v15723_v11 = vpack.c.bf16 %v163_v56, %v163_v56 }
 0x101   :  { %v13091_v28 = vld [vmem:[#allocation5 + $0x1ce0] sm:$0xf]  ;;  %v15055_v33 = vld [vmem:[#allocation5 + $0x1cec] sm:$0xf0]  ;;  %v12852_v53 = vor.u32 %v14995_v23, %v12851_v22  ;;  %6718 = vmatpush.bf16.msra.mxu1 %v12596_v45 }
 0x102   :  { %v13219_v47 = vld [vmem:[#allocation5 + $0x1de0] sm:$0xf]  ;;  %v15087_v34 = vld [vmem:[#allocation5 + $0x1dec] sm:$0xf0]  ;;  %v13092_v54 = vor.u32 %v15055_v33, %v13091_v28  ;;  %v6499_v56 = vpop.f32.mrf.mxu0 }
 0x103   :  { %v13347_v4 = vld [vmem:[#allocation5 + $0x1ee0] sm:$0xf]  ;;  %v15119_v42 = vld [vmem:[#allocation5 + $0x1eec] sm:$0xf0]  ;;  %v13220_v58 = vor.u32 %v15087_v34, %v13219_v47  ;;  %6731 = vmatpush.bf16.msra.mxu2 %v12724_v46  ;;  %6744 = vmatpush.bf16.msra.mxu3 %v12852_v53 }
 0x104   :  { %v13475_v48 = vld [vmem:[#allocation5 + $0x1fe0] sm:$0xf]  ;;  %v15151_v50 = vld [vmem:[#allocation5 + $0x1fec] sm:$0xf0]  ;;  %v13348_v59 = vor.u32 %v15119_v42, %v13347_v4  ;;  %6750 = vmatpush.bf16.msrb.mxu0 %v13092_v54  ;;  %6719 = vmatmul.bf16.vlgmr.msra.gmra.mxu1 %v15721_v7 }
 0x105   :  { %v13075_v60 = vld [vmem:[#allocation5 + $0x1cc0] sm:$0xf]  ;;  %v15051_v61 = vld [vmem:[#allocation5 + $0x1ccc] sm:$0xf0]  ;;  %v13476_v63 = vor.u32 %v15151_v50, %v13475_v48  ;;  %6763 = vmatpush.bf16.msrb.mxu1 %v13220_v58  ;;  %6706 = vmatmul.bf16.vlgmr.msra.gmra.mxu0 %v15717_v0 }
 0x106   :  { %v13203_v62 = vld [vmem:[#allocation5 + $0x1dc0] sm:$0xf]  ;;  %v15083_v1 = vld [vmem:[#allocation5 + $0x1dcc] sm:$0xf0]  ;;  %v13076_v13 = vor.u32 %v15051_v61, %v13075_v60  ;;  %6732 = vmatmul.bf16.vlgmr.msra.gmra.mxu2 %v15719_v6  ;;  %6745 = vmatmul.bf16.vlgmr.msra.gmra.mxu3 %v15723_v11  ;;  %v6500_v60 = vadd.f32 %v6499_v56, %v15709_v49 }
 0x107   :  { %v13331_v2 = vld [vmem:[#allocation5 + $0x1ec0] sm:$0xf]  ;;  %v15115_v5 = vld [vmem:[#allocation5 + $0x1ecc] sm:$0xf0]  ;;  %6776 = vmatpush.bf16.msrb.mxu2 %v13348_v59  ;;  %v13204_v15 = vor.u32 %v15083_v1, %v13203_v62  ;;  %6789 = vmatpush.bf16.msrb.mxu3 %v13476_v63  ;;  %v6512_v62 = vpop.f32.mrf.mxu1 }
 0x108   :  { %v13459_v10 = vld [vmem:[#allocation5 + $0x1fc0] sm:$0xf]  ;;  %v15147_v57 = vld [vmem:[#allocation5 + $0x1fcc] sm:$0xf0]  ;;  %v13332_v20 = vor.u32 %v15115_v5, %v13331_v2  ;;  %6751 = vmatpush.bf16.msrb.mxu0 %v13076_v13  ;;  %v6513_v13 = vadd.f32 %v6512_v62, %v6500_v60 }
 0x109   :  { %v13059_v22 = vld [vmem:[#allocation5 + $0x1ca0] sm:$0xf]  ;;  %v15047_v23 = vld [vmem:[#allocation5 + $0x1cac] sm:$0xf0]  ;;  %v13460_v55 = vor.u32 %v15147_v57, %v13459_v10  ;;  %6764 = vmatpush.bf16.msrb.mxu1 %v13204_v15 }
 0x10a   :  { %v13187_v28 = vld [vmem:[#allocation5 + $0x1da0] sm:$0xf]  ;;  %v15079_v33 = vld [vmem:[#allocation5 + $0x1dac] sm:$0xf0]  ;;  %v13060_v42 = vor.u32 %v15047_v23, %v13059_v22 }
 0x10b   :  { %v13315_v47 = vld [vmem:[#allocation5 + $0x1ea0] sm:$0xf]  ;;  %v15111_v34 = vld [vmem:[#allocation5 + $0x1eac] sm:$0xf0]  ;;  %6777 = vmatpush.bf16.msrb.mxu2 %v13332_v20  ;;  %v13188_v44 = vor.u32 %v15079_v33, %v13187_v28  ;;  %6790 = vmatpush.bf16.msrb.mxu3 %v13460_v55 }
 0x10c   :  { %v13443_v35 = vld [vmem:[#allocation5 + $0x1fa0] sm:$0xf]  ;;  %v15143_v4 = vld [vmem:[#allocation5 + $0x1fac] sm:$0xf0]  ;;  %v13316_v45 = vor.u32 %v15111_v34, %v13315_v47  ;;  %6752 = vmatpush.bf16.msrb.mxu0 %v13060_v42  ;;  %v6525_v42 = vpop.f32.mrf.mxu2 }
 0x10d   :  { %v13043_v46 = vld [vmem:[#allocation5 + $0x1c80] sm:$0xf]  ;;  %v15043_v48 = vld [vmem:[#allocation5 + $0x1c8c] sm:$0xf0]  ;;  %v13444_v51 = vor.u32 %v15143_v4, %v13443_v35  ;;  %6765 = vmatpush.bf16.msrb.mxu1 %v13188_v44 }
 0x10e   :  { %v13171_v50 = vld [vmem:[#allocation5 + $0x1d80] sm:$0xf]  ;;  %v15075_v52 = vld [vmem:[#allocation5 + $0x1d8c] sm:$0xf0]  ;;  %v13044_v61 = vor.u32 %v15043_v48, %v13043_v46  ;;  %v6526_v48 = vadd.f32 %v6525_v42, %v6513_v13  ;;  %v14157_v42 = vld [vmem:[#allocation5 + $0xe4] sm:$0xf] }
 0x10f   :  { %v13299_v53 = vld [vmem:[#allocation5 + $0x1e80] sm:$0xf]  ;;  %v15107_v54 = vld [vmem:[#allocation5 + $0x1e8c] sm:$0xf0]  ;;  %6778 = vmatpush.bf16.msrb.mxu2 %v13316_v45  ;;  %v13172_v63 = vor.u32 %v15075_v52, %v13171_v50  ;;  %6791 = vmatpush.bf16.msrb.mxu3 %v13444_v51  ;;  %v6538_v50 = vpop.f32.mrf.mxu3  ;;  %v6514_v56 = vpop.f32.mrf.mxu1 }
 0x110   :  { %v13427_v58 = vld [vmem:[#allocation5 + $0x1f80] sm:$0xf]  ;;  %v15139_v59 = vld [vmem:[#allocation5 + $0x1f8c] sm:$0xf0]  ;;  %v13300_v1 = vor.u32 %v15107_v54, %v13299_v53  ;;  %6753 = vmatpush.bf16.msrb.mxu0 %v13044_v61  ;;  %v6501_v53 = vpop.f32.mrf.mxu0 }
 0x111   :  { %v13027_v2 = vld [vmem:[#allocation5 + $0x1c60] sm:$0xf]  ;;  %v15039_v5 = vld [vmem:[#allocation5 + $0x1c6c] sm:$0xf0]  ;;  %v13428_v57 = vor.u32 %v15139_v59, %v13427_v58  ;;  %6766 = vmatpush.bf16.msrb.mxu1 %v13172_v63  ;;  %v15730_v58 = vadd.f32 %v6538_v50, %v6526_v48  ;;  %v9637_v48 = vld [vmem:[#allocation5 + $0x1f0] sm:$0xf0] }
 0x112   :  { %v13155_v10 = vld [vmem:[#allocation5 + $0x1d60] sm:$0xf]  ;;  %v15071_v15 = vld [vmem:[#allocation5 + $0x1d6c] sm:$0xf0]  ;;  %v13028_v55 = vor.u32 %v15039_v5, %v13027_v2  ;;  %v9765_v53 = vld [vmem:[#allocation5 + $0x2f0] sm:$0xf0] }
 0x113   :  { %v13283_v20 = vld [vmem:[#allocation5 + $0x1e60] sm:$0xf]  ;;  %v15103_v22 = vld [vmem:[#allocation5 + $0x1e6c] sm:$0xf0]  ;;  %6779 = vmatpush.bf16.msrb.mxu2 %v13300_v1  ;;  %v13156_v49 = vor.u32 %v15071_v15, %v13155_v10  ;;  %6792 = vmatpush.bf16.msrb.mxu3 %v13428_v57 }
 0x114   :  { %v13411_v23 = vld [vmem:[#allocation5 + $0x1f60] sm:$0xf]  ;;  %v15135_v28 = vld [vmem:[#allocation5 + $0x1f6c] sm:$0xf0]  ;;  %v13284_v33 = vor.u32 %v15103_v22, %v13283_v20  ;;  %6754 = vmatpush.bf16.msrb.mxu0 %v13028_v55 }
 0x115   :  { %v13011_v47 = vld [vmem:[#allocation5 + $0x1c40] sm:$0xf]  ;;  %v15035_v34 = vld [vmem:[#allocation5 + $0x1c4c] sm:$0xf0]  ;;  %v13412_v4 = vor.u32 %v15135_v28, %v13411_v23  ;;  %6767 = vmatpush.bf16.msrb.mxu1 %v13156_v49 }
 0x116   :  { %v13139_v35 = vld [vmem:[#allocation5 + $0x1d40] sm:$0xf]  ;;  %v15067_v44 = vld [vmem:[#allocation5 + $0x1d4c] sm:$0xf0]  ;;  %v13012_v54 = vor.u32 %v15035_v34, %v13011_v47 }
 0x117   :  { %v13267_v45 = vld [vmem:[#allocation5 + $0x1e40] sm:$0xf]  ;;  %v15099_v46 = vld [vmem:[#allocation5 + $0x1e4c] sm:$0xf0]  ;;  %6780 = vmatpush.bf16.msrb.mxu2 %v13284_v33  ;;  %v13140_v59 = vor.u32 %v15067_v44, %v13139_v35  ;;  %6793 = vmatpush.bf16.msrb.mxu3 %v13412_v4  ;;  %v6527_v44 = vpop.f32.mrf.mxu2  ;;  %v6540_v50 = vpop.f32.mrf.mxu3 }
 0x118   :  { %v13395_v51 = vld [vmem:[#allocation5 + $0x1f40] sm:$0xf]  ;;  %v15131_v52 = vld [vmem:[#allocation5 + $0x1f4c] sm:$0xf0]  ;;  %v13268_v60 = vor.u32 %v15099_v46, %v13267_v45  ;;  %6755 = vmatpush.bf16.msrb.mxu0 %v13012_v54  ;;  %v9509_v45 = vld [vmem:[#allocation5 + $0xf0] sm:$0xf0] }
 0x119   :  { %v12995_v61 = vld [vmem:[#allocation5 + $0x1c20] sm:$0xf]  ;;  %v15031_v62 = vld [vmem:[#allocation5 + $0x1c2c] sm:$0xf0]  ;;  %v13396_v1 = vor.u32 %v15131_v52, %v13395_v51  ;;  %6768 = vmatpush.bf16.msrb.mxu1 %v13140_v59  ;;  %v14189_v46 = vld [vmem:[#allocation5 + $0x1e4] sm:$0xf] }
 0x11a   :  { %v13123_v63 = vld [vmem:[#allocation5 + $0x1d20] sm:$0xf]  ;;  %v15063_v2 = vld [vmem:[#allocation5 + $0x1d2c] sm:$0xf0]  ;;  %v12996_v15 = vor.u32 %v15031_v62, %v12995_v61  ;;  %v14221_v52 = vld [vmem:[#allocation5 + $0x2e4] sm:$0xf] }
 0x11b   :  { %v13251_v5 = vld [vmem:[#allocation5 + $0x1e20] sm:$0xf]  ;;  %v15095_v10 = vld [vmem:[#allocation5 + $0x1e2c] sm:$0xf0]  ;;  %6781 = vmatpush.bf16.msrb.mxu2 %v13268_v60  ;;  %v13124_v28 = vor.u32 %v15063_v2, %v13123_v63  ;;  %6794 = vmatpush.bf16.msrb.mxu3 %v13396_v1  ;;  %v164_v54 = vperm.slane %v15711_v14, 4  ;;  %v166_v62 = vperm.slane %v15711_v14, 6  ;;  %v9512_v2 = vor.u32 %v14157_v42, %v9509_v45 }
 0x11c   :  { %v13379_v57 = vld [vmem:[#allocation5 + $0x1f20] sm:$0xf]  ;;  %v15127_v13 = vld [vmem:[#allocation5 + $0x1f2c] sm:$0xf0]  ;;  %v13252_v55 = vor.u32 %v15095_v10, %v13251_v5  ;;  %6756 = vmatpush.bf16.msrb.mxu0 %v12996_v15  ;;  %v14253_v60 = vld [vmem:[#allocation5 + $0x3e4] sm:$0xf]  ;;  %v9640_v10 = vor.u32 %v14189_v46, %v9637_v48 }
 0x11d   :  { %v12979_v20 = vld [vmem:[#allocation5 + $0x1c00] sm:$0xf]  ;;  %v15027_v22 = vld [vmem:[#allocation5 + $0x1c0c] sm:$0xf0]  ;;  %v13380_v34 = vor.u32 %v15127_v13, %v13379_v57  ;;  %6769 = vmatpush.bf16.msrb.mxu1 %v13124_v28  ;;  %v9893_v61 = vld [vmem:[#allocation5 + $0x3f0] sm:$0xf0]  ;;  %v9768_v57 = vor.u32 %v14221_v52, %v9765_v53 }
 0x11e   :  { %v13107_v23 = vld [vmem:[#allocation5 + $0x1d00] sm:$0xf]  ;;  %v15059_v49 = vld [vmem:[#allocation5 + $0x1d0c] sm:$0xf0]  ;;  %v12980_v51 = vor.u32 %v15027_v22, %v12979_v20  ;;  %v165_v63 = vperm.slane %v15711_v14, 5  ;;  %v167_v5 = vperm.slane %v15711_v14, 7  ;;  %v9896_v22 = vor.u32 %v14253_v60, %v9893_v61 }
 0x11f   :  { %v13235_v33 = vld [vmem:[#allocation5 + $0x1e00] sm:$0xf]  ;;  %v15091_v47 = vld [vmem:[#allocation5 + $0x1e0c] sm:$0xf0]  ;;  %6782 = vmatpush.bf16.msrb.mxu2 %v13252_v55  ;;  %v13108_v56 = vor.u32 %v15059_v49, %v13107_v23  ;;  %6795 = vmatpush.bf16.msrb.mxu3 %v13380_v34  ;;  %v14153_v13 = vld [vmem:[#allocation5 + $0xc4] sm:$0xf]  ;;  %v15736_v23 = vpack.c.bf16 %v164_v54, %v164_v54 }
 0x120   :  { %v13363_v35 = vld [vmem:[#allocation5 + $0x1f00] sm:$0xf]  ;;  %v15123_v4 = vld [vmem:[#allocation5 + $0x1f0c] sm:$0xf0]  ;;  %v13236_v59 = vor.u32 %v15091_v47, %v13235_v33  ;;  %v9493_v15 = vld [vmem:[#allocation5 + $0xd0] sm:$0xf0]  ;;  %6757 = vmatpush.bf16.msrb.mxu0 %v12980_v51  ;;  %v15738_v33 = vpack.c.bf16 %v166_v62, %v166_v62  ;;  %v15740_v47 = vpack.c.bf16 %v165_v63, %v165_v63 }
 0x121   :  { %v13364_v1 = vor.u32 %v15123_v4, %v13363_v35  ;;  %v14185_v20 = vld [vmem:[#allocation5 + $0x1c4] sm:$0xf]  ;;  %v9621_v28 = vld [vmem:[#allocation5 + $0x1d0] sm:$0xf0]  ;;  %6770 = vmatpush.bf16.msrb.mxu1 %v13108_v56  ;;  %v15742_v35 = vpack.c.bf16 %v167_v5, %v167_v5  ;;  %v9496_v4 = vor.u32 %v14153_v13, %v9493_v15 }
 0x122   :  { %v14217_v55 = vld [vmem:[#allocation5 + $0x2c4] sm:$0xf]  ;;  %v9749_v49 = vld [vmem:[#allocation5 + $0x2d0] sm:$0xf0]  ;;  %v9624_v42 = vor.u32 %v14185_v20, %v9621_v28  ;;  %v6551_v13 = vpop.f32.mrf.mxu0 }
 0x123   :  { %6783 = vmatpush.bf16.msrb.mxu2 %v13236_v59  ;;  %v14249_v34 = vld [vmem:[#allocation5 + $0x3c4] sm:$0xf]  ;;  %v9877_v14 = vld [vmem:[#allocation5 + $0x3d0] sm:$0xf0]  ;;  %6796 = vmatpush.bf16.msrb.mxu3 %v13364_v1  ;;  %v9752_v44 = vor.u32 %v14217_v55, %v9749_v49  ;;  %v6564_v55 = vpop.f32.mrf.mxu1 }
 0x124   :  { %6802 = vmatpush.bf16.msra.mxu0 %v9512_v2  ;;  %v14149_v45 = vld [vmem:[#allocation5 + $0xa4] sm:$0xf]  ;;  %v9477_v46 = vld [vmem:[#allocation5 + $0xb0] sm:$0xf0]  ;;  %v9880_v50 = vor.u32 %v14249_v34, %v9877_v14  ;;  %6771 = vmatmul.bf16.vlgmr.msrb.gmra.mxu1 %v15740_v47 }
 0x125   :  { %6815 = vmatpush.bf16.msra.mxu1 %v9640_v10  ;;  %v14181_v48 = vld [vmem:[#allocation5 + $0x1a4] sm:$0xf]  ;;  %6758 = vmatmul.bf16.vlgmr.msrb.gmra.mxu0 %v15736_v23  ;;  %v9605_v51 = vld [vmem:[#allocation5 + $0x1b0] sm:$0xf0]  ;;  %v9480_v59 = vor.u32 %v14149_v45, %v9477_v46 }
 0x126   :  { %v14213_v52 = vld [vmem:[#allocation5 + $0x2a4] sm:$0xf]  ;;  %v9733_v53 = vld [vmem:[#allocation5 + $0x2b0] sm:$0xf0]  ;;  %6784 = vmatmul.bf16.vlgmr.msrb.gmra.mxu2 %v15738_v33  ;;  %6797 = vmatmul.bf16.vlgmr.msrb.gmra.mxu3 %v15742_v35  ;;  %v9608_v60 = vor.u32 %v14181_v48, %v9605_v51 }
 0x127   :  { %6828 = vmatpush.bf16.msra.mxu2 %v9768_v57  ;;  %6841 = vmatpush.bf16.msra.mxu3 %v9896_v22  ;;  %v14245_v54 = vld [vmem:[#allocation5 + $0x3a4] sm:$0xf]  ;;  %v9861_v56 = vld [vmem:[#allocation5 + $0x3b0] sm:$0xf0]  ;;  %v9736_v61 = vor.u32 %v14213_v52, %v9733_v53  ;;  %v6552_v22 = vadd.f32 %v6551_v13, %v15730_v58 }
 0x128   :  { %6803 = vmatpush.bf16.msra.mxu0 %v9496_v4  ;;  %v14145_v62 = vld [vmem:[#allocation5 + $0x84] sm:$0xf]  ;;  %v9461_v63 = vld [vmem:[#allocation5 + $0x90] sm:$0xf0]  ;;  %v9864_v2 = vor.u32 %v14245_v54, %v9861_v56 }
 0x129   :  { %6816 = vmatpush.bf16.msra.mxu1 %v9624_v42  ;;  %v14177_v1 = vld [vmem:[#allocation5 + $0x184] sm:$0xf]  ;;  %v9589_v5 = vld [vmem:[#allocation5 + $0x190] sm:$0xf0]  ;;  %v9464_v28 = vor.u32 %v14145_v62, %v9461_v63  ;;  %v6565_v45 = vadd.f32 %v6564_v55, %v6552_v22  ;;  %v6577_v62 = vpop.f32.mrf.mxu2 }
 0x12a   :  { %v14209_v10 = vld [vmem:[#allocation5 + $0x284] sm:$0xf]  ;;  %v9717_v57 = vld [vmem:[#allocation5 + $0x290] sm:$0xf0]  ;;  %v9592_v49 = vor.u32 %v14177_v1, %v9589_v5 }
 0x12b   :  { %6829 = vmatpush.bf16.msra.mxu2 %v9752_v44  ;;  %6842 = vmatpush.bf16.msra.mxu3 %v9880_v50  ;;  %v14241_v15 = vld [vmem:[#allocation5 + $0x384] sm:$0xf]  ;;  %v9845_v20 = vld [vmem:[#allocation5 + $0x390] sm:$0xf0]  ;;  %v9720_v34 = vor.u32 %v14209_v10, %v9717_v57  ;;  %v6578_v5 = vadd.f32 %v6577_v62, %v6565_v45  ;;  %v6590_v10 = vpop.f32.mrf.mxu3  ;;  %v6566_v22 = vpop.f32.mrf.mxu1 }
 0x12c   :  { %6804 = vmatpush.bf16.msra.mxu0 %v9480_v59  ;;  %v14141_v14 = vld [vmem:[#allocation5 + $0x64] sm:$0xf]  ;;  %v9445_v4 = vld [vmem:[#allocation5 + $0x70] sm:$0xf0]  ;;  %v9848_v44 = vor.u32 %v14241_v15, %v9845_v20  ;;  %v6553_v15 = vpop.f32.mrf.mxu0 }
 0x12d   :  { %6817 = vmatpush.bf16.msra.mxu1 %v9608_v60  ;;  %v14173_v42 = vld [vmem:[#allocation5 + $0x164] sm:$0xf]  ;;  %v9573_v46 = vld [vmem:[#allocation5 + $0x170] sm:$0xf0]  ;;  %v9448_v53 = vor.u32 %v14141_v14, %v9445_v4 }
 0x12e   :  { %v14205_v48 = vld [vmem:[#allocation5 + $0x264] sm:$0xf]  ;;  %v9701_v50 = vld [vmem:[#allocation5 + $0x270] sm:$0xf0]  ;;  %v9576_v58 = vor.u32 %v14173_v42, %v9573_v46 }
 0x12f   :  { %6830 = vmatpush.bf16.msra.mxu2 %v9736_v61  ;;  %6843 = vmatpush.bf16.msra.mxu3 %v9864_v2  ;;  %v14237_v51 = vld [vmem:[#allocation5 + $0x364] sm:$0xf]  ;;  %v9829_v52 = vld [vmem:[#allocation5 + $0x370] sm:$0xf0]  ;;  %v9704_v54 = vor.u32 %v14205_v48, %v9701_v50 }
 0x130   :  { %6805 = vmatpush.bf16.msra.mxu0 %v9464_v28  ;;  %v14137_v56 = vld [vmem:[#allocation5 + $0x44] sm:$0xf]  ;;  %v9429_v59 = vld [vmem:[#allocation5 + $0x50] sm:$0xf0]  ;;  %v9832_v61 = vor.u32 %v14237_v51, %v9829_v52  ;;  %v15749_v28 = vadd.f32 %v6590_v10, %v6578_v5 }
 0x131   :  { %6818 = vmatpush.bf16.msra.mxu1 %v9592_v49  ;;  %v14169_v60 = vld [vmem:[#allocation5 + $0x144] sm:$0xf]  ;;  %v9557_v63 = vld [vmem:[#allocation5 + $0x150] sm:$0xf0]  ;;  %v9432_v20 = vor.u32 %v14137_v56, %v9429_v59 }
 0x132   :  { %v14201_v1 = vld [vmem:[#allocation5 + $0x244] sm:$0xf]  ;;  %v9685_v2 = vld [vmem:[#allocation5 + $0x250] sm:$0xf0]  ;;  %v9560_v55 = vor.u32 %v14169_v60, %v9557_v63 }
 0x133   :  { %6831 = vmatpush.bf16.msra.mxu2 %v9720_v34  ;;  %6844 = vmatpush.bf16.msra.mxu3 %v9848_v44  ;;  %v14233_v57 = vld [vmem:[#allocation5 + $0x344] sm:$0xf]  ;;  %v9813_v13 = vld [vmem:[#allocation5 + $0x350] sm:$0xf0]  ;;  %v9688_v49 = vor.u32 %v14201_v1, %v9685_v2  ;;  %v6579_v2 = vpop.f32.mrf.mxu2 }
 0x134   :  { %6806 = vmatpush.bf16.msra.mxu0 %v9448_v53  ;;  %v14133_v34 = vld [vmem:[#allocation5 + $0x24] sm:$0xf]  ;;  %v9413_v14 = vld [vmem:[#allocation5 + $0x30] sm:$0xf0]  ;;  %v9816_v42 = vor.u32 %v14233_v57, %v9813_v13  ;;  %v6592_v13 = vpop.f32.mrf.mxu3 }
 0x135   :  { %6819 = vmatpush.bf16.msra.mxu1 %v9576_v58  ;;  %v14165_v4 = vld [vmem:[#allocation5 + $0x124] sm:$0xf]  ;;  %v9541_v44 = vld [vmem:[#allocation5 + $0x130] sm:$0xf0]  ;;  %v9416_v51 = vor.u32 %v14133_v34, %v9413_v14 }
 0x136   :  { %v14197_v45 = vld [vmem:[#allocation5 + $0x224] sm:$0xf]  ;;  %v9669_v46 = vld [vmem:[#allocation5 + $0x230] sm:$0xf0]  ;;  %v9544_v58 = vor.u32 %v14165_v4, %v9541_v44 }
 0x137   :  { %6832 = vmatpush.bf16.msra.mxu2 %v9704_v54  ;;  %6845 = vmatpush.bf16.msra.mxu3 %v9832_v61  ;;  %v14229_v48 = vld [vmem:[#allocation5 + $0x324] sm:$0xf]  ;;  %v9797_v50 = vld [vmem:[#allocation5 + $0x330] sm:$0xf0]  ;;  %v9672_v54 = vor.u32 %v14197_v45, %v9669_v46 }
 0x138   :  { %6807 = vmatpush.bf16.msra.mxu0 %v9432_v20  ;;  %v14129_v52 = vld [vmem:[#allocation5 + $0x4] sm:$0xf]  ;;  %v9397_v53 = vld [vmem:[#allocation5 + $0x10] sm:$0xf0]  ;;  %v9800_v62 = vor.u32 %v14229_v48, %v9797_v50 }
 0x139   :  { %6820 = vmatpush.bf16.msra.mxu1 %v9560_v55  ;;  %v14161_v56 = vld [vmem:[#allocation5 + $0x104] sm:$0xf]  ;;  %v9525_v59 = vld [vmem:[#allocation5 + $0x110] sm:$0xf0]  ;;  %v9400_v15 = vor.u32 %v14129_v52, %v9397_v53 }
 0x13a   :  { %v14193_v60 = vld [vmem:[#allocation5 + $0x204] sm:$0xf]  ;;  %v9653_v61 = vld [vmem:[#allocation5 + $0x210] sm:$0xf0] }
 0x13b   :  { %6833 = vmatpush.bf16.msra.mxu2 %v9688_v49  ;;  %6846 = vmatpush.bf16.msra.mxu3 %v9816_v42  ;;  %v14225_v63 = vld [vmem:[#allocation5 + $0x304] sm:$0xf]  ;;  %v9781_v1 = vld [vmem:[#allocation5 + $0x310] sm:$0xf0]  ;;  %v9528_v49 = vor.u32 %v14161_v56, %v9525_v59  ;;  %v9656_v34 = vor.u32 %v14193_v60, %v9653_v61 }
 0x13c   :  { %v14285_v5 = vld [vmem:[#allocation5 + $0x4e4] sm:$0xf]  ;;  %v10021_v10 = vld [vmem:[#allocation5 + $0x4f0] sm:$0xf0]  ;;  %6808 = vmatpush.bf16.msra.mxu0 %v9416_v51  ;;  %v9784_v42 = vor.u32 %v14225_v63, %v9781_v1 }
 0x13d   :  { %v14317_v57 = vld [vmem:[#allocation5 + $0x5e4] sm:$0xf]  ;;  %v10149_v20 = vld [vmem:[#allocation5 + $0x5f0] sm:$0xf0]  ;;  %6821 = vmatpush.bf16.msra.mxu1 %v9544_v58  ;;  %v10024_v44 = vor.u32 %v14285_v5, %v10021_v10 }
 0x13e   :  { %v14349_v22 = vld [vmem:[#allocation5 + $0x6e4] sm:$0xf]  ;;  %v10277_v55 = vld [vmem:[#allocation5 + $0x6f0] sm:$0xf0]  ;;  %v10152_v45 = vor.u32 %v14317_v57, %v10149_v20 }
 0x13f   :  { %6834 = vmatpush.bf16.msra.mxu2 %v9672_v54  ;;  %v14381_v14 = vld [vmem:[#allocation5 + $0x7e4] sm:$0xf]  ;;  %v10405_v4 = vld [vmem:[#allocation5 + $0x7f0] sm:$0xf0]  ;;  %6847 = vmatpush.bf16.msra.mxu3 %v9800_v62  ;;  %v10280_v46 = vor.u32 %v14349_v22, %v10277_v55 }
 0x140   :  { %v14281_v48 = vld [vmem:[#allocation5 + $0x4c4] sm:$0xf]  ;;  %v10005_v50 = vld [vmem:[#allocation5 + $0x4d0] sm:$0xf0]  ;;  %6809 = vmatpush.bf16.msra.mxu0 %v9400_v15  ;;  %v10408_v51 = vor.u32 %v14381_v14, %v10405_v4 }
 0x141   :  { %v14313_v2 = vld [vmem:[#allocation5 + $0x5c4] sm:$0xf]  ;;  %v10133_v52 = vld [vmem:[#allocation5 + $0x5d0] sm:$0xf0]  ;;  %6822 = vmatpush.bf16.msra.mxu1 %v9528_v49  ;;  %v10008_v56 = vor.u32 %v14281_v48, %v10005_v50 }
 0x142   :  { %v14345_v53 = vld [vmem:[#allocation5 + $0x6c4] sm:$0xf]  ;;  %v10261_v13 = vld [vmem:[#allocation5 + $0x6d0] sm:$0xf0]  ;;  %v10136_v59 = vor.u32 %v14313_v2, %v10133_v52  ;;  %v6603_v48 = vpop.f32.mrf.mxu0 }
 0x143   :  { %6835 = vmatpush.bf16.msra.mxu2 %v9656_v34  ;;  %v14377_v58 = vld [vmem:[#allocation5 + $0x7c4] sm:$0xf]  ;;  %v10389_v54 = vld [vmem:[#allocation5 + $0x7d0] sm:$0xf0]  ;;  %6848 = vmatpush.bf16.msra.mxu3 %v9784_v42  ;;  %v10264_v60 = vor.u32 %v14345_v53, %v10261_v13  ;;  %v6616_v53 = vpop.f32.mrf.mxu1 }
 0x144   :  { %6854 = vmatpush.bf16.msrb.mxu0 %v10024_v44  ;;  %v14277_v62 = vld [vmem:[#allocation5 + $0x4a4] sm:$0xf]  ;;  %v9989_v61 = vld [vmem:[#allocation5 + $0x4b0] sm:$0xf0]  ;;  %v10392_v1 = vor.u32 %v14377_v58, %v10389_v54  ;;  %6823 = vmatmul.bf16.vlgmr.msra.gmra.mxu1 %v15617_v30 }
 0x145   :  { %6867 = vmatpush.bf16.msrb.mxu1 %v10152_v45  ;;  %v14309_v63 = vld [vmem:[#allocation5 + $0x5a4] sm:$0xf]  ;;  %v10117_v5 = vld [vmem:[#allocation5 + $0x5b0] sm:$0xf0]  ;;  %6810 = vmatmul.bf16.vlgmr.msra.gmra.mxu0 %v15611_v17  ;;  %v9992_v22 = vor.u32 %v14277_v62, %v9989_v61 }
 0x146   :  { %v14341_v10 = vld [vmem:[#allocation5 + $0x6a4] sm:$0xf]  ;;  %v10245_v57 = vld [vmem:[#allocation5 + $0x6b0] sm:$0xf0]  ;;  %6836 = vmatmul.bf16.vlgmr.msra.gmra.mxu2 %v15609_v16  ;;  %6849 = vmatmul.bf16.vlgmr.msra.gmra.mxu3 %v15613_v18  ;;  %v10120_v55 = vor.u32 %v14309_v63, %v10117_v5 }
 0x147   :  { %6880 = vmatpush.bf16.msrb.mxu2 %v10280_v46  ;;  %6893 = vmatpush.bf16.msrb.mxu3 %v10408_v51  ;;  %v14373_v15 = vld [vmem:[#allocation5 + $0x7a4] sm:$0xf]  ;;  %v10373_v20 = vld [vmem:[#allocation5 + $0x7b0] sm:$0xf0]  ;;  %v10248_v49 = vor.u32 %v14341_v10, %v10245_v57  ;;  %v6604_v51 = vadd.f32 %v6603_v48, %v15749_v28 }
 0x148   :  { %6855 = vmatpush.bf16.msrb.mxu0 %v10008_v56  ;;  %v14273_v34 = vld [vmem:[#allocation5 + $0x484] sm:$0xf]  ;;  %v9973_v14 = vld [vmem:[#allocation5 + $0x490] sm:$0xf0]  ;;  %v10376_v42 = vor.u32 %v14373_v15, %v10373_v20 }
 0x149   :  { %6868 = vmatpush.bf16.msrb.mxu1 %v10136_v59  ;;  %v14305_v4 = vld [vmem:[#allocation5 + $0x584] sm:$0xf]  ;;  %v10101_v44 = vld [vmem:[#allocation5 + $0x590] sm:$0xf0]  ;;  %v9976_v52 = vor.u32 %v14273_v34, %v9973_v14  ;;  %v6617_v62 = vadd.f32 %v6616_v53, %v6604_v51  ;;  %v6629_v34 = vpop.f32.mrf.mxu2 }
 0x14a   :  { %v14337_v45 = vld [vmem:[#allocation5 + $0x684] sm:$0xf]  ;;  %v10229_v46 = vld [vmem:[#allocation5 + $0x690] sm:$0xf0]  ;;  %v10104_v13 = vor.u32 %v14305_v4, %v10101_v44 }
 0x14b   :  { %6881 = vmatpush.bf16.msrb.mxu2 %v10264_v60  ;;  %6894 = vmatpush.bf16.msrb.mxu3 %v10392_v1  ;;  %v14369_v50 = vld [vmem:[#allocation5 + $0x784] sm:$0xf]  ;;  %v10357_v2 = vld [vmem:[#allocation5 + $0x790] sm:$0xf0]  ;;  %v10232_v58 = vor.u32 %v14337_v45, %v10229_v46  ;;  %v6630_v44 = vadd.f32 %v6629_v34, %v6617_v62  ;;  %v6642_v45 = vpop.f32.mrf.mxu3  ;;  %v6618_v51 = vpop.f32.mrf.mxu1 }
 0x14c   :  { %6856 = vmatpush.bf16.msrb.mxu0 %v9992_v22  ;;  %v14269_v54 = vld [vmem:[#allocation5 + $0x464] sm:$0xf]  ;;  %v9957_v56 = vld [vmem:[#allocation5 + $0x470] sm:$0xf0]  ;;  %v10360_v60 = vor.u32 %v14369_v50, %v10357_v2  ;;  %v6605_v50 = vpop.f32.mrf.mxu0 }
 0x14d   :  { %6869 = vmatpush.bf16.msrb.mxu1 %v10120_v55  ;;  %v14301_v59 = vld [vmem:[#allocation5 + $0x564] sm:$0xf]  ;;  %v10085_v61 = vld [vmem:[#allocation5 + $0x570] sm:$0xf0]  ;;  %v9960_v57 = vor.u32 %v14269_v54, %v9957_v56 }
 0x14e   :  { %v14333_v63 = vld [vmem:[#allocation5 + $0x664] sm:$0xf]  ;;  %v10213_v1 = vld [vmem:[#allocation5 + $0x670] sm:$0xf0]  ;;  %v10088_v28 = vor.u32 %v14301_v59, %v10085_v61 }
 0x14f   :  { %6882 = vmatpush.bf16.msrb.mxu2 %v10248_v49  ;;  %6895 = vmatpush.bf16.msrb.mxu3 %v10376_v42  ;;  %v14365_v5 = vld [vmem:[#allocation5 + $0x764] sm:$0xf]  ;;  %v10341_v10 = vld [vmem:[#allocation5 + $0x770] sm:$0xf0]  ;;  %v10216_v15 = vor.u32 %v14333_v63, %v10213_v1 }
 0x150   :  { %6857 = vmatpush.bf16.msrb.mxu0 %v9976_v52  ;;  %v14265_v20 = vld [vmem:[#allocation5 + $0x444] sm:$0xf]  ;;  %v9941_v22 = vld [vmem:[#allocation5 + $0x450] sm:$0xf0]  ;;  %v10344_v49 = vor.u32 %v14365_v5, %v10341_v10  ;;  %v15756_v52 = vadd.f32 %v6642_v45, %v6630_v44 }
 0x151   :  { %6870 = vmatpush.bf16.msrb.mxu1 %v10104_v13  ;;  %v14297_v55 = vld [vmem:[#allocation5 + $0x544] sm:$0xf]  ;;  %v10069_v14 = vld [vmem:[#allocation5 + $0x550] sm:$0xf0]  ;;  %v9944_v2 = vor.u32 %v14265_v20, %v9941_v22 }
 0x152   :  { %v14329_v4 = vld [vmem:[#allocation5 + $0x644] sm:$0xf]  ;;  %v10197_v42 = vld [vmem:[#allocation5 + $0x650] sm:$0xf0]  ;;  %v10072_v53 = vor.u32 %v14297_v55, %v10069_v14 }
 0x153   :  { %6883 = vmatpush.bf16.msrb.mxu2 %v10232_v58  ;;  %6896 = vmatpush.bf16.msrb.mxu3 %v10360_v60  ;;  %v14361_v46 = vld [vmem:[#allocation5 + $0x744] sm:$0xf]  ;;  %v10325_v48 = vld [vmem:[#allocation5 + $0x750] sm:$0xf0]  ;;  %v10200_v13 = vor.u32 %v14329_v4, %v10197_v42  ;;  %v6631_v42 = vpop.f32.mrf.mxu2 }
 0x154   :  { %6858 = vmatpush.bf16.msrb.mxu0 %v9960_v57  ;;  %v14261_v58 = vld [vmem:[#allocation5 + $0x424] sm:$0xf]  ;;  %v9925_v54 = vld [vmem:[#allocation5 + $0x430] sm:$0xf0]  ;;  %v10328_v59 = vor.u32 %v14361_v46, %v10325_v48  ;;  %v6644_v48 = vpop.f32.mrf.mxu3 }
 0x155   :  { %6871 = vmatpush.bf16.msrb.mxu1 %v10088_v28  ;;  %v14293_v56 = vld [vmem:[#allocation5 + $0x524] sm:$0xf]  ;;  %v10053_v60 = vld [vmem:[#allocation5 + $0x530] sm:$0xf0]  ;;  %v9928_v5 = vor.u32 %v14261_v58, %v9925_v54 }
 0x156   :  { %v14325_v62 = vld [vmem:[#allocation5 + $0x624] sm:$0xf]  ;;  %v10181_v61 = vld [vmem:[#allocation5 + $0x630] sm:$0xf0]  ;;  %v10056_v28 = vor.u32 %v14293_v56, %v10053_v60 }
 0x157   :  { %6884 = vmatpush.bf16.msrb.mxu2 %v10216_v15  ;;  %6897 = vmatpush.bf16.msrb.mxu3 %v10344_v49  ;;  %v14357_v63 = vld [vmem:[#allocation5 + $0x724] sm:$0xf]  ;;  %v10309_v1 = vld [vmem:[#allocation5 + $0x730] sm:$0xf0]  ;;  %v10184_v15 = vor.u32 %v14325_v62, %v10181_v61 }
 0x158   :  { %6859 = vmatpush.bf16.msrb.mxu0 %v9944_v2  ;;  %v14257_v10 = vld [vmem:[#allocation5 + $0x404] sm:$0xf]  ;;  %v9909_v57 = vld [vmem:[#allocation5 + $0x410] sm:$0xf0]  ;;  %v10312_v34 = vor.u32 %v14357_v63, %v10309_v1 }
 0x159   :  { %6872 = vmatpush.bf16.msrb.mxu1 %v10072_v53  ;;  %v14289_v20 = vld [vmem:[#allocation5 + $0x504] sm:$0xf]  ;;  %v10037_v22 = vld [vmem:[#allocation5 + $0x510] sm:$0xf0]  ;;  %v9912_v50 = vor.u32 %v14257_v10, %v9909_v57 }
 0x15a   :  { %v14321_v55 = vld [vmem:[#allocation5 + $0x604] sm:$0xf]  ;;  %v10165_v49 = vld [vmem:[#allocation5 + $0x610] sm:$0xf0] }
 0x15b   :  { %6885 = vmatpush.bf16.msrb.mxu2 %v10200_v13  ;;  %6898 = vmatpush.bf16.msrb.mxu3 %v10328_v59  ;;  %v14353_v14 = vld [vmem:[#allocation5 + $0x704] sm:$0xf]  ;;  %v10293_v4 = vld [vmem:[#allocation5 + $0x710] sm:$0xf0]  ;;  %v10040_v13 = vor.u32 %v14289_v20, %v10037_v22  ;;  %v10168_v58 = vor.u32 %v14321_v55, %v10165_v49 }
 0x15c   :  { %v14413_v44 = vld [vmem:[#allocation5 + $0x8e4] sm:$0xf]  ;;  %v10533_v45 = vld [vmem:[#allocation5 + $0x8f0] sm:$0xf0]  ;;  %6860 = vmatpush.bf16.msrb.mxu0 %v9928_v5  ;;  %v10296_v59 = vor.u32 %v14353_v14, %v10293_v4 }
 0x15d   :  { %v14445_v46 = vld [vmem:[#allocation5 + $0x9e4] sm:$0xf]  ;;  %v10661_v2 = vld [vmem:[#allocation5 + $0x9f0] sm:$0xf0]  ;;  %6873 = vmatpush.bf16.msrb.mxu1 %v10056_v28  ;;  %v10536_v60 = vor.u32 %v14413_v44, %v10533_v45 }
 0x15e   :  { %v14477_v51 = vld [vmem:[#allocation5 + $0xae4] sm:$0xf]  ;;  %v10789_v53 = vld [vmem:[#allocation5 + $0xaf0] sm:$0xf0]  ;;  %v10664_v62 = vor.u32 %v14445_v46, %v10661_v2 }
 0x15f   :  { %6886 = vmatpush.bf16.msrb.mxu2 %v10184_v15  ;;  %v14509_v54 = vld [vmem:[#allocation5 + $0xbe4] sm:$0xf]  ;;  %v10917_v56 = vld [vmem:[#allocation5 + $0xbf0] sm:$0xf0]  ;;  %6899 = vmatpush.bf16.msrb.mxu3 %v10312_v34  ;;  %v10792_v61 = vor.u32 %v14477_v51, %v10789_v53 }
 0x160   :  { %v14409_v63 = vld [vmem:[#allocation5 + $0x8c4] sm:$0xf]  ;;  %v10517_v1 = vld [vmem:[#allocation5 + $0x8d0] sm:$0xf0]  ;;  %6861 = vmatpush.bf16.msrb.mxu0 %v9912_v50  ;;  %v10920_v5 = vor.u32 %v14509_v54, %v10917_v56 }
 0x161   :  { %v14441_v42 = vld [vmem:[#allocation5 + $0x9c4] sm:$0xf]  ;;  %v10645_v10 = vld [vmem:[#allocation5 + $0x9d0] sm:$0xf0]  ;;  %6874 = vmatpush.bf16.msrb.mxu1 %v10040_v13  ;;  %v10520_v20 = vor.u32 %v14409_v63, %v10517_v1 }
 0x162   :  { %v14473_v57 = vld [vmem:[#allocation5 + $0xac4] sm:$0xf]  ;;  %v10773_v48 = vld [vmem:[#allocation5 + $0xad0] sm:$0xf0]  ;;  %v10648_v22 = vor.u32 %v14441_v42, %v10645_v10  ;;  %v6655_v63 = vpop.f32.mrf.mxu0 }
 0x163   :  { %6887 = vmatpush.bf16.msrb.mxu2 %v10168_v58  ;;  %v14505_v28 = vld [vmem:[#allocation5 + $0xbc4] sm:$0xf]  ;;  %v10901_v15 = vld [vmem:[#allocation5 + $0xbd0] sm:$0xf0]  ;;  %6900 = vmatpush.bf16.msrb.mxu3 %v10296_v59  ;;  %v10776_v55 = vor.u32 %v14473_v57, %v10773_v48  ;;  %v6668_v57 = vpop.f32.mrf.mxu1 }
 0x164   :  { %6906 = vmatpush.bf16.msra.mxu0 %v10536_v60  ;;  %v14405_v34 = vld [vmem:[#allocation5 + $0x8a4] sm:$0xf]  ;;  %v10501_v49 = vld [vmem:[#allocation5 + $0x8b0] sm:$0xf0]  ;;  %v10904_v4 = vor.u32 %v14505_v28, %v10901_v15  ;;  %6875 = vmatmul.bf16.vlgmr.msrb.gmra.mxu1 %v15632_v41 }
 0x165   :  { %6919 = vmatpush.bf16.msra.mxu1 %v10664_v62  ;;  %v14437_v14 = vld [vmem:[#allocation5 + $0x9a4] sm:$0xf]  ;;  %v10629_v44 = vld [vmem:[#allocation5 + $0x9b0] sm:$0xf0]  ;;  %6862 = vmatmul.bf16.vlgmr.msrb.gmra.mxu0 %v15628_v39  ;;  %v10504_v51 = vor.u32 %v14405_v34, %v10501_v49 }
 0x166   :  { %6888 = vmatmul.bf16.vlgmr.msrb.gmra.mxu2 %v15626_v36  ;;  %v14469_v45 = vld [vmem:[#allocation5 + $0xaa4] sm:$0xf]  ;;  %v10757_v46 = vld [vmem:[#allocation5 + $0xab0] sm:$0xf0]  ;;  %6901 = vmatmul.bf16.vlgmr.msrb.gmra.mxu3 %v15630_v40  ;;  %v10632_v53 = vor.u32 %v14437_v14, %v10629_v44 }
 0x167   :  { %6932 = vmatpush.bf16.msra.mxu2 %v10792_v61  ;;  %6945 = vmatpush.bf16.msra.mxu3 %v10920_v5  ;;  %v14501_v50 = vld [vmem:[#allocation5 + $0xba4] sm:$0xf]  ;;  %v10885_v2 = vld [vmem:[#allocation5 + $0xbb0] sm:$0xf0]  ;;  %v10760_v13 = vor.u32 %v14469_v45, %v10757_v46  ;;  %v6656_v5 = vadd.f32 %v6655_v63, %v15756_v52 }
 0x168   :  { %6907 = vmatpush.bf16.msra.mxu0 %v10520_v20  ;;  %v14401_v58 = vld [vmem:[#allocation5 + $0x884] sm:$0xf]  ;;  %v10485_v54 = vld [vmem:[#allocation5 + $0x890] sm:$0xf0]  ;;  %v10888_v59 = vor.u32 %v14501_v50, %v10885_v2 }
 0x169   :  { %6920 = vmatpush.bf16.msra.mxu1 %v10648_v22  ;;  %v14433_v56 = vld [vmem:[#allocation5 + $0x984] sm:$0xf]  ;;  %v10613_v60 = vld [vmem:[#allocation5 + $0x990] sm:$0xf0]  ;;  %v10488_v10 = vor.u32 %v14401_v58, %v10485_v54  ;;  %v6669_v34 = vadd.f32 %v6668_v57, %v6656_v5  ;;  %v6681_v58 = vpop.f32.mrf.mxu2 }
 0x16a   :  { %v14465_v62 = vld [vmem:[#allocation5 + $0xa84] sm:$0xf]  ;;  %v10741_v61 = vld [vmem:[#allocation5 + $0xa90] sm:$0xf0]  ;;  %v10616_v48 = vor.u32 %v14433_v56, %v10613_v60 }
 0x16b   :  { %6933 = vmatpush.bf16.msra.mxu2 %v10776_v55  ;;  %6946 = vmatpush.bf16.msra.mxu3 %v10904_v4  ;;  %v14497_v1 = vld [vmem:[#allocation5 + $0xb84] sm:$0xf]  ;;  %v10869_v42 = vld [vmem:[#allocation5 + $0xb90] sm:$0xf0]  ;;  %v10744_v28 = vor.u32 %v14465_v62, %v10741_v61  ;;  %v6682_v60 = vadd.f32 %v6681_v58, %v6669_v34  ;;  %v6694_v62 = vpop.f32.mrf.mxu3  ;;  %v6670_v5 = vpop.f32.mrf.mxu1 }
 0x16c   :  { %6908 = vmatpush.bf16.msra.mxu0 %v10504_v51  ;;  %v14397_v15 = vld [vmem:[#allocation5 + $0x864] sm:$0xf]  ;;  %v10469_v20 = vld [vmem:[#allocation5 + $0x870] sm:$0xf0]  ;;  %v10872_v55 = vor.u32 %v14497_v1, %v10869_v42  ;;  %v6657_v1 = vpop.f32.mrf.mxu0 }
 0x16d   :  { %6921 = vmatpush.bf16.msra.mxu1 %v10632_v53  ;;  %v14429_v22 = vld [vmem:[#allocation5 + $0x964] sm:$0xf]  ;;  %v10597_v49 = vld [vmem:[#allocation5 + $0x970] sm:$0xf0]  ;;  %v10472_v46 = vor.u32 %v14397_v15, %v10469_v20 }
 0x16e   :  { %v14461_v14 = vld [vmem:[#allocation5 + $0xa64] sm:$0xf]  ;;  %v10725_v4 = vld [vmem:[#allocation5 + $0xa70] sm:$0xf0]  ;;  %v10600_v52 = vor.u32 %v14429_v22, %v10597_v49 }
 0x16f   :  { %6934 = vmatpush.bf16.msra.mxu2 %v10760_v13  ;;  %6947 = vmatpush.bf16.msra.mxu3 %v10888_v59  ;;  %v14493_v44 = vld [vmem:[#allocation5 + $0xb64] sm:$0xf]  ;;  %v10853_v45 = vld [vmem:[#allocation5 + $0xb70] sm:$0xf0]  ;;  %v10728_v50 = vor.u32 %v14461_v14, %v10725_v4 }
 0x170   :  { %6909 = vmatpush.bf16.msra.mxu0 %v10488_v10  ;;  %v14393_v2 = vld [vmem:[#allocation5 + $0x844] sm:$0xf]  ;;  %v10453_v51 = vld [vmem:[#allocation5 + $0x850] sm:$0xf0]  ;;  %v10856_v13 = vor.u32 %v14493_v44, %v10853_v45  ;;  %v15763_v10 = vadd.f32 %v6694_v62, %v6682_v60 }
 0x171   :  { %6922 = vmatpush.bf16.msra.mxu1 %v10616_v48  ;;  %v14425_v53 = vld [vmem:[#allocation5 + $0x944] sm:$0xf]  ;;  %v10581_v54 = vld [vmem:[#allocation5 + $0x950] sm:$0xf0]  ;;  %v10456_v42 = vor.u32 %v14393_v2, %v10453_v51 }
 0x172   :  { %v14457_v56 = vld [vmem:[#allocation5 + $0xa44] sm:$0xf]  ;;  %v10709_v59 = vld [vmem:[#allocation5 + $0xa50] sm:$0xf0]  ;;  %v10584_v57 = vor.u32 %v14425_v53, %v10581_v54 }
 0x173   :  { %6935 = vmatpush.bf16.msra.mxu2 %v10744_v28  ;;  %6948 = vmatpush.bf16.msra.mxu3 %v10872_v55  ;;  %v14489_v61 = vld [vmem:[#allocation5 + $0xb44] sm:$0xf]  ;;  %v10837_v63 = vld [vmem:[#allocation5 + $0xb50] sm:$0xf0]  ;;  %v10712_v48 = vor.u32 %v14457_v56, %v10709_v59  ;;  %v6683_v59 = vpop.f32.mrf.mxu2 }
 0x174   :  { %6910 = vmatpush.bf16.msra.mxu0 %v10472_v46  ;;  %v14389_v28 = vld [vmem:[#allocation5 + $0x824] sm:$0xf]  ;;  %v10437_v15 = vld [vmem:[#allocation5 + $0x830] sm:$0xf0]  ;;  %v10840_v22 = vor.u32 %v14489_v61, %v10837_v63  ;;  %v6696_v63 = vpop.f32.mrf.mxu3 }
 0x175   :  { %6923 = vmatpush.bf16.msra.mxu1 %v10600_v52  ;;  %v14421_v20 = vld [vmem:[#allocation5 + $0x924] sm:$0xf]  ;;  %v10565_v55 = vld [vmem:[#allocation5 + $0x930] sm:$0xf0]  ;;  %v10440_v44 = vor.u32 %v14389_v28, %v10437_v15 }
 0x176   :  { %v14453_v34 = vld [vmem:[#allocation5 + $0xa24] sm:$0xf]  ;;  %v10693_v49 = vld [vmem:[#allocation5 + $0xa30] sm:$0xf0]  ;;  %v10568_v52 = vor.u32 %v14421_v20, %v10565_v55 }
 0x177   :  { %6936 = vmatpush.bf16.msra.mxu2 %v10728_v50  ;;  %6949 = vmatpush.bf16.msra.mxu3 %v10856_v13  ;;  %v14485_v14 = vld [vmem:[#allocation5 + $0xb24] sm:$0xf]  ;;  %v10821_v4 = vld [vmem:[#allocation5 + $0xb30] sm:$0xf0]  ;;  %v10696_v50 = vor.u32 %v14453_v34, %v10693_v49 }
 0x178   :  { %6911 = vmatpush.bf16.msra.mxu0 %v10456_v42  ;;  %v14385_v45 = vld [vmem:[#allocation5 + $0x804] sm:$0xf]  ;;  %v10421_v46 = vld [vmem:[#allocation5 + $0x810] sm:$0xf0]  ;;  %v10824_v58 = vor.u32 %v14485_v14, %v10821_v4 }
 0x179   :  { %6924 = vmatpush.bf16.msra.mxu1 %v10584_v57  ;;  %v14417_v2 = vld [vmem:[#allocation5 + $0x904] sm:$0xf]  ;;  %v10549_v51 = vld [vmem:[#allocation5 + $0x910] sm:$0xf0]  ;;  %v10424_v1 = vor.u32 %v14385_v45, %v10421_v46 }
 0x17a   :  { %v14449_v53 = vld [vmem:[#allocation5 + $0xa04] sm:$0xf]  ;;  %v10677_v13 = vld [vmem:[#allocation5 + $0xa10] sm:$0xf0] }
 0x17b   :  { %6937 = vmatpush.bf16.msra.mxu2 %v10712_v48  ;;  %6950 = vmatpush.bf16.msra.mxu3 %v10840_v22  ;;  %v14481_v54 = vld [vmem:[#allocation5 + $0xb04] sm:$0xf]  ;;  %v10805_v56 = vld [vmem:[#allocation5 + $0xb10] sm:$0xf0]  ;;  %v10552_v48 = vor.u32 %v14417_v2, %v10549_v51  ;;  %v10680_v28 = vor.u32 %v14449_v53, %v10677_v13 }
 0x17c   :  { %v14541_v60 = vld [vmem:[#allocation5 + $0xce4] sm:$0xf]  ;;  %v11045_v62 = vld [vmem:[#allocation5 + $0xcf0] sm:$0xf0]  ;;  %6912 = vmatpush.bf16.msra.mxu0 %v10440_v44  ;;  %v10808_v22 = vor.u32 %v14481_v54, %v10805_v56 }
 0x17d   :  { %v14573_v61 = vld [vmem:[#allocation5 + $0xde4] sm:$0xf]  ;;  %v11173_v42 = vld [vmem:[#allocation5 + $0xdf0] sm:$0xf0]  ;;  %6925 = vmatpush.bf16.msra.mxu1 %v10568_v52  ;;  %v11048_v55 = vor.u32 %v14541_v60, %v11045_v62 }
 0x17e   :  { %v14605_v5 = vld [vmem:[#allocation5 + $0xee4] sm:$0xf]  ;;  %v11301_v57 = vld [vmem:[#allocation5 + $0xef0] sm:$0xf0]  ;;  %v11176_v34 = vor.u32 %v14573_v61, %v11173_v42 }
 0x17f   :  { %6938 = vmatpush.bf16.msra.mxu2 %v10696_v50  ;;  %v14637_v15 = vld [vmem:[#allocation5 + $0xfe4] sm:$0xf]  ;;  %v11429_v20 = vld [vmem:[#allocation5 + $0xff0] sm:$0xf0]  ;;  %6951 = vmatpush.bf16.msra.mxu3 %v10824_v58  ;;  %v11304_v49 = vor.u32 %v14605_v5, %v11301_v57 }
 0x180   :  { %v14537_v14 = vld [vmem:[#allocation5 + $0xcc4] sm:$0xf]  ;;  %v11029_v4 = vld [vmem:[#allocation5 + $0xcd0] sm:$0xf0]  ;;  %6913 = vmatpush.bf16.msra.mxu0 %v10424_v1  ;;  %v11432_v44 = vor.u32 %v14637_v15, %v11429_v20 }
 0x181   :  { %v14569_v59 = vld [vmem:[#allocation5 + $0xdc4] sm:$0xf]  ;;  %v11157_v45 = vld [vmem:[#allocation5 + $0xdd0] sm:$0xf0]  ;;  %6926 = vmatpush.bf16.msra.mxu1 %v10552_v48  ;;  %v11032_v2 = vor.u32 %v14537_v14, %v11029_v4 }
 0x182   :  { %v14601_v46 = vld [vmem:[#allocation5 + $0xec4] sm:$0xf]  ;;  %v11285_v63 = vld [vmem:[#allocation5 + $0xed0] sm:$0xf0]  ;;  %v11160_v51 = vor.u32 %v14569_v59, %v11157_v45  ;;  %v6707_v14 = vpop.f32.mrf.mxu0 }
 0x183   :  { %6939 = vmatpush.bf16.msra.mxu2 %v10680_v28  ;;  %v14633_v52 = vld [vmem:[#allocation5 + $0xfc4] sm:$0xf]  ;;  %v11413_v50 = vld [vmem:[#allocation5 + $0xfd0] sm:$0xf0]  ;;  %6952 = vmatpush.bf16.msra.mxu3 %v10808_v22  ;;  %v11288_v53 = vor.u32 %v14601_v46, %v11285_v63  ;;  %v6720_v46 = vpop.f32.mrf.mxu1 }
 0x184   :  { %6958 = vmatpush.bf16.msrb.mxu0 %v11048_v55  ;;  %v14533_v58 = vld [vmem:[#allocation5 + $0xca4] sm:$0xf]  ;;  %v11013_v13 = vld [vmem:[#allocation5 + $0xcb0] sm:$0xf0]  ;;  %v11416_v56 = vor.u32 %v14633_v52, %v11413_v50  ;;  %6927 = vmatmul.bf16.vlgmr.msra.gmra.mxu1 %v15648_v26 }
 0x185   :  { %6971 = vmatpush.bf16.msrb.mxu1 %v11176_v34  ;;  %v14565_v54 = vld [vmem:[#allocation5 + $0xda4] sm:$0xf]  ;;  %6914 = vmatmul.bf16.vlgmr.msra.gmra.mxu0 %v15644_v21  ;;  %v11141_v60 = vld [vmem:[#allocation5 + $0xdb0] sm:$0xf0]  ;;  %v11016_v5 = vor.u32 %v14533_v58, %v11013_v13 }
 0x186   :  { %v14597_v62 = vld [vmem:[#allocation5 + $0xea4] sm:$0xf]  ;;  %v11269_v61 = vld [vmem:[#allocation5 + $0xeb0] sm:$0xf0]  ;;  %6940 = vmatmul.bf16.vlgmr.msra.gmra.mxu2 %v15646_v25  ;;  %6953 = vmatmul.bf16.vlgmr.msra.gmra.mxu3 %v15650_v29  ;;  %v11144_v57 = vor.u32 %v14565_v54, %v11141_v60 }
 0x187   :  { %6984 = vmatpush.bf16.msrb.mxu2 %v11304_v49  ;;  %6997 = vmatpush.bf16.msrb.mxu3 %v11432_v44  ;;  %v14629_v1 = vld [vmem:[#allocation5 + $0xfa4] sm:$0xf]  ;;  %v11397_v42 = vld [vmem:[#allocation5 + $0xfb0] sm:$0xf0]  ;;  %v11272_v48 = vor.u32 %v14597_v62, %v11269_v61  ;;  %v6708_v44 = vadd.f32 %v6707_v14, %v15763_v10 }
 0x188   :  { %6959 = vmatpush.bf16.msrb.mxu0 %v11032_v2  ;;  %v14529_v28 = vld [vmem:[#allocation5 + $0xc84] sm:$0xf]  ;;  %v10997_v15 = vld [vmem:[#allocation5 + $0xc90] sm:$0xf0]  ;;  %v11400_v22 = vor.u32 %v14629_v1, %v11397_v42 }
 0x189   :  { %6972 = vmatpush.bf16.msrb.mxu1 %v11160_v51  ;;  %v14561_v20 = vld [vmem:[#allocation5 + $0xd84] sm:$0xf]  ;;  %v11125_v55 = vld [vmem:[#allocation5 + $0xd90] sm:$0xf0]  ;;  %v11000_v45 = vor.u32 %v14529_v28, %v10997_v15  ;;  %v6721_v58 = vadd.f32 %v6720_v46, %v6708_v44  ;;  %v6733_v28 = vpop.f32.mrf.mxu2 }
 0x18a   :  { %v14593_v34 = vld [vmem:[#allocation5 + $0xe84] sm:$0xf]  ;;  %v11253_v49 = vld [vmem:[#allocation5 + $0xe90] sm:$0xf0]  ;;  %v11128_v63 = vor.u32 %v14561_v20, %v11125_v55 }
 0x18b   :  { %6985 = vmatpush.bf16.msrb.mxu2 %v11288_v53  ;;  %6998 = vmatpush.bf16.msrb.mxu3 %v11416_v56  ;;  %v14625_v4 = vld [vmem:[#allocation5 + $0xf84] sm:$0xf]  ;;  %v11381_v59 = vld [vmem:[#allocation5 + $0xf90] sm:$0xf0]  ;;  %v11256_v52 = vor.u32 %v14593_v34, %v11253_v49  ;;  %v6734_v55 = vadd.f32 %v6733_v28, %v6721_v58  ;;  %v6746_v34 = vpop.f32.mrf.mxu3  ;;  %v6722_v44 = vpop.f32.mrf.mxu1 }
 0x18c   :  { %6960 = vmatpush.bf16.msrb.mxu0 %v11016_v5  ;;  %v14525_v50 = vld [vmem:[#allocation5 + $0xc64] sm:$0xf]  ;;  %v10981_v2 = vld [vmem:[#allocation5 + $0xc70] sm:$0xf0]  ;;  %v11384_v53 = vor.u32 %v14625_v4, %v11381_v59  ;;  %v6709_v4 = vpop.f32.mrf.mxu0 }
 0x18d   :  { %6973 = vmatpush.bf16.msrb.mxu1 %v11144_v57  ;;  %v14557_v51 = vld [vmem:[#allocation5 + $0xd64] sm:$0xf]  ;;  %v11109_v13 = vld [vmem:[#allocation5 + $0xd70] sm:$0xf0]  ;;  %v10984_v61 = vor.u32 %v14525_v50, %v10981_v2 }
 0x18e   :  { %v14589_v54 = vld [vmem:[#allocation5 + $0xe64] sm:$0xf]  ;;  %v11237_v56 = vld [vmem:[#allocation5 + $0xe70] sm:$0xf0]  ;;  %v11112_v10 = vor.u32 %v14557_v51, %v11109_v13 }
 0x18f   :  { %6986 = vmatpush.bf16.msrb.mxu2 %v11272_v48  ;;  %6999 = vmatpush.bf16.msrb.mxu3 %v11400_v22  ;;  %v14621_v60 = vld [vmem:[#allocation5 + $0xf64] sm:$0xf]  ;;  %v11365_v62 = vld [vmem:[#allocation5 + $0xf70] sm:$0xf0]  ;;  %v11240_v1 = vor.u32 %v14589_v54, %v11237_v56 }
 0x190   :  { %6961 = vmatpush.bf16.msrb.mxu0 %v11000_v45  ;;  %v14521_v42 = vld [vmem:[#allocation5 + $0xc44] sm:$0xf]  ;;  %v10965_v5 = vld [vmem:[#allocation5 + $0xc50] sm:$0xf0]  ;;  %v11368_v48 = vor.u32 %v14621_v60, %v11365_v62  ;;  %v15770_v45 = vadd.f32 %v6746_v34, %v6734_v55 }
 0x191   :  { %6974 = vmatpush.bf16.msrb.mxu1 %v11128_v63  ;;  %v14553_v57 = vld [vmem:[#allocation5 + $0xd44] sm:$0xf]  ;;  %v11093_v15 = vld [vmem:[#allocation5 + $0xd50] sm:$0xf0]  ;;  %v10968_v59 = vor.u32 %v14521_v42, %v10965_v5 }
 0x192   :  { %v14585_v20 = vld [vmem:[#allocation5 + $0xe44] sm:$0xf]  ;;  %v11221_v22 = vld [vmem:[#allocation5 + $0xe50] sm:$0xf0]  ;;  %v11096_v46 = vor.u32 %v14553_v57, %v11093_v15 }
 0x193   :  { %6987 = vmatpush.bf16.msrb.mxu2 %v11256_v52  ;;  %7000 = vmatpush.bf16.msrb.mxu3 %v11384_v53  ;;  %v14617_v49 = vld [vmem:[#allocation5 + $0xf44] sm:$0xf]  ;;  %v11349_v14 = vld [vmem:[#allocation5 + $0xf50] sm:$0xf0]  ;;  %v11224_v63 = vor.u32 %v14585_v20, %v11221_v22  ;;  %v6735_v22 = vpop.f32.mrf.mxu2 }
 0x194   :  { %6962 = vmatpush.bf16.msrb.mxu0 %v10984_v61  ;;  %v14517_v52 = vld [vmem:[#allocation5 + $0xc24] sm:$0xf]  ;;  %v10949_v50 = vld [vmem:[#allocation5 + $0xc30] sm:$0xf0]  ;;  %v11352_v51 = vor.u32 %v14617_v49, %v11349_v14  ;;  %v6748_v14 = vpop.f32.mrf.mxu3 }
 0x195   :  { %6975 = vmatpush.bf16.msrb.mxu1 %v11112_v10  ;;  %v14549_v2 = vld [vmem:[#allocation5 + $0xd24] sm:$0xf]  ;;  %v11077_v53 = vld [vmem:[#allocation5 + $0xd30] sm:$0xf0]  ;;  %v10952_v60 = vor.u32 %v14517_v52, %v10949_v50 }
 0x196   :  { %v14581_v58 = vld [vmem:[#allocation5 + $0xe24] sm:$0xf]  ;;  %v11205_v13 = vld [vmem:[#allocation5 + $0xe30] sm:$0xf0]  ;;  %v11080_v10 = vor.u32 %v14549_v2, %v11077_v53 }
 0x197   :  { %6988 = vmatpush.bf16.msrb.mxu2 %v11240_v1  ;;  %7001 = vmatpush.bf16.msrb.mxu3 %v11368_v48  ;;  %v14613_v54 = vld [vmem:[#allocation5 + $0xf24] sm:$0xf]  ;;  %v11333_v56 = vld [vmem:[#allocation5 + $0xf30] sm:$0xf0]  ;;  %v11208_v1 = vor.u32 %v14581_v58, %v11205_v13 }
 0x198   :  { %6963 = vmatpush.bf16.msrb.mxu0 %v10968_v59  ;;  %v14513_v62 = vld [vmem:[#allocation5 + $0xc04] sm:$0xf]  ;;  %v10933_v61 = vld [vmem:[#allocation5 + $0xc10] sm:$0xf0]  ;;  %v11336_v28 = vor.u32 %v14613_v54, %v11333_v56 }
 0x199   :  { %6976 = vmatpush.bf16.msrb.mxu1 %v11096_v46  ;;  %v14545_v42 = vld [vmem:[#allocation5 + $0xd04] sm:$0xf]  ;;  %v11061_v5 = vld [vmem:[#allocation5 + $0xd10] sm:$0xf0]  ;;  %v10936_v4 = vor.u32 %v14513_v62, %v10933_v61 }
 0x19a   :  { %v14577_v57 = vld [vmem:[#allocation5 + $0xe04] sm:$0xf]  ;;  %v11189_v48 = vld [vmem:[#allocation5 + $0xe10] sm:$0xf0] }
 0x19b   :  { %6989 = vmatpush.bf16.msrb.mxu2 %v11224_v63  ;;  %7002 = vmatpush.bf16.msrb.mxu3 %v11352_v51  ;;  %v14609_v15 = vld [vmem:[#allocation5 + $0xf04] sm:$0xf]  ;;  %v11317_v20 = vld [vmem:[#allocation5 + $0xf10] sm:$0xf0]  ;;  %v11064_v63 = vor.u32 %v14545_v42, %v11061_v5  ;;  %v11192_v52 = vor.u32 %v14577_v57, %v11189_v48 }
 0x19c   :  { %v14669_v55 = vld [vmem:[#allocation5 + $0x10e4] sm:$0xf]  ;;  %v11557_v34 = vld [vmem:[#allocation5 + $0x10f0] sm:$0xf0]  ;;  %6964 = vmatpush.bf16.msrb.mxu0 %v10952_v60  ;;  %v11320_v51 = vor.u32 %v14609_v15, %v11317_v20 }
 0x19d   :  { %v14701_v49 = vld [vmem:[#allocation5 + $0x11e4] sm:$0xf]  ;;  %v11685_v59 = vld [vmem:[#allocation5 + $0x11f0] sm:$0xf0]  ;;  %6977 = vmatpush.bf16.msrb.mxu1 %v11080_v10  ;;  %v11560_v53 = vor.u32 %v14669_v55, %v11557_v34 }
 0x19e   :  { %v14733_v44 = vld [vmem:[#allocation5 + $0x12e4] sm:$0xf]  ;;  %v11813_v46 = vld [vmem:[#allocation5 + $0x12f0] sm:$0xf0]  ;;  %v11688_v58 = vor.u32 %v14701_v49, %v11685_v59 }
 0x19f   :  { %6990 = vmatpush.bf16.msrb.mxu2 %v11208_v1  ;;  %v14765_v50 = vld [vmem:[#allocation5 + $0x13e4] sm:$0xf]  ;;  %v11941_v2 = vld [vmem:[#allocation5 + $0x13f0] sm:$0xf0]  ;;  %7003 = vmatpush.bf16.msrb.mxu3 %v11336_v28  ;;  %v11816_v13 = vor.u32 %v14733_v44, %v11813_v46 }
 0x1a0   :  { %v14665_v54 = vld [vmem:[#allocation5 + $0x10c4] sm:$0xf]  ;;  %v11541_v56 = vld [vmem:[#allocation5 + $0x10d0] sm:$0xf0]  ;;  %6965 = vmatpush.bf16.msrb.mxu0 %v10936_v4  ;;  %v11944_v60 = vor.u32 %v14765_v50, %v11941_v2 }
 0x1a1   :  { %v14697_v22 = vld [vmem:[#allocation5 + $0x11c4] sm:$0xf]  ;;  %v11669_v62 = vld [vmem:[#allocation5 + $0x11d0] sm:$0xf0]  ;;  %6978 = vmatpush.bf16.msrb.mxu1 %v11064_v63  ;;  %v11544_v42 = vor.u32 %v14665_v54, %v11541_v56 }
 0x1a2   :  { %v14729_v61 = vld [vmem:[#allocation5 + $0x12c4] sm:$0xf]  ;;  %v11797_v14 = vld [vmem:[#allocation5 + $0x12d0] sm:$0xf0]  ;;  %v11672_v5 = vor.u32 %v14697_v22, %v11669_v62  ;;  %v6759_v54 = vpop.f32.mrf.mxu0 }
 0x1a3   :  { %6991 = vmatpush.bf16.msrb.mxu2 %v11192_v52  ;;  %v14761_v10 = vld [vmem:[#allocation5 + $0x13c4] sm:$0xf]  ;;  %v11925_v1 = vld [vmem:[#allocation5 + $0x13d0] sm:$0xf0]  ;;  %7004 = vmatpush.bf16.msrb.mxu3 %v11320_v51  ;;  %v11800_v57 = vor.u32 %v14729_v61, %v11797_v14  ;;  %v6772_v61 = vpop.f32.mrf.mxu1 }
 0x1a4   :  { %7010 = vmatpush.bf16.msra.mxu0 %v11560_v53  ;;  %v14661_v28 = vld [vmem:[#allocation5 + $0x10a4] sm:$0xf]  ;;  %v11525_v48 = vld [vmem:[#allocation5 + $0x10b0] sm:$0xf0]  ;;  %v11928_v20 = vor.u32 %v14761_v10, %v11925_v1  ;;  %6979 = vmatmul.bf16.vlgmr.msrb.gmra.mxu1 %v15664_v27 }
 0x1a5   :  { %7023 = vmatpush.bf16.msra.mxu1 %v11688_v58  ;;  %v14693_v15 = vld [vmem:[#allocation5 + $0x11a4] sm:$0xf]  ;;  %6966 = vmatmul.bf16.vlgmr.msrb.gmra.mxu0 %v15660_v19  ;;  %v11653_v55 = vld [vmem:[#allocation5 + $0x11b0] sm:$0xf0]  ;;  %v11528_v44 = vor.u32 %v14661_v28, %v11525_v48 }
 0x1a6   :  { %v14725_v34 = vld [vmem:[#allocation5 + $0x12a4] sm:$0xf]  ;;  %v11781_v49 = vld [vmem:[#allocation5 + $0x12b0] sm:$0xf0]  ;;  %6992 = vmatmul.bf16.vlgmr.msrb.gmra.mxu2 %v15662_v24  ;;  %7005 = vmatmul.bf16.vlgmr.msrb.gmra.mxu3 %v15666_v31  ;;  %v11656_v46 = vor.u32 %v14693_v15, %v11653_v55 }
 0x1a7   :  { %7036 = vmatpush.bf16.msra.mxu2 %v11816_v13  ;;  %7049 = vmatpush.bf16.msra.mxu3 %v11944_v60  ;;  %v14757_v4 = vld [vmem:[#allocation5 + $0x13a4] sm:$0xf]  ;;  %v11909_v59 = vld [vmem:[#allocation5 + $0x13b0] sm:$0xf0]  ;;  %v11784_v63 = vor.u32 %v14725_v34, %v11781_v49  ;;  %v6760_v60 = vadd.f32 %v6759_v54, %v15770_v45 }
 0x1a8   :  { %7011 = vmatpush.bf16.msra.mxu0 %v11544_v42  ;;  %v14657_v52 = vld [vmem:[#allocation5 + $0x1084] sm:$0xf]  ;;  %v11509_v50 = vld [vmem:[#allocation5 + $0x1090] sm:$0xf0]  ;;  %v11912_v51 = vor.u32 %v14757_v4, %v11909_v59 }
 0x1a9   :  { %7024 = vmatpush.bf16.msra.mxu1 %v11672_v5  ;;  %v14689_v2 = vld [vmem:[#allocation5 + $0x1184] sm:$0xf]  ;;  %v11637_v53 = vld [vmem:[#allocation5 + $0x1190] sm:$0xf0]  ;;  %v11512_v62 = vor.u32 %v14657_v52, %v11509_v50  ;;  %v6773_v28 = vadd.f32 %v6772_v61, %v6760_v60  ;;  %v6785_v52 = vpop.f32.mrf.mxu2 }
 0x1aa   :  { %v14721_v58 = vld [vmem:[#allocation5 + $0x1284] sm:$0xf]  ;;  %v11765_v13 = vld [vmem:[#allocation5 + $0x1290] sm:$0xf0]  ;;  %v11640_v14 = vor.u32 %v14689_v2, %v11637_v53 }
 0x1ab   :  { %7037 = vmatpush.bf16.msra.mxu2 %v11800_v57  ;;  %7050 = vmatpush.bf16.msra.mxu3 %v11928_v20  ;;  %v14753_v56 = vld [vmem:[#allocation5 + $0x1384] sm:$0xf]  ;;  %v11893_v22 = vld [vmem:[#allocation5 + $0x1390] sm:$0xf0]  ;;  %v11768_v10 = vor.u32 %v14721_v58, %v11765_v13  ;;  %v6786_v53 = vadd.f32 %v6785_v52, %v6773_v28  ;;  %v6798_v58 = vpop.f32.mrf.mxu3  ;;  %v6774_v60 = vpop.f32.mrf.mxu1 }
 0x1ac   :  { %7012 = vmatpush.bf16.msra.mxu0 %v11528_v44  ;;  %v14653_v1 = vld [vmem:[#allocation5 + $0x1064] sm:$0xf]  ;;  %v11493_v42 = vld [vmem:[#allocation5 + $0x1070] sm:$0xf0]  ;;  %v11896_v57 = vor.u32 %v14753_v56, %v11893_v22  ;;  %v6761_v56 = vpop.f32.mrf.mxu0 }
 0x1ad   :  { %7025 = vmatpush.bf16.msra.mxu1 %v11656_v46  ;;  %v14685_v5 = vld [vmem:[#allocation5 + $0x1164] sm:$0xf]  ;;  %v11621_v48 = vld [vmem:[#allocation5 + $0x1170] sm:$0xf0]  ;;  %v11496_v49 = vor.u32 %v14653_v1, %v11493_v42 }
 0x1ae   :  { %v14717_v15 = vld [vmem:[#allocation5 + $0x1264] sm:$0xf]  ;;  %v11749_v20 = vld [vmem:[#allocation5 + $0x1270] sm:$0xf0]  ;;  %v11624_v45 = vor.u32 %v14685_v5, %v11621_v48 }
 0x1af   :  { %7038 = vmatpush.bf16.msra.mxu2 %v11784_v63  ;;  %7051 = vmatpush.bf16.msra.mxu3 %v11912_v51  ;;  %v14749_v55 = vld [vmem:[#allocation5 + $0x1364] sm:$0xf]  ;;  %v11877_v34 = vld [vmem:[#allocation5 + $0x1370] sm:$0xf0]  ;;  %v11752_v4 = vor.u32 %v14717_v15, %v11749_v20 }
 0x1b0   :  { %7013 = vmatpush.bf16.msra.mxu0 %v11512_v62  ;;  %v14649_v59 = vld [vmem:[#allocation5 + $0x1044] sm:$0xf]  ;;  %v11477_v44 = vld [vmem:[#allocation5 + $0x1050] sm:$0xf0]  ;;  %v11880_v63 = vor.u32 %v14749_v55, %v11877_v34  ;;  %v15777_v62 = vadd.f32 %v6798_v58, %v6786_v53 }
 0x1b1   :  { %7026 = vmatpush.bf16.msra.mxu1 %v11640_v14  ;;  %v14681_v46 = vld [vmem:[#allocation5 + $0x1144] sm:$0xf]  ;;  %v11605_v50 = vld [vmem:[#allocation5 + $0x1150] sm:$0xf0]  ;;  %v11480_v22 = vor.u32 %v14649_v59, %v11477_v44 }
 0x1b2   :  { %v14713_v2 = vld [vmem:[#allocation5 + $0x1244] sm:$0xf]  ;;  %v11733_v51 = vld [vmem:[#allocation5 + $0x1250] sm:$0xf0]  ;;  %15999 = vst [vmem:[#allocation20_spill] sm:$0xff] %v15777_v62  ;;  %v11608_v61 = vor.u32 %v14681_v46, %v11605_v50 }
 0x1b3   :  { %7039 = vmatpush.bf16.msra.mxu2 %v11768_v10  ;;  %7052 = vmatpush.bf16.msra.mxu3 %v11896_v57  ;;  %v14745_v13 = vld [vmem:[#allocation5 + $0x1344] sm:$0xf]  ;;  %v11861_v54 = vld [vmem:[#allocation5 + $0x1350] sm:$0xf0]  ;;  %v11736_v14 = vor.u32 %v14713_v2, %v11733_v51  ;;  %v6787_v51 = vpop.f32.mrf.mxu2 }
 0x1b4   :  { %7014 = vmatpush.bf16.msra.mxu0 %v11496_v49  ;;  %v14645_v10 = vld [vmem:[#allocation5 + $0x1024] sm:$0xf]  ;;  %v11461_v1 = vld [vmem:[#allocation5 + $0x1030] sm:$0xf0]  ;;  %v11864_v5 = vor.u32 %v14745_v13, %v11861_v54  ;;  %v6800_v54 = vpop.f32.mrf.mxu3 }
 0x1b5   :  { %7027 = vmatpush.bf16.msra.mxu1 %v11624_v45  ;;  %v14677_v42 = vld [vmem:[#allocation5 + $0x1124] sm:$0xf]  ;;  %v11589_v57 = vld [vmem:[#allocation5 + $0x1130] sm:$0xf0]  ;;  %v11464_v55 = vor.u32 %v14645_v10, %v11461_v1 }
 0x1b6   :  { %v14709_v28 = vld [vmem:[#allocation5 + $0x1224] sm:$0xf]  ;;  %v11717_v48 = vld [vmem:[#allocation5 + $0x1230] sm:$0xf0]  ;;  %v11592_v45 = vor.u32 %v14677_v42, %v11589_v57 }
 0x1b7   :  { %7040 = vmatpush.bf16.msra.mxu2 %v11752_v4  ;;  %7053 = vmatpush.bf16.msra.mxu3 %v11880_v63  ;;  %v14741_v15 = vld [vmem:[#allocation5 + $0x1324] sm:$0xf]  ;;  %v11845_v20 = vld [vmem:[#allocation5 + $0x1330] sm:$0xf0]  ;;  %v11720_v4 = vor.u32 %v14709_v28, %v11717_v48 }
 0x1b8   :  { %7015 = vmatpush.bf16.msra.mxu0 %v11480_v22  ;;  %v14641_v34 = vld [vmem:[#allocation5 + $0x1004] sm:$0xf]  ;;  %v11445_v49 = vld [vmem:[#allocation5 + $0x1010] sm:$0xf0]  ;;  %v11848_v52 = vor.u32 %v14741_v15, %v11845_v20 }
 0x1b9   :  { %7028 = vmatpush.bf16.msra.mxu1 %v11608_v61  ;;  %v14673_v59 = vld [vmem:[#allocation5 + $0x1104] sm:$0xf]  ;;  %v11573_v44 = vld [vmem:[#allocation5 + $0x1110] sm:$0xf0]  ;;  %v11448_v56 = vor.u32 %v14641_v34, %v11445_v49 }
 0x1ba   :  { %v14705_v46 = vld [vmem:[#allocation5 + $0x1204] sm:$0xf]  ;;  %v11701_v63 = vld [vmem:[#allocation5 + $0x1210] sm:$0xf0] }
 0x1bb   :  { %7041 = vmatpush.bf16.msra.mxu2 %v11736_v14  ;;  %7054 = vmatpush.bf16.msra.mxu3 %v11864_v5  ;;  %v14737_v50 = vld [vmem:[#allocation5 + $0x1304] sm:$0xf]  ;;  %v11829_v2 = vld [vmem:[#allocation5 + $0x1310] sm:$0xf0]  ;;  %v11576_v14 = vor.u32 %v14673_v59, %v11573_v44  ;;  %v11704_v10 = vor.u32 %v14705_v46, %v11701_v63 }
 0x1bc   :  { %v14797_v53 = vld [vmem:[#allocation5 + $0x14e4] sm:$0xf]  ;;  %v12069_v58 = vld [vmem:[#allocation5 + $0x14f0] sm:$0xf0]  ;;  %7016 = vmatpush.bf16.msra.mxu0 %v11464_v55  ;;  %v11832_v5 = vor.u32 %v14737_v50, %v11829_v2 }
 0x1bd   :  { %v14829_v13 = vld [vmem:[#allocation5 + $0x15e4] sm:$0xf]  ;;  %v12197_v22 = vld [vmem:[#allocation5 + $0x15f0] sm:$0xf0]  ;;  %7029 = vmatpush.bf16.msra.mxu1 %v11592_v45  ;;  %v12072_v57 = vor.u32 %v14797_v53, %v12069_v58 }
 0x1be   :  { %v14861_v60 = vld [vmem:[#allocation5 + $0x16e4] sm:$0xf]  ;;  %v12325_v61 = vld [vmem:[#allocation5 + $0x16f0] sm:$0xf0]  ;;  %v12200_v28 = vor.u32 %v14829_v13, %v12197_v22 }
 0x1bf   :  { %7042 = vmatpush.bf16.msra.mxu2 %v11720_v4  ;;  %v14893_v1 = vld [vmem:[#allocation5 + $0x17e4] sm:$0xf]  ;;  %v12453_v42 = vld [vmem:[#allocation5 + $0x17f0] sm:$0xf0]  ;;  %7055 = vmatpush.bf16.msra.mxu3 %v11848_v52  ;;  %v12328_v48 = vor.u32 %v14861_v60, %v12325_v61 }
 0x1c0   :  { %v14793_v15 = vld [vmem:[#allocation5 + $0x14c4] sm:$0xf]  ;;  %v12053_v20 = vld [vmem:[#allocation5 + $0x14d0] sm:$0xf0]  ;;  %7017 = vmatpush.bf16.msra.mxu0 %v11448_v56  ;;  %v12456_v55 = vor.u32 %v14893_v1, %v12453_v42 }
 0x1c1   :  { %v14825_v51 = vld [vmem:[#allocation5 + $0x15c4] sm:$0xf]  ;;  %v12181_v34 = vld [vmem:[#allocation5 + $0x15d0] sm:$0xf0]  ;;  %7030 = vmatpush.bf16.msra.mxu1 %v11576_v14  ;;  %v12056_v59 = vor.u32 %v14793_v15, %v12053_v20 }
 0x1c2   :  { %v14857_v49 = vld [vmem:[#allocation5 + $0x16c4] sm:$0xf]  ;;  %v12309_v54 = vld [vmem:[#allocation5 + $0x16d0] sm:$0xf0]  ;;  %v12184_v44 = vor.u32 %v14825_v51, %v12181_v34 }
 0x1c3   :  { %7043 = vmatpush.bf16.msra.mxu2 %v11704_v10  ;;  %v14889_v45 = vld [vmem:[#allocation5 + $0x17c4] sm:$0xf]  ;;  %v12437_v4 = vld [vmem:[#allocation5 + $0x17d0] sm:$0xf0]  ;;  %7056 = vmatpush.bf16.msra.mxu3 %v11832_v5  ;;  %v12312_v46 = vor.u32 %v14857_v49, %v12309_v54  ;;  %v15326_v5 = vld [vmem:[#allocation7] sm:$0xf]  ;;  %v6811_v49 = vpop.f32.mrf.mxu0 }
 0x1c4   :  { %7062 = vmatpush.bf16.msrb.mxu0 %v12072_v57  ;;  %v14789_v52 = vld [vmem:[#allocation5 + $0x14a4] sm:$0xf]  ;;  %v12037_v63 = vld [vmem:[#allocation5 + $0x14b0] sm:$0xf0]  ;;  %v12440_v2 = vor.u32 %v14889_v45, %v12437_v4  ;;  %7031 = vmatmul.bf16.vlgmr.msra.gmra.mxu1 %v15682_v38  ;;  %v1259_v57 = vperm.slane %v15326_v5, 1 }
 0x1c5   :  { %7075 = vmatpush.bf16.msrb.mxu1 %v12200_v28  ;;  %v14821_v50 = vld [vmem:[#allocation5 + $0x15a4] sm:$0xf]  ;;  %7018 = vmatmul.bf16.vlgmr.msra.gmra.mxu0 %v15678_v32  ;;  %v12165_v53 = vld [vmem:[#allocation5 + $0x15b0] sm:$0xf0]  ;;  %v12040_v60 = vor.u32 %v14789_v52, %v12037_v63  ;;  %v6824_v52 = vpop.f32.mrf.mxu1 }
 0x1c6   :  { %v14853_v58 = vld [vmem:[#allocation5 + $0x16a4] sm:$0xf]  ;;  %v12293_v13 = vld [vmem:[#allocation5 + $0x16b0] sm:$0xf0]  ;;  %7044 = vmatmul.bf16.vlgmr.msra.gmra.mxu2 %v15680_v37  ;;  %7057 = vmatmul.bf16.vlgmr.msra.gmra.mxu3 %v15684_v43  ;;  %v12168_v14 = vor.u32 %v14821_v50, %v12165_v53 }
 0x1c7   :  { %7088 = vmatpush.bf16.msrb.mxu2 %v12328_v48  ;;  %7101 = vmatpush.bf16.msrb.mxu3 %v12456_v55  ;;  %v14885_v56 = vld [vmem:[#allocation5 + $0x17a4] sm:$0xf]  ;;  %v12421_v22 = vld [vmem:[#allocation5 + $0x17b0] sm:$0xf0]  ;;  %v12296_v10 = vor.u32 %v14853_v58, %v12293_v13 }
 0x1c8   :  { %7063 = vmatpush.bf16.msrb.mxu0 %v12056_v59  ;;  %v14785_v61 = vld [vmem:[#allocation5 + $0x1484] sm:$0xf]  ;;  %v12021_v1 = vld [vmem:[#allocation5 + $0x1490] sm:$0xf0]  ;;  %v12424_v28 = vor.u32 %v14885_v56, %v12421_v22 }
 0x1c9   :  { %7076 = vmatpush.bf16.msrb.mxu1 %v12184_v44  ;;  %v14817_v42 = vld [vmem:[#allocation5 + $0x1584] sm:$0xf]  ;;  %v12149_v48 = vld [vmem:[#allocation5 + $0x1590] sm:$0xf0]  ;;  %v12024_v34 = vor.u32 %v14785_v61, %v12021_v1 }
 0x1ca   :  { %v14849_v15 = vld [vmem:[#allocation5 + $0x1684] sm:$0xf]  ;;  %v12277_v20 = vld [vmem:[#allocation5 + $0x1690] sm:$0xf0]  ;;  %v12152_v54 = vor.u32 %v14817_v42, %v12149_v48  ;;  %v6837_v42 = vpop.f32.mrf.mxu2 }
 0x1cb   :  { %7089 = vmatpush.bf16.msrb.mxu2 %v12312_v46  ;;  %7102 = vmatpush.bf16.msrb.mxu3 %v12440_v2  ;;  %v14881_v51 = vld [vmem:[#allocation5 + $0x1784] sm:$0xf]  ;;  %v12405_v55 = vld [vmem:[#allocation5 + $0x1790] sm:$0xf0]  ;;  %v12280_v45 = vor.u32 %v14849_v15, %v12277_v20  ;;  %v6812_v46 = vadd.f32 %v6811_v49, %v1259_v57  ;;  %v6850_v20 = vpop.f32.mrf.mxu3 }
 0x1cc   :  { %7064 = vmatpush.bf16.msrb.mxu0 %v12040_v60  ;;  %v14781_v4 = vld [vmem:[#allocation5 + $0x1464] sm:$0xf]  ;;  %v12005_v59 = vld [vmem:[#allocation5 + $0x1470] sm:$0xf0]  ;;  %v12408_v63 = vor.u32 %v14881_v51, %v12405_v55 }
 0x1cd   :  { %7077 = vmatpush.bf16.msrb.mxu1 %v12168_v14  ;;  %v14813_v44 = vld [vmem:[#allocation5 + $0x1564] sm:$0xf]  ;;  %v12133_v50 = vld [vmem:[#allocation5 + $0x1570] sm:$0xf0]  ;;  %v6825_v56 = vadd.f32 %v6824_v52, %v6812_v46  ;;  %v12008_v22 = vor.u32 %v14781_v4, %v12005_v59  ;;  %v6826_v52 = vpop.f32.mrf.mxu1 }
 0x1ce   :  { %v14845_v2 = vld [vmem:[#allocation5 + $0x1664] sm:$0xf]  ;;  %v12261_v53 = vld [vmem:[#allocation5 + $0x1670] sm:$0xf0]  ;;  %v12136_v60 = vor.u32 %v14813_v44, %v12133_v50 }
 0x1cf   :  { %7090 = vmatpush.bf16.msrb.mxu2 %v12296_v10  ;;  %7103 = vmatpush.bf16.msrb.mxu3 %v12424_v28  ;;  %v14877_v58 = vld [vmem:[#allocation5 + $0x1764] sm:$0xf]  ;;  %v12389_v13 = vld [vmem:[#allocation5 + $0x1770] sm:$0xf0]  ;;  %v12264_v61 = vor.u32 %v14845_v2, %v12261_v53  ;;  %v6838_v15 = vadd.f32 %v6837_v42, %v6825_v56 }
 0x1d0   :  { %7065 = vmatpush.bf16.msrb.mxu0 %v12024_v34  ;;  %v14777_v14 = vld [vmem:[#allocation5 + $0x1444] sm:$0xf]  ;;  %v11989_v10 = vld [vmem:[#allocation5 + $0x1450] sm:$0xf0]  ;;  %v12392_v5 = vor.u32 %v14877_v58, %v12389_v13 }
 0x1d1   :  { %7078 = vmatpush.bf16.msrb.mxu1 %v12152_v54  ;;  %v14809_v1 = vld [vmem:[#allocation5 + $0x1544] sm:$0xf]  ;;  %v12117_v57 = vld [vmem:[#allocation5 + $0x1550] sm:$0xf0]  ;;  %v11992_v34 = vor.u32 %v14777_v14, %v11989_v10  ;;  %v15783_v49 = vadd.f32 %v6850_v20, %v6838_v15  ;;  %v6813_v54 = vpop.f32.mrf.mxu0 }
 0x1d2   :  { %v14841_v28 = vld [vmem:[#allocation5 + $0x1644] sm:$0xf]  ;;  %v12245_v48 = vld [vmem:[#allocation5 + $0x1650] sm:$0xf0] }
 0x1d3   :  { %7091 = vmatpush.bf16.msrb.mxu2 %v12280_v45  ;;  %7104 = vmatpush.bf16.msrb.mxu3 %v12408_v63  ;;  %v14873_v51 = vld [vmem:[#allocation5 + $0x1744] sm:$0xf]  ;;  %v12373_v55 = vld [vmem:[#allocation5 + $0x1750] sm:$0xf0]  ;;  %v12120_v45 = vor.u32 %v14809_v1, %v12117_v57  ;;  %v12248_v4 = vor.u32 %v14841_v28, %v12245_v48  ;;  %v6839_v57 = vpop.f32.mrf.mxu2  ;;  %v6852_v20 = vpop.f32.mrf.mxu3 }
 0x1d4   :  { %7066 = vmatpush.bf16.msrb.mxu0 %v12008_v22  ;;  %v14773_v59 = vld [vmem:[#allocation5 + $0x1424] sm:$0xf]  ;;  %v11973_v44 = vld [vmem:[#allocation5 + $0x1430] sm:$0xf0]  ;;  %v12376_v63 = vor.u32 %v14873_v51, %v12373_v55 }
 0x1d5   :  { %7079 = vmatpush.bf16.msrb.mxu1 %v12136_v60  ;;  %v14805_v46 = vld [vmem:[#allocation5 + $0x1524] sm:$0xf]  ;;  %v12101_v50 = vld [vmem:[#allocation5 + $0x1530] sm:$0xf0]  ;;  %v11976_v56 = vor.u32 %v14773_v59, %v11973_v44 }
 0x1d6   :  { %v14837_v2 = vld [vmem:[#allocation5 + $0x1624] sm:$0xf]  ;;  %v12229_v53 = vld [vmem:[#allocation5 + $0x1630] sm:$0xf0]  ;;  %v12104_v60 = vor.u32 %v14805_v46, %v12101_v50 }
 0x1d7   :  { %7092 = vmatpush.bf16.msrb.mxu2 %v12264_v61  ;;  %7105 = vmatpush.bf16.msrb.mxu3 %v12392_v5  ;;  %v14869_v58 = vld [vmem:[#allocation5 + $0x1724] sm:$0xf]  ;;  %v12357_v13 = vld [vmem:[#allocation5 + $0x1730] sm:$0xf0]  ;;  %v12232_v61 = vor.u32 %v14837_v2, %v12229_v53 }
 0x1d8   :  { %7067 = vmatpush.bf16.msrb.mxu0 %v11992_v34  ;;  %v14769_v22 = vld [vmem:[#allocation5 + $0x1404] sm:$0xf]  ;;  %v11957_v14 = vld [vmem:[#allocation5 + $0x1410] sm:$0xf0]  ;;  %v12360_v5 = vor.u32 %v14869_v58, %v12357_v13 }
 0x1d9   :  { %7080 = vmatpush.bf16.msrb.mxu1 %v12120_v45  ;;  %v14801_v10 = vld [vmem:[#allocation5 + $0x1504] sm:$0xf]  ;;  %v12085_v1 = vld [vmem:[#allocation5 + $0x1510] sm:$0xf0]  ;;  %v11960_v54 = vor.u32 %v14769_v22, %v11957_v14 }
 0x1da   :  { %v14833_v42 = vld [vmem:[#allocation5 + $0x1604] sm:$0xf]  ;;  %v12213_v28 = vld [vmem:[#allocation5 + $0x1610] sm:$0xf0]  ;;  %v12088_v44 = vor.u32 %v14801_v10, %v12085_v1 }
 0x1db   :  { %7093 = vmatpush.bf16.msrb.mxu2 %v12248_v4  ;;  %7106 = vmatpush.bf16.msrb.mxu3 %v12376_v63  ;;  %v14865_v48 = vld [vmem:[#allocation5 + $0x1704] sm:$0xf]  ;;  %v12341_v15 = vld [vmem:[#allocation5 + $0x1710] sm:$0xf0]  ;;  %v12216_v46 = vor.u32 %v14833_v42, %v12213_v28 }
 0x1dc   :  { %v14925_v51 = vld [vmem:[#allocation5 + $0x18e4] sm:$0xf]  ;;  %v12581_v55 = vld [vmem:[#allocation5 + $0x18f0] sm:$0xf0]  ;;  %7068 = vmatpush.bf16.msrb.mxu0 %v11976_v56  ;;  %v12344_v63 = vor.u32 %v14865_v48, %v12341_v15 }
 0x1dd   :  { %v14957_v34 = vld [vmem:[#allocation5 + $0x19e4] sm:$0xf]  ;;  %v12709_v59 = vld [vmem:[#allocation5 + $0x19f0] sm:$0xf0]  ;;  %7081 = vmatpush.bf16.msrb.mxu1 %v12104_v60  ;;  %v12584_v2 = vor.u32 %v14925_v51, %v12581_v55 }
 0x1de   :  { %v14989_v45 = vld [vmem:[#allocation5 + $0x1ae4] sm:$0xf]  ;;  %v12837_v4 = vld [vmem:[#allocation5 + $0x1af0] sm:$0xf0]  ;;  %v12712_v53 = vor.u32 %v14957_v34, %v12709_v59 }
 0x1df   :  { %7094 = vmatpush.bf16.msrb.mxu2 %v12232_v61  ;;  %v15021_v52 = vld [vmem:[#allocation5 + $0x1be4] sm:$0xf]  ;;  %v12965_v50 = vld [vmem:[#allocation5 + $0x1bf0] sm:$0xf0]  ;;  %7107 = vmatpush.bf16.msrb.mxu3 %v12360_v5  ;;  %v12840_v58 = vor.u32 %v14989_v45, %v12837_v4 }
 0x1e0   :  { %v14921_v13 = vld [vmem:[#allocation5 + $0x18c4] sm:$0xf]  ;;  %v12565_v57 = vld [vmem:[#allocation5 + $0x18d0] sm:$0xf0]  ;;  %7069 = vmatpush.bf16.msrb.mxu0 %v11960_v54  ;;  %v12968_v56 = vor.u32 %v15021_v52, %v12965_v50 }
 0x1e1   :  { %v14953_v20 = vld [vmem:[#allocation5 + $0x19c4] sm:$0xf]  ;;  %v12693_v22 = vld [vmem:[#allocation5 + $0x19d0] sm:$0xf0]  ;;  %7082 = vmatpush.bf16.msrb.mxu1 %v12088_v44  ;;  %v12568_v10 = vor.u32 %v14921_v13, %v12565_v57 }
 0x1e2   :  { %v14985_v14 = vld [vmem:[#allocation5 + $0x1ac4] sm:$0xf]  ;;  %v12821_v62 = vld [vmem:[#allocation5 + $0x1ad0] sm:$0xf0]  ;;  %v12696_v1 = vor.u32 %v14953_v20, %v12693_v22  ;;  %v6863_v20 = vpop.f32.mrf.mxu0 }
 0x1e3   :  { %7095 = vmatpush.bf16.msrb.mxu2 %v12216_v46  ;;  %v15017_v60 = vld [vmem:[#allocation5 + $0x1bc4] sm:$0xf]  ;;  %v12949_v61 = vld [vmem:[#allocation5 + $0x1bd0] sm:$0xf0]  ;;  %7108 = vmatpush.bf16.msrb.mxu3 %v12344_v63  ;;  %v12824_v42 = vor.u32 %v14985_v14, %v12821_v62 }
 0x1e4   :  { %7114 = vmatpush.bf16.msra.mxu0 %v12584_v2  ;;  %v14917_v5 = vld [vmem:[#allocation5 + $0x18a4] sm:$0xf]  ;;  %v12549_v28 = vld [vmem:[#allocation5 + $0x18b0] sm:$0xf0]  ;;  %v12952_v15 = vor.u32 %v15017_v60, %v12949_v61  ;;  %7083 = vmatmul.bf16.vlgmr.msrb.gmra.mxu1 %v15700_v9 }
 0x1e5   :  { %7127 = vmatpush.bf16.msra.mxu1 %v12712_v53  ;;  %v14949_v48 = vld [vmem:[#allocation5 + $0x19a4] sm:$0xf]  ;;  %7070 = vmatmul.bf16.vlgmr.msrb.gmra.mxu0 %v15696_v3  ;;  %v12677_v51 = vld [vmem:[#allocation5 + $0x19b0] sm:$0xf0]  ;;  %v12552_v62 = vor.u32 %v14917_v5, %v12549_v28 }
 0x1e6   :  { %v14981_v55 = vld [vmem:[#allocation5 + $0x1aa4] sm:$0xf]  ;;  %v12805_v34 = vld [vmem:[#allocation5 + $0x1ab0] sm:$0xf0]  ;;  %7096 = vmatmul.bf16.vlgmr.msrb.gmra.mxu2 %v15698_v8  ;;  %7109 = vmatmul.bf16.vlgmr.msrb.gmra.mxu3 %v15702_v12  ;;  %v12680_v45 = vor.u32 %v14949_v48, %v12677_v51 }
 0x1e7   :  { %7140 = vmatpush.bf16.msra.mxu2 %v12840_v58  ;;  %7153 = vmatpush.bf16.msra.mxu3 %v12968_v56  ;;  %v15013_v54 = vld [vmem:[#allocation5 + $0x1ba4] sm:$0xf]  ;;  %v12933_v59 = vld [vmem:[#allocation5 + $0x1bb0] sm:$0xf0]  ;;  %v12808_v4 = vor.u32 %v14981_v55, %v12805_v34 }
 0x1e8   :  { %7115 = vmatpush.bf16.msra.mxu0 %v12568_v10  ;;  %v14913_v44 = vld [vmem:[#allocation5 + $0x1884] sm:$0xf]  ;;  %v12533_v46 = vld [vmem:[#allocation5 + $0x1890] sm:$0xf0]  ;;  %v12936_v50 = vor.u32 %v15013_v54, %v12933_v59  ;;  %v6864_v10 = vadd.f32 %v6863_v20, %v15783_v49 }
 0x1e9   :  { %7128 = vmatpush.bf16.msra.mxu1 %v12696_v1  ;;  %v14945_v52 = vld [vmem:[#allocation5 + $0x1984] sm:$0xf]  ;;  %v12661_v63 = vld [vmem:[#allocation5 + $0x1990] sm:$0xf0]  ;;  %v12536_v57 = vor.u32 %v14913_v44, %v12533_v46  ;;  %v6876_v1 = vpop.f32.mrf.mxu1  ;;  %v6889_v44 = vpop.f32.mrf.mxu2 }
 0x1ea   :  { %v14977_v2 = vld [vmem:[#allocation5 + $0x1a84] sm:$0xf]  ;;  %v12789_v53 = vld [vmem:[#allocation5 + $0x1a90] sm:$0xf0]  ;;  %v12664_v56 = vor.u32 %v14945_v52, %v12661_v63  ;;  %v6877_v55 = vadd.f32 %v6876_v1, %v6864_v10  ;;  %v6865_v20 = vpop.f32.mrf.mxu0 }
 0x1eb   :  { %7141 = vmatpush.bf16.msra.mxu2 %v12824_v42  ;;  %7154 = vmatpush.bf16.msra.mxu3 %v12952_v15  ;;  %v15009_v58 = vld [vmem:[#allocation5 + $0x1b84] sm:$0xf]  ;;  %v12917_v13 = vld [vmem:[#allocation5 + $0x1b90] sm:$0xf0]  ;;  %v12792_v22 = vor.u32 %v14977_v2, %v12789_v53  ;;  %v6902_v2 = vpop.f32.mrf.mxu3 }
 0x1ec   :  { %7116 = vmatpush.bf16.msra.mxu0 %v12552_v62  ;;  %v14909_v14 = vld [vmem:[#allocation5 + $0x1864] sm:$0xf]  ;;  %v12517_v60 = vld [vmem:[#allocation5 + $0x1870] sm:$0xf0]  ;;  %v12920_v42 = vor.u32 %v15009_v58, %v12917_v13  ;;  %v6890_v63 = vadd.f32 %v6889_v44, %v6877_v55 }
 0x1ed   :  { %7129 = vmatpush.bf16.msra.mxu1 %v12680_v45  ;;  %v14941_v61 = vld [vmem:[#allocation5 + $0x1964] sm:$0xf]  ;;  %v12645_v5 = vld [vmem:[#allocation5 + $0x1970] sm:$0xf0]  ;;  %v12520_v34 = vor.u32 %v14909_v14, %v12517_v60 }
 0x1ee   :  { %v14973_v28 = vld [vmem:[#allocation5 + $0x1a64] sm:$0xf]  ;;  %v12773_v48 = vld [vmem:[#allocation5 + $0x1a70] sm:$0xf0]  ;;  %v12648_v54 = vor.u32 %v14941_v61, %v12645_v5 }
 0x1ef   :  { %7142 = vmatpush.bf16.msra.mxu2 %v12808_v4  ;;  %7155 = vmatpush.bf16.msra.mxu3 %v12936_v50  ;;  %v15005_v15 = vld [vmem:[#allocation5 + $0x1b64] sm:$0xf]  ;;  %v12901_v51 = vld [vmem:[#allocation5 + $0x1b70] sm:$0xf0]  ;;  %v12776_v59 = vor.u32 %v14973_v28, %v12773_v48 }
 0x1f0   :  { %7117 = vmatpush.bf16.msra.mxu0 %v12536_v57  ;;  %v14905_v62 = vld [vmem:[#allocation5 + $0x1844] sm:$0xf]  ;;  %v12501_v45 = vld [vmem:[#allocation5 + $0x1850] sm:$0xf0]  ;;  %v12904_v49 = vor.u32 %v15005_v15, %v12901_v51  ;;  %v15790_v57 = vadd.f32 %v6902_v2, %v6890_v63 }
 0x1f1   :  { %7130 = vmatpush.bf16.msra.mxu1 %v12664_v56  ;;  %v14937_v4 = vld [vmem:[#allocation5 + $0x1944] sm:$0xf]  ;;  %v12629_v46 = vld [vmem:[#allocation5 + $0x1950] sm:$0xf0]  ;;  %v12504_v13 = vor.u32 %v14905_v62, %v12501_v45  ;;  %v6878_v10 = vpop.f32.mrf.mxu1  ;;  %v6891_v44 = vpop.f32.mrf.mxu2 }
 0x1f2   :  { %v14969_v52 = vld [vmem:[#allocation5 + $0x1a44] sm:$0xf]  ;;  %v12757_v50 = vld [vmem:[#allocation5 + $0x1a50] sm:$0xf0]  ;;  %v12632_v56 = vor.u32 %v14937_v4, %v12629_v46 }
 0x1f3   :  { %7143 = vmatpush.bf16.msra.mxu2 %v12792_v22  ;;  %7156 = vmatpush.bf16.msra.mxu3 %v12920_v42  ;;  %v15001_v53 = vld [vmem:[#allocation5 + $0x1b44] sm:$0xf]  ;;  %v12885_v58 = vld [vmem:[#allocation5 + $0x1b50] sm:$0xf0]  ;;  %v12760_v22 = vor.u32 %v14969_v52, %v12757_v50  ;;  %v6904_v63 = vpop.f32.mrf.mxu3 }
 0x1f4   :  { %7118 = vmatpush.bf16.msra.mxu0 %v12520_v34  ;;  %v14901_v14 = vld [vmem:[#allocation5 + $0x1824] sm:$0xf]  ;;  %v12485_v60 = vld [vmem:[#allocation5 + $0x1830] sm:$0xf0]  ;;  %v12888_v1 = vor.u32 %v15001_v53, %v12885_v58 }
 0x1f5   :  { %7131 = vmatpush.bf16.msra.mxu1 %v12648_v54  ;;  %v14933_v61 = vld [vmem:[#allocation5 + $0x1924] sm:$0xf]  ;;  %v12613_v42 = vld [vmem:[#allocation5 + $0x1930] sm:$0xf0]  ;;  %v12488_v51 = vor.u32 %v14901_v14, %v12485_v60 }
 0x1f6   :  { %v14965_v5 = vld [vmem:[#allocation5 + $0x1a24] sm:$0xf]  ;;  %v12741_v28 = vld [vmem:[#allocation5 + $0x1a30] sm:$0xf0]  ;;  %v12616_v54 = vor.u32 %v14933_v61, %v12613_v42 }
 0x1f7   :  { %7144 = vmatpush.bf16.msra.mxu2 %v12776_v59  ;;  %7157 = vmatpush.bf16.msra.mxu3 %v12904_v49  ;;  %v14997_v48 = vld [vmem:[#allocation5 + $0x1b24] sm:$0xf]  ;;  %v12869_v15 = vld [vmem:[#allocation5 + $0x1b30] sm:$0xf0]  ;;  %v12744_v59 = vor.u32 %v14965_v5, %v12741_v28 }
 0x1f8   :  { %7119 = vmatpush.bf16.msra.mxu0 %v12504_v13  ;;  %v14897_v55 = vld [vmem:[#allocation5 + $0x1804] sm:$0xf]  ;;  %v12469_v34 = vld [vmem:[#allocation5 + $0x1810] sm:$0xf0]  ;;  %v12872_v49 = vor.u32 %v14997_v48, %v12869_v15 }
 0x1f9   :  { %7132 = vmatpush.bf16.msra.mxu1 %v12632_v56  ;;  %v14929_v62 = vld [vmem:[#allocation5 + $0x1904] sm:$0xf]  ;;  %v12597_v45 = vld [vmem:[#allocation5 + $0x1910] sm:$0xf0]  ;;  %v12472_v13 = vor.u32 %v14897_v55, %v12469_v34 }
 0x1fa   :  { %v14961_v4 = vld [vmem:[#allocation5 + $0x1a04] sm:$0xf]  ;;  %v12725_v46 = vld [vmem:[#allocation5 + $0x1a10] sm:$0xf0]  ;;  %v12600_v14 = vor.u32 %v14929_v62, %v12597_v45 }
 0x1fb   :  { %7145 = vmatpush.bf16.msra.mxu2 %v12760_v22  ;;  %7158 = vmatpush.bf16.msra.mxu3 %v12888_v1  ;;  %v14993_v52 = vld [vmem:[#allocation5 + $0x1b04] sm:$0xf]  ;;  %v12853_v50 = vld [vmem:[#allocation5 + $0x1b10] sm:$0xf0]  ;;  %v12728_v60 = vor.u32 %v14961_v4, %v12725_v46 }
 0x1fc   :  { %v15053_v2 = vld [vmem:[#allocation5 + $0x1ce4] sm:$0xf]  ;;  %v13093_v53 = vld [vmem:[#allocation5 + $0x1cf0] sm:$0xf0]  ;;  %7120 = vmatpush.bf16.msra.mxu0 %v12488_v51  ;;  %v12856_v1 = vor.u32 %v14993_v52, %v12853_v50 }
 0x1fd   :  { %v15085_v58 = vld [vmem:[#allocation5 + $0x1de4] sm:$0xf]  ;;  %v13221_v20 = vld [vmem:[#allocation5 + $0x1df0] sm:$0xf0]  ;;  %7133 = vmatpush.bf16.msra.mxu1 %v12616_v54  ;;  %v13096_v42 = vor.u32 %v15053_v2, %v13093_v53 }
 0x1fe   :  { %v15117_v56 = vld [vmem:[#allocation5 + $0x1ee4] sm:$0xf]  ;;  %v13349_v22 = vld [vmem:[#allocation5 + $0x1ef0] sm:$0xf0]  ;;  %v13224_v5 = vor.u32 %v15085_v58, %v13221_v20 }
 0x1ff   :  { %7146 = vmatpush.bf16.msra.mxu2 %v12744_v59  ;;  %v15149_v61 = vld [vmem:[#allocation5 + $0x1fe4] sm:$0xf]  ;;  %v13477_v10 = vld [vmem:[#allocation5 + $0x1ff0] sm:$0xf0]  ;;  %7159 = vmatpush.bf16.msra.mxu3 %v12872_v49  ;;  %v13352_v28 = vor.u32 %v15117_v56, %v13349_v22 }
 0x200   :  { %v15049_v48 = vld [vmem:[#allocation5 + $0x1cc4] sm:$0xf]  ;;  %v13077_v15 = vld [vmem:[#allocation5 + $0x1cd0] sm:$0xf0]  ;;  %7121 = vmatpush.bf16.msra.mxu0 %v12472_v13  ;;  %v13480_v51 = vor.u32 %v15149_v61, %v13477_v10 }
 0x201   :  { %v15081_v44 = vld [vmem:[#allocation5 + $0x1dc4] sm:$0xf]  ;;  %v13205_v55 = vld [vmem:[#allocation5 + $0x1dd0] sm:$0xf0]  ;;  %7134 = vmatpush.bf16.msra.mxu1 %v12600_v14  ;;  %v13080_v62 = vor.u32 %v15049_v48, %v13077_v15 }
 0x202   :  { %v15113_v34 = vld [vmem:[#allocation5 + $0x1ec4] sm:$0xf]  ;;  %v13333_v63 = vld [vmem:[#allocation5 + $0x1ed0] sm:$0xf0]  ;;  %v13208_v45 = vor.u32 %v15081_v44, %v13205_v55  ;;  %v6915_v48 = vpop.f32.mrf.mxu0 }
 0x203   :  { %7147 = vmatpush.bf16.msra.mxu2 %v12728_v60  ;;  %v15145_v54 = vld [vmem:[#allocation5 + $0x1fc4] sm:$0xf]  ;;  %v13461_v59 = vld [vmem:[#allocation5 + $0x1fd0] sm:$0xf0]  ;;  %7160 = vmatpush.bf16.msra.mxu3 %v12856_v1  ;;  %v13336_v4 = vor.u32 %v15113_v34, %v13333_v63  ;;  %v6928_v34 = vpop.f32.mrf.mxu1 }
 0x204   :  { %7166 = vmatpush.bf16.msrb.mxu0 %v13096_v42  ;;  %v15045_v49 = vld [vmem:[#allocation5 + $0x1ca4] sm:$0xf]  ;;  %v13061_v46 = vld [vmem:[#allocation5 + $0x1cb0] sm:$0xf0]  ;;  %v13464_v50 = vor.u32 %v15145_v54, %v13461_v59  ;;  %7135 = vmatmul.bf16.vlgmr.msra.gmra.mxu1 %v15721_v7 }
 0x205   :  { %7179 = vmatpush.bf16.msrb.mxu1 %v13224_v5  ;;  %v15077_v52 = vld [vmem:[#allocation5 + $0x1da4] sm:$0xf]  ;;  %7122 = vmatmul.bf16.vlgmr.msra.gmra.mxu0 %v15717_v0  ;;  %v13189_v2 = vld [vmem:[#allocation5 + $0x1db0] sm:$0xf0]  ;;  %v13064_v56 = vor.u32 %v15045_v49, %v13061_v46 }
 0x206   :  { %v15109_v53 = vld [vmem:[#allocation5 + $0x1ea4] sm:$0xf]  ;;  %v13317_v58 = vld [vmem:[#allocation5 + $0x1eb0] sm:$0xf0]  ;;  %7148 = vmatmul.bf16.vlgmr.msra.gmra.mxu2 %v15719_v6  ;;  %7161 = vmatmul.bf16.vlgmr.msra.gmra.mxu3 %v15723_v11  ;;  %v13192_v22 = vor.u32 %v15077_v52, %v13189_v2 }
 0x207   :  { %7192 = vmatpush.bf16.msrb.mxu2 %v13352_v28  ;;  %7205 = vmatpush.bf16.msrb.mxu3 %v13480_v51  ;;  %v15141_v13 = vld [vmem:[#allocation5 + $0x1fa4] sm:$0xf]  ;;  %v13445_v20 = vld [vmem:[#allocation5 + $0x1fb0] sm:$0xf0]  ;;  %v13320_v14 = vor.u32 %v15109_v53, %v13317_v58  ;;  %v6916_v51 = vadd.f32 %v6915_v48, %v15790_v57 }
 0x208   :  { %7167 = vmatpush.bf16.msrb.mxu0 %v13080_v62  ;;  %v15041_v60 = vld [vmem:[#allocation5 + $0x1c84] sm:$0xf]  ;;  %v13045_v61 = vld [vmem:[#allocation5 + $0x1c90] sm:$0xf0]  ;;  %v13448_v1 = vor.u32 %v15141_v13, %v13445_v20 }
 0x209   :  { %7180 = vmatpush.bf16.msrb.mxu1 %v13208_v45  ;;  %v15073_v10 = vld [vmem:[#allocation5 + $0x1d84] sm:$0xf]  ;;  %v13173_v42 = vld [vmem:[#allocation5 + $0x1d90] sm:$0xf0]  ;;  %v13048_v55 = vor.u32 %v15041_v60, %v13045_v61  ;;  %v6929_v49 = vadd.f32 %v6928_v34, %v6916_v51  ;;  %v6941_v60 = vpop.f32.mrf.mxu2 }
 0x20a   :  { %v15105_v5 = vld [vmem:[#allocation5 + $0x1e84] sm:$0xf]  ;;  %v13301_v28 = vld [vmem:[#allocation5 + $0x1e90] sm:$0xf0]  ;;  %v13176_v63 = vor.u32 %v15073_v10, %v13173_v42 }
 0x20b   :  { %7193 = vmatpush.bf16.msrb.mxu2 %v13336_v4  ;;  %7206 = vmatpush.bf16.msrb.mxu3 %v13464_v50  ;;  %v15137_v15 = vld [vmem:[#allocation5 + $0x1f84] sm:$0xf]  ;;  %v13429_v44 = vld [vmem:[#allocation5 + $0x1f90] sm:$0xf0]  ;;  %v13304_v54 = vor.u32 %v15105_v5, %v13301_v28  ;;  %v6942_v42 = vadd.f32 %v6941_v60, %v6929_v49  ;;  %v6954_v5 = vpop.f32.mrf.mxu3  ;;  %v6930_v51 = vpop.f32.mrf.mxu1 }
 0x20c   :  { %7168 = vmatpush.bf16.msrb.mxu0 %v13064_v56  ;;  %v15037_v59 = vld [vmem:[#allocation5 + $0x1c64] sm:$0xf]  ;;  %v13029_v62 = vld [vmem:[#allocation5 + $0x1c70] sm:$0xf0]  ;;  %v13432_v4 = vor.u32 %v15137_v15, %v13429_v44  ;;  %v6917_v15 = vpop.f32.mrf.mxu0  ;;  %v9771_v51 = vld [vmem:[#allocation5 + $0x2e8] sm:$0xf] }
 0x20d   :  { %7181 = vmatpush.bf16.msrb.mxu1 %v13192_v22  ;;  %v15069_v45 = vld [vmem:[#allocation5 + $0x1d64] sm:$0xf]  ;;  %v13157_v46 = vld [vmem:[#allocation5 + $0x1d70] sm:$0xf0]  ;;  %v13032_v58 = vor.u32 %v15037_v59, %v13029_v62 }
 0x20e   :  { %v15101_v52 = vld [vmem:[#allocation5 + $0x1e64] sm:$0xf]  ;;  %v13285_v50 = vld [vmem:[#allocation5 + $0x1e70] sm:$0xf0]  ;;  %v13160_v57 = vor.u32 %v15069_v45, %v13157_v46 }
 0x20f   :  { %7194 = vmatpush.bf16.msrb.mxu2 %v13320_v14  ;;  %7207 = vmatpush.bf16.msrb.mxu3 %v13448_v1  ;;  %v15133_v2 = vld [vmem:[#allocation5 + $0x1f64] sm:$0xf]  ;;  %v13413_v53 = vld [vmem:[#allocation5 + $0x1f70] sm:$0xf0]  ;;  %v13288_v13 = vor.u32 %v15101_v52, %v13285_v50 }
 0x210   :  { %7169 = vmatpush.bf16.msrb.mxu0 %v13048_v55  ;;  %v15033_v20 = vld [vmem:[#allocation5 + $0x1c44] sm:$0xf]  ;;  %v13013_v56 = vld [vmem:[#allocation5 + $0x1c50] sm:$0xf0]  ;;  %v13416_v14 = vor.u32 %v15133_v2, %v13413_v53  ;;  %v15797_v55 = vadd.f32 %v6954_v5, %v6942_v42  ;;  %v9515_v42 = vld [vmem:[#allocation5 + $0xe8] sm:$0xf] }
 0x211   :  { %7182 = vmatpush.bf16.msrb.mxu1 %v13176_v63  ;;  %v15065_v22 = vld [vmem:[#allocation5 + $0x1d44] sm:$0xf]  ;;  %v13141_v61 = vld [vmem:[#allocation5 + $0x1d50] sm:$0xf0]  ;;  %v13016_v44 = vor.u32 %v15033_v20, %v13013_v56  ;;  %v14160_v5 = vld [vmem:[#allocation5 + $0xf4] sm:$0xf0] }
 0x212   :  { %v15097_v10 = vld [vmem:[#allocation5 + $0x1e44] sm:$0xf]  ;;  %v13269_v1 = vld [vmem:[#allocation5 + $0x1e50] sm:$0xf0]  ;;  %v13144_v34 = vor.u32 %v15065_v22, %v13141_v61 }
 0x213   :  { %7195 = vmatpush.bf16.msrb.mxu2 %v13304_v54  ;;  %7208 = vmatpush.bf16.msrb.mxu3 %v13432_v4  ;;  %v15129_v28 = vld [vmem:[#allocation5 + $0x1f44] sm:$0xf]  ;;  %v13397_v48 = vld [vmem:[#allocation5 + $0x1f50] sm:$0xf0]  ;;  %v13272_v63 = vor.u32 %v15097_v10, %v13269_v1  ;;  %v6943_v1 = vpop.f32.mrf.mxu2 }
 0x214   :  { %7170 = vmatpush.bf16.msrb.mxu0 %v13032_v58  ;;  %v15029_v54 = vld [vmem:[#allocation5 + $0x1c24] sm:$0xf]  ;;  %v12997_v59 = vld [vmem:[#allocation5 + $0x1c30] sm:$0xf0]  ;;  %v13400_v45 = vor.u32 %v15129_v28, %v13397_v48  ;;  %v9643_v28 = vld [vmem:[#allocation5 + $0x1e8] sm:$0xf]  ;;  %v6956_v48 = vpop.f32.mrf.mxu3 }
 0x215   :  { %7183 = vmatpush.bf16.msrb.mxu1 %v13160_v57  ;;  %v15061_v62 = vld [vmem:[#allocation5 + $0x1d24] sm:$0xf]  ;;  %v13125_v4 = vld [vmem:[#allocation5 + $0x1d30] sm:$0xf0]  ;;  %v13000_v2 = vor.u32 %v15029_v54, %v12997_v59  ;;  %v9899_v59 = vld [vmem:[#allocation5 + $0x3e8] sm:$0xf] }
 0x216   :  { %v15093_v49 = vld [vmem:[#allocation5 + $0x1e24] sm:$0xf]  ;;  %v13253_v46 = vld [vmem:[#allocation5 + $0x1e30] sm:$0xf0]  ;;  %v13128_v57 = vor.u32 %v15061_v62, %v13125_v4  ;;  %v14256_v62 = vld [vmem:[#allocation5 + $0x3f4] sm:$0xf0]  ;;  %v9516_v4 = vor.u32 %v14160_v5, %v9515_v42 }
 0x217   :  { %7196 = vmatpush.bf16.msrb.mxu2 %v13288_v13  ;;  %7209 = vmatpush.bf16.msrb.mxu3 %v13416_v14  ;;  %v15125_v52 = vld [vmem:[#allocation5 + $0x1f24] sm:$0xf]  ;;  %v13381_v50 = vld [vmem:[#allocation5 + $0x1f30] sm:$0xf0]  ;;  %v13256_v13 = vor.u32 %v15093_v49, %v13253_v46  ;;  %v9627_v1 = vld [vmem:[#allocation5 + $0x1c8] sm:$0xf] }
 0x218   :  { %7171 = vmatpush.bf16.msrb.mxu0 %v13016_v44  ;;  %v15025_v53 = vld [vmem:[#allocation5 + $0x1c04] sm:$0xf]  ;;  %v12981_v58 = vld [vmem:[#allocation5 + $0x1c10] sm:$0xf0]  ;;  %v13384_v60 = vor.u32 %v15125_v52, %v13381_v50  ;;  %v14192_v44 = vld [vmem:[#allocation5 + $0x1f4] sm:$0xf0] }
 0x219   :  { %7184 = vmatpush.bf16.msrb.mxu1 %v13144_v34  ;;  %v15057_v20 = vld [vmem:[#allocation5 + $0x1d04] sm:$0xf]  ;;  %v13109_v56 = vld [vmem:[#allocation5 + $0x1d10] sm:$0xf0]  ;;  %v12984_v15 = vor.u32 %v15025_v53, %v12981_v58  ;;  %v14224_v34 = vld [vmem:[#allocation5 + $0x2f4] sm:$0xf0]  ;;  %v9644_v49 = vor.u32 %v14192_v44, %v9643_v28 }
 0x21a   :  { %v15089_v22 = vld [vmem:[#allocation5 + $0x1e04] sm:$0xf]  ;;  %v13237_v14 = vld [vmem:[#allocation5 + $0x1e10] sm:$0xf0]  ;;  %v9772_v46 = vor.u32 %v14224_v34, %v9771_v51  ;;  %v9499_v52 = vld [vmem:[#allocation5 + $0xc8] sm:$0xf] }
 0x21b   :  { %7197 = vmatpush.bf16.msrb.mxu2 %v13272_v63  ;;  %7210 = vmatpush.bf16.msrb.mxu3 %v13400_v45  ;;  %v15121_v61 = vld [vmem:[#allocation5 + $0x1f04] sm:$0xf]  ;;  %v13365_v10 = vld [vmem:[#allocation5 + $0x1f10] sm:$0xf0]  ;;  %v13112_v63 = vor.u32 %v15057_v20, %v13109_v56  ;;  %v13240_v54 = vor.u32 %v15089_v22, %v13237_v14  ;;  %v14156_v50 = vld [vmem:[#allocation5 + $0xd4] sm:$0xf0] }
 0x21c   :  { %7172 = vmatpush.bf16.msrb.mxu0 %v13000_v2  ;;  %v13368_v45 = vor.u32 %v15121_v61, %v13365_v10  ;;  %v9900_v2 = vor.u32 %v14256_v62, %v9899_v59  ;;  %v14188_v53 = vld [vmem:[#allocation5 + $0x1d4] sm:$0xf0]  ;;  %v9755_v58 = vld [vmem:[#allocation5 + $0x2c8] sm:$0xf]  ;;  %v9500_v20 = vor.u32 %v14156_v50, %v9499_v52 }
 0x21d   :  { %7185 = vmatpush.bf16.msrb.mxu1 %v13128_v57  ;;  %v14220_v48 = vld [vmem:[#allocation5 + $0x2d4] sm:$0xf0]  ;;  %v9883_v57 = vld [vmem:[#allocation5 + $0x3c8] sm:$0xf]  ;;  %v9628_v56 = vor.u32 %v14188_v53, %v9627_v1 }
 0x21e   :  { %v9756_v22 = vor.u32 %v14220_v48, %v9755_v58  ;;  %v14152_v14 = vld [vmem:[#allocation5 + $0xb4] sm:$0xf0]  ;;  %v9611_v61 = vld [vmem:[#allocation5 + $0x1a8] sm:$0xf] }
 0x21f   :  { %7198 = vmatpush.bf16.msrb.mxu2 %v13256_v13  ;;  %7211 = vmatpush.bf16.msrb.mxu3 %v13384_v60  ;;  %v14252_v13 = vld [vmem:[#allocation5 + $0x3d4] sm:$0xf0]  ;;  %v9483_v60 = vld [vmem:[#allocation5 + $0xa8] sm:$0xf] }
 0x220   :  { %7173 = vmatpush.bf16.msrb.mxu0 %v12984_v15  ;;  %v9884_v10 = vor.u32 %v14252_v13, %v9883_v57  ;;  %v14184_v42 = vld [vmem:[#allocation5 + $0x1b4] sm:$0xf0]  ;;  %v9739_v5 = vld [vmem:[#allocation5 + $0x2a8] sm:$0xf]  ;;  %v9484_v51 = vor.u32 %v14152_v14, %v9483_v60 }
 0x221   :  { %7186 = vmatpush.bf16.msrb.mxu1 %v13112_v63  ;;  %v14216_v28 = vld [vmem:[#allocation5 + $0x2b4] sm:$0xf0]  ;;  %v9867_v15 = vld [vmem:[#allocation5 + $0x3a8] sm:$0xf]  ;;  %v9612_v34 = vor.u32 %v14184_v42, %v9611_v61  ;;  %v6980_v58 = vpop.f32.mrf.mxu1 }
 0x222   :  { %v14248_v44 = vld [vmem:[#allocation5 + $0x3b4] sm:$0xf0]  ;;  %v9740_v63 = vor.u32 %v14216_v28, %v9739_v5  ;;  %v9595_v62 = vld [vmem:[#allocation5 + $0x188] sm:$0xf]  ;;  %v6967_v52 = vpop.f32.mrf.mxu0 }
 0x223   :  { %7199 = vmatpush.bf16.msrb.mxu2 %v13240_v54  ;;  %7212 = vmatpush.bf16.msrb.mxu3 %v13368_v45  ;;  %v9467_v54 = vld [vmem:[#allocation5 + $0x88] sm:$0xf]  ;;  %v14148_v59 = vld [vmem:[#allocation5 + $0x94] sm:$0xf0]  ;;  %v9868_v45 = vor.u32 %v14248_v44, %v9867_v15 }
 0x224   :  { %7218 = vmatpush.bf16.msra.mxu0 %v9516_v4  ;;  %7187 = vmatmul.bf16.vlgmr.msrb.gmra.mxu1 %v15740_v47  ;;  %v14180_v4 = vld [vmem:[#allocation5 + $0x194] sm:$0xf0]  ;;  %v9851_v50 = vld [vmem:[#allocation5 + $0x388] sm:$0xf]  ;;  %v9468_v53 = vor.u32 %v14148_v59, %v9467_v54 }
 0x225   :  { %7231 = vmatpush.bf16.msra.mxu1 %v9644_v49  ;;  %7174 = vmatmul.bf16.vlgmr.msrb.gmra.mxu0 %v15736_v23  ;;  %v9723_v49 = vld [vmem:[#allocation5 + $0x288] sm:$0xf]  ;;  %v14244_v1 = vld [vmem:[#allocation5 + $0x394] sm:$0xf0]  ;;  %v9596_v48 = vor.u32 %v14180_v4, %v9595_v62 }
 0x226   :  { %7200 = vmatmul.bf16.vlgmr.msrb.gmra.mxu2 %v15738_v33  ;;  %7213 = vmatmul.bf16.vlgmr.msrb.gmra.mxu3 %v15742_v35  ;;  %v9451_v13 = vld [vmem:[#allocation5 + $0x68] sm:$0xf]  ;;  %v14176_v14 = vld [vmem:[#allocation5 + $0x174] sm:$0xf0] }
 0x227   :  { %7244 = vmatpush.bf16.msra.mxu2 %v9772_v46  ;;  %7257 = vmatpush.bf16.msra.mxu3 %v9900_v2  ;;  %v14212_v46 = vld [vmem:[#allocation5 + $0x294] sm:$0xf0]  ;;  %v6968_v2 = vadd.f32 %v6967_v52, %v15797_v55  ;;  %v9707_v61 = vld [vmem:[#allocation5 + $0x268] sm:$0xf] }
 0x228   :  { %7219 = vmatpush.bf16.msra.mxu0 %v9500_v20  ;;  %v9724_v57 = vor.u32 %v14212_v46, %v9723_v49  ;;  %v14144_v20 = vld [vmem:[#allocation5 + $0x74] sm:$0xf0]  ;;  %v9835_v42 = vld [vmem:[#allocation5 + $0x368] sm:$0xf] }
 0x229   :  { %7232 = vmatpush.bf16.msra.mxu1 %v9628_v56  ;;  %v9579_v56 = vld [vmem:[#allocation5 + $0x168] sm:$0xf]  ;;  %v6981_v60 = vadd.f32 %v6980_v58, %v6968_v2  ;;  %v14240_v5 = vld [vmem:[#allocation5 + $0x374] sm:$0xf0]  ;;  %v9452_v28 = vor.u32 %v14144_v20, %v9451_v13  ;;  %v6993_v54 = vpop.f32.mrf.mxu2  ;;  %v7006_v49 = vpop.f32.mrf.mxu3 }
 0x22a   :  { %v9580_v55 = vor.u32 %v14176_v14, %v9579_v56  ;;  %v9435_v44 = vld [vmem:[#allocation5 + $0x48] sm:$0xf]  ;;  %v14172_v59 = vld [vmem:[#allocation5 + $0x154] sm:$0xf0]  ;;  %v6982_v2 = vpop.f32.mrf.mxu1 }
 0x22b   :  { %7245 = vmatpush.bf16.msra.mxu2 %v9756_v22  ;;  %7258 = vmatpush.bf16.msra.mxu3 %v9884_v10  ;;  %v9852_v22 = vor.u32 %v14244_v1, %v9851_v50  ;;  %v14208_v10 = vld [vmem:[#allocation5 + $0x274] sm:$0xf0]  ;;  %v9691_v62 = vld [vmem:[#allocation5 + $0x248] sm:$0xf]  ;;  %v6994_v4 = vadd.f32 %v6993_v54, %v6981_v60  ;;  %v6969_v50 = vpop.f32.mrf.mxu0 }
 0x22c   :  { %7220 = vmatpush.bf16.msra.mxu0 %v9484_v51  ;;  %v9708_v15 = vor.u32 %v14208_v10, %v9707_v61  ;;  %v14140_v51 = vld [vmem:[#allocation5 + $0x54] sm:$0xf0]  ;;  %v9819_v46 = vld [vmem:[#allocation5 + $0x348] sm:$0xf] }
 0x22d   :  { %7233 = vmatpush.bf16.msra.mxu1 %v9612_v34  ;;  %v9563_v34 = vld [vmem:[#allocation5 + $0x148] sm:$0xf]  ;;  %v14236_v52 = vld [vmem:[#allocation5 + $0x354] sm:$0xf0]  ;;  %v9436_v1 = vor.u32 %v14140_v51, %v9435_v44 }
 0x22e   :  { %v9564_v58 = vor.u32 %v14172_v59, %v9563_v34  ;;  %v14136_v13 = vld [vmem:[#allocation5 + $0x34] sm:$0xf0]  ;;  %v9547_v20 = vld [vmem:[#allocation5 + $0x128] sm:$0xf]  ;;  %v9820_v56 = vor.u32 %v14236_v52, %v9819_v46 }
 0x22f   :  { %7246 = vmatpush.bf16.msra.mxu2 %v9740_v63  ;;  %7259 = vmatpush.bf16.msra.mxu3 %v9868_v45  ;;  %v9836_v63 = vor.u32 %v14240_v5, %v9835_v42  ;;  %v14204_v45 = vld [vmem:[#allocation5 + $0x254] sm:$0xf0]  ;;  %v9675_v60 = vld [vmem:[#allocation5 + $0x228] sm:$0xf] }
 0x230   :  { %7221 = vmatpush.bf16.msra.mxu0 %v9468_v53  ;;  %v15804_v53 = vadd.f32 %v7006_v49, %v6994_v4  ;;  %v14200_v14 = vld [vmem:[#allocation5 + $0x234] sm:$0xf0]  ;;  %v9803_v61 = vld [vmem:[#allocation5 + $0x328] sm:$0xf] }
 0x231   :  { %7234 = vmatpush.bf16.msra.mxu1 %v9596_v48  ;;  %v9692_v48 = vor.u32 %v14204_v45, %v9691_v62  ;;  %v14232_v10 = vld [vmem:[#allocation5 + $0x334] sm:$0xf0]  ;;  %v9403_v5 = vld [vmem:[#allocation5 + $0x8] sm:$0xf]  ;;  %v6995_v45 = vpop.f32.mrf.mxu2  ;;  %v7008_v52 = vpop.f32.mrf.mxu3 }
 0x232   :  { %v9531_v44 = vld [vmem:[#allocation5 + $0x108] sm:$0xf]  ;;  %v14164_v51 = vld [vmem:[#allocation5 + $0x114] sm:$0xf0]  ;;  %v9804_v54 = vor.u32 %v14232_v10, %v9803_v61 }
 0x233   :  { %7247 = vmatpush.bf16.msra.mxu2 %v9724_v57  ;;  %7260 = vmatpush.bf16.msra.mxu3 %v9852_v22  ;;  %v9419_v57 = vld [vmem:[#allocation5 + $0x28] sm:$0xf]  ;;  %v14168_v22 = vld [vmem:[#allocation5 + $0x134] sm:$0xf0] }
 0x234   :  { %7222 = vmatpush.bf16.msra.mxu0 %v9452_v28  ;;  %v9420_v42 = vor.u32 %v14136_v13, %v9419_v57  ;;  %v14132_v28 = vld [vmem:[#allocation5 + $0x14] sm:$0xf0]  ;;  %v9659_v34 = vld [vmem:[#allocation5 + $0x208] sm:$0xf] }
 0x235   :  { %7235 = vmatpush.bf16.msra.mxu1 %v9580_v55  ;;  %v9548_v55 = vor.u32 %v14168_v22, %v9547_v20  ;;  %v9787_v59 = vld [vmem:[#allocation5 + $0x308] sm:$0xf]  ;;  %v14228_v62 = vld [vmem:[#allocation5 + $0x314] sm:$0xf0]  ;;  %v9404_v50 = vor.u32 %v14132_v28, %v9403_v5 }
 0x236   :  { %v10027_v4 = vld [vmem:[#allocation5 + $0x4e8] sm:$0xf]  ;;  %v14288_v49 = vld [vmem:[#allocation5 + $0x4f4] sm:$0xf0] }
 0x237   :  { %7248 = vmatpush.bf16.msra.mxu2 %v9708_v15  ;;  %7261 = vmatpush.bf16.msra.mxu3 %v9836_v63  ;;  %v9676_v15 = vor.u32 %v14200_v14, %v9675_v60  ;;  %v14196_v63 = vld [vmem:[#allocation5 + $0x214] sm:$0xf0]  ;;  %v10155_v46 = vld [vmem:[#allocation5 + $0x5e8] sm:$0xf]  ;;  %v10028_v22 = vor.u32 %v14288_v49, %v10027_v4 }
 0x238   :  { %7223 = vmatpush.bf16.msra.mxu0 %v9436_v1  ;;  %v14320_v1 = vld [vmem:[#allocation5 + $0x5f4] sm:$0xf0]  ;;  %v10283_v2 = vld [vmem:[#allocation5 + $0x6e8] sm:$0xf]  ;;  %v9660_v57 = vor.u32 %v14196_v63, %v9659_v34 }
 0x239   :  { %7236 = vmatpush.bf16.msra.mxu1 %v9564_v58  ;;  %v14352_v58 = vld [vmem:[#allocation5 + $0x6f4] sm:$0xf0]  ;;  %v10411_v13 = vld [vmem:[#allocation5 + $0x7e8] sm:$0xf]  ;;  %v10156_v60 = vor.u32 %v14320_v1, %v10155_v46 }
 0x23a   :  { %v14384_v20 = vld [vmem:[#allocation5 + $0x7f4] sm:$0xf0]  ;;  %v10284_v14 = vor.u32 %v14352_v58, %v10283_v2  ;;  %v10011_v61 = vld [vmem:[#allocation5 + $0x4c8] sm:$0xf] }
 0x23b   :  { %7249 = vmatpush.bf16.msra.mxu2 %v9692_v48  ;;  %7262 = vmatpush.bf16.msra.mxu3 %v9820_v56  ;;  %v9532_v48 = vor.u32 %v14164_v51, %v9531_v44  ;;  %v9788_v56 = vor.u32 %v14228_v62, %v9787_v59  ;;  %v14284_v10 = vld [vmem:[#allocation5 + $0x4d4] sm:$0xf0]  ;;  %v10139_v45 = vld [vmem:[#allocation5 + $0x5c8] sm:$0xf] }
 0x23c   :  { %7224 = vmatpush.bf16.msra.mxu0 %v9420_v42  ;;  %v10412_v42 = vor.u32 %v14384_v20, %v10411_v13  ;;  %v14316_v5 = vld [vmem:[#allocation5 + $0x5d4] sm:$0xf0]  ;;  %v10267_v28 = vld [vmem:[#allocation5 + $0x6c8] sm:$0xf]  ;;  %v10012_v44 = vor.u32 %v14284_v10, %v10011_v61 }
 0x23d   :  { %7237 = vmatpush.bf16.msra.mxu1 %v9548_v55  ;;  %v14348_v52 = vld [vmem:[#allocation5 + $0x6d4] sm:$0xf0]  ;;  %v10395_v55 = vld [vmem:[#allocation5 + $0x7c8] sm:$0xf]  ;;  %v10140_v51 = vor.u32 %v14316_v5, %v10139_v45 }
 0x23e   :  { %v10268_v34 = vor.u32 %v14348_v52, %v10267_v28  ;;  %v14280_v63 = vld [vmem:[#allocation5 + $0x4b4] sm:$0xf0]  ;;  %v10123_v59 = vld [vmem:[#allocation5 + $0x5a8] sm:$0xf] }
 0x23f   :  { %7250 = vmatpush.bf16.msra.mxu2 %v9676_v15  ;;  %7263 = vmatpush.bf16.msra.mxu3 %v9804_v54  ;;  %v14380_v15 = vld [vmem:[#allocation5 + $0x7d4] sm:$0xf0]  ;;  %v9995_v54 = vld [vmem:[#allocation5 + $0x4a8] sm:$0xf] }
 0x240   :  { %7225 = vmatpush.bf16.msra.mxu0 %v9404_v50  ;;  %v10396_v62 = vor.u32 %v14380_v15, %v10395_v55  ;;  %v14312_v4 = vld [vmem:[#allocation5 + $0x5b4] sm:$0xf0]  ;;  %v10251_v49 = vld [vmem:[#allocation5 + $0x6a8] sm:$0xf]  ;;  %v9996_v2 = vor.u32 %v14280_v63, %v9995_v54 }
 0x241   :  { %7238 = vmatpush.bf16.msra.mxu1 %v9532_v48  ;;  %v14344_v46 = vld [vmem:[#allocation5 + $0x6b4] sm:$0xf0]  ;;  %v10379_v50 = vld [vmem:[#allocation5 + $0x7a8] sm:$0xf]  ;;  %v10124_v58 = vor.u32 %v14312_v4, %v10123_v59  ;;  %v7032_v28 = vpop.f32.mrf.mxu1 }
 0x242   :  { %v14376_v1 = vld [vmem:[#allocation5 + $0x7b4] sm:$0xf0]  ;;  %v10252_v48 = vor.u32 %v14344_v46, %v10251_v49  ;;  %v10107_v20 = vld [vmem:[#allocation5 + $0x588] sm:$0xf]  ;;  %v7019_v61 = vpop.f32.mrf.mxu0 }
 0x243   :  { %7251 = vmatpush.bf16.msra.mxu2 %v9660_v57  ;;  %7264 = vmatpush.bf16.msra.mxu3 %v9788_v56  ;;  %v9979_v57 = vld [vmem:[#allocation5 + $0x488] sm:$0xf]  ;;  %v14276_v13 = vld [vmem:[#allocation5 + $0x494] sm:$0xf0]  ;;  %v10380_v56 = vor.u32 %v14376_v1, %v10379_v50 }
 0x244   :  { %7270 = vmatpush.bf16.msrb.mxu0 %v10028_v22  ;;  %7239 = vmatmul.bf16.vlgmr.msra.gmra.mxu1 %v15617_v30  ;;  %v14308_v22 = vld [vmem:[#allocation5 + $0x594] sm:$0xf0]  ;;  %v10363_v10 = vld [vmem:[#allocation5 + $0x788] sm:$0xf]  ;;  %v9980_v5 = vor.u32 %v14276_v13, %v9979_v57 }
 0x245   :  { %7283 = vmatpush.bf16.msrb.mxu1 %v10156_v60  ;;  %7226 = vmatmul.bf16.vlgmr.msra.gmra.mxu0 %v15611_v17  ;;  %v10235_v60 = vld [vmem:[#allocation5 + $0x688] sm:$0xf]  ;;  %v14372_v45 = vld [vmem:[#allocation5 + $0x794] sm:$0xf0]  ;;  %v10108_v52 = vor.u32 %v14308_v22, %v10107_v20 }
 0x246   :  { %7252 = vmatmul.bf16.vlgmr.msra.gmra.mxu2 %v15609_v16  ;;  %7265 = vmatmul.bf16.vlgmr.msra.gmra.mxu3 %v15613_v18  ;;  %v9963_v15 = vld [vmem:[#allocation5 + $0x468] sm:$0xf]  ;;  %v14304_v63 = vld [vmem:[#allocation5 + $0x574] sm:$0xf0] }
 0x247   :  { %7296 = vmatpush.bf16.msrb.mxu2 %v10284_v14  ;;  %7309 = vmatpush.bf16.msrb.mxu3 %v10412_v42  ;;  %v14340_v14 = vld [vmem:[#allocation5 + $0x694] sm:$0xf0]  ;;  %v7020_v42 = vadd.f32 %v7019_v61, %v15804_v53  ;;  %v10219_v59 = vld [vmem:[#allocation5 + $0x668] sm:$0xf] }
 0x248   :  { %7271 = vmatpush.bf16.msrb.mxu0 %v10012_v44  ;;  %v10236_v55 = vor.u32 %v14340_v14, %v10235_v60  ;;  %v14272_v44 = vld [vmem:[#allocation5 + $0x474] sm:$0xf0]  ;;  %v10347_v4 = vld [vmem:[#allocation5 + $0x768] sm:$0xf] }
 0x249   :  { %7284 = vmatpush.bf16.msrb.mxu1 %v10140_v51  ;;  %v10091_v51 = vld [vmem:[#allocation5 + $0x568] sm:$0xf]  ;;  %v7033_v54 = vadd.f32 %v7032_v28, %v7020_v42  ;;  %v14368_v49 = vld [vmem:[#allocation5 + $0x774] sm:$0xf0]  ;;  %v9964_v46 = vor.u32 %v14272_v44, %v9963_v15  ;;  %v7045_v57 = vpop.f32.mrf.mxu2  ;;  %v7058_v60 = vpop.f32.mrf.mxu3 }
 0x24a   :  { %v10092_v53 = vor.u32 %v14304_v63, %v10091_v51  ;;  %v9947_v1 = vld [vmem:[#allocation5 + $0x448] sm:$0xf]  ;;  %v14300_v13 = vld [vmem:[#allocation5 + $0x554] sm:$0xf0]  ;;  %v7034_v42 = vpop.f32.mrf.mxu1 }
 0x24b   :  { %7297 = vmatpush.bf16.msrb.mxu2 %v10268_v34  ;;  %7310 = vmatpush.bf16.msrb.mxu3 %v10396_v62  ;;  %v10364_v34 = vor.u32 %v14372_v45, %v10363_v10  ;;  %v14336_v62 = vld [vmem:[#allocation5 + $0x674] sm:$0xf0]  ;;  %v10203_v20 = vld [vmem:[#allocation5 + $0x648] sm:$0xf]  ;;  %v7046_v22 = vadd.f32 %v7045_v57, %v7033_v54  ;;  %v7021_v10 = vpop.f32.mrf.mxu0 }
 0x24c   :  { %7272 = vmatpush.bf16.msrb.mxu0 %v9996_v2  ;;  %v10220_v50 = vor.u32 %v14336_v62, %v10219_v59  ;;  %v14268_v2 = vld [vmem:[#allocation5 + $0x454] sm:$0xf0]  ;;  %v10331_v14 = vld [vmem:[#allocation5 + $0x748] sm:$0xf] }
 0x24d   :  { %7285 = vmatpush.bf16.msrb.mxu1 %v10124_v58  ;;  %v10075_v58 = vld [vmem:[#allocation5 + $0x548] sm:$0xf]  ;;  %v14364_v61 = vld [vmem:[#allocation5 + $0x754] sm:$0xf0]  ;;  %v9948_v45 = vor.u32 %v14268_v2, %v9947_v1 }
 0x24e   :  { %v10076_v28 = vor.u32 %v14300_v13, %v10075_v58  ;;  %v14264_v15 = vld [vmem:[#allocation5 + $0x434] sm:$0xf0]  ;;  %v10059_v44 = vld [vmem:[#allocation5 + $0x528] sm:$0xf]  ;;  %v10332_v51 = vor.u32 %v14364_v61, %v10331_v14 }
 0x24f   :  { %7298 = vmatpush.bf16.msrb.mxu2 %v10252_v48  ;;  %7311 = vmatpush.bf16.msrb.mxu3 %v10380_v56  ;;  %v10348_v48 = vor.u32 %v14368_v49, %v10347_v4  ;;  %v14332_v56 = vld [vmem:[#allocation5 + $0x654] sm:$0xf0]  ;;  %v10187_v54 = vld [vmem:[#allocation5 + $0x628] sm:$0xf] }
 0x250   :  { %7273 = vmatpush.bf16.msrb.mxu0 %v9980_v5  ;;  %v15811_v5 = vadd.f32 %v7058_v60, %v7046_v22  ;;  %v14328_v63 = vld [vmem:[#allocation5 + $0x634] sm:$0xf0]  ;;  %v10315_v59 = vld [vmem:[#allocation5 + $0x728] sm:$0xf] }
 0x251   :  { %7286 = vmatpush.bf16.msrb.mxu1 %v10108_v52  ;;  %v10204_v52 = vor.u32 %v14332_v56, %v10203_v20  ;;  %v14360_v62 = vld [vmem:[#allocation5 + $0x734] sm:$0xf0]  ;;  %v9915_v49 = vld [vmem:[#allocation5 + $0x408] sm:$0xf]  ;;  %v7047_v56 = vpop.f32.mrf.mxu2  ;;  %v7060_v61 = vpop.f32.mrf.mxu3 }
 0x252   :  { %v10043_v1 = vld [vmem:[#allocation5 + $0x508] sm:$0xf]  ;;  %v14292_v2 = vld [vmem:[#allocation5 + $0x514] sm:$0xf0]  ;;  %v10316_v57 = vor.u32 %v14360_v62, %v10315_v59 }
 0x253   :  { %7299 = vmatpush.bf16.msrb.mxu2 %v10236_v55  ;;  %7312 = vmatpush.bf16.msrb.mxu3 %v10364_v34  ;;  %v9931_v55 = vld [vmem:[#allocation5 + $0x428] sm:$0xf]  ;;  %v14296_v34 = vld [vmem:[#allocation5 + $0x534] sm:$0xf0] }
 0x254   :  { %7274 = vmatpush.bf16.msrb.mxu0 %v9964_v46  ;;  %v9932_v4 = vor.u32 %v14264_v15, %v9931_v55  ;;  %v14260_v46 = vld [vmem:[#allocation5 + $0x414] sm:$0xf0]  ;;  %v10171_v58 = vld [vmem:[#allocation5 + $0x608] sm:$0xf] }
 0x255   :  { %7287 = vmatpush.bf16.msrb.mxu1 %v10092_v53  ;;  %v10060_v53 = vor.u32 %v14296_v34, %v10059_v44  ;;  %v10299_v13 = vld [vmem:[#allocation5 + $0x708] sm:$0xf]  ;;  %v14356_v20 = vld [vmem:[#allocation5 + $0x714] sm:$0xf0]  ;;  %v9916_v10 = vor.u32 %v14260_v46, %v9915_v49 }
 0x256   :  { %v10539_v22 = vld [vmem:[#allocation5 + $0x8e8] sm:$0xf]  ;;  %v14416_v60 = vld [vmem:[#allocation5 + $0x8f4] sm:$0xf0] }
 0x257   :  { %7300 = vmatpush.bf16.msrb.mxu2 %v10220_v50  ;;  %7313 = vmatpush.bf16.msrb.mxu3 %v10348_v48  ;;  %v10188_v50 = vor.u32 %v14328_v63, %v10187_v54  ;;  %v14324_v48 = vld [vmem:[#allocation5 + $0x614] sm:$0xf0]  ;;  %v10667_v14 = vld [vmem:[#allocation5 + $0x9e8] sm:$0xf]  ;;  %v10540_v34 = vor.u32 %v14416_v60, %v10539_v22 }
 0x258   :  { %7275 = vmatpush.bf16.msrb.mxu0 %v9948_v45  ;;  %v14448_v45 = vld [vmem:[#allocation5 + $0x9f4] sm:$0xf0]  ;;  %v10795_v42 = vld [vmem:[#allocation5 + $0xae8] sm:$0xf]  ;;  %v10172_v55 = vor.u32 %v14324_v48, %v10171_v58 }
 0x259   :  { %7288 = vmatpush.bf16.msrb.mxu1 %v10076_v28  ;;  %v14480_v28 = vld [vmem:[#allocation5 + $0xaf4] sm:$0xf0]  ;;  %v10923_v15 = vld [vmem:[#allocation5 + $0xbe8] sm:$0xf]  ;;  %v10668_v54 = vor.u32 %v14448_v45, %v10667_v14 }
 0x25a   :  { %v14512_v44 = vld [vmem:[#allocation5 + $0xbf4] sm:$0xf0]  ;;  %v10796_v63 = vor.u32 %v14480_v28, %v10795_v42  ;;  %v10523_v59 = vld [vmem:[#allocation5 + $0x8c8] sm:$0xf] }
 0x25b   :  { %7301 = vmatpush.bf16.msrb.mxu2 %v10204_v52  ;;  %7314 = vmatpush.bf16.msrb.mxu3 %v10332_v51  ;;  %v10044_v52 = vor.u32 %v14292_v2, %v10043_v1  ;;  %v10300_v51 = vor.u32 %v14356_v20, %v10299_v13  ;;  %v14412_v62 = vld [vmem:[#allocation5 + $0x8d4] sm:$0xf0]  ;;  %v10651_v56 = vld [vmem:[#allocation5 + $0x9c8] sm:$0xf] }
 0x25c   :  { %7276 = vmatpush.bf16.msrb.mxu0 %v9932_v4  ;;  %v10924_v4 = vor.u32 %v14512_v44, %v10923_v15  ;;  %v14444_v49 = vld [vmem:[#allocation5 + $0x9d4] sm:$0xf0]  ;;  %v10779_v46 = vld [vmem:[#allocation5 + $0xac8] sm:$0xf]  ;;  %v10524_v1 = vor.u32 %v14412_v62, %v10523_v59 }
 0x25d   :  { %7289 = vmatpush.bf16.msrb.mxu1 %v10060_v53  ;;  %v14476_v61 = vld [vmem:[#allocation5 + $0xad4] sm:$0xf0]  ;;  %v10907_v53 = vld [vmem:[#allocation5 + $0xbc8] sm:$0xf]  ;;  %v10652_v2 = vor.u32 %v14444_v49, %v10651_v56 }
 0x25e   :  { %v10780_v58 = vor.u32 %v14476_v61, %v10779_v46  ;;  %v14408_v48 = vld [vmem:[#allocation5 + $0x8b4] sm:$0xf0]  ;;  %v10635_v13 = vld [vmem:[#allocation5 + $0x9a8] sm:$0xf] }
 0x25f   :  { %7302 = vmatpush.bf16.msrb.mxu2 %v10188_v50  ;;  %7315 = vmatpush.bf16.msrb.mxu3 %v10316_v57  ;;  %v14508_v50 = vld [vmem:[#allocation5 + $0xbd4] sm:$0xf0]  ;;  %v10507_v57 = vld [vmem:[#allocation5 + $0x8a8] sm:$0xf] }
 0x260   :  { %7277 = vmatpush.bf16.msrb.mxu0 %v9916_v10  ;;  %v10908_v20 = vor.u32 %v14508_v50, %v10907_v53  ;;  %v14440_v22 = vld [vmem:[#allocation5 + $0x9b4] sm:$0xf0]  ;;  %v10763_v60 = vld [vmem:[#allocation5 + $0xaa8] sm:$0xf]  ;;  %v10508_v42 = vor.u32 %v14408_v48, %v10507_v57 }
 0x261   :  { %7290 = vmatpush.bf16.msrb.mxu1 %v10044_v52  ;;  %v14472_v14 = vld [vmem:[#allocation5 + $0xab4] sm:$0xf0]  ;;  %v10891_v10 = vld [vmem:[#allocation5 + $0xba8] sm:$0xf]  ;;  %v10636_v28 = vor.u32 %v14440_v22, %v10635_v13  ;;  %v7084_v46 = vpop.f32.mrf.mxu1 }
 0x262   :  { %v14504_v45 = vld [vmem:[#allocation5 + $0xbb4] sm:$0xf0]  ;;  %v10764_v52 = vor.u32 %v14472_v14, %v10763_v60  ;;  %v10619_v44 = vld [vmem:[#allocation5 + $0x988] sm:$0xf]  ;;  %v7071_v59 = vpop.f32.mrf.mxu0 }
 0x263   :  { %7303 = vmatpush.bf16.msrb.mxu2 %v10172_v55  ;;  %7316 = vmatpush.bf16.msrb.mxu3 %v10300_v51  ;;  %v10491_v55 = vld [vmem:[#allocation5 + $0x888] sm:$0xf]  ;;  %v14404_v15 = vld [vmem:[#allocation5 + $0x894] sm:$0xf0]  ;;  %v10892_v51 = vor.u32 %v14504_v45, %v10891_v10 }
 0x264   :  { %7322 = vmatpush.bf16.msra.mxu0 %v10540_v34  ;;  %7291 = vmatmul.bf16.vlgmr.msrb.gmra.mxu1 %v15632_v41  ;;  %v14436_v34 = vld [vmem:[#allocation5 + $0x994] sm:$0xf0]  ;;  %v10875_v62 = vld [vmem:[#allocation5 + $0xb88] sm:$0xf]  ;;  %v10492_v49 = vor.u32 %v14404_v15, %v10491_v55 }
 0x265   :  { %7335 = vmatpush.bf16.msra.mxu1 %v10668_v54  ;;  %7278 = vmatmul.bf16.vlgmr.msrb.gmra.mxu0 %v15628_v39  ;;  %v10747_v54 = vld [vmem:[#allocation5 + $0xa88] sm:$0xf]  ;;  %v14500_v56 = vld [vmem:[#allocation5 + $0xb94] sm:$0xf0]  ;;  %v10620_v61 = vor.u32 %v14436_v34, %v10619_v44 }
 0x266   :  { %7304 = vmatmul.bf16.vlgmr.msrb.gmra.mxu2 %v15626_v36  ;;  %7317 = vmatmul.bf16.vlgmr.msrb.gmra.mxu3 %v15630_v40  ;;  %v10475_v50 = vld [vmem:[#allocation5 + $0x868] sm:$0xf]  ;;  %v14432_v48 = vld [vmem:[#allocation5 + $0x974] sm:$0xf0] }
 0x267   :  { %7348 = vmatpush.bf16.msra.mxu2 %v10796_v63  ;;  %7361 = vmatpush.bf16.msra.mxu3 %v10924_v4  ;;  %v14468_v63 = vld [vmem:[#allocation5 + $0xa94] sm:$0xf0]  ;;  %v7072_v4 = vadd.f32 %v7071_v59, %v15811_v5  ;;  %v10731_v13 = vld [vmem:[#allocation5 + $0xa68] sm:$0xf] }
 0x268   :  { %7323 = vmatpush.bf16.msra.mxu0 %v10524_v1  ;;  %v10748_v53 = vor.u32 %v14468_v63, %v10747_v54  ;;  %v14400_v1 = vld [vmem:[#allocation5 + $0x874] sm:$0xf0]  ;;  %v10859_v22 = vld [vmem:[#allocation5 + $0xb68] sm:$0xf] }
 0x269   :  { %7336 = vmatpush.bf16.msra.mxu1 %v10652_v2  ;;  %v10603_v2 = vld [vmem:[#allocation5 + $0x968] sm:$0xf]  ;;  %v7085_v57 = vadd.f32 %v7084_v46, %v7072_v4  ;;  %v14496_v60 = vld [vmem:[#allocation5 + $0xb74] sm:$0xf0]  ;;  %v10476_v14 = vor.u32 %v14400_v1, %v10475_v50  ;;  %v7097_v55 = vpop.f32.mrf.mxu2  ;;  %v7110_v54 = vpop.f32.mrf.mxu3 }
 0x26a   :  { %v10604_v5 = vor.u32 %v14432_v48, %v10603_v2  ;;  %v10459_v45 = vld [vmem:[#allocation5 + $0x848] sm:$0xf]  ;;  %v14428_v15 = vld [vmem:[#allocation5 + $0x954] sm:$0xf0]  ;;  %v7086_v4 = vpop.f32.mrf.mxu1 }
 0x26b   :  { %7349 = vmatpush.bf16.msra.mxu2 %v10780_v58  ;;  %7362 = vmatpush.bf16.msra.mxu3 %v10908_v20  ;;  %v10876_v58 = vor.u32 %v14500_v56, %v10875_v62  ;;  %v14464_v20 = vld [vmem:[#allocation5 + $0xa74] sm:$0xf0]  ;;  %v10715_v44 = vld [vmem:[#allocation5 + $0xa48] sm:$0xf]  ;;  %v7098_v34 = vadd.f32 %v7097_v55, %v7085_v57  ;;  %v7073_v62 = vpop.f32.mrf.mxu0 }
 0x26c   :  { %7324 = vmatpush.bf16.msra.mxu0 %v10508_v42  ;;  %v10732_v10 = vor.u32 %v14464_v20, %v10731_v13  ;;  %v14396_v42 = vld [vmem:[#allocation5 + $0x854] sm:$0xf0]  ;;  %v10843_v63 = vld [vmem:[#allocation5 + $0xb48] sm:$0xf] }
 0x26d   :  { %7337 = vmatpush.bf16.msra.mxu1 %v10636_v28  ;;  %v10587_v28 = vld [vmem:[#allocation5 + $0x948] sm:$0xf]  ;;  %v14492_v59 = vld [vmem:[#allocation5 + $0xb54] sm:$0xf0]  ;;  %v10460_v56 = vor.u32 %v14396_v42, %v10459_v45 }
 0x26e   :  { %v10588_v46 = vor.u32 %v14428_v15, %v10587_v28  ;;  %v14392_v50 = vld [vmem:[#allocation5 + $0x834] sm:$0xf0]  ;;  %v10571_v1 = vld [vmem:[#allocation5 + $0x928] sm:$0xf]  ;;  %v10844_v2 = vor.u32 %v14492_v59, %v10843_v63 }
 0x26f   :  { %7350 = vmatpush.bf16.msra.mxu2 %v10764_v52  ;;  %7363 = vmatpush.bf16.msra.mxu3 %v10892_v51  ;;  %v10860_v52 = vor.u32 %v14496_v60, %v10859_v22  ;;  %v14460_v51 = vld [vmem:[#allocation5 + $0xa54] sm:$0xf0]  ;;  %v10699_v57 = vld [vmem:[#allocation5 + $0xa28] sm:$0xf] }
 0x270   :  { %7325 = vmatpush.bf16.msra.mxu0 %v10492_v49  ;;  %v15818_v49 = vadd.f32 %v7110_v54, %v7098_v34  ;;  %v14456_v48 = vld [vmem:[#allocation5 + $0xa34] sm:$0xf0]  ;;  %v10827_v13 = vld [vmem:[#allocation5 + $0xb28] sm:$0xf] }
 0x271   :  { %7338 = vmatpush.bf16.msra.mxu1 %v10620_v61  ;;  %v10716_v61 = vor.u32 %v14460_v51, %v10715_v44  ;;  %v14488_v20 = vld [vmem:[#allocation5 + $0xb34] sm:$0xf0]  ;;  %v10427_v60 = vld [vmem:[#allocation5 + $0x808] sm:$0xf]  ;;  %v7099_v51 = vpop.f32.mrf.mxu2  ;;  %v7112_v59 = vpop.f32.mrf.mxu3 }
 0x272   :  { %v10555_v45 = vld [vmem:[#allocation5 + $0x908] sm:$0xf]  ;;  %v14420_v42 = vld [vmem:[#allocation5 + $0x914] sm:$0xf0]  ;;  %v10828_v55 = vor.u32 %v14488_v20, %v10827_v13 }
 0x273   :  { %7351 = vmatpush.bf16.msra.mxu2 %v10748_v53  ;;  %7364 = vmatpush.bf16.msra.mxu3 %v10876_v58  ;;  %v10443_v53 = vld [vmem:[#allocation5 + $0x828] sm:$0xf]  ;;  %v14424_v58 = vld [vmem:[#allocation5 + $0x934] sm:$0xf0] }
 0x274   :  { %7326 = vmatpush.bf16.msra.mxu0 %v10476_v14  ;;  %v10444_v22 = vor.u32 %v14392_v50, %v10443_v53  ;;  %v14388_v14 = vld [vmem:[#allocation5 + $0x814] sm:$0xf0]  ;;  %v10683_v28 = vld [vmem:[#allocation5 + $0xa08] sm:$0xf] }
 0x275   :  { %7339 = vmatpush.bf16.msra.mxu1 %v10604_v5  ;;  %v10572_v5 = vor.u32 %v14424_v58, %v10571_v1  ;;  %v10811_v15 = vld [vmem:[#allocation5 + $0xb08] sm:$0xf]  ;;  %v14484_v44 = vld [vmem:[#allocation5 + $0xb14] sm:$0xf0]  ;;  %v10428_v62 = vor.u32 %v14388_v14, %v10427_v60 }
 0x276   :  { %v11051_v34 = vld [vmem:[#allocation5 + $0xce8] sm:$0xf]  ;;  %v14544_v54 = vld [vmem:[#allocation5 + $0xcf4] sm:$0xf0] }
 0x277   :  { %7352 = vmatpush.bf16.msra.mxu2 %v10732_v10  ;;  %7365 = vmatpush.bf16.msra.mxu3 %v10860_v52  ;;  %v10700_v10 = vor.u32 %v14456_v48, %v10699_v57  ;;  %v14452_v52 = vld [vmem:[#allocation5 + $0xa14] sm:$0xf0]  ;;  %v11179_v63 = vld [vmem:[#allocation5 + $0xde8] sm:$0xf]  ;;  %v11052_v58 = vor.u32 %v14544_v54, %v11051_v34 }
 0x278   :  { %7327 = vmatpush.bf16.msra.mxu0 %v10460_v56  ;;  %v14576_v56 = vld [vmem:[#allocation5 + $0xdf4] sm:$0xf0]  ;;  %v11307_v4 = vld [vmem:[#allocation5 + $0xee8] sm:$0xf]  ;;  %v10684_v53 = vor.u32 %v14452_v52, %v10683_v28 }
 0x279   :  { %7340 = vmatpush.bf16.msra.mxu1 %v10588_v46  ;;  %v14608_v46 = vld [vmem:[#allocation5 + $0xef4] sm:$0xf0]  ;;  %v11435_v50 = vld [vmem:[#allocation5 + $0xfe8] sm:$0xf]  ;;  %v11180_v57 = vor.u32 %v14576_v56, %v11179_v63 }
 0x27a   :  { %v14640_v1 = vld [vmem:[#allocation5 + $0xff4] sm:$0xf0]  ;;  %v11308_v48 = vor.u32 %v14608_v46, %v11307_v4  ;;  %v11035_v13 = vld [vmem:[#allocation5 + $0xcc8] sm:$0xf] }
 0x27b   :  { %7353 = vmatpush.bf16.msra.mxu2 %v10716_v61  ;;  %7366 = vmatpush.bf16.msra.mxu3 %v10844_v2  ;;  %v10556_v61 = vor.u32 %v14420_v42, %v10555_v45  ;;  %v10812_v2 = vor.u32 %v14484_v44, %v10811_v15  ;;  %v14540_v20 = vld [vmem:[#allocation5 + $0xcd4] sm:$0xf0]  ;;  %v11163_v51 = vld [vmem:[#allocation5 + $0xdc8] sm:$0xf] }
 0x27c   :  { %7328 = vmatpush.bf16.msra.mxu0 %v10444_v22  ;;  %v11436_v22 = vor.u32 %v14640_v1, %v11435_v50  ;;  %v14572_v60 = vld [vmem:[#allocation5 + $0xdd4] sm:$0xf0]  ;;  %v11291_v14 = vld [vmem:[#allocation5 + $0xec8] sm:$0xf]  ;;  %v11036_v45 = vor.u32 %v14540_v20, %v11035_v13 }
 0x27d   :  { %7341 = vmatpush.bf16.msra.mxu1 %v10572_v5  ;;  %v14604_v59 = vld [vmem:[#allocation5 + $0xed4] sm:$0xf0]  ;;  %v11419_v5 = vld [vmem:[#allocation5 + $0xfc8] sm:$0xf]  ;;  %v11164_v42 = vor.u32 %v14572_v60, %v11163_v51 }
 0x27e   :  { %v11292_v28 = vor.u32 %v14604_v59, %v11291_v14  ;;  %v14536_v52 = vld [vmem:[#allocation5 + $0xcb4] sm:$0xf0]  ;;  %v11147_v15 = vld [vmem:[#allocation5 + $0xda8] sm:$0xf] }
 0x27f   :  { %7354 = vmatpush.bf16.msra.mxu2 %v10700_v10  ;;  %7367 = vmatpush.bf16.msra.mxu3 %v10828_v55  ;;  %v14636_v10 = vld [vmem:[#allocation5 + $0xfd4] sm:$0xf0]  ;;  %v11019_v55 = vld [vmem:[#allocation5 + $0xca8] sm:$0xf] }
 0x280   :  { %7329 = vmatpush.bf16.msra.mxu0 %v10428_v62  ;;  %v11420_v44 = vor.u32 %v14636_v10, %v11419_v5  ;;  %v14568_v34 = vld [vmem:[#allocation5 + $0xdb4] sm:$0xf0]  ;;  %v11275_v54 = vld [vmem:[#allocation5 + $0xea8] sm:$0xf]  ;;  %v11020_v4 = vor.u32 %v14536_v52, %v11019_v55 }
 0x281   :  { %7342 = vmatpush.bf16.msra.mxu1 %v10556_v61  ;;  %v14600_v63 = vld [vmem:[#allocation5 + $0xeb4] sm:$0xf0]  ;;  %v11403_v62 = vld [vmem:[#allocation5 + $0xfa8] sm:$0xf]  ;;  %v11148_v46 = vor.u32 %v14568_v34, %v11147_v15  ;;  %v7136_v14 = vpop.f32.mrf.mxu1 }
 0x282   :  { %v14632_v56 = vld [vmem:[#allocation5 + $0xfb4] sm:$0xf0]  ;;  %v11276_v61 = vor.u32 %v14600_v63, %v11275_v54  ;;  %v11131_v1 = vld [vmem:[#allocation5 + $0xd88] sm:$0xf]  ;;  %v7123_v13 = vpop.f32.mrf.mxu0 }
 0x283   :  { %7355 = vmatpush.bf16.msra.mxu2 %v10684_v53  ;;  %7368 = vmatpush.bf16.msra.mxu3 %v10812_v2  ;;  %v11003_v53 = vld [vmem:[#allocation5 + $0xc88] sm:$0xf]  ;;  %v14532_v50 = vld [vmem:[#allocation5 + $0xc94] sm:$0xf0]  ;;  %v11404_v2 = vor.u32 %v14632_v56, %v11403_v62 }
 0x284   :  { %7374 = vmatpush.bf16.msrb.mxu0 %v11052_v58  ;;  %7343 = vmatmul.bf16.vlgmr.msra.gmra.mxu1 %v15648_v26  ;;  %v14564_v58 = vld [vmem:[#allocation5 + $0xd94] sm:$0xf0]  ;;  %v11387_v20 = vld [vmem:[#allocation5 + $0xf88] sm:$0xf]  ;;  %v11004_v60 = vor.u32 %v14532_v50, %v11003_v53 }
 0x285   :  { %7387 = vmatpush.bf16.msrb.mxu1 %v11180_v57  ;;  %7330 = vmatmul.bf16.vlgmr.msra.gmra.mxu0 %v15644_v21  ;;  %v11259_v57 = vld [vmem:[#allocation5 + $0xe88] sm:$0xf]  ;;  %v14628_v51 = vld [vmem:[#allocation5 + $0xf94] sm:$0xf0]  ;;  %v11132_v59 = vor.u32 %v14564_v58, %v11131_v1 }
 0x286   :  { %7356 = vmatmul.bf16.vlgmr.msra.gmra.mxu2 %v15646_v25  ;;  %7369 = vmatmul.bf16.vlgmr.msra.gmra.mxu3 %v15650_v29  ;;  %v10987_v10 = vld [vmem:[#allocation5 + $0xc68] sm:$0xf]  ;;  %v14560_v52 = vld [vmem:[#allocation5 + $0xd74] sm:$0xf0] }
 0x287   :  { %7400 = vmatpush.bf16.msrb.mxu2 %v11308_v48  ;;  %7413 = vmatpush.bf16.msrb.mxu3 %v11436_v22  ;;  %v14596_v48 = vld [vmem:[#allocation5 + $0xe94] sm:$0xf0]  ;;  %v7124_v22 = vadd.f32 %v7123_v13, %v15818_v49  ;;  %v11243_v15 = vld [vmem:[#allocation5 + $0xe68] sm:$0xf] }
 0x288   :  { %7375 = vmatpush.bf16.msrb.mxu0 %v11036_v45  ;;  %v11260_v5 = vor.u32 %v14596_v48, %v11259_v57  ;;  %v14528_v45 = vld [vmem:[#allocation5 + $0xc74] sm:$0xf0]  ;;  %v11371_v34 = vld [vmem:[#allocation5 + $0xf68] sm:$0xf] }
 0x289   :  { %7388 = vmatpush.bf16.msrb.mxu1 %v11164_v42  ;;  %v11115_v42 = vld [vmem:[#allocation5 + $0xd68] sm:$0xf]  ;;  %v7137_v55 = vadd.f32 %v7136_v14, %v7124_v22  ;;  %v14624_v54 = vld [vmem:[#allocation5 + $0xf74] sm:$0xf0]  ;;  %v10988_v63 = vor.u32 %v14528_v45, %v10987_v10  ;;  %v7149_v53 = vpop.f32.mrf.mxu2  ;;  %v7162_v57 = vpop.f32.mrf.mxu3 }
 0x28a   :  { %v11116_v49 = vor.u32 %v14560_v52, %v11115_v42  ;;  %v10971_v56 = vld [vmem:[#allocation5 + $0xc48] sm:$0xf]  ;;  %v14556_v50 = vld [vmem:[#allocation5 + $0xd54] sm:$0xf0]  ;;  %v7138_v22 = vpop.f32.mrf.mxu1 }
 0x28b   :  { %7401 = vmatpush.bf16.msrb.mxu2 %v11292_v28  ;;  %7414 = vmatpush.bf16.msrb.mxu3 %v11420_v44  ;;  %v11388_v28 = vor.u32 %v14628_v51, %v11387_v20  ;;  %v14592_v44 = vld [vmem:[#allocation5 + $0xe74] sm:$0xf0]  ;;  %v11227_v1 = vld [vmem:[#allocation5 + $0xe48] sm:$0xf]  ;;  %v7150_v58 = vadd.f32 %v7149_v53, %v7137_v55  ;;  %v7125_v20 = vpop.f32.mrf.mxu0 }
 0x28c   :  { %7376 = vmatpush.bf16.msrb.mxu0 %v11020_v4  ;;  %v11244_v62 = vor.u32 %v14592_v44, %v11243_v15  ;;  %v14524_v4 = vld [vmem:[#allocation5 + $0xc54] sm:$0xf0]  ;;  %v11355_v48 = vld [vmem:[#allocation5 + $0xf48] sm:$0xf] }
 0x28d   :  { %7389 = vmatpush.bf16.msrb.mxu1 %v11148_v46  ;;  %v11099_v46 = vld [vmem:[#allocation5 + $0xd48] sm:$0xf]  ;;  %v14620_v13 = vld [vmem:[#allocation5 + $0xf54] sm:$0xf0]  ;;  %v10972_v51 = vor.u32 %v14524_v4, %v10971_v56 }
 0x28e   :  { %v11100_v14 = vor.u32 %v14556_v50, %v11099_v46  ;;  %v14520_v10 = vld [vmem:[#allocation5 + $0xc34] sm:$0xf0]  ;;  %v11083_v45 = vld [vmem:[#allocation5 + $0xd28] sm:$0xf]  ;;  %v11356_v42 = vor.u32 %v14620_v13, %v11355_v48 }
 0x28f   :  { %7402 = vmatpush.bf16.msrb.mxu2 %v11276_v61  ;;  %7415 = vmatpush.bf16.msrb.mxu3 %v11404_v2  ;;  %v11372_v61 = vor.u32 %v14624_v54, %v11371_v34  ;;  %v14588_v2 = vld [vmem:[#allocation5 + $0xe54] sm:$0xf0]  ;;  %v11211_v55 = vld [vmem:[#allocation5 + $0xe28] sm:$0xf] }
 0x290   :  { %7377 = vmatpush.bf16.msrb.mxu0 %v11004_v60  ;;  %v15825_v60 = vadd.f32 %v7162_v57, %v7150_v58  ;;  %v14584_v52 = vld [vmem:[#allocation5 + $0xe34] sm:$0xf0]  ;;  %v11339_v15 = vld [vmem:[#allocation5 + $0xf28] sm:$0xf] }
 0x291   :  { %7390 = vmatpush.bf16.msrb.mxu1 %v11132_v59  ;;  %v11228_v59 = vor.u32 %v14588_v2, %v11227_v1  ;;  %v14616_v44 = vld [vmem:[#allocation5 + $0xf34] sm:$0xf0]  ;;  %v10939_v54 = vld [vmem:[#allocation5 + $0xc08] sm:$0xf]  ;;  %v7151_v2 = vpop.f32.mrf.mxu2  ;;  %v7164_v13 = vpop.f32.mrf.mxu3 }
 0x292   :  { %v11067_v56 = vld [vmem:[#allocation5 + $0xd08] sm:$0xf]  ;;  %v14548_v4 = vld [vmem:[#allocation5 + $0xd14] sm:$0xf0]  ;;  %v11340_v53 = vor.u32 %v14616_v44, %v11339_v15 }
 0x293   :  { %7403 = vmatpush.bf16.msrb.mxu2 %v11260_v5  ;;  %7416 = vmatpush.bf16.msrb.mxu3 %v11388_v28  ;;  %v10955_v5 = vld [vmem:[#allocation5 + $0xc28] sm:$0xf]  ;;  %v14552_v28 = vld [vmem:[#allocation5 + $0xd34] sm:$0xf0] }
 0x294   :  { %7378 = vmatpush.bf16.msrb.mxu0 %v10988_v63  ;;  %v10956_v34 = vor.u32 %v14520_v10, %v10955_v5  ;;  %v14516_v63 = vld [vmem:[#allocation5 + $0xc14] sm:$0xf0]  ;;  %v11195_v46 = vld [vmem:[#allocation5 + $0xe08] sm:$0xf] }
 0x295   :  { %7391 = vmatpush.bf16.msrb.mxu1 %v11116_v49  ;;  %v11084_v49 = vor.u32 %v14552_v28, %v11083_v45  ;;  %v11323_v50 = vld [vmem:[#allocation5 + $0xf08] sm:$0xf]  ;;  %v14612_v1 = vld [vmem:[#allocation5 + $0xf14] sm:$0xf0]  ;;  %v10940_v20 = vor.u32 %v14516_v63, %v10939_v54 }
 0x296   :  { %v11563_v58 = vld [vmem:[#allocation5 + $0x10e8] sm:$0xf]  ;;  %v14672_v57 = vld [vmem:[#allocation5 + $0x10f4] sm:$0xf0] }
 0x297   :  { %7404 = vmatpush.bf16.msrb.mxu2 %v11244_v62  ;;  %7417 = vmatpush.bf16.msrb.mxu3 %v11372_v61  ;;  %v11212_v62 = vor.u32 %v14584_v52, %v11211_v55  ;;  %v14580_v61 = vld [vmem:[#allocation5 + $0xe14] sm:$0xf0]  ;;  %v11691_v48 = vld [vmem:[#allocation5 + $0x11e8] sm:$0xf]  ;;  %v11564_v28 = vor.u32 %v14672_v57, %v11563_v58 }
 0x298   :  { %7379 = vmatpush.bf16.msrb.mxu0 %v10972_v51  ;;  %v14704_v51 = vld [vmem:[#allocation5 + $0x11f4] sm:$0xf0]  ;;  %v11819_v22 = vld [vmem:[#allocation5 + $0x12e8] sm:$0xf]  ;;  %v11196_v5 = vor.u32 %v14580_v61, %v11195_v46 }
 0x299   :  { %7392 = vmatpush.bf16.msrb.mxu1 %v11100_v14  ;;  %v14736_v14 = vld [vmem:[#allocation5 + $0x12f4] sm:$0xf0]  ;;  %v11947_v10 = vld [vmem:[#allocation5 + $0x13e8] sm:$0xf]  ;;  %v11692_v55 = vor.u32 %v14704_v51, %v11691_v48 }
 0x29a   :  { %v14768_v45 = vld [vmem:[#allocation5 + $0x13f4] sm:$0xf0]  ;;  %v11820_v52 = vor.u32 %v14736_v14, %v11819_v22  ;;  %v11547_v15 = vld [vmem:[#allocation5 + $0x10c8] sm:$0xf] }
 0x29b   :  { %7405 = vmatpush.bf16.msrb.mxu2 %v11228_v59  ;;  %7418 = vmatpush.bf16.msrb.mxu3 %v11356_v42  ;;  %v11068_v59 = vor.u32 %v14548_v4, %v11067_v56  ;;  %v11324_v42 = vor.u32 %v14612_v1, %v11323_v50  ;;  %v14668_v44 = vld [vmem:[#allocation5 + $0x10d4] sm:$0xf0]  ;;  %v11675_v2 = vld [vmem:[#allocation5 + $0x11c8] sm:$0xf] }
 0x29c   :  { %7380 = vmatpush.bf16.msrb.mxu0 %v10956_v34  ;;  %v11948_v34 = vor.u32 %v14768_v45, %v11947_v10  ;;  %v14700_v54 = vld [vmem:[#allocation5 + $0x11d4] sm:$0xf0]  ;;  %v11803_v63 = vld [vmem:[#allocation5 + $0x12c8] sm:$0xf]  ;;  %v11548_v56 = vor.u32 %v14668_v44, %v11547_v15 }
 0x29d   :  { %7393 = vmatpush.bf16.msrb.mxu1 %v11084_v49  ;;  %v14732_v13 = vld [vmem:[#allocation5 + $0x12d4] sm:$0xf0]  ;;  %v11931_v49 = vld [vmem:[#allocation5 + $0x13c8] sm:$0xf]  ;;  %v11676_v4 = vor.u32 %v14700_v54, %v11675_v2 }
 0x29e   :  { %v11804_v46 = vor.u32 %v14732_v13, %v11803_v63  ;;  %v14664_v61 = vld [vmem:[#allocation5 + $0x10b4] sm:$0xf0]  ;;  %v11659_v50 = vld [vmem:[#allocation5 + $0x11a8] sm:$0xf] }
 0x29f   :  { %7406 = vmatpush.bf16.msrb.mxu2 %v11212_v62  ;;  %7419 = vmatpush.bf16.msrb.mxu3 %v11340_v53  ;;  %v14764_v62 = vld [vmem:[#allocation5 + $0x13d4] sm:$0xf0]  ;;  %v11531_v53 = vld [vmem:[#allocation5 + $0x10a8] sm:$0xf] }
 0x2a0   :  { %7381 = vmatpush.bf16.msrb.mxu0 %v10940_v20  ;;  %v11932_v1 = vor.u32 %v14764_v62, %v11931_v49  ;;  %v14696_v58 = vld [vmem:[#allocation5 + $0x11b4] sm:$0xf0]  ;;  %v11787_v57 = vld [vmem:[#allocation5 + $0x12a8] sm:$0xf]  ;;  %v11532_v22 = vor.u32 %v14664_v61, %v11531_v53 }
 0x2a1   :  { %7394 = vmatpush.bf16.msrb.mxu1 %v11068_v59  ;;  %v14728_v48 = vld [vmem:[#allocation5 + $0x12b4] sm:$0xf0]  ;;  %v11915_v20 = vld [vmem:[#allocation5 + $0x13a8] sm:$0xf]  ;;  %v11660_v14 = vor.u32 %v14696_v58, %v11659_v50  ;;  %v7188_v63 = vpop.f32.mrf.mxu1 }
 0x2a2   :  { %v14760_v51 = vld [vmem:[#allocation5 + $0x13b4] sm:$0xf0]  ;;  %v11788_v59 = vor.u32 %v14728_v48, %v11787_v57  ;;  %v11643_v45 = vld [vmem:[#allocation5 + $0x1188] sm:$0xf]  ;;  %v7175_v15 = vpop.f32.mrf.mxu0 }
 0x2a3   :  { %7407 = vmatpush.bf16.msrb.mxu2 %v11196_v5  ;;  %7420 = vmatpush.bf16.msrb.mxu3 %v11324_v42  ;;  %v11515_v5 = vld [vmem:[#allocation5 + $0x1088] sm:$0xf]  ;;  %v14660_v10 = vld [vmem:[#allocation5 + $0x1094] sm:$0xf0]  ;;  %v11916_v42 = vor.u32 %v14760_v51, %v11915_v20 }
 0x2a4   :  { %7426 = vmatpush.bf16.msra.mxu0 %v11564_v28  ;;  %7395 = vmatmul.bf16.vlgmr.msrb.gmra.mxu1 %v15664_v27  ;;  %v14692_v28 = vld [vmem:[#allocation5 + $0x1194] sm:$0xf0]  ;;  %v11899_v44 = vld [vmem:[#allocation5 + $0x1388] sm:$0xf]  ;;  %v11516_v54 = vor.u32 %v14660_v10, %v11515_v5 }
 0x2a5   :  { %7439 = vmatpush.bf16.msra.mxu1 %v11692_v55  ;;  %7382 = vmatmul.bf16.vlgmr.msrb.gmra.mxu0 %v15660_v19  ;;  %v11771_v55 = vld [vmem:[#allocation5 + $0x1288] sm:$0xf]  ;;  %v14756_v2 = vld [vmem:[#allocation5 + $0x1394] sm:$0xf0]  ;;  %v11644_v13 = vor.u32 %v14692_v28, %v11643_v45 }
 0x2a6   :  { %7408 = vmatmul.bf16.vlgmr.msrb.gmra.mxu2 %v15662_v24  ;;  %7421 = vmatmul.bf16.vlgmr.msrb.gmra.mxu3 %v15666_v31  ;;  %v11499_v62 = vld [vmem:[#allocation5 + $0x1068] sm:$0xf]  ;;  %v14688_v61 = vld [vmem:[#allocation5 + $0x1174] sm:$0xf0] }
 0x2a7   :  { %7452 = vmatpush.bf16.msra.mxu2 %v11820_v52  ;;  %7465 = vmatpush.bf16.msra.mxu3 %v11948_v34  ;;  %v14724_v52 = vld [vmem:[#allocation5 + $0x1294] sm:$0xf0]  ;;  %v7176_v34 = vadd.f32 %v7175_v15, %v15825_v60  ;;  %v11755_v50 = vld [vmem:[#allocation5 + $0x1268] sm:$0xf] }
 0x2a8   :  { %7427 = vmatpush.bf16.msra.mxu0 %v11548_v56  ;;  %v11772_v49 = vor.u32 %v14724_v52, %v11771_v55  ;;  %v14656_v56 = vld [vmem:[#allocation5 + $0x1074] sm:$0xf0]  ;;  %v11883_v58 = vld [vmem:[#allocation5 + $0x1368] sm:$0xf] }
 0x2a9   :  { %7440 = vmatpush.bf16.msra.mxu1 %v11676_v4  ;;  %v11627_v4 = vld [vmem:[#allocation5 + $0x1168] sm:$0xf]  ;;  %v7189_v53 = vadd.f32 %v7188_v63, %v7176_v34  ;;  %v14752_v57 = vld [vmem:[#allocation5 + $0x1374] sm:$0xf0]  ;;  %v11500_v48 = vor.u32 %v14656_v56, %v11499_v62  ;;  %v7201_v5 = vpop.f32.mrf.mxu2  ;;  %v7214_v55 = vpop.f32.mrf.mxu3 }
 0x2aa   :  { %v11628_v60 = vor.u32 %v14688_v61, %v11627_v4  ;;  %v11483_v51 = vld [vmem:[#allocation5 + $0x1048] sm:$0xf]  ;;  %v14684_v10 = vld [vmem:[#allocation5 + $0x1154] sm:$0xf0]  ;;  %v7190_v34 = vpop.f32.mrf.mxu1 }
 0x2ab   :  { %7453 = vmatpush.bf16.msra.mxu2 %v11804_v46  ;;  %7466 = vmatpush.bf16.msra.mxu3 %v11932_v1  ;;  %v11900_v46 = vor.u32 %v14756_v2, %v11899_v44  ;;  %v14720_v1 = vld [vmem:[#allocation5 + $0x1274] sm:$0xf0]  ;;  %v11739_v45 = vld [vmem:[#allocation5 + $0x1248] sm:$0xf]  ;;  %v7202_v28 = vadd.f32 %v7201_v5, %v7189_v53  ;;  %v7177_v44 = vpop.f32.mrf.mxu0 }
 0x2ac   :  { %7428 = vmatpush.bf16.msra.mxu0 %v11532_v22  ;;  %v11756_v20 = vor.u32 %v14720_v1, %v11755_v50  ;;  %v14652_v22 = vld [vmem:[#allocation5 + $0x1054] sm:$0xf0]  ;;  %v11867_v52 = vld [vmem:[#allocation5 + $0x1348] sm:$0xf] }
 0x2ad   :  { %7441 = vmatpush.bf16.msra.mxu1 %v11660_v14  ;;  %v11611_v14 = vld [vmem:[#allocation5 + $0x1148] sm:$0xf]  ;;  %v14748_v15 = vld [vmem:[#allocation5 + $0x1354] sm:$0xf0]  ;;  %v11484_v2 = vor.u32 %v14652_v22, %v11483_v51 }
 0x2ae   :  { %v11612_v63 = vor.u32 %v14684_v10, %v11611_v14  ;;  %v14648_v62 = vld [vmem:[#allocation5 + $0x1034] sm:$0xf0]  ;;  %v11595_v56 = vld [vmem:[#allocation5 + $0x1128] sm:$0xf]  ;;  %v11868_v4 = vor.u32 %v14748_v15, %v11867_v52 }
 0x2af   :  { %7454 = vmatpush.bf16.msra.mxu2 %v11788_v59  ;;  %7467 = vmatpush.bf16.msra.mxu3 %v11916_v42  ;;  %v11884_v59 = vor.u32 %v14752_v57, %v11883_v58  ;;  %v14716_v42 = vld [vmem:[#allocation5 + $0x1254] sm:$0xf0]  ;;  %v11723_v53 = vld [vmem:[#allocation5 + $0x1228] sm:$0xf] }
 0x2b0   :  { %7429 = vmatpush.bf16.msra.mxu0 %v11516_v54  ;;  %v15832_v54 = vadd.f32 %v7214_v55, %v7202_v28  ;;  %v14712_v61 = vld [vmem:[#allocation5 + $0x1234] sm:$0xf0]  ;;  %v11851_v50 = vld [vmem:[#allocation5 + $0x1328] sm:$0xf] }
 0x2b1   :  { %7442 = vmatpush.bf16.msra.mxu1 %v11644_v13  ;;  %v11740_v13 = vor.u32 %v14716_v42, %v11739_v45  ;;  %v14744_v1 = vld [vmem:[#allocation5 + $0x1334] sm:$0xf0]  ;;  %v11451_v57 = vld [vmem:[#allocation5 + $0x1008] sm:$0xf]  ;;  %v7203_v42 = vpop.f32.mrf.mxu2  ;;  %v7216_v15 = vpop.f32.mrf.mxu3 }
 0x2b2   :  { %16000 = vst [vmem:[#allocation21_spill] sm:$0xff] %v15832_v54  ;;  %v11579_v51 = vld [vmem:[#allocation5 + $0x1108] sm:$0xf]  ;;  %v14676_v22 = vld [vmem:[#allocation5 + $0x1114] sm:$0xf0]  ;;  %v11852_v5 = vor.u32 %v14744_v1, %v11851_v50 }
 0x2b3   :  { %7455 = vmatpush.bf16.msra.mxu2 %v11772_v49  ;;  %7468 = vmatpush.bf16.msra.mxu3 %v11900_v46  ;;  %v11467_v49 = vld [vmem:[#allocation5 + $0x1028] sm:$0xf]  ;;  %v14680_v46 = vld [vmem:[#allocation5 + $0x1134] sm:$0xf0] }
 0x2b4   :  { %7430 = vmatpush.bf16.msra.mxu0 %v11500_v48  ;;  %v11468_v58 = vor.u32 %v14648_v62, %v11467_v49  ;;  %v14644_v48 = vld [vmem:[#allocation5 + $0x1014] sm:$0xf0]  ;;  %v11707_v14 = vld [vmem:[#allocation5 + $0x1208] sm:$0xf] }
 0x2b5   :  { %7443 = vmatpush.bf16.msra.mxu1 %v11628_v60  ;;  %v11596_v60 = vor.u32 %v14680_v46, %v11595_v56  ;;  %v11835_v10 = vld [vmem:[#allocation5 + $0x1308] sm:$0xf]  ;;  %v14740_v45 = vld [vmem:[#allocation5 + $0x1314] sm:$0xf0]  ;;  %v11452_v44 = vor.u32 %v14644_v48, %v11451_v57 }
 0x2b6   :  { %v12075_v28 = vld [vmem:[#allocation5 + $0x14e8] sm:$0xf]  ;;  %v14800_v55 = vld [vmem:[#allocation5 + $0x14f4] sm:$0xf0] }
 0x2b7   :  { %7456 = vmatpush.bf16.msra.mxu2 %v11756_v20  ;;  %7469 = vmatpush.bf16.msra.mxu3 %v11884_v59  ;;  %v11724_v20 = vor.u32 %v14712_v61, %v11723_v53  ;;  %v14708_v59 = vld [vmem:[#allocation5 + $0x1214] sm:$0xf0]  ;;  %v12203_v52 = vld [vmem:[#allocation5 + $0x15e8] sm:$0xf]  ;;  %v12076_v46 = vor.u32 %v14800_v55, %v12075_v28 }
 0x2b8   :  { %7431 = vmatpush.bf16.msra.mxu0 %v11484_v2  ;;  %v14832_v2 = vld [vmem:[#allocation5 + $0x15f4] sm:$0xf0]  ;;  %v12331_v34 = vld [vmem:[#allocation5 + $0x16e8] sm:$0xf]  ;;  %v11708_v49 = vor.u32 %v14708_v59, %v11707_v14 }
 0x2b9   :  { %7444 = vmatpush.bf16.msra.mxu1 %v11612_v63  ;;  %v14864_v63 = vld [vmem:[#allocation5 + $0x16f4] sm:$0xf0]  ;;  %v12459_v62 = vld [vmem:[#allocation5 + $0x17e8] sm:$0xf]  ;;  %v12204_v53 = vor.u32 %v14832_v2, %v12203_v52 }
 0x2ba   :  { %v14896_v56 = vld [vmem:[#allocation5 + $0x17f4] sm:$0xf0]  ;;  %v12332_v61 = vor.u32 %v14864_v63, %v12331_v34  ;;  %v12059_v50 = vld [vmem:[#allocation5 + $0x14c8] sm:$0xf] }
 0x2bb   :  { %7457 = vmatpush.bf16.msra.mxu2 %v11740_v13  ;;  %7470 = vmatpush.bf16.msra.mxu3 %v11868_v4  ;;  %v11580_v13 = vor.u32 %v14676_v22, %v11579_v51  ;;  %v11836_v4 = vor.u32 %v14740_v45, %v11835_v10  ;;  %v14796_v1 = vld [vmem:[#allocation5 + $0x14d4] sm:$0xf0]  ;;  %v12187_v42 = vld [vmem:[#allocation5 + $0x15c8] sm:$0xf] }
 0x2bc   :  { %7432 = vmatpush.bf16.msra.mxu0 %v11468_v58  ;;  %v12460_v58 = vor.u32 %v14896_v56, %v12459_v62  ;;  %v14828_v57 = vld [vmem:[#allocation5 + $0x15d4] sm:$0xf0]  ;;  %v12315_v48 = vld [vmem:[#allocation5 + $0x16c8] sm:$0xf]  ;;  %v12060_v51 = vor.u32 %v14796_v1, %v12059_v50 }
 0x2bd   :  { %7445 = vmatpush.bf16.msra.mxu1 %v11596_v60  ;;  %v14860_v15 = vld [vmem:[#allocation5 + $0x16d4] sm:$0xf0]  ;;  %v12443_v60 = vld [vmem:[#allocation5 + $0x17c8] sm:$0xf]  ;;  %v12188_v22 = vor.u32 %v14828_v57, %v12187_v42 }
 0x2be   :  { %v12316_v14 = vor.u32 %v14860_v15, %v12315_v48  ;;  %v14792_v59 = vld [vmem:[#allocation5 + $0x14b4] sm:$0xf0]  ;;  %v12171_v10 = vld [vmem:[#allocation5 + $0x15a8] sm:$0xf] }
 0x2bf   :  { %7458 = vmatpush.bf16.msra.mxu2 %v11724_v20  ;;  %7471 = vmatpush.bf16.msra.mxu3 %v11852_v5  ;;  %v14892_v20 = vld [vmem:[#allocation5 + $0x17d4] sm:$0xf0]  ;;  %v12043_v5 = vld [vmem:[#allocation5 + $0x14a8] sm:$0xf] }
 0x2c0   :  { %7433 = vmatpush.bf16.msra.mxu0 %v11452_v44  ;;  %v12444_v45 = vor.u32 %v14892_v20, %v12443_v60  ;;  %v14824_v28 = vld [vmem:[#allocation5 + $0x15b4] sm:$0xf0]  ;;  %v12299_v55 = vld [vmem:[#allocation5 + $0x16a8] sm:$0xf]  ;;  %v12044_v34 = vor.u32 %v14792_v59, %v12043_v5 }
 0x2c1   :  { %7446 = vmatpush.bf16.msra.mxu1 %v11580_v13  ;;  %v14856_v52 = vld [vmem:[#allocation5 + $0x16b4] sm:$0xf0]  ;;  %v12427_v44 = vld [vmem:[#allocation5 + $0x17a8] sm:$0xf]  ;;  %v12172_v13 = vor.u32 %v14824_v28, %v12171_v10  ;;  %v7240_v5 = vpop.f32.mrf.mxu1 }
 0x2c2   :  { %v14888_v2 = vld [vmem:[#allocation5 + $0x17b4] sm:$0xf0]  ;;  %v12027_v63 = vld [vmem:[#allocation5 + $0x1488] sm:$0xf]  ;;  %v7227_v48 = vpop.f32.mrf.mxu0 }
 0x2c3   :  { %7459 = vmatpush.bf16.msra.mxu2 %v11708_v49  ;;  %7472 = vmatpush.bf16.msra.mxu3 %v11836_v4  ;;  %v12300_v49 = vor.u32 %v14856_v52, %v12299_v55  ;;  %v14788_v62 = vld [vmem:[#allocation5 + $0x1494] sm:$0xf0]  ;;  %v12155_v56 = vld [vmem:[#allocation5 + $0x1588] sm:$0xf]  ;;  %v15327_v4 = vld [vmem:[#allocation7] sm:$0xf] }
 0x2c4   :  { %7478 = vmatpush.bf16.msrb.mxu0 %v12076_v46  ;;  %7447 = vmatmul.bf16.vlgmr.msra.gmra.mxu1 %v15682_v38  ;;  %v1260_v46 = vperm.slane %v15327_v4, 2  ;;  %v12283_v50 = vld [vmem:[#allocation5 + $0x1688] sm:$0xf]  ;;  %v14852_v1 = vld [vmem:[#allocation5 + $0x1694] sm:$0xf0]  ;;  %v12028_v57 = vor.u32 %v14788_v62, %v12027_v63 }
 0x2c5   :  { %7491 = vmatpush.bf16.msrb.mxu1 %v12204_v53  ;;  %7434 = vmatmul.bf16.vlgmr.msra.gmra.mxu0 %v15678_v32  ;;  %v12428_v53 = vor.u32 %v14888_v2, %v12427_v44  ;;  %v12411_v42 = vld [vmem:[#allocation5 + $0x1788] sm:$0xf]  ;;  %v12284_v60 = vor.u32 %v14852_v1, %v12283_v50  ;;  %v14816_v10 = vld [vmem:[#allocation5 + $0x1574] sm:$0xf0] }
 0x2c6   :  { %7460 = vmatmul.bf16.vlgmr.msra.gmra.mxu2 %v15680_v37  ;;  %7473 = vmatmul.bf16.vlgmr.msra.gmra.mxu3 %v15684_v43  ;;  %v12011_v20 = vld [vmem:[#allocation5 + $0x1468] sm:$0xf]  ;;  %v14848_v28 = vld [vmem:[#allocation5 + $0x1674] sm:$0xf0] }
 0x2c7   :  { %7504 = vmatpush.bf16.msrb.mxu2 %v12332_v61  ;;  %7517 = vmatpush.bf16.msrb.mxu3 %v12460_v58  ;;  %v14820_v61 = vld [vmem:[#allocation5 + $0x1594] sm:$0xf0]  ;;  %v12395_v55 = vld [vmem:[#allocation5 + $0x1768] sm:$0xf] }
 0x2c8   :  { %7479 = vmatpush.bf16.msrb.mxu0 %v12060_v51  ;;  %v14884_v58 = vld [vmem:[#allocation5 + $0x1794] sm:$0xf0]  ;;  %v12156_v15 = vor.u32 %v14820_v61, %v12155_v56  ;;  %v12123_v62 = vld [vmem:[#allocation5 + $0x1548] sm:$0xf] }
 0x2c9   :  { %7492 = vmatpush.bf16.msrb.mxu1 %v12188_v22  ;;  %v14784_v51 = vld [vmem:[#allocation5 + $0x1474] sm:$0xf0]  ;;  %v12139_v22 = vld [vmem:[#allocation5 + $0x1568] sm:$0xf]  ;;  %v12412_v59 = vor.u32 %v14884_v58, %v12411_v42  ;;  %v7253_v56 = vpop.f32.mrf.mxu2  ;;  %v7266_v1 = vpop.f32.mrf.mxu3 }
 0x2ca   :  { %v14880_v52 = vld [vmem:[#allocation5 + $0x1774] sm:$0xf0]  ;;  %v12012_v2 = vor.u32 %v14784_v51, %v12011_v20  ;;  %v12379_v42 = vld [vmem:[#allocation5 + $0x1748] sm:$0xf] }
 0x2cb   :  { %7505 = vmatpush.bf16.msrb.mxu2 %v12316_v14  ;;  %7518 = vmatpush.bf16.msrb.mxu3 %v12444_v45  ;;  %v7228_v14 = vadd.f32 %v7227_v48, %v1260_v46  ;;  %v12267_v45 = vld [vmem:[#allocation5 + $0x1668] sm:$0xf]  ;;  %v12396_v4 = vor.u32 %v14880_v52, %v12395_v55  ;;  %v14812_v46 = vld [vmem:[#allocation5 + $0x1554] sm:$0xf0] }
 0x2cc   :  { %7480 = vmatpush.bf16.msrb.mxu0 %v12044_v34  ;;  %v12140_v34 = vor.u32 %v14816_v10, %v12139_v22  ;;  %v12268_v63 = vor.u32 %v14848_v28, %v12267_v45  ;;  %v14844_v61 = vld [vmem:[#allocation5 + $0x1654] sm:$0xf0]  ;;  %v11979_v51 = vld [vmem:[#allocation5 + $0x1428] sm:$0xf] }
 0x2cd   :  { %7493 = vmatpush.bf16.msrb.mxu1 %v12172_v13  ;;  %v7241_v44 = vadd.f32 %v7240_v5, %v7228_v14  ;;  %v11995_v13 = vld [vmem:[#allocation5 + $0x1448] sm:$0xf]  ;;  %v14876_v58 = vld [vmem:[#allocation5 + $0x1754] sm:$0xf0]  ;;  %v7242_v5 = vpop.f32.mrf.mxu1 }
 0x2ce   :  { %v14776_v22 = vld [vmem:[#allocation5 + $0x1434] sm:$0xf0]  ;;  %v12107_v14 = vld [vmem:[#allocation5 + $0x1528] sm:$0xf] }
 0x2cf   :  { %7506 = vmatpush.bf16.msrb.mxu2 %v12300_v49  ;;  %7519 = vmatpush.bf16.msrb.mxu3 %v12428_v53  ;;  %v14780_v49 = vld [vmem:[#allocation5 + $0x1454] sm:$0xf0]  ;;  %v12251_v53 = vld [vmem:[#allocation5 + $0x1648] sm:$0xf]  ;;  %v7254_v50 = vadd.f32 %v7253_v56, %v7241_v44  ;;  %v11980_v44 = vor.u32 %v14776_v22, %v11979_v51 }
 0x2d0   :  { %7481 = vmatpush.bf16.msrb.mxu0 %v12028_v57  ;;  %v11996_v57 = vor.u32 %v14780_v49, %v11995_v13  ;;  %v12252_v20 = vor.u32 %v14844_v61, %v12251_v53  ;;  %v14808_v10 = vld [vmem:[#allocation5 + $0x1534] sm:$0xf0]  ;;  %v12235_v45 = vld [vmem:[#allocation5 + $0x1628] sm:$0xf] }
 0x2d1   :  { %7494 = vmatpush.bf16.msrb.mxu1 %v12156_v15  ;;  %v15838_v48 = vadd.f32 %v7266_v1, %v7254_v50  ;;  %v7229_v15 = vpop.f32.mrf.mxu0  ;;  %v14840_v28 = vld [vmem:[#allocation5 + $0x1634] sm:$0xf0]  ;;  %v12363_v55 = vld [vmem:[#allocation5 + $0x1728] sm:$0xf]  ;;  %v7268_v1 = vpop.f32.mrf.mxu3 }
 0x2d2   :  { %v14872_v52 = vld [vmem:[#allocation5 + $0x1734] sm:$0xf0]  ;;  %v12091_v49 = vld [vmem:[#allocation5 + $0x1508] sm:$0xf] }
 0x2d3   :  { %7507 = vmatpush.bf16.msrb.mxu2 %v12284_v60  ;;  %7520 = vmatpush.bf16.msrb.mxu3 %v12412_v59  ;;  %v12124_v60 = vor.u32 %v14812_v46, %v12123_v62  ;;  %v12380_v59 = vor.u32 %v14876_v58, %v12379_v42  ;;  %v14772_v13 = vld [vmem:[#allocation5 + $0x1414] sm:$0xf0]  ;;  %v12219_v56 = vld [vmem:[#allocation5 + $0x1608] sm:$0xf]  ;;  %v7255_v46 = vpop.f32.mrf.mxu2 }
 0x2d4   :  { %7482 = vmatpush.bf16.msrb.mxu0 %v12012_v2  ;;  %v11963_v2 = vld [vmem:[#allocation5 + $0x1408] sm:$0xf]  ;;  %v14804_v62 = vld [vmem:[#allocation5 + $0x1514] sm:$0xf0] }
 0x2d5   :  { %7495 = vmatpush.bf16.msrb.mxu1 %v12140_v34  ;;  %v12108_v34 = vor.u32 %v14808_v10, %v12107_v14  ;;  %v14836_v53 = vld [vmem:[#allocation5 + $0x1614] sm:$0xf0]  ;;  %v12347_v61 = vld [vmem:[#allocation5 + $0x1708] sm:$0xf]  ;;  %v11964_v15 = vor.u32 %v14772_v13, %v11963_v2  ;;  %v12092_v22 = vor.u32 %v14804_v62, %v12091_v49 }
 0x2d6   :  { %v14868_v50 = vld [vmem:[#allocation5 + $0x1714] sm:$0xf0]  ;;  %v12587_v42 = vld [vmem:[#allocation5 + $0x18e8] sm:$0xf]  ;;  %v12220_v14 = vor.u32 %v14836_v53, %v12219_v56 }
 0x2d7   :  { %7508 = vmatpush.bf16.msrb.mxu2 %v12268_v63  ;;  %7521 = vmatpush.bf16.msrb.mxu3 %v12396_v4  ;;  %v12236_v63 = vor.u32 %v14840_v28, %v12235_v45  ;;  %v12364_v4 = vor.u32 %v14872_v52, %v12363_v55  ;;  %v14928_v58 = vld [vmem:[#allocation5 + $0x18f4] sm:$0xf0]  ;;  %v12971_v5 = vld [vmem:[#allocation5 + $0x1be8] sm:$0xf] }
 0x2d8   :  { %7483 = vmatpush.bf16.msrb.mxu0 %v11996_v57  ;;  %v12715_v57 = vld [vmem:[#allocation5 + $0x19e8] sm:$0xf]  ;;  %v14960_v51 = vld [vmem:[#allocation5 + $0x19f4] sm:$0xf0]  ;;  %v12588_v45 = vor.u32 %v14928_v58, %v12587_v42 }
 0x2d9   :  { %7496 = vmatpush.bf16.msrb.mxu1 %v12124_v60  ;;  %v12843_v60 = vld [vmem:[#allocation5 + $0x1ae8] sm:$0xf]  ;;  %v15024_v10 = vld [vmem:[#allocation5 + $0x1bf4] sm:$0xf0]  ;;  %v12716_v28 = vor.u32 %v14960_v51, %v12715_v57 }
 0x2da   :  { %v12571_v52 = vld [vmem:[#allocation5 + $0x18c8] sm:$0xf]  ;;  %v14924_v46 = vld [vmem:[#allocation5 + $0x18d4] sm:$0xf0] }
 0x2db   :  { %7509 = vmatpush.bf16.msrb.mxu2 %v12252_v20  ;;  %7522 = vmatpush.bf16.msrb.mxu3 %v12380_v59  ;;  %v14992_v20 = vld [vmem:[#allocation5 + $0x1af4] sm:$0xf0]  ;;  %v12348_v59 = vor.u32 %v14868_v50, %v12347_v61  ;;  %v12699_v1 = vld [vmem:[#allocation5 + $0x19c8] sm:$0xf]  ;;  %v12572_v49 = vor.u32 %v14924_v46, %v12571_v52 }
 0x2dc   :  { %7484 = vmatpush.bf16.msrb.mxu0 %v11980_v44  ;;  %v12844_v55 = vor.u32 %v14992_v20, %v12843_v60  ;;  %v12972_v44 = vor.u32 %v15024_v10, %v12971_v5  ;;  %v14956_v2 = vld [vmem:[#allocation5 + $0x19d4] sm:$0xf0]  ;;  %v12827_v13 = vld [vmem:[#allocation5 + $0x1ac8] sm:$0xf] }
 0x2dd   :  { %7497 = vmatpush.bf16.msrb.mxu1 %v12108_v34  ;;  %v14988_v54 = vld [vmem:[#allocation5 + $0x1ad4] sm:$0xf0]  ;;  %v12955_v34 = vld [vmem:[#allocation5 + $0x1bc8] sm:$0xf]  ;;  %v12700_v62 = vor.u32 %v14956_v2, %v12699_v1 }
 0x2de   :  { %v12828_v56 = vor.u32 %v14988_v54, %v12827_v13  ;;  %v14920_v53 = vld [vmem:[#allocation5 + $0x18b4] sm:$0xf0]  ;;  %v12683_v61 = vld [vmem:[#allocation5 + $0x19a8] sm:$0xf] }
 0x2df   :  { %7510 = vmatpush.bf16.msrb.mxu2 %v12236_v63  ;;  %7523 = vmatpush.bf16.msrb.mxu3 %v12364_v4  ;;  %v15020_v63 = vld [vmem:[#allocation5 + $0x1bd4] sm:$0xf0]  ;;  %v12555_v4 = vld [vmem:[#allocation5 + $0x18a8] sm:$0xf] }
 0x2e0   :  { %7485 = vmatpush.bf16.msrb.mxu0 %v11964_v15  ;;  %v12956_v50 = vor.u32 %v15020_v63, %v12955_v34  ;;  %v14952_v42 = vld [vmem:[#allocation5 + $0x19b4] sm:$0xf0]  ;;  %v12811_v58 = vld [vmem:[#allocation5 + $0x1aa8] sm:$0xf]  ;;  %v12556_v54 = vor.u32 %v14920_v53, %v12555_v4 }
 0x2e1   :  { %7498 = vmatpush.bf16.msrb.mxu1 %v12092_v22  ;;  %v14984_v57 = vld [vmem:[#allocation5 + $0x1ab4] sm:$0xf0]  ;;  %v12939_v15 = vld [vmem:[#allocation5 + $0x1ba8] sm:$0xf]  ;;  %v12684_v60 = vor.u32 %v14952_v42, %v12683_v61 }
 0x2e2   :  { %v15016_v51 = vld [vmem:[#allocation5 + $0x1bb4] sm:$0xf0]  ;;  %v12812_v20 = vor.u32 %v14984_v57, %v12811_v58  ;;  %v12539_v22 = vld [vmem:[#allocation5 + $0x1888] sm:$0xf]  ;;  %v7279_v1 = vpop.f32.mrf.mxu0 }
 0x2e3   :  { %7511 = vmatpush.bf16.msrb.mxu2 %v12220_v14  ;;  %7524 = vmatpush.bf16.msrb.mxu3 %v12348_v59  ;;  %v14916_v14 = vld [vmem:[#allocation5 + $0x1894] sm:$0xf0]  ;;  %v12667_v5 = vld [vmem:[#allocation5 + $0x1988] sm:$0xf]  ;;  %v12940_v10 = vor.u32 %v15016_v51, %v12939_v15 }
 0x2e4   :  { %7530 = vmatpush.bf16.msra.mxu0 %v12588_v45  ;;  %7499 = vmatmul.bf16.vlgmr.msrb.gmra.mxu1 %v15700_v9  ;;  %v14948_v59 = vld [vmem:[#allocation5 + $0x1994] sm:$0xf0]  ;;  %v12795_v45 = vld [vmem:[#allocation5 + $0x1a88] sm:$0xf]  ;;  %v12540_v46 = vor.u32 %v14916_v14, %v12539_v22 }
 0x2e5   :  { %7543 = vmatpush.bf16.msra.mxu1 %v12716_v28  ;;  %7486 = vmatmul.bf16.vlgmr.msrb.gmra.mxu0 %v15696_v3  ;;  %v14980_v28 = vld [vmem:[#allocation5 + $0x1a94] sm:$0xf0]  ;;  %v12523_v13 = vld [vmem:[#allocation5 + $0x1868] sm:$0xf] }
 0x2e6   :  { %7512 = vmatmul.bf16.vlgmr.msrb.gmra.mxu2 %v15698_v8  ;;  %7525 = vmatmul.bf16.vlgmr.msrb.gmra.mxu3 %v15702_v12  ;;  %v15012_v52 = vld [vmem:[#allocation5 + $0x1b94] sm:$0xf0]  ;;  %v12796_v2 = vor.u32 %v14980_v28, %v12795_v45  ;;  %v12651_v63 = vld [vmem:[#allocation5 + $0x1968] sm:$0xf] }
 0x2e7   :  { %7556 = vmatpush.bf16.msra.mxu2 %v12844_v55  ;;  %7569 = vmatpush.bf16.msra.mxu3 %v12972_v44  ;;  %v12923_v55 = vld [vmem:[#allocation5 + $0x1b88] sm:$0xf]  ;;  %v12668_v44 = vor.u32 %v14948_v59, %v12667_v5  ;;  %v14912_v34 = vld [vmem:[#allocation5 + $0x1874] sm:$0xf0] }
 0x2e8   :  { %7531 = vmatpush.bf16.msra.mxu0 %v12572_v49  ;;  %v7280_v49 = vadd.f32 %v7279_v1, %v15838_v48  ;;  %v14944_v4 = vld [vmem:[#allocation5 + $0x1974] sm:$0xf0]  ;;  %v12779_v53 = vld [vmem:[#allocation5 + $0x1a68] sm:$0xf]  ;;  %v12524_v57 = vor.u32 %v14912_v34, %v12523_v13 }
 0x2e9   :  { %7544 = vmatpush.bf16.msra.mxu1 %v12700_v62  ;;  %v7292_v62 = vpop.f32.mrf.mxu1  ;;  %v14976_v61 = vld [vmem:[#allocation5 + $0x1a74] sm:$0xf0]  ;;  %v12652_v15 = vor.u32 %v14944_v4, %v12651_v63  ;;  %v7305_v22 = vpop.f32.mrf.mxu2  ;;  %v12763_v5 = vld [vmem:[#allocation5 + $0x1a48] sm:$0xf] }
 0x2ea   :  { %v15008_v42 = vld [vmem:[#allocation5 + $0x1b74] sm:$0xf0]  ;;  %v7293_v58 = vadd.f32 %v7292_v62, %v7280_v49  ;;  %v12780_v51 = vor.u32 %v14976_v61, %v12779_v53  ;;  %v7318_v45 = vpop.f32.mrf.mxu3  ;;  %v12891_v28 = vld [vmem:[#allocation5 + $0x1b48] sm:$0xf]  ;;  %v7281_v1 = vpop.f32.mrf.mxu0 }
 0x2eb   :  { %7557 = vmatpush.bf16.msra.mxu2 %v12828_v56  ;;  %7570 = vmatpush.bf16.msra.mxu3 %v12956_v50  ;;  %v12924_v56 = vor.u32 %v15012_v52, %v12923_v55  ;;  %v12907_v50 = vld [vmem:[#allocation5 + $0x1b68] sm:$0xf]  ;;  %v14940_v14 = vld [vmem:[#allocation5 + $0x1954] sm:$0xf0] }
 0x2ec   :  { %7532 = vmatpush.bf16.msra.mxu0 %v12556_v54  ;;  %v12507_v54 = vld [vmem:[#allocation5 + $0x1848] sm:$0xf]  ;;  %v12908_v48 = vor.u32 %v15008_v42, %v12907_v50  ;;  %v7306_v59 = vadd.f32 %v7305_v22, %v7293_v58  ;;  %v15004_v55 = vld [vmem:[#allocation5 + $0x1b54] sm:$0xf0] }
 0x2ed   :  { %7545 = vmatpush.bf16.msra.mxu1 %v12684_v60  ;;  %v14908_v60 = vld [vmem:[#allocation5 + $0x1854] sm:$0xf0]  ;;  %v12491_v13 = vld [vmem:[#allocation5 + $0x1828] sm:$0xf]  ;;  %v12892_v62 = vor.u32 %v15004_v55, %v12891_v28 }
 0x2ee   :  { %v12508_v52 = vor.u32 %v14908_v60, %v12507_v54  ;;  %v14904_v34 = vld [vmem:[#allocation5 + $0x1834] sm:$0xf0]  ;;  %v12619_v63 = vld [vmem:[#allocation5 + $0x1928] sm:$0xf] }
 0x2ef   :  { %7558 = vmatpush.bf16.msra.mxu2 %v12812_v20  ;;  %7571 = vmatpush.bf16.msra.mxu3 %v12940_v10  ;;  %v12635_v20 = vld [vmem:[#allocation5 + $0x1948] sm:$0xf]  ;;  %v14972_v10 = vld [vmem:[#allocation5 + $0x1a54] sm:$0xf0]  ;;  %v12492_v42 = vor.u32 %v14904_v34, %v12491_v13 }
 0x2f0   :  { %7533 = vmatpush.bf16.msra.mxu0 %v12540_v46  ;;  %v15845_v46 = vadd.f32 %v7318_v45, %v7306_v59  ;;  %v12747_v4 = vld [vmem:[#allocation5 + $0x1a28] sm:$0xf]  ;;  %v14968_v53 = vld [vmem:[#allocation5 + $0x1a34] sm:$0xf0] }
 0x2f1   :  { %7546 = vmatpush.bf16.msra.mxu1 %v12668_v44  ;;  %v12636_v44 = vor.u32 %v14940_v14, %v12635_v20  ;;  %v7294_v49 = vpop.f32.mrf.mxu1  ;;  %v12875_v61 = vld [vmem:[#allocation5 + $0x1b28] sm:$0xf]  ;;  %v15000_v50 = vld [vmem:[#allocation5 + $0x1b34] sm:$0xf0]  ;;  %v7307_v22 = vpop.f32.mrf.mxu2 }
 0x2f2   :  { %v12475_v58 = vld [vmem:[#allocation5 + $0x1808] sm:$0xf]  ;;  %v14932_v60 = vld [vmem:[#allocation5 + $0x1914] sm:$0xf0]  ;;  %v7320_v59 = vpop.f32.mrf.mxu3 }
 0x2f3   :  { %7559 = vmatpush.bf16.msra.mxu2 %v12796_v2  ;;  %7572 = vmatpush.bf16.msra.mxu3 %v12924_v56  ;;  %v12764_v2 = vor.u32 %v14972_v10, %v12763_v5  ;;  %v14936_v56 = vld [vmem:[#allocation5 + $0x1934] sm:$0xf0]  ;;  %v12603_v54 = vld [vmem:[#allocation5 + $0x1908] sm:$0xf] }
 0x2f4   :  { %7534 = vmatpush.bf16.msra.mxu0 %v12524_v57  ;;  %v14900_v57 = vld [vmem:[#allocation5 + $0x1814] sm:$0xf0]  ;;  %v12731_v20 = vld [vmem:[#allocation5 + $0x1a08] sm:$0xf]  ;;  %v12604_v13 = vor.u32 %v14932_v60, %v12603_v54 }
 0x2f5   :  { %7547 = vmatpush.bf16.msra.mxu1 %v12652_v15  ;;  %v12620_v15 = vor.u32 %v14936_v56, %v12619_v63  ;;  %v14964_v14 = vld [vmem:[#allocation5 + $0x1a14] sm:$0xf0]  ;;  %v12859_v5 = vld [vmem:[#allocation5 + $0x1b08] sm:$0xf] }
 0x2f6   :  { %v14996_v10 = vld [vmem:[#allocation5 + $0x1b14] sm:$0xf0]  ;;  %v13099_v45 = vld [vmem:[#allocation5 + $0x1ce8] sm:$0xf]  ;;  %v12732_v34 = vor.u32 %v14964_v14, %v12731_v20 }
 0x2f7   :  { %7560 = vmatpush.bf16.msra.mxu2 %v12780_v51  ;;  %7573 = vmatpush.bf16.msra.mxu3 %v12908_v48  ;;  %v12748_v51 = vor.u32 %v14968_v53, %v12747_v4  ;;  %v12876_v48 = vor.u32 %v15000_v50, %v12875_v61  ;;  %v15056_v28 = vld [vmem:[#allocation5 + $0x1cf4] sm:$0xf0]  ;;  %v13227_v55 = vld [vmem:[#allocation5 + $0x1de8] sm:$0xf] }
 0x2f8   :  { %7535 = vmatpush.bf16.msra.mxu0 %v12508_v52  ;;  %v12476_v52 = vor.u32 %v14900_v57, %v12475_v58  ;;  %v15088_v1 = vld [vmem:[#allocation5 + $0x1df4] sm:$0xf0]  ;;  %v13483_v63 = vld [vmem:[#allocation5 + $0x1fe8] sm:$0xf]  ;;  %v13100_v56 = vor.u32 %v15056_v28, %v13099_v45 }
 0x2f9   :  { %7548 = vmatpush.bf16.msra.mxu1 %v12636_v44  ;;  %v13355_v44 = vld [vmem:[#allocation5 + $0x1ee8] sm:$0xf]  ;;  %v15152_v49 = vld [vmem:[#allocation5 + $0x1ff4] sm:$0xf0]  ;;  %v13228_v4 = vor.u32 %v15088_v1, %v13227_v55 }
 0x2fa   :  { %v13083_v61 = vld [vmem:[#allocation5 + $0x1cc8] sm:$0xf]  ;;  %v15052_v50 = vld [vmem:[#allocation5 + $0x1cd4] sm:$0xf0] }
 0x2fb   :  { %7561 = vmatpush.bf16.msra.mxu2 %v12764_v2  ;;  %7574 = vmatpush.bf16.msra.mxu3 %v12892_v62  ;;  %v15120_v2 = vld [vmem:[#allocation5 + $0x1ef4] sm:$0xf0]  ;;  %v12860_v62 = vor.u32 %v14996_v10, %v12859_v5  ;;  %v13211_v22 = vld [vmem:[#allocation5 + $0x1dc8] sm:$0xf]  ;;  %v13084_v54 = vor.u32 %v15052_v50, %v13083_v61 }
 0x2fc   :  { %7536 = vmatpush.bf16.msra.mxu0 %v12492_v42  ;;  %v13356_v53 = vor.u32 %v15120_v2, %v13355_v44  ;;  %v13484_v42 = vor.u32 %v15152_v49, %v13483_v63  ;;  %v15084_v58 = vld [vmem:[#allocation5 + $0x1dd4] sm:$0xf0]  ;;  %v13339_v57 = vld [vmem:[#allocation5 + $0x1ec8] sm:$0xf] }
 0x2fd   :  { %7549 = vmatpush.bf16.msra.mxu1 %v12620_v15  ;;  %v15116_v59 = vld [vmem:[#allocation5 + $0x1ed4] sm:$0xf0]  ;;  %v13467_v15 = vld [vmem:[#allocation5 + $0x1fc8] sm:$0xf]  ;;  %v13212_v60 = vor.u32 %v15084_v58, %v13211_v22 }
 0x2fe   :  { %v13340_v20 = vor.u32 %v15116_v59, %v13339_v57  ;;  %v15048_v14 = vld [vmem:[#allocation5 + $0x1cb4] sm:$0xf0]  ;;  %v13195_v5 = vld [vmem:[#allocation5 + $0x1da8] sm:$0xf] }
 0x2ff   :  { %7562 = vmatpush.bf16.msra.mxu2 %v12748_v51  ;;  %7575 = vmatpush.bf16.msra.mxu3 %v12876_v48  ;;  %v15148_v51 = vld [vmem:[#allocation5 + $0x1fd4] sm:$0xf0]  ;;  %v13067_v48 = vld [vmem:[#allocation5 + $0x1ca8] sm:$0xf] }
 0x300   :  { %7537 = vmatpush.bf16.msra.mxu0 %v12476_v52  ;;  %v13468_v10 = vor.u32 %v15148_v51, %v13467_v15  ;;  %v15080_v45 = vld [vmem:[#allocation5 + $0x1db4] sm:$0xf0]  ;;  %v13323_v28 = vld [vmem:[#allocation5 + $0x1ea8] sm:$0xf]  ;;  %v13068_v44 = vor.u32 %v15048_v14, %v13067_v48 }
 0x301   :  { %7550 = vmatpush.bf16.msra.mxu1 %v12604_v13  ;;  %v15112_v55 = vld [vmem:[#allocation5 + $0x1eb4] sm:$0xf0]  ;;  %v13451_v52 = vld [vmem:[#allocation5 + $0x1fa8] sm:$0xf]  ;;  %v13196_v2 = vor.u32 %v15080_v45, %v13195_v5  ;;  %v7344_v57 = vpop.f32.mrf.mxu1 }
 0x302   :  { %v15144_v1 = vld [vmem:[#allocation5 + $0x1fb4] sm:$0xf0]  ;;  %v13324_v13 = vor.u32 %v15112_v55, %v13323_v28  ;;  %v13179_v49 = vld [vmem:[#allocation5 + $0x1d88] sm:$0xf]  ;;  %v7331_v61 = vpop.f32.mrf.mxu0 }
 0x303   :  { %7563 = vmatpush.bf16.msra.mxu2 %v12732_v34  ;;  %7576 = vmatpush.bf16.msra.mxu3 %v12860_v62  ;;  %v13051_v34 = vld [vmem:[#allocation5 + $0x1c88] sm:$0xf]  ;;  %v15044_v63 = vld [vmem:[#allocation5 + $0x1c94] sm:$0xf0]  ;;  %v13452_v62 = vor.u32 %v15144_v1, %v13451_v52 }
 0x304   :  { %7582 = vmatpush.bf16.msrb.mxu0 %v13100_v56  ;;  %7551 = vmatmul.bf16.vlgmr.msra.gmra.mxu1 %v15721_v7  ;;  %v15076_v56 = vld [vmem:[#allocation5 + $0x1d94] sm:$0xf0]  ;;  %v13435_v50 = vld [vmem:[#allocation5 + $0x1f88] sm:$0xf]  ;;  %v13052_v58 = vor.u32 %v15044_v63, %v13051_v34 }
 0x305   :  { %7595 = vmatpush.bf16.msrb.mxu1 %v13228_v4  ;;  %7538 = vmatmul.bf16.vlgmr.msra.gmra.mxu0 %v15717_v0  ;;  %v13307_v4 = vld [vmem:[#allocation5 + $0x1e88] sm:$0xf]  ;;  %v15140_v22 = vld [vmem:[#allocation5 + $0x1f94] sm:$0xf0]  ;;  %v13180_v59 = vor.u32 %v15076_v56, %v13179_v49 }
 0x306   :  { %7564 = vmatmul.bf16.vlgmr.msra.gmra.mxu2 %v15719_v6  ;;  %7577 = vmatmul.bf16.vlgmr.msra.gmra.mxu3 %v15723_v11  ;;  %v13035_v51 = vld [vmem:[#allocation5 + $0x1c68] sm:$0xf]  ;;  %v15072_v14 = vld [vmem:[#allocation5 + $0x1d74] sm:$0xf0] }
 0x307   :  { %7608 = vmatpush.bf16.msrb.mxu2 %v13356_v53  ;;  %7621 = vmatpush.bf16.msrb.mxu3 %v13484_v42  ;;  %v15108_v53 = vld [vmem:[#allocation5 + $0x1e94] sm:$0xf0]  ;;  %v7332_v42 = vadd.f32 %v7331_v61, %v15845_v46  ;;  %v13291_v5 = vld [vmem:[#allocation5 + $0x1e68] sm:$0xf] }
 0x308   :  { %7583 = vmatpush.bf16.msrb.mxu0 %v13084_v54  ;;  %v13308_v15 = vor.u32 %v15108_v53, %v13307_v4  ;;  %v15040_v54 = vld [vmem:[#allocation5 + $0x1c74] sm:$0xf0]  ;;  %v13419_v45 = vld [vmem:[#allocation5 + $0x1f68] sm:$0xf] }
 0x309   :  { %7596 = vmatpush.bf16.msrb.mxu1 %v13212_v60  ;;  %v13163_v60 = vld [vmem:[#allocation5 + $0x1d68] sm:$0xf]  ;;  %v7345_v48 = vadd.f32 %v7344_v57, %v7332_v42  ;;  %v15136_v28 = vld [vmem:[#allocation5 + $0x1f74] sm:$0xf0]  ;;  %v13036_v55 = vor.u32 %v15040_v54, %v13035_v51  ;;  %v7357_v34 = vpop.f32.mrf.mxu2  ;;  %v7370_v4 = vpop.f32.mrf.mxu3 }
 0x30a   :  { %v13164_v46 = vor.u32 %v15072_v14, %v13163_v60  ;;  %v13019_v1 = vld [vmem:[#allocation5 + $0x1c48] sm:$0xf]  ;;  %v15068_v63 = vld [vmem:[#allocation5 + $0x1d54] sm:$0xf0]  ;;  %v7346_v42 = vpop.f32.mrf.mxu1 }
 0x30b   :  { %7609 = vmatpush.bf16.msrb.mxu2 %v13340_v20  ;;  %7622 = vmatpush.bf16.msrb.mxu3 %v13468_v10  ;;  %v13436_v20 = vor.u32 %v15140_v22, %v13435_v50  ;;  %v15104_v10 = vld [vmem:[#allocation5 + $0x1e74] sm:$0xf0]  ;;  %v13275_v49 = vld [vmem:[#allocation5 + $0x1e48] sm:$0xf]  ;;  %v7358_v56 = vadd.f32 %v7357_v34, %v7345_v48  ;;  %v7333_v50 = vpop.f32.mrf.mxu0  ;;  %v14222_v42 = vld [vmem:[#allocation5 + $0x2ec] sm:$0xf] }
 0x30c   :  { %7584 = vmatpush.bf16.msrb.mxu0 %v13068_v44  ;;  %v13292_v52 = vor.u32 %v15104_v10, %v13291_v5  ;;  %v15036_v44 = vld [vmem:[#allocation5 + $0x1c54] sm:$0xf0]  ;;  %v13403_v53 = vld [vmem:[#allocation5 + $0x1f48] sm:$0xf] }
 0x30d   :  { %7597 = vmatpush.bf16.msrb.mxu1 %v13196_v2  ;;  %v13147_v2 = vld [vmem:[#allocation5 + $0x1d48] sm:$0xf]  ;;  %v15132_v61 = vld [vmem:[#allocation5 + $0x1f54] sm:$0xf0]  ;;  %v13020_v22 = vor.u32 %v15036_v44, %v13019_v1 }
 0x30e   :  { %v13148_v57 = vor.u32 %v15068_v63, %v13147_v2  ;;  %v15032_v51 = vld [vmem:[#allocation5 + $0x1c34] sm:$0xf0]  ;;  %v13131_v54 = vld [vmem:[#allocation5 + $0x1d28] sm:$0xf]  ;;  %v13404_v60 = vor.u32 %v15132_v61, %v13403_v53  ;;  %v14190_v53 = vld [vmem:[#allocation5 + $0x1ec] sm:$0xf] }
 0x30f   :  { %7610 = vmatpush.bf16.msrb.mxu2 %v13324_v13  ;;  %7623 = vmatpush.bf16.msrb.mxu3 %v13452_v62  ;;  %v13420_v13 = vor.u32 %v15136_v28, %v13419_v45  ;;  %v15100_v62 = vld [vmem:[#allocation5 + $0x1e54] sm:$0xf0]  ;;  %v13259_v48 = vld [vmem:[#allocation5 + $0x1e28] sm:$0xf] }
 0x310   :  { %7585 = vmatpush.bf16.msrb.mxu0 %v13052_v58  ;;  %v15852_v58 = vadd.f32 %v7370_v4, %v7358_v56  ;;  %v15096_v14 = vld [vmem:[#allocation5 + $0x1e34] sm:$0xf0]  ;;  %v13387_v5 = vld [vmem:[#allocation5 + $0x1f28] sm:$0xf]  ;;  %v14158_v56 = vld [vmem:[#allocation5 + $0xec] sm:$0xf] }
 0x311   :  { %7598 = vmatpush.bf16.msrb.mxu1 %v13180_v59  ;;  %v13276_v59 = vor.u32 %v15100_v62, %v13275_v49  ;;  %v15128_v10 = vld [vmem:[#allocation5 + $0x1f34] sm:$0xf0]  ;;  %v12987_v28 = vld [vmem:[#allocation5 + $0x1c08] sm:$0xf]  ;;  %v7359_v62 = vpop.f32.mrf.mxu2  ;;  %v9517_v4 = vld [vmem:[#allocation5 + $0xf8] sm:$0xf0]  ;;  %v7372_v61 = vpop.f32.mrf.mxu3 }
 0x312   :  { %v13115_v1 = vld [vmem:[#allocation5 + $0x1d08] sm:$0xf]  ;;  %v15060_v44 = vld [vmem:[#allocation5 + $0x1d14] sm:$0xf0]  ;;  %v13388_v34 = vor.u32 %v15128_v10, %v13387_v5  ;;  %v14154_v5 = vld [vmem:[#allocation5 + $0xcc] sm:$0xf] }
 0x313   :  { %7611 = vmatpush.bf16.msrb.mxu2 %v13308_v15  ;;  %7624 = vmatpush.bf16.msrb.mxu3 %v13436_v20  ;;  %v13003_v15 = vld [vmem:[#allocation5 + $0x1c28] sm:$0xf]  ;;  %v15064_v20 = vld [vmem:[#allocation5 + $0x1d34] sm:$0xf0]  ;;  %v9501_v10 = vld [vmem:[#allocation5 + $0xd8] sm:$0xf0] }
 0x314   :  { %7586 = vmatpush.bf16.msrb.mxu0 %v13036_v55  ;;  %v13004_v45 = vor.u32 %v15032_v51, %v13003_v15  ;;  %v15028_v55 = vld [vmem:[#allocation5 + $0x1c14] sm:$0xf0]  ;;  %v13243_v2 = vld [vmem:[#allocation5 + $0x1e08] sm:$0xf]  ;;  %v14254_v51 = vld [vmem:[#allocation5 + $0x3ec] sm:$0xf] }
 0x315   :  { %7599 = vmatpush.bf16.msrb.mxu1 %v13164_v46  ;;  %v13132_v46 = vor.u32 %v15064_v20, %v13131_v54  ;;  %v13371_v63 = vld [vmem:[#allocation5 + $0x1f08] sm:$0xf]  ;;  %v15124_v49 = vld [vmem:[#allocation5 + $0x1f14] sm:$0xf0]  ;;  %v12988_v50 = vor.u32 %v15028_v55, %v12987_v28  ;;  %v9901_v54 = vld [vmem:[#allocation5 + $0x3f8] sm:$0xf0]  ;;  %v9520_v20 = vor.u32 %v14158_v56, %v9517_v4 }
 0x316   :  { %v14186_v62 = vld [vmem:[#allocation5 + $0x1cc] sm:$0xf]  ;;  %v9629_v28 = vld [vmem:[#allocation5 + $0x1d8] sm:$0xf0] }
 0x317   :  { %7612 = vmatpush.bf16.msrb.mxu2 %v13292_v52  ;;  %7625 = vmatpush.bf16.msrb.mxu3 %v13420_v13  ;;  %v13260_v52 = vor.u32 %v15096_v14, %v13259_v48  ;;  %v15092_v13 = vld [vmem:[#allocation5 + $0x1e14] sm:$0xf0]  ;;  %v14218_v55 = vld [vmem:[#allocation5 + $0x2cc] sm:$0xf]  ;;  %v9757_v61 = vld [vmem:[#allocation5 + $0x2d8] sm:$0xf0] }
 0x318   :  { %7587 = vmatpush.bf16.msrb.mxu0 %v13020_v22  ;;  %v9645_v22 = vld [vmem:[#allocation5 + $0x1f8] sm:$0xf0]  ;;  %v13244_v15 = vor.u32 %v15092_v13, %v13243_v2  ;;  %v9760_v2 = vor.u32 %v14218_v55, %v9757_v61  ;;  %v14214_v4 = vld [vmem:[#allocation5 + $0x2ac] sm:$0xf] }
 0x319   :  { %7600 = vmatpush.bf16.msrb.mxu1 %v13148_v57  ;;  %v9773_v57 = vld [vmem:[#allocation5 + $0x2f8] sm:$0xf0]  ;;  %v9648_v48 = vor.u32 %v14190_v53, %v9645_v22 }
 0x31a   :  { %v9776_v14 = vor.u32 %v14222_v42, %v9773_v57  ;;  %v9485_v13 = vld [vmem:[#allocation5 + $0xb8] sm:$0xf0] }
 0x31b   :  { %7613 = vmatpush.bf16.msrb.mxu2 %v13276_v59  ;;  %7626 = vmatpush.bf16.msrb.mxu3 %v13404_v60  ;;  %v13116_v59 = vor.u32 %v15060_v44, %v13115_v1  ;;  %v13372_v60 = vor.u32 %v15124_v49, %v13371_v63  ;;  %v9504_v1 = vor.u32 %v14154_v5, %v9501_v10  ;;  %v14182_v63 = vld [vmem:[#allocation5 + $0x1ac] sm:$0xf]  ;;  %v9613_v56 = vld [vmem:[#allocation5 + $0x1b8] sm:$0xf0] }
 0x31c   :  { %7588 = vmatpush.bf16.msrb.mxu0 %v13004_v45  ;;  %v9904_v45 = vor.u32 %v14254_v51, %v9901_v54  ;;  %v9632_v44 = vor.u32 %v14186_v62, %v9629_v28  ;;  %v9741_v53 = vld [vmem:[#allocation5 + $0x2b8] sm:$0xf0]  ;;  %v9616_v57 = vor.u32 %v14182_v63, %v9613_v56  ;;  %v14178_v54 = vld [vmem:[#allocation5 + $0x18c] sm:$0xf] }
 0x31d   :  { %7601 = vmatpush.bf16.msrb.mxu1 %v13132_v46  ;;  %v14250_v46 = vld [vmem:[#allocation5 + $0x3cc] sm:$0xf]  ;;  %v9869_v22 = vld [vmem:[#allocation5 + $0x3b8] sm:$0xf0] }
 0x31e   :  { %v9469_v51 = vld [vmem:[#allocation5 + $0x98] sm:$0xf0]  ;;  %v14242_v10 = vld [vmem:[#allocation5 + $0x38c] sm:$0xf] }
 0x31f   :  { %7614 = vmatpush.bf16.msrb.mxu2 %v13260_v52  ;;  %7627 = vmatpush.bf16.msrb.mxu3 %v13388_v34  ;;  %v9885_v52 = vld [vmem:[#allocation5 + $0x3d8] sm:$0xf0]  ;;  %v14150_v34 = vld [vmem:[#allocation5 + $0xac] sm:$0xf] }
 0x320   :  { %7589 = vmatpush.bf16.msrb.mxu0 %v12988_v50  ;;  %v9888_v49 = vor.u32 %v14250_v46, %v9885_v52  ;;  %v14246_v50 = vld [vmem:[#allocation5 + $0x3ac] sm:$0xf]  ;;  %v9488_v42 = vor.u32 %v14150_v34, %v9485_v13  ;;  %v9853_v62 = vld [vmem:[#allocation5 + $0x398] sm:$0xf0] }
 0x321   :  { %7602 = vmatpush.bf16.msrb.mxu1 %v13116_v59  ;;  %v9744_v59 = vor.u32 %v14214_v4, %v9741_v53  ;;  %v7396_v55 = vpop.f32.mrf.mxu1  ;;  %v14142_v52 = vld [vmem:[#allocation5 + $0x6c] sm:$0xf]  ;;  %v9581_v13 = vld [vmem:[#allocation5 + $0x178] sm:$0xf0] }
 0x322   :  { %v7383_v5 = vpop.f32.mrf.mxu0  ;;  %v14206_v63 = vld [vmem:[#allocation5 + $0x26c] sm:$0xf]  ;;  %v9837_v4 = vld [vmem:[#allocation5 + $0x378] sm:$0xf0] }
 0x323   :  { %7615 = vmatpush.bf16.msrb.mxu2 %v13244_v15  ;;  %7628 = vmatpush.bf16.msrb.mxu3 %v13372_v60  ;;  %v14146_v15 = vld [vmem:[#allocation5 + $0x8c] sm:$0xf]  ;;  %v9872_v60 = vor.u32 %v14246_v50, %v9869_v22 }
 0x324   :  { %7634 = vmatpush.bf16.msra.mxu0 %v9520_v20  ;;  %7603 = vmatmul.bf16.vlgmr.msrb.gmra.mxu1 %v15740_v47  ;;  %v9597_v20 = vld [vmem:[#allocation5 + $0x198] sm:$0xf0]  ;;  %v9472_v28 = vor.u32 %v14146_v15, %v9469_v51  ;;  %v14238_v56 = vld [vmem:[#allocation5 + $0x36c] sm:$0xf] }
 0x325   :  { %7647 = vmatpush.bf16.msra.mxu1 %v9648_v48  ;;  %7590 = vmatmul.bf16.vlgmr.msrb.gmra.mxu0 %v15736_v23  ;;  %v14210_v48 = vld [vmem:[#allocation5 + $0x28c] sm:$0xf]  ;;  %v9600_v61 = vor.u32 %v14178_v54, %v9597_v20  ;;  %v9565_v51 = vld [vmem:[#allocation5 + $0x158] sm:$0xf0] }
 0x326   :  { %7616 = vmatmul.bf16.vlgmr.msrb.gmra.mxu2 %v15738_v33  ;;  %7629 = vmatmul.bf16.vlgmr.msrb.gmra.mxu3 %v15742_v35  ;;  %v14138_v22 = vld [vmem:[#allocation5 + $0x4c] sm:$0xf] }
 0x327   :  { %7660 = vmatpush.bf16.msra.mxu2 %v9776_v14  ;;  %7673 = vmatpush.bf16.msra.mxu3 %v9904_v45  ;;  %v9725_v14 = vld [vmem:[#allocation5 + $0x298] sm:$0xf0]  ;;  %v7384_v45 = vadd.f32 %v7383_v5, %v15852_v58  ;;  %v14202_v54 = vld [vmem:[#allocation5 + $0x24c] sm:$0xf] }
 0x328   :  { %7635 = vmatpush.bf16.msra.mxu0 %v9504_v1  ;;  %v9728_v46 = vor.u32 %v14210_v48, %v9725_v14  ;;  %v9453_v1 = vld [vmem:[#allocation5 + $0x78] sm:$0xf0]  ;;  %v14234_v14 = vld [vmem:[#allocation5 + $0x34c] sm:$0xf] }
 0x329   :  { %7648 = vmatpush.bf16.msra.mxu1 %v9632_v44  ;;  %v14174_v44 = vld [vmem:[#allocation5 + $0x16c] sm:$0xf]  ;;  %v7397_v34 = vadd.f32 %v7396_v55, %v7384_v45  ;;  %v9456_v53 = vor.u32 %v14142_v52, %v9453_v1  ;;  %v7409_v15 = vpop.f32.mrf.mxu2  ;;  %v7422_v48 = vpop.f32.mrf.mxu3  ;;  %v9821_v5 = vld [vmem:[#allocation5 + $0x358] sm:$0xf0] }
 0x32a   :  { %v9584_v58 = vor.u32 %v14174_v44, %v9581_v13  ;;  %v7398_v45 = vpop.f32.mrf.mxu1  ;;  %v9421_v52 = vld [vmem:[#allocation5 + $0x38] sm:$0xf0]  ;;  %v14166_v1 = vld [vmem:[#allocation5 + $0x12c] sm:$0xf]  ;;  %v9824_v44 = vor.u32 %v14234_v14, %v9821_v5 }
 0x32b   :  { %7661 = vmatpush.bf16.msra.mxu2 %v9760_v2  ;;  %7674 = vmatpush.bf16.msra.mxu3 %v9888_v49  ;;  %v9856_v2 = vor.u32 %v14242_v10, %v9853_v62  ;;  %v9709_v49 = vld [vmem:[#allocation5 + $0x278] sm:$0xf0]  ;;  %v7410_v20 = vadd.f32 %v7409_v15, %v7397_v34  ;;  %v7385_v10 = vpop.f32.mrf.mxu0  ;;  %v14198_v34 = vld [vmem:[#allocation5 + $0x22c] sm:$0xf] }
 0x32c   :  { %7636 = vmatpush.bf16.msra.mxu0 %v9488_v42  ;;  %v9712_v50 = vor.u32 %v14206_v63, %v9709_v49  ;;  %v9437_v42 = vld [vmem:[#allocation5 + $0x58] sm:$0xf0]  ;;  %v14230_v63 = vld [vmem:[#allocation5 + $0x32c] sm:$0xf] }
 0x32d   :  { %7649 = vmatpush.bf16.msra.mxu1 %v9616_v57  ;;  %v14170_v57 = vld [vmem:[#allocation5 + $0x14c] sm:$0xf]  ;;  %v9440_v62 = vor.u32 %v14138_v22, %v9437_v42  ;;  %v9677_v13 = vld [vmem:[#allocation5 + $0x238] sm:$0xf0] }
 0x32e   :  { %v9568_v55 = vor.u32 %v14170_v57, %v9565_v51  ;;  %v9805_v49 = vld [vmem:[#allocation5 + $0x338] sm:$0xf0]  ;;  %v14162_v22 = vld [vmem:[#allocation5 + $0x10c] sm:$0xf] }
 0x32f   :  { %7662 = vmatpush.bf16.msra.mxu2 %v9744_v59  ;;  %7675 = vmatpush.bf16.msra.mxu3 %v9872_v60  ;;  %v9840_v59 = vor.u32 %v14238_v56, %v9837_v4  ;;  %v9693_v60 = vld [vmem:[#allocation5 + $0x258] sm:$0xf0]  ;;  %v14130_v4 = vld [vmem:[#allocation5 + $0xc] sm:$0xf]  ;;  %v9808_v15 = vor.u32 %v14230_v63, %v9805_v49 }
 0x330   :  { %7637 = vmatpush.bf16.msra.mxu0 %v9472_v28  ;;  %v15859_v28 = vadd.f32 %v7422_v48, %v7410_v20  ;;  %v9533_v42 = vld [vmem:[#allocation5 + $0x118] sm:$0xf0]  ;;  %v14194_v57 = vld [vmem:[#allocation5 + $0x20c] sm:$0xf] }
 0x331   :  { %7650 = vmatpush.bf16.msra.mxu1 %v9600_v61  ;;  %v9696_v61 = vor.u32 %v14202_v54, %v9693_v60  ;;  %v14226_v51 = vld [vmem:[#allocation5 + $0x30c] sm:$0xf]  ;;  %v9789_v54 = vld [vmem:[#allocation5 + $0x318] sm:$0xf0]  ;;  %v7411_v60 = vpop.f32.mrf.mxu2  ;;  %v7424_v5 = vpop.f32.mrf.mxu3 }
 0x332   :  { %v14286_v20 = vld [vmem:[#allocation5 + $0x4ec] sm:$0xf]  ;;  %v10029_v48 = vld [vmem:[#allocation5 + $0x4f8] sm:$0xf0] }
 0x333   :  { %7663 = vmatpush.bf16.msra.mxu2 %v9728_v46  ;;  %7676 = vmatpush.bf16.msra.mxu3 %v9856_v2  ;;  %v14134_v46 = vld [vmem:[#allocation5 + $0x2c] sm:$0xf]  ;;  %v9549_v2 = vld [vmem:[#allocation5 + $0x138] sm:$0xf0] }
 0x334   :  { %7638 = vmatpush.bf16.msra.mxu0 %v9456_v53  ;;  %v9424_v56 = vor.u32 %v14134_v46, %v9421_v52  ;;  %v9405_v53 = vld [vmem:[#allocation5 + $0x18] sm:$0xf0]  ;;  %v14318_v14 = vld [vmem:[#allocation5 + $0x5ec] sm:$0xf] }
 0x335   :  { %7651 = vmatpush.bf16.msra.mxu1 %v9584_v58  ;;  %v9552_v58 = vor.u32 %v14166_v1, %v9549_v2  ;;  %v9408_v10 = vor.u32 %v14130_v4, %v9405_v53  ;;  %v14350_v45 = vld [vmem:[#allocation5 + $0x6ec] sm:$0xf]  ;;  %v10413_v1 = vld [vmem:[#allocation5 + $0x7f8] sm:$0xf0]  ;;  %v10032_v2 = vor.u32 %v14286_v20, %v10029_v48 }
 0x336   :  { %v14382_v52 = vld [vmem:[#allocation5 + $0x7ec] sm:$0xf]  ;;  %v10013_v49 = vld [vmem:[#allocation5 + $0x4d8] sm:$0xf0] }
 0x337   :  { %7664 = vmatpush.bf16.msra.mxu2 %v9712_v50  ;;  %7677 = vmatpush.bf16.msra.mxu3 %v9840_v59  ;;  %v9680_v50 = vor.u32 %v14198_v34, %v9677_v13  ;;  %v9661_v59 = vld [vmem:[#allocation5 + $0x218] sm:$0xf0]  ;;  %v14282_v63 = vld [vmem:[#allocation5 + $0x4cc] sm:$0xf] }
 0x338   :  { %7639 = vmatpush.bf16.msra.mxu0 %v9440_v62  ;;  %v10157_v62 = vld [vmem:[#allocation5 + $0x5f8] sm:$0xf0]  ;;  %v9664_v46 = vor.u32 %v14194_v57, %v9661_v59  ;;  %v14314_v60 = vld [vmem:[#allocation5 + $0x5cc] sm:$0xf] }
 0x339   :  { %7652 = vmatpush.bf16.msra.mxu1 %v9568_v55  ;;  %v10285_v55 = vld [vmem:[#allocation5 + $0x6f8] sm:$0xf0]  ;;  %v10160_v34 = vor.u32 %v14318_v14, %v10157_v62  ;;  %v14346_v53 = vld [vmem:[#allocation5 + $0x6cc] sm:$0xf] }
 0x33a   :  { %v10288_v13 = vor.u32 %v14350_v45, %v10285_v55  ;;  %v10141_v4 = vld [vmem:[#allocation5 + $0x5d8] sm:$0xf0]  ;;  %v14342_v48 = vld [vmem:[#allocation5 + $0x6ac] sm:$0xf] }
 0x33b   :  { %7665 = vmatpush.bf16.msra.mxu2 %v9696_v61  ;;  %7678 = vmatpush.bf16.msra.mxu3 %v9824_v44  ;;  %v9536_v61 = vor.u32 %v14162_v22, %v9533_v42  ;;  %v9792_v44 = vor.u32 %v14226_v51, %v9789_v54  ;;  %v10269_v5 = vld [vmem:[#allocation5 + $0x6d8] sm:$0xf0]  ;;  %v10016_v22 = vor.u32 %v14282_v63, %v10013_v49  ;;  %v14310_v51 = vld [vmem:[#allocation5 + $0x5ac] sm:$0xf] }
 0x33c   :  { %7640 = vmatpush.bf16.msra.mxu0 %v9424_v56  ;;  %v10416_v56 = vor.u32 %v14382_v52, %v10413_v1  ;;  %v10144_v42 = vor.u32 %v14314_v60, %v10141_v4  ;;  %v10272_v57 = vor.u32 %v14346_v53, %v10269_v5  ;;  %v9997_v59 = vld [vmem:[#allocation5 + $0x4b8] sm:$0xf0]  ;;  %v14306_v1 = vld [vmem:[#allocation5 + $0x58c] sm:$0xf] }
 0x33d   :  { %7653 = vmatpush.bf16.msra.mxu1 %v9552_v58  ;;  %v14378_v58 = vld [vmem:[#allocation5 + $0x7cc] sm:$0xf]  ;;  %v10125_v20 = vld [vmem:[#allocation5 + $0x5b8] sm:$0xf0] }
 0x33e   :  { %v10253_v14 = vld [vmem:[#allocation5 + $0x6b8] sm:$0xf0]  ;;  %v10128_v55 = vor.u32 %v14310_v51, %v10125_v20  ;;  %v14270_v4 = vld [vmem:[#allocation5 + $0x46c] sm:$0xf] }
 0x33f   :  { %7666 = vmatpush.bf16.msra.mxu2 %v9680_v50  ;;  %7679 = vmatpush.bf16.msra.mxu3 %v9808_v15  ;;  %v10397_v50 = vld [vmem:[#allocation5 + $0x7d8] sm:$0xf0]  ;;  %v14278_v15 = vld [vmem:[#allocation5 + $0x4ac] sm:$0xf] }
 0x340   :  { %7641 = vmatpush.bf16.msra.mxu0 %v9408_v10  ;;  %v10400_v54 = vor.u32 %v14378_v58, %v10397_v50  ;;  %v14374_v10 = vld [vmem:[#allocation5 + $0x7ac] sm:$0xf]  ;;  %v10381_v62 = vld [vmem:[#allocation5 + $0x7b8] sm:$0xf0]  ;;  %v10000_v45 = vor.u32 %v14278_v15, %v9997_v59 }
 0x341   :  { %7654 = vmatpush.bf16.msra.mxu1 %v9536_v61  ;;  %v10256_v61 = vor.u32 %v14342_v48, %v10253_v14  ;;  %v9981_v52 = vld [vmem:[#allocation5 + $0x498] sm:$0xf0]  ;;  %v14302_v5 = vld [vmem:[#allocation5 + $0x56c] sm:$0xf] }
 0x342   :  { %v10365_v63 = vld [vmem:[#allocation5 + $0x798] sm:$0xf0]  ;;  %v14366_v15 = vld [vmem:[#allocation5 + $0x76c] sm:$0xf] }
 0x343   :  { %7667 = vmatpush.bf16.msra.mxu2 %v9664_v46  ;;  %7680 = vmatpush.bf16.msra.mxu3 %v9792_v44  ;;  %v14274_v46 = vld [vmem:[#allocation5 + $0x48c] sm:$0xf]  ;;  %v10384_v44 = vor.u32 %v14374_v10, %v10381_v62  ;;  %v9965_v53 = vld [vmem:[#allocation5 + $0x478] sm:$0xf0] }
 0x344   :  { %7686 = vmatpush.bf16.msrb.mxu0 %v10032_v2  ;;  %7655 = vmatmul.bf16.vlgmr.msra.gmra.mxu1 %v15617_v30  ;;  %v14338_v2 = vld [vmem:[#allocation5 + $0x68c] sm:$0xf]  ;;  %v9984_v49 = vor.u32 %v14274_v46, %v9981_v52  ;;  %v7448_v30 = vpop.f32.mrf.mxu1  ;;  %v10349_v59 = vld [vmem:[#allocation5 + $0x778] sm:$0xf0]  ;;  %v9968_v51 = vor.u32 %v14270_v4, %v9965_v53 }
 0x345   :  { %7699 = vmatpush.bf16.msrb.mxu1 %v10160_v34  ;;  %7642 = vmatmul.bf16.vlgmr.msra.gmra.mxu0 %v15611_v17  ;;  %v10237_v34 = vld [vmem:[#allocation5 + $0x698] sm:$0xf0]  ;;  %v14370_v17 = vld [vmem:[#allocation5 + $0x78c] sm:$0xf]  ;;  %v10352_v10 = vor.u32 %v14366_v15, %v10349_v59 }
 0x346   :  { %7668 = vmatmul.bf16.vlgmr.msra.gmra.mxu2 %v15609_v16  ;;  %7681 = vmatmul.bf16.vlgmr.msra.gmra.mxu3 %v15613_v18  ;;  %v10109_v16 = vld [vmem:[#allocation5 + $0x598] sm:$0xf0]  ;;  %v10368_v58 = vor.u32 %v14370_v17, %v10365_v63  ;;  %v14266_v20 = vld [vmem:[#allocation5 + $0x44c] sm:$0xf] }
 0x347   :  { %7712 = vmatpush.bf16.msrb.mxu2 %v10288_v13  ;;  %7725 = vmatpush.bf16.msrb.mxu3 %v10416_v56  ;;  %v7435_v13 = vpop.f32.mrf.mxu0  ;;  %v10112_v60 = vor.u32 %v14306_v1, %v10109_v16  ;;  %v10240_v56 = vor.u32 %v14338_v2, %v10237_v34  ;;  %v9949_v48 = vld [vmem:[#allocation5 + $0x458] sm:$0xf0]  ;;  %v14298_v14 = vld [vmem:[#allocation5 + $0x54c] sm:$0xf] }
 0x348   :  { %7687 = vmatpush.bf16.msrb.mxu0 %v10016_v22  ;;  %v7436_v18 = vadd.f32 %v7435_v13, %v15859_v28  ;;  %v10093_v22 = vld [vmem:[#allocation5 + $0x578] sm:$0xf0]  ;;  %v14362_v1 = vld [vmem:[#allocation5 + $0x74c] sm:$0xf]  ;;  %v9952_v2 = vor.u32 %v14266_v20, %v9949_v48 }
 0x349   :  { %7700 = vmatpush.bf16.msrb.mxu1 %v10144_v42  ;;  %v14334_v42 = vld [vmem:[#allocation5 + $0x66c] sm:$0xf]  ;;  %v10096_v28 = vor.u32 %v14302_v5, %v10093_v22  ;;  %v7461_v62 = vpop.f32.mrf.mxu2  ;;  %v7474_v52 = vpop.f32.mrf.mxu3  ;;  %v10189_v53 = vld [vmem:[#allocation5 + $0x638] sm:$0xf0] }
 0x34a   :  { %v7449_v50 = vadd.f32 %v7448_v30, %v7436_v18  ;;  %v14262_v18 = vld [vmem:[#allocation5 + $0x42c] sm:$0xf]  ;;  %v10173_v20 = vld [vmem:[#allocation5 + $0x618] sm:$0xf0] }
 0x34b   :  { %7713 = vmatpush.bf16.msrb.mxu2 %v10272_v57  ;;  %7726 = vmatpush.bf16.msrb.mxu3 %v10400_v54  ;;  %v10221_v57 = vld [vmem:[#allocation5 + $0x678] sm:$0xf0]  ;;  %v14294_v30 = vld [vmem:[#allocation5 + $0x52c] sm:$0xf] }
 0x34c   :  { %7688 = vmatpush.bf16.msrb.mxu0 %v10000_v45  ;;  %v10224_v54 = vor.u32 %v14334_v42, %v10221_v57  ;;  %v10077_v45 = vld [vmem:[#allocation5 + $0x558] sm:$0xf0]  ;;  %v7462_v46 = vadd.f32 %v7461_v62, %v7449_v50  ;;  %v7450_v34 = vpop.f32.mrf.mxu1  ;;  %v14326_v4 = vld [vmem:[#allocation5 + $0x62c] sm:$0xf] }
 0x34d   :  { %7701 = vmatpush.bf16.msrb.mxu1 %v10128_v55  ;;  %v14330_v55 = vld [vmem:[#allocation5 + $0x64c] sm:$0xf]  ;;  %v10080_v17 = vor.u32 %v14298_v14, %v10077_v45  ;;  %v9917_v42 = vld [vmem:[#allocation5 + $0x418] sm:$0xf0]  ;;  %v10192_v15 = vor.u32 %v14326_v4, %v10189_v53 }
 0x34e   :  { %v15866_v13 = vadd.f32 %v7474_v52, %v7462_v46  ;;  %v14358_v5 = vld [vmem:[#allocation5 + $0x72c] sm:$0xf]  ;;  %v10301_v14 = vld [vmem:[#allocation5 + $0x718] sm:$0xf0] }
 0x34f   :  { %7714 = vmatpush.bf16.msrb.mxu2 %v10256_v61  ;;  %7727 = vmatpush.bf16.msrb.mxu3 %v10384_v44  ;;  %v10205_v61 = vld [vmem:[#allocation5 + $0x658] sm:$0xf0]  ;;  %v7437_v16 = vpop.f32.mrf.mxu0  ;;  %v14258_v22 = vld [vmem:[#allocation5 + $0x40c] sm:$0xf] }
 0x350   :  { %7689 = vmatpush.bf16.msrb.mxu0 %v9984_v49  ;;  %v10333_v44 = vld [vmem:[#allocation5 + $0x758] sm:$0xf0]  ;;  %v10208_v63 = vor.u32 %v14330_v55, %v10205_v61  ;;  %v14290_v59 = vld [vmem:[#allocation5 + $0x50c] sm:$0xf]  ;;  %v9920_v46 = vor.u32 %v14258_v22, %v9917_v42 }
 0x351   :  { %7702 = vmatpush.bf16.msrb.mxu1 %v10112_v60  ;;  %v9933_v49 = vld [vmem:[#allocation5 + $0x438] sm:$0xf0]  ;;  %v10336_v60 = vor.u32 %v14362_v1, %v10333_v44  ;;  %v14354_v48 = vld [vmem:[#allocation5 + $0x70c] sm:$0xf]  ;;  %v7476_v61 = vpop.f32.mrf.mxu3 }
 0x352   :  { %v9936_v50 = vor.u32 %v14262_v18, %v9933_v49  ;;  %v14414_v62 = vld [vmem:[#allocation5 + $0x8ec] sm:$0xf]  ;;  %v10541_v45 = vld [vmem:[#allocation5 + $0x8f8] sm:$0xf0] }
 0x353   :  { %7715 = vmatpush.bf16.msrb.mxu2 %v10240_v56  ;;  %7728 = vmatpush.bf16.msrb.mxu3 %v10368_v58  ;;  %v10061_v56 = vld [vmem:[#allocation5 + $0x538] sm:$0xf0]  ;;  %v14446_v55 = vld [vmem:[#allocation5 + $0x9ec] sm:$0xf]  ;;  %v10544_v18 = vor.u32 %v14414_v62, %v10541_v45 }
 0x354   :  { %7690 = vmatpush.bf16.msrb.mxu0 %v9968_v51  ;;  %v10317_v58 = vld [vmem:[#allocation5 + $0x738] sm:$0xf0]  ;;  %v10064_v57 = vor.u32 %v14294_v30, %v10061_v56  ;;  %v14478_v1 = vld [vmem:[#allocation5 + $0xaec] sm:$0xf] }
 0x355   :  { %7703 = vmatpush.bf16.msrb.mxu1 %v10096_v28  ;;  %v10045_v51 = vld [vmem:[#allocation5 + $0x518] sm:$0xf0]  ;;  %v14322_v28 = vld [vmem:[#allocation5 + $0x60c] sm:$0xf] }
 0x356   :  { %v10669_v52 = vld [vmem:[#allocation5 + $0x9f8] sm:$0xf0]  ;;  %v10048_v16 = vor.u32 %v14290_v59, %v10045_v51  ;;  %v14510_v34 = vld [vmem:[#allocation5 + $0xbec] sm:$0xf] }
 0x357   :  { %7716 = vmatpush.bf16.msrb.mxu2 %v10224_v54  ;;  %7729 = vmatpush.bf16.msrb.mxu3 %v10352_v10  ;;  %v10320_v54 = vor.u32 %v14358_v5, %v10317_v58  ;;  %v7463_v10 = vpop.f32.mrf.mxu2  ;;  %v10797_v44 = vld [vmem:[#allocation5 + $0xaf8] sm:$0xf0]  ;;  %v10672_v49 = vor.u32 %v14446_v55, %v10669_v52  ;;  %v14442_v4 = vld [vmem:[#allocation5 + $0x9cc] sm:$0xf] }
 0x358   :  { %7691 = vmatpush.bf16.msrb.mxu0 %v9952_v2  ;;  %v10176_v2 = vor.u32 %v14322_v28, %v10173_v20  ;;  %v10800_v30 = vor.u32 %v14478_v1, %v10797_v44  ;;  %v10525_v56 = vld [vmem:[#allocation5 + $0x8d8] sm:$0xf0]  ;;  %v14474_v58 = vld [vmem:[#allocation5 + $0xacc] sm:$0xf] }
 0x359   :  { %7704 = vmatpush.bf16.msrb.mxu1 %v10080_v17  ;;  %v10925_v17 = vld [vmem:[#allocation5 + $0xbf8] sm:$0xf0]  ;;  %v14506_v22 = vld [vmem:[#allocation5 + $0xbcc] sm:$0xf] }
 0x35a   :  { %v10928_v53 = vor.u32 %v14510_v34, %v10925_v17  ;;  %v10653_v5 = vld [vmem:[#allocation5 + $0x9d8] sm:$0xf0]  ;;  %v14406_v51 = vld [vmem:[#allocation5 + $0x8ac] sm:$0xf] }
 0x35b   :  { %7717 = vmatpush.bf16.msrb.mxu2 %v10208_v63  ;;  %7730 = vmatpush.bf16.msrb.mxu3 %v10336_v60  ;;  %v10304_v63 = vor.u32 %v14354_v48, %v10301_v14  ;;  %v14410_v60 = vld [vmem:[#allocation5 + $0x8cc] sm:$0xf]  ;;  %v10909_v42 = vld [vmem:[#allocation5 + $0xbd8] sm:$0xf0] }
 0x35c   :  { %7692 = vmatpush.bf16.msrb.mxu0 %v9936_v50  ;;  %v10781_v50 = vld [vmem:[#allocation5 + $0xad8] sm:$0xf0]  ;;  %v10912_v20 = vor.u32 %v14506_v22, %v10909_v42  ;;  %v14470_v14 = vld [vmem:[#allocation5 + $0xaac] sm:$0xf] }
 0x35d   :  { %7705 = vmatpush.bf16.msrb.mxu1 %v10064_v57  ;;  %v10528_v57 = vor.u32 %v14410_v60, %v10525_v56  ;;  %v10784_v59 = vor.u32 %v14474_v58, %v10781_v50  ;;  %v10509_v28 = vld [vmem:[#allocation5 + $0x8b8] sm:$0xf0]  ;;  %v14502_v62 = vld [vmem:[#allocation5 + $0xbac] sm:$0xf] }
 0x35e   :  { %v10637_v48 = vld [vmem:[#allocation5 + $0x9b8] sm:$0xf0]  ;;  %v10512_v55 = vor.u32 %v14406_v51, %v10509_v28  ;;  %v14402_v52 = vld [vmem:[#allocation5 + $0x88c] sm:$0xf] }
 0x35f   :  { %7718 = vmatpush.bf16.msrb.mxu2 %v10192_v15  ;;  %7731 = vmatpush.bf16.msrb.mxu3 %v10320_v54  ;;  %v10656_v15 = vor.u32 %v14442_v4, %v10653_v5  ;;  %v14438_v54 = vld [vmem:[#allocation5 + $0x9ac] sm:$0xf]  ;;  %v10765_v10 = vld [vmem:[#allocation5 + $0xab8] sm:$0xf0] }
 0x360   :  { %7693 = vmatpush.bf16.msrb.mxu0 %v9920_v46  ;;  %v10893_v45 = vld [vmem:[#allocation5 + $0xbb8] sm:$0xf0]  ;;  %v10640_v61 = vor.u32 %v14438_v54, %v10637_v48  ;;  %v10768_v46 = vor.u32 %v14470_v14, %v10765_v10  ;;  %v14398_v60 = vld [vmem:[#allocation5 + $0x86c] sm:$0xf] }
 0x361   :  { %7706 = vmatpush.bf16.msrb.mxu1 %v10048_v16  ;;  %v10493_v1 = vld [vmem:[#allocation5 + $0x898] sm:$0xf0]  ;;  %v10896_v44 = vor.u32 %v14502_v62, %v10893_v45  ;;  %v14430_v4 = vld [vmem:[#allocation5 + $0x96c] sm:$0xf] }
 0x362   :  { %v10621_v16 = vld [vmem:[#allocation5 + $0x998] sm:$0xf0]  ;;  %v7487_v17 = vpop.f32.mrf.mxu0  ;;  %v14462_v50 = vld [vmem:[#allocation5 + $0xa6c] sm:$0xf] }
 0x363   :  { %7719 = vmatpush.bf16.msrb.mxu2 %v10176_v2  ;;  %7732 = vmatpush.bf16.msrb.mxu3 %v10304_v63  ;;  %v14466_v2 = vld [vmem:[#allocation5 + $0xa8c] sm:$0xf]  ;;  %v10749_v34 = vld [vmem:[#allocation5 + $0xa98] sm:$0xf0] }
 0x364   :  { %7738 = vmatpush.bf16.msra.mxu0 %v10544_v18  ;;  %7707 = vmatmul.bf16.vlgmr.msrb.gmra.mxu1 %v15632_v41  ;;  %v10877_v63 = vld [vmem:[#allocation5 + $0xb98] sm:$0xf0]  ;;  %v10496_v18 = vor.u32 %v14402_v52, %v10493_v1  ;;  %v7500_v41 = vpop.f32.mrf.mxu1  ;;  %v14494_v42 = vld [vmem:[#allocation5 + $0xb6c] sm:$0xf] }
 0x365   :  { %7751 = vmatpush.bf16.msra.mxu1 %v10672_v49  ;;  %7694 = vmatmul.bf16.vlgmr.msrb.gmra.mxu0 %v15628_v39  ;;  %v14498_v39 = vld [vmem:[#allocation5 + $0xb8c] sm:$0xf]  ;;  %v10477_v56 = vld [vmem:[#allocation5 + $0x878] sm:$0xf0] }
 0x366   :  { %7720 = vmatmul.bf16.vlgmr.msrb.gmra.mxu2 %v15626_v36  ;;  %7733 = vmatmul.bf16.vlgmr.msrb.gmra.mxu3 %v15630_v40  ;;  %v14434_v36 = vld [vmem:[#allocation5 + $0x98c] sm:$0xf]  ;;  %v7488_v40 = vadd.f32 %v7487_v17, %v15866_v13  ;;  %v10605_v58 = vld [vmem:[#allocation5 + $0x978] sm:$0xf0] }
 0x367   :  { %7764 = vmatpush.bf16.msra.mxu2 %v10800_v30  ;;  %7777 = vmatpush.bf16.msra.mxu3 %v10928_v53  ;;  %v10624_v49 = vor.u32 %v14434_v36, %v10621_v16  ;;  %v10752_v30 = vor.u32 %v14466_v2, %v10749_v34  ;;  %v10880_v53 = vor.u32 %v14498_v39, %v10877_v63  ;;  %v10733_v22 = vld [vmem:[#allocation5 + $0xa78] sm:$0xf0]  ;;  %v14394_v51 = vld [vmem:[#allocation5 + $0x84c] sm:$0xf] }
 0x368   :  { %7739 = vmatpush.bf16.msra.mxu0 %v10528_v57  ;;  %v7501_v5 = vadd.f32 %v7500_v41, %v7488_v40  ;;  %v10861_v57 = vld [vmem:[#allocation5 + $0xb78] sm:$0xf0]  ;;  %v10608_v13 = vor.u32 %v14430_v4, %v10605_v58  ;;  %v14426_v54 = vld [vmem:[#allocation5 + $0x94c] sm:$0xf] }
 0x369   :  { %7752 = vmatpush.bf16.msra.mxu1 %v10656_v15  ;;  %v10480_v15 = vor.u32 %v14398_v60, %v10477_v56  ;;  %v10461_v28 = vld [vmem:[#allocation5 + $0x858] sm:$0xf0]  ;;  %v7513_v48 = vpop.f32.mrf.mxu2  ;;  %v14458_v10 = vld [vmem:[#allocation5 + $0xa4c] sm:$0xf] }
 0x36a   :  { %v10589_v14 = vld [vmem:[#allocation5 + $0x958] sm:$0xf0]  ;;  %v7514_v45 = vadd.f32 %v7513_v48, %v7501_v5  ;;  %v7489_v52 = vpop.f32.mrf.mxu0  ;;  %v10464_v1 = vor.u32 %v14394_v51, %v10461_v28  ;;  %v14390_v34 = vld [vmem:[#allocation5 + $0x82c] sm:$0xf] }
 0x36b   :  { %7765 = vmatpush.bf16.msra.mxu2 %v10784_v59  ;;  %7778 = vmatpush.bf16.msra.mxu3 %v10912_v20  ;;  %v10736_v59 = vor.u32 %v14462_v50, %v10733_v22  ;;  %v10864_v20 = vor.u32 %v14494_v42, %v10861_v57  ;;  %v10717_v62 = vld [vmem:[#allocation5 + $0xa58] sm:$0xf0]  ;;  %v10592_v16 = vor.u32 %v14426_v54, %v10589_v14  ;;  %v14422_v39 = vld [vmem:[#allocation5 + $0x92c] sm:$0xf] }
 0x36c   :  { %7740 = vmatpush.bf16.msra.mxu0 %v10512_v55  ;;  %v7526_v55 = vpop.f32.mrf.mxu3  ;;  %v7502_v36 = vpop.f32.mrf.mxu1  ;;  %v10720_v2 = vor.u32 %v14458_v10, %v10717_v62  ;;  %v10445_v17 = vld [vmem:[#allocation5 + $0x838] sm:$0xf0]  ;;  %v14386_v56 = vld [vmem:[#allocation5 + $0x80c] sm:$0xf] }
 0x36d   :  { %7753 = vmatpush.bf16.msra.mxu1 %v10640_v61  ;;  %v14490_v61 = vld [vmem:[#allocation5 + $0xb4c] sm:$0xf]  ;;  %v10573_v40 = vld [vmem:[#allocation5 + $0x938] sm:$0xf0]  ;;  %v10448_v60 = vor.u32 %v14390_v34, %v10445_v17 }
 0x36e   :  { %v10701_v41 = vld [vmem:[#allocation5 + $0xa38] sm:$0xf0]  ;;  %v14418_v58 = vld [vmem:[#allocation5 + $0x90c] sm:$0xf] }
 0x36f   :  { %7766 = vmatpush.bf16.msra.mxu2 %v10768_v46  ;;  %7779 = vmatpush.bf16.msra.mxu3 %v10896_v44  ;;  %v10845_v46 = vld [vmem:[#allocation5 + $0xb58] sm:$0xf0]  ;;  %v15873_v44 = vadd.f32 %v7526_v55, %v7514_v45  ;;  %v14450_v22 = vld [vmem:[#allocation5 + $0xa0c] sm:$0xf] }
 0x370   :  { %7741 = vmatpush.bf16.msra.mxu0 %v10496_v18  ;;  %v10848_v63 = vor.u32 %v14490_v61, %v10845_v46  ;;  %v14454_v18 = vld [vmem:[#allocation5 + $0xa2c] sm:$0xf]  ;;  %v10429_v4 = vld [vmem:[#allocation5 + $0x818] sm:$0xf0] }
 0x371   :  { %7754 = vmatpush.bf16.msra.mxu1 %v10624_v49  ;;  %v14486_v49 = vld [vmem:[#allocation5 + $0xb2c] sm:$0xf]  ;;  %v10704_v5 = vor.u32 %v14454_v18, %v10701_v41  ;;  %v10557_v50 = vld [vmem:[#allocation5 + $0x918] sm:$0xf0]  ;;  %v10432_v48 = vor.u32 %v14386_v56, %v10429_v4 }
 0x372   :  { %v10685_v57 = vld [vmem:[#allocation5 + $0xa18] sm:$0xf0]  ;;  %v14542_v51 = vld [vmem:[#allocation5 + $0xcec] sm:$0xf]  ;;  %v10560_v45 = vor.u32 %v14418_v58, %v10557_v50 }
 0x373   :  { %7767 = vmatpush.bf16.msra.mxu2 %v10752_v30  ;;  %7780 = vmatpush.bf16.msra.mxu3 %v10880_v53  ;;  %v10829_v30 = vld [vmem:[#allocation5 + $0xb38] sm:$0xf0]  ;;  %v10576_v53 = vor.u32 %v14422_v39, %v10573_v40  ;;  %v14574_v54 = vld [vmem:[#allocation5 + $0xdec] sm:$0xf]  ;;  %v10688_v55 = vor.u32 %v14450_v22, %v10685_v57 }
 0x374   :  { %7742 = vmatpush.bf16.msra.mxu0 %v10480_v15  ;;  %v10832_v42 = vor.u32 %v14486_v49, %v10829_v30  ;;  %v14482_v15 = vld [vmem:[#allocation5 + $0xb0c] sm:$0xf]  ;;  %v11053_v28 = vld [vmem:[#allocation5 + $0xcf8] sm:$0xf0] }
 0x375   :  { %7755 = vmatpush.bf16.msra.mxu1 %v10608_v13  ;;  %v10813_v13 = vld [vmem:[#allocation5 + $0xb18] sm:$0xf0]  ;;  %v14606_v10 = vld [vmem:[#allocation5 + $0xeec] sm:$0xf] }
 0x376   :  { %v11181_v14 = vld [vmem:[#allocation5 + $0xdf8] sm:$0xf0]  ;;  %v14638_v61 = vld [vmem:[#allocation5 + $0xfec] sm:$0xf]  ;;  %v10816_v52 = vor.u32 %v14482_v15, %v10813_v13 }
 0x377   :  { %7768 = vmatpush.bf16.msra.mxu2 %v10736_v59  ;;  %7781 = vmatpush.bf16.msra.mxu3 %v10864_v20  ;;  %v7515_v59 = vpop.f32.mrf.mxu2  ;;  %v7528_v20 = vpop.f32.mrf.mxu3  ;;  %v11309_v62 = vld [vmem:[#allocation5 + $0xef8] sm:$0xf0]  ;;  %v11184_v36 = vor.u32 %v14574_v54, %v11181_v14  ;;  %v14570_v17 = vld [vmem:[#allocation5 + $0xdcc] sm:$0xf] }
 0x378   :  { %7743 = vmatpush.bf16.msra.mxu0 %v10464_v1  ;;  %v11437_v46 = vld [vmem:[#allocation5 + $0xff8] sm:$0xf0]  ;;  %v11056_v1 = vor.u32 %v14542_v51, %v11053_v28  ;;  %v14602_v40 = vld [vmem:[#allocation5 + $0xecc] sm:$0xf] }
 0x379   :  { %7756 = vmatpush.bf16.msra.mxu1 %v10592_v16  ;;  %v11312_v16 = vor.u32 %v14606_v10, %v11309_v62  ;;  %v11037_v34 = vld [vmem:[#allocation5 + $0xcd8] sm:$0xf0]  ;;  %v11440_v39 = vor.u32 %v14638_v61, %v11437_v46  ;;  %v14634_v41 = vld [vmem:[#allocation5 + $0xfcc] sm:$0xf] }
 0x37a   :  { %v11293_v18 = vld [vmem:[#allocation5 + $0xed8] sm:$0xf0]  ;;  %v14534_v4 = vld [vmem:[#allocation5 + $0xcac] sm:$0xf] }
 0x37b   :  { %7769 = vmatpush.bf16.msra.mxu2 %v10720_v2  ;;  %7782 = vmatpush.bf16.msra.mxu3 %v10848_v63  ;;  %v14538_v2 = vld [vmem:[#allocation5 + $0xccc] sm:$0xf]  ;;  %v11165_v63 = vld [vmem:[#allocation5 + $0xdd8] sm:$0xf0]  ;;  %v11296_v56 = vor.u32 %v14602_v40, %v11293_v18 }
 0x37c   :  { %7744 = vmatpush.bf16.msra.mxu0 %v10448_v60  ;;  %v11421_v49 = vld [vmem:[#allocation5 + $0xfd8] sm:$0xf0]  ;;  %v11040_v30 = vor.u32 %v14538_v2, %v11037_v34  ;;  %v11168_v60 = vor.u32 %v14570_v17, %v11165_v63  ;;  %v14598_v22 = vld [vmem:[#allocation5 + $0xeac] sm:$0xf] }
 0x37d   :  { %7757 = vmatpush.bf16.msra.mxu1 %v10576_v53  ;;  %v11021_v53 = vld [vmem:[#allocation5 + $0xcb8] sm:$0xf0]  ;;  %v11424_v58 = vor.u32 %v14634_v41, %v11421_v49  ;;  %v14630_v57 = vld [vmem:[#allocation5 + $0xfac] sm:$0xf] }
 0x37e   :  { %v11149_v50 = vld [vmem:[#allocation5 + $0xdb8] sm:$0xf0]  ;;  %v11024_v13 = vor.u32 %v14534_v4, %v11021_v53  ;;  %v14530_v28 = vld [vmem:[#allocation5 + $0xc8c] sm:$0xf] }
 0x37f   :  { %7770 = vmatpush.bf16.msra.mxu2 %v10704_v5  ;;  %7783 = vmatpush.bf16.msra.mxu3 %v10832_v42  ;;  %v14566_v5 = vld [vmem:[#allocation5 + $0xdac] sm:$0xf]  ;;  %v11277_v42 = vld [vmem:[#allocation5 + $0xeb8] sm:$0xf0] }
 0x380   :  { %7745 = vmatpush.bf16.msra.mxu0 %v10432_v48  ;;  %v11405_v15 = vld [vmem:[#allocation5 + $0xfb8] sm:$0xf0]  ;;  %v11152_v59 = vor.u32 %v14566_v5, %v11149_v50  ;;  %v11280_v51 = vor.u32 %v14598_v22, %v11277_v42  ;;  %v14562_v54 = vld [vmem:[#allocation5 + $0xd8c] sm:$0xf] }
 0x381   :  { %7758 = vmatpush.bf16.msra.mxu1 %v10560_v45  ;;  %v11408_v20 = vor.u32 %v14630_v57, %v11405_v15  ;;  %v11133_v48 = vld [vmem:[#allocation5 + $0xd98] sm:$0xf0]  ;;  %v14594_v14 = vld [vmem:[#allocation5 + $0xe8c] sm:$0xf] }
 0x382   :  { %v7539_v10 = vpop.f32.mrf.mxu0  ;;  %v11389_v62 = vld [vmem:[#allocation5 + $0xf98] sm:$0xf0]  ;;  %v11136_v61 = vor.u32 %v14562_v54, %v11133_v48  ;;  %v14590_v17 = vld [vmem:[#allocation5 + $0xe6c] sm:$0xf] }
 0x383   :  { %7771 = vmatpush.bf16.msra.mxu2 %v10688_v55  ;;  %7784 = vmatpush.bf16.msra.mxu3 %v10816_v52  ;;  %v7552_v55 = vpop.f32.mrf.mxu1  ;;  %v14526_v52 = vld [vmem:[#allocation5 + $0xc6c] sm:$0xf]  ;;  %v11117_v34 = vld [vmem:[#allocation5 + $0xd78] sm:$0xf0] }
 0x384   :  { %7790 = vmatpush.bf16.msrb.mxu0 %v11056_v1  ;;  %7759 = vmatmul.bf16.vlgmr.msra.gmra.mxu1 %v15648_v26  ;;  %v14626_v26 = vld [vmem:[#allocation5 + $0xf8c] sm:$0xf]  ;;  %v10989_v1 = vld [vmem:[#allocation5 + $0xc78] sm:$0xf0] }
 0x385   :  { %7803 = vmatpush.bf16.msrb.mxu1 %v11184_v36  ;;  %7746 = vmatmul.bf16.vlgmr.msra.gmra.mxu0 %v15644_v21  ;;  %v11005_v21 = vld [vmem:[#allocation5 + $0xc98] sm:$0xf0]  ;;  %v14558_v36 = vld [vmem:[#allocation5 + $0xd6c] sm:$0xf]  ;;  %v10992_v18 = vor.u32 %v14526_v52, %v10989_v1 }
 0x386   :  { %7772 = vmatmul.bf16.vlgmr.msra.gmra.mxu2 %v15646_v25  ;;  %7785 = vmatmul.bf16.vlgmr.msra.gmra.mxu3 %v15650_v29  ;;  %v11261_v25 = vld [vmem:[#allocation5 + $0xe98] sm:$0xf0]  ;;  %v7540_v29 = vadd.f32 %v7539_v10, %v15873_v44  ;;  %v11008_v45 = vor.u32 %v14530_v28, %v11005_v21  ;;  %v14622_v63 = vld [vmem:[#allocation5 + $0xf6c] sm:$0xf]  ;;  %v11120_v44 = vor.u32 %v14558_v36, %v11117_v34 }
 0x387   :  { %7816 = vmatpush.bf16.msrb.mxu2 %v11312_v16  ;;  %7829 = vmatpush.bf16.msrb.mxu3 %v11440_v39  ;;  %v11264_v46 = vor.u32 %v14594_v14, %v11261_v25  ;;  %v11392_v16 = vor.u32 %v14626_v26, %v11389_v62  ;;  %v11245_v39 = vld [vmem:[#allocation5 + $0xe78] sm:$0xf0]  ;;  %v14522_v49 = vld [vmem:[#allocation5 + $0xc4c] sm:$0xf] }
 0x388   :  { %7791 = vmatpush.bf16.msrb.mxu0 %v11040_v30  ;;  %v7553_v2 = vadd.f32 %v7552_v55, %v7540_v29  ;;  %v11373_v40 = vld [vmem:[#allocation5 + $0xf78] sm:$0xf0]  ;;  %v11248_v41 = vor.u32 %v14590_v17, %v11245_v39  ;;  %v14586_v5 = vld [vmem:[#allocation5 + $0xe4c] sm:$0xf] }
 0x389   :  { %7804 = vmatpush.bf16.msrb.mxu1 %v11168_v60  ;;  %v10973_v30 = vld [vmem:[#allocation5 + $0xc58] sm:$0xf0]  ;;  %v14554_v60 = vld [vmem:[#allocation5 + $0xd4c] sm:$0xf]  ;;  %v7565_v4 = vpop.f32.mrf.mxu2  ;;  %v7578_v22 = vpop.f32.mrf.mxu3 }
 0x38a   :  { %v11101_v53 = vld [vmem:[#allocation5 + $0xd58] sm:$0xf0]  ;;  %v7566_v50 = vadd.f32 %v7565_v4, %v7553_v2  ;;  %v14618_v42 = vld [vmem:[#allocation5 + $0xf4c] sm:$0xf]  ;;  %v7541_v15 = vpop.f32.mrf.mxu0 }
 0x38b   :  { %7817 = vmatpush.bf16.msrb.mxu2 %v11296_v56  ;;  %7830 = vmatpush.bf16.msrb.mxu3 %v11424_v58  ;;  %v11376_v56 = vor.u32 %v14622_v63, %v11373_v40  ;;  %v11229_v58 = vld [vmem:[#allocation5 + $0xe58] sm:$0xf0]  ;;  %v11104_v28 = vor.u32 %v14554_v60, %v11101_v53  ;;  %v14518_v54 = vld [vmem:[#allocation5 + $0xc2c] sm:$0xf] }
 0x38c   :  { %7792 = vmatpush.bf16.msrb.mxu0 %v11024_v13  ;;  %v11357_v57 = vld [vmem:[#allocation5 + $0xf58] sm:$0xf0]  ;;  %v10976_v13 = vor.u32 %v14522_v49, %v10973_v30  ;;  %v11232_v21 = vor.u32 %v14586_v5, %v11229_v58  ;;  %v14550_v48 = vld [vmem:[#allocation5 + $0xd2c] sm:$0xf] }
 0x38d   :  { %7805 = vmatpush.bf16.msrb.mxu1 %v11152_v59  ;;  %v7554_v59 = vpop.f32.mrf.mxu1  ;;  %v11360_v14 = vor.u32 %v14618_v42, %v11357_v57  ;;  %v11085_v25 = vld [vmem:[#allocation5 + $0xd38] sm:$0xf0]  ;;  %v14582_v10 = vld [vmem:[#allocation5 + $0xe2c] sm:$0xf] }
 0x38e   :  { %v11213_v26 = vld [vmem:[#allocation5 + $0xe38] sm:$0xf0]  ;;  %v14614_v62 = vld [vmem:[#allocation5 + $0xf2c] sm:$0xf] }
 0x38f   :  { %7818 = vmatpush.bf16.msrb.mxu2 %v11280_v51  ;;  %7831 = vmatpush.bf16.msrb.mxu3 %v11408_v20  ;;  %v15880_v51 = vadd.f32 %v7578_v22, %v7566_v50  ;;  %v10957_v20 = vld [vmem:[#allocation5 + $0xc38] sm:$0xf0]  ;;  %v14514_v55 = vld [vmem:[#allocation5 + $0xc0c] sm:$0xf]  ;;  %v11216_v52 = vor.u32 %v14582_v10, %v11213_v26 }
 0x390   :  { %7793 = vmatpush.bf16.msrb.mxu0 %v11008_v45  ;;  %v11341_v29 = vld [vmem:[#allocation5 + $0xf38] sm:$0xf0]  ;;  %v10960_v45 = vor.u32 %v14518_v54, %v10957_v20  ;;  %v14546_v1 = vld [vmem:[#allocation5 + $0xd0c] sm:$0xf] }
 0x391   :  { %7806 = vmatpush.bf16.msrb.mxu1 %v11136_v61  ;;  %v10941_v61 = vld [vmem:[#allocation5 + $0xc18] sm:$0xf0]  ;;  %v11344_v2 = vor.u32 %v14614_v62, %v11341_v29  ;;  %v14610_v17 = vld [vmem:[#allocation5 + $0xf0c] sm:$0xf]  ;;  %v7567_v63 = vpop.f32.mrf.mxu2 }
 0x392   :  { %v11069_v36 = vld [vmem:[#allocation5 + $0xd18] sm:$0xf0]  ;;  %v14670_v40 = vld [vmem:[#allocation5 + $0x10ec] sm:$0xf]  ;;  %v10944_v49 = vor.u32 %v14514_v55, %v10941_v61 }
 0x393   :  { %7819 = vmatpush.bf16.msrb.mxu2 %v11264_v46  ;;  %7832 = vmatpush.bf16.msrb.mxu3 %v11392_v16  ;;  %v11088_v46 = vor.u32 %v14550_v48, %v11085_v25  ;;  %v14578_v16 = vld [vmem:[#allocation5 + $0xe0c] sm:$0xf]  ;;  %v11197_v34 = vld [vmem:[#allocation5 + $0xe18] sm:$0xf0]  ;;  %v11072_v4 = vor.u32 %v14546_v1, %v11069_v36 }
 0x394   :  { %7794 = vmatpush.bf16.msrb.mxu0 %v10992_v18  ;;  %v11325_v39 = vld [vmem:[#allocation5 + $0xf18] sm:$0xf0]  ;;  %v14734_v60 = vld [vmem:[#allocation5 + $0x12ec] sm:$0xf]  ;;  %v11200_v53 = vor.u32 %v14578_v16, %v11197_v34 }
 0x395   :  { %7807 = vmatpush.bf16.msrb.mxu1 %v11120_v44  ;;  %v11565_v18 = vld [vmem:[#allocation5 + $0x10f8] sm:$0xf0]  ;;  %v14702_v44 = vld [vmem:[#allocation5 + $0x11ec] sm:$0xf]  ;;  %v11328_v50 = vor.u32 %v14610_v17, %v11325_v39 }
 0x396   :  { %v11693_v30 = vld [vmem:[#allocation5 + $0x11f8] sm:$0xf0]  ;;  %v14766_v5 = vld [vmem:[#allocation5 + $0x13ec] sm:$0xf]  ;;  %v11568_v22 = vor.u32 %v14670_v40, %v11565_v18 }
 0x397   :  { %7820 = vmatpush.bf16.msrb.mxu2 %v11248_v41  ;;  %7833 = vmatpush.bf16.msrb.mxu3 %v11376_v56  ;;  %v7580_v41 = vpop.f32.mrf.mxu3  ;;  %v11821_v56 = vld [vmem:[#allocation5 + $0x12f8] sm:$0xf0]  ;;  %v11696_v42 = vor.u32 %v14702_v44, %v11693_v30  ;;  %v14666_v15 = vld [vmem:[#allocation5 + $0x10cc] sm:$0xf] }
 0x398   :  { %7795 = vmatpush.bf16.msrb.mxu0 %v10976_v13  ;;  %v11949_v58 = vld [vmem:[#allocation5 + $0x13f8] sm:$0xf0]  ;;  %v11824_v57 = vor.u32 %v14734_v60, %v11821_v56  ;;  %v14698_v59 = vld [vmem:[#allocation5 + $0x11cc] sm:$0xf] }
 0x399   :  { %7808 = vmatpush.bf16.msrb.mxu1 %v11104_v28  ;;  %v11549_v13 = vld [vmem:[#allocation5 + $0x10d8] sm:$0xf0]  ;;  %v11952_v28 = vor.u32 %v14766_v5, %v11949_v58  ;;  %v14730_v54 = vld [vmem:[#allocation5 + $0x12cc] sm:$0xf] }
 0x39a   :  { %v11805_v20 = vld [vmem:[#allocation5 + $0x12d8] sm:$0xf0]  ;;  %v14762_v48 = vld [vmem:[#allocation5 + $0x13cc] sm:$0xf]  ;;  %v11552_v25 = vor.u32 %v14666_v15, %v11549_v13 }
 0x39b   :  { %7821 = vmatpush.bf16.msrb.mxu2 %v11232_v21  ;;  %7834 = vmatpush.bf16.msrb.mxu3 %v11360_v14  ;;  %v11677_v21 = vld [vmem:[#allocation5 + $0x11d8] sm:$0xf0]  ;;  %v11808_v26 = vor.u32 %v14730_v54, %v11805_v20  ;;  %v14662_v62 = vld [vmem:[#allocation5 + $0x10ac] sm:$0xf] }
 0x39c   :  { %7796 = vmatpush.bf16.msrb.mxu0 %v10960_v45  ;;  %v11933_v14 = vld [vmem:[#allocation5 + $0x13d8] sm:$0xf0]  ;;  %v11680_v10 = vor.u32 %v14698_v59, %v11677_v21  ;;  %v14694_v45 = vld [vmem:[#allocation5 + $0x11ac] sm:$0xf] }
 0x39d   :  { %7809 = vmatpush.bf16.msrb.mxu1 %v11088_v46  ;;  %v11533_v29 = vld [vmem:[#allocation5 + $0x10b8] sm:$0xf0]  ;;  %v11936_v55 = vor.u32 %v14762_v48, %v11933_v14  ;;  %v14726_v46 = vld [vmem:[#allocation5 + $0x12ac] sm:$0xf] }
 0x39e   :  { %v11661_v61 = vld [vmem:[#allocation5 + $0x11b8] sm:$0xf0]  ;;  %v14758_v1 = vld [vmem:[#allocation5 + $0x13ac] sm:$0xf]  ;;  %v11536_v16 = vor.u32 %v14662_v62, %v11533_v29 }
 0x39f   :  { %7822 = vmatpush.bf16.msrb.mxu2 %v11216_v52  ;;  %7835 = vmatpush.bf16.msrb.mxu3 %v11344_v2  ;;  %v11789_v52 = vld [vmem:[#allocation5 + $0x12b8] sm:$0xf0]  ;;  %v11664_v2 = vor.u32 %v14694_v45, %v11661_v61  ;;  %v14658_v17 = vld [vmem:[#allocation5 + $0x108c] sm:$0xf] }
 0x3a0   :  { %7797 = vmatpush.bf16.msrb.mxu0 %v10944_v49  ;;  %v11917_v36 = vld [vmem:[#allocation5 + $0x13b8] sm:$0xf0]  ;;  %v11792_v34 = vor.u32 %v14726_v46, %v11789_v52  ;;  %v14690_v39 = vld [vmem:[#allocation5 + $0x118c] sm:$0xf] }
 0x3a1   :  { %7810 = vmatpush.bf16.msrb.mxu1 %v11072_v4  ;;  %v11920_v63 = vor.u32 %v14758_v1, %v11917_v36  ;;  %v11645_v40 = vld [vmem:[#allocation5 + $0x1198] sm:$0xf0]  ;;  %v14722_v18 = vld [vmem:[#allocation5 + $0x128c] sm:$0xf]  ;;  %v7604_v30 = vpop.f32.mrf.mxu1 }
 0x3a2   :  { %v7591_v44 = vpop.f32.mrf.mxu0  ;;  %v11901_v41 = vld [vmem:[#allocation5 + $0x1398] sm:$0xf0]  ;;  %v11648_v60 = vor.u32 %v14690_v39, %v11645_v40  ;;  %v14654_v4 = vld [vmem:[#allocation5 + $0x106c] sm:$0xf] }
 0x3a3   :  { %7823 = vmatpush.bf16.msrb.mxu2 %v11200_v53  ;;  %7836 = vmatpush.bf16.msrb.mxu3 %v11328_v50  ;;  %v11501_v53 = vld [vmem:[#allocation5 + $0x1078] sm:$0xf0]  ;;  %v14686_v5 = vld [vmem:[#allocation5 + $0x116c] sm:$0xf] }
 0x3a4   :  { %7842 = vmatpush.bf16.msra.mxu0 %v11568_v22  ;;  %7811 = vmatmul.bf16.vlgmr.msrb.gmra.mxu1 %v15664_v27  ;;  %v14754_v27 = vld [vmem:[#allocation5 + $0x138c] sm:$0xf]  ;;  %v11629_v22 = vld [vmem:[#allocation5 + $0x1178] sm:$0xf0]  ;;  %v11504_v59 = vor.u32 %v14654_v4, %v11501_v53 }
 0x3a5   :  { %7855 = vmatpush.bf16.msra.mxu1 %v11696_v42  ;;  %7798 = vmatmul.bf16.vlgmr.msrb.gmra.mxu0 %v15660_v19  ;;  %v11517_v19 = vld [vmem:[#allocation5 + $0x1098] sm:$0xf0]  ;;  %v11904_v58 = vor.u32 %v14754_v27, %v11901_v41  ;;  %v14718_v42 = vld [vmem:[#allocation5 + $0x126c] sm:$0xf] }
 0x3a6   :  { %7824 = vmatmul.bf16.vlgmr.msrb.gmra.mxu2 %v15662_v24  ;;  %7837 = vmatmul.bf16.vlgmr.msrb.gmra.mxu3 %v15666_v31  ;;  %v11773_v24 = vld [vmem:[#allocation5 + $0x1298] sm:$0xf0]  ;;  %v7592_v31 = vadd.f32 %v7591_v44, %v15880_v51  ;;  %v11520_v49 = vor.u32 %v14658_v17, %v11517_v19  ;;  %v14750_v15 = vld [vmem:[#allocation5 + $0x136c] sm:$0xf]  ;;  %v11632_v51 = vor.u32 %v14686_v5, %v11629_v22 }
 0x3a7   :  { %7868 = vmatpush.bf16.msra.mxu2 %v11824_v57  ;;  %7881 = vmatpush.bf16.msra.mxu3 %v11952_v28  ;;  %v11776_v56 = vor.u32 %v14722_v18, %v11773_v24  ;;  %v11757_v57 = vld [vmem:[#allocation5 + $0x1278] sm:$0xf0]  ;;  %v14650_v21 = vld [vmem:[#allocation5 + $0x104c] sm:$0xf] }
 0x3a8   :  { %7843 = vmatpush.bf16.msra.mxu0 %v11552_v25  ;;  %v7605_v50 = vadd.f32 %v7604_v30, %v7592_v31  ;;  %v11885_v13 = vld [vmem:[#allocation5 + $0x1378] sm:$0xf0]  ;;  %v11760_v28 = vor.u32 %v14718_v42, %v11757_v57  ;;  %v14682_v20 = vld [vmem:[#allocation5 + $0x114c] sm:$0xf] }
 0x3a9   :  { %7856 = vmatpush.bf16.msra.mxu1 %v11680_v10  ;;  %v11485_v54 = vld [vmem:[#allocation5 + $0x1058] sm:$0xf0]  ;;  %v11888_v48 = vor.u32 %v14750_v15, %v11885_v13  ;;  %v7617_v14 = vpop.f32.mrf.mxu2  ;;  %v14714_v10 = vld [vmem:[#allocation5 + $0x124c] sm:$0xf]  ;;  %v7630_v29 = vpop.f32.mrf.mxu3 }
 0x3aa   :  { %v11613_v25 = vld [vmem:[#allocation5 + $0x1158] sm:$0xf0]  ;;  %v7618_v62 = vadd.f32 %v7617_v14, %v7605_v50  ;;  %v14746_v45 = vld [vmem:[#allocation5 + $0x134c] sm:$0xf]  ;;  %v7593_v61 = vpop.f32.mrf.mxu0  ;;  %v11488_v46 = vor.u32 %v14650_v21, %v11485_v54  ;;  %v7606_v52 = vpop.f32.mrf.mxu1 }
 0x3ab   :  { %7869 = vmatpush.bf16.msra.mxu2 %v11808_v26  ;;  %7882 = vmatpush.bf16.msra.mxu3 %v11936_v55  ;;  %v11741_v26 = vld [vmem:[#allocation5 + $0x1258] sm:$0xf0]  ;;  %v11616_v36 = vor.u32 %v14682_v20, %v11613_v25  ;;  %v14678_v17 = vld [vmem:[#allocation5 + $0x112c] sm:$0xf] }
 0x3ac   :  { %7844 = vmatpush.bf16.msra.mxu0 %v11536_v16  ;;  %v11869_v55 = vld [vmem:[#allocation5 + $0x1358] sm:$0xf0]  ;;  %v15887_v1 = vadd.f32 %v7630_v29, %v7618_v62  ;;  %v11744_v16 = vor.u32 %v14714_v10, %v11741_v26  ;;  %v14742_v18 = vld [vmem:[#allocation5 + $0x132c] sm:$0xf] }
 0x3ad   :  { %7857 = vmatpush.bf16.msra.mxu1 %v11664_v2  ;;  %v14646_v2 = vld [vmem:[#allocation5 + $0x102c] sm:$0xf]  ;;  %v11872_v19 = vor.u32 %v14746_v45, %v11869_v55  ;;  %v11597_v39 = vld [vmem:[#allocation5 + $0x1138] sm:$0xf0] }
 0x3ae   :  { %v11725_v40 = vld [vmem:[#allocation5 + $0x1238] sm:$0xf0]  ;;  %v14642_v27 = vld [vmem:[#allocation5 + $0x100c] sm:$0xf]  ;;  %v11600_v31 = vor.u32 %v14678_v17, %v11597_v39 }
 0x3af   :  { %7870 = vmatpush.bf16.msra.mxu2 %v11792_v34  ;;  %7883 = vmatpush.bf16.msra.mxu3 %v11920_v63  ;;  %v11469_v34 = vld [vmem:[#allocation5 + $0x1038] sm:$0xf0]  ;;  %v14710_v63 = vld [vmem:[#allocation5 + $0x122c] sm:$0xf] }
 0x3b0   :  { %7845 = vmatpush.bf16.msra.mxu0 %v11520_v49  ;;  %v11853_v24 = vld [vmem:[#allocation5 + $0x1338] sm:$0xf0]  ;;  %v11472_v44 = vor.u32 %v14646_v2, %v11469_v34  ;;  %v11728_v49 = vor.u32 %v14710_v63, %v11725_v40  ;;  %v14674_v30 = vld [vmem:[#allocation5 + $0x110c] sm:$0xf] }
 0x3b1   :  { %7858 = vmatpush.bf16.msra.mxu1 %v11648_v60  ;;  %v11453_v41 = vld [vmem:[#allocation5 + $0x1018] sm:$0xf0]  ;;  %v11856_v4 = vor.u32 %v14742_v18, %v11853_v24  ;;  %v14738_v5 = vld [vmem:[#allocation5 + $0x130c] sm:$0xf]  ;;  %v7619_v50 = vpop.f32.mrf.mxu2  ;;  %v7632_v15 = vpop.f32.mrf.mxu3 }
 0x3b2   :  { %v11581_v60 = vld [vmem:[#allocation5 + $0x1118] sm:$0xf0]  ;;  %v14798_v22 = vld [vmem:[#allocation5 + $0x14ec] sm:$0xf]  ;;  %v11456_v13 = vor.u32 %v14642_v27, %v11453_v41 }
 0x3b3   :  { %7871 = vmatpush.bf16.msra.mxu2 %v11776_v56  ;;  %7884 = vmatpush.bf16.msra.mxu3 %v11904_v58  ;;  %v14706_v56 = vld [vmem:[#allocation5 + $0x120c] sm:$0xf]  ;;  %v11709_v53 = vld [vmem:[#allocation5 + $0x1218] sm:$0xf0]  ;;  %v11584_v21 = vor.u32 %v14674_v30, %v11581_v60 }
 0x3b4   :  { %7846 = vmatpush.bf16.msra.mxu0 %v11504_v59  ;;  %v11837_v58 = vld [vmem:[#allocation5 + $0x1318] sm:$0xf0]  ;;  %v14830_v57 = vld [vmem:[#allocation5 + $0x15ec] sm:$0xf]  ;;  %v11712_v54 = vor.u32 %v14706_v56, %v11709_v53 }
 0x3b5   :  { %7859 = vmatpush.bf16.msra.mxu1 %v11632_v51  ;;  %v12077_v42 = vld [vmem:[#allocation5 + $0x14f8] sm:$0xf0]  ;;  %v14862_v51 = vld [vmem:[#allocation5 + $0x16ec] sm:$0xf]  ;;  %v11840_v14 = vor.u32 %v14738_v5, %v11837_v58 }
 0x3b6   :  { %v12205_v59 = vld [vmem:[#allocation5 + $0x15f8] sm:$0xf0]  ;;  %v14894_v20 = vld [vmem:[#allocation5 + $0x17ec] sm:$0xf]  ;;  %v12080_v25 = vor.u32 %v14798_v22, %v12077_v42 }
 0x3b7   :  { %7872 = vmatpush.bf16.msra.mxu2 %v11760_v28  ;;  %7885 = vmatpush.bf16.msra.mxu3 %v11888_v48  ;;  %v12333_v28 = vld [vmem:[#allocation5 + $0x16f8] sm:$0xf0]  ;;  %v12208_v10 = vor.u32 %v14830_v57, %v12205_v59  ;;  %v14794_v62 = vld [vmem:[#allocation5 + $0x14cc] sm:$0xf] }
 0x3b8   :  { %7847 = vmatpush.bf16.msra.mxu0 %v11488_v46  ;;  %v12461_v48 = vld [vmem:[#allocation5 + $0x17f8] sm:$0xf0]  ;;  %v12336_v26 = vor.u32 %v14862_v51, %v12333_v28  ;;  %v14826_v45 = vld [vmem:[#allocation5 + $0x15cc] sm:$0xf] }
 0x3b9   :  { %7860 = vmatpush.bf16.msra.mxu1 %v11616_v36  ;;  %v12061_v29 = vld [vmem:[#allocation5 + $0x14d8] sm:$0xf0]  ;;  %v12464_v55 = vor.u32 %v14894_v20, %v12461_v48  ;;  %v14858_v46 = vld [vmem:[#allocation5 + $0x16cc] sm:$0xf] }
 0x3ba   :  { %v12189_v61 = vld [vmem:[#allocation5 + $0x15d8] sm:$0xf0]  ;;  %v14890_v36 = vld [vmem:[#allocation5 + $0x17cc] sm:$0xf]  ;;  %v12064_v2 = vor.u32 %v14794_v62, %v12061_v29 }
 0x3bb   :  { %7873 = vmatpush.bf16.msra.mxu2 %v11744_v16  ;;  %7886 = vmatpush.bf16.msra.mxu3 %v11872_v19  ;;  %v12317_v52 = vld [vmem:[#allocation5 + $0x16d8] sm:$0xf0]  ;;  %v12192_v34 = vor.u32 %v14826_v45, %v12189_v61  ;;  %v14790_v19 = vld [vmem:[#allocation5 + $0x14ac] sm:$0xf] }
 0x3bc   :  { %7848 = vmatpush.bf16.msra.mxu0 %v11472_v44  ;;  %v12445_v16 = vld [vmem:[#allocation5 + $0x17d8] sm:$0xf0]  ;;  %v12320_v17 = vor.u32 %v14858_v46, %v12317_v52  ;;  %v14822_v63 = vld [vmem:[#allocation5 + $0x15ac] sm:$0xf] }
 0x3bd   :  { %7861 = vmatpush.bf16.msra.mxu1 %v11600_v31  ;;  %v12045_v39 = vld [vmem:[#allocation5 + $0x14b8] sm:$0xf0]  ;;  %v12448_v40 = vor.u32 %v14890_v36, %v12445_v16  ;;  %v14854_v24 = vld [vmem:[#allocation5 + $0x16ac] sm:$0xf] }
 0x3be   :  { %v12173_v18 = vld [vmem:[#allocation5 + $0x15b8] sm:$0xf0]  ;;  %v14886_v27 = vld [vmem:[#allocation5 + $0x17ac] sm:$0xf]  ;;  %v12048_v31 = vor.u32 %v14790_v19, %v12045_v39 }
 0x3bf   :  { %7874 = vmatpush.bf16.msra.mxu2 %v11728_v49  ;;  %7887 = vmatpush.bf16.msra.mxu3 %v11856_v4  ;;  %v12301_v44 = vld [vmem:[#allocation5 + $0x16b8] sm:$0xf0]  ;;  %v14786_v49 = vld [vmem:[#allocation5 + $0x148c] sm:$0xf]  ;;  %v12176_v30 = vor.u32 %v14822_v63, %v12173_v18  ;;  %v15328_v4 = vld [vmem:[#allocation7] sm:$0xf] }
 0x3c0   :  { %7849 = vmatpush.bf16.msra.mxu0 %v11456_v13  ;;  %v12429_v41 = vld [vmem:[#allocation5 + $0x17b8] sm:$0xf0]  ;;  %v12304_v60 = vor.u32 %v14854_v24, %v12301_v44  ;;  %v14818_v56 = vld [vmem:[#allocation5 + $0x158c] sm:$0xf]  ;;  %v1261_v53 = vperm.slane %v15328_v4, 3 }
 0x3c1   :  { %7862 = vmatpush.bf16.msra.mxu1 %v11584_v21  ;;  %v12432_v5 = vor.u32 %v14886_v27, %v12429_v41  ;;  %v14850_v58 = vld [vmem:[#allocation5 + $0x168c] sm:$0xf]  ;;  %v12413_v22 = vld [vmem:[#allocation5 + $0x1798] sm:$0xf0]  ;;  %v7656_v21 = vpop.f32.mrf.mxu1 }
 0x3c2   :  { %v14882_v50 = vld [vmem:[#allocation5 + $0x178c] sm:$0xf]  ;;  %v7643_v42 = vpop.f32.mrf.mxu0  ;;  %v12013_v59 = vld [vmem:[#allocation5 + $0x1478] sm:$0xf0] }
 0x3c3   :  { %7875 = vmatpush.bf16.msra.mxu2 %v11712_v54  ;;  %7888 = vmatpush.bf16.msra.mxu3 %v11840_v14  ;;  %v14782_v13 = vld [vmem:[#allocation5 + $0x146c] sm:$0xf]  ;;  %v7644_v28 = vadd.f32 %v7643_v42, %v1261_v53  ;;  %v12416_v54 = vor.u32 %v14882_v50, %v12413_v22  ;;  %v12141_v20 = vld [vmem:[#allocation5 + $0x1578] sm:$0xf0] }
 0x3c4   :  { %7894 = vmatpush.bf16.msrb.mxu0 %v12080_v25  ;;  %7863 = vmatmul.bf16.vlgmr.msra.gmra.mxu1 %v15682_v38  ;;  %v12285_v38 = vld [vmem:[#allocation5 + $0x1698] sm:$0xf0]  ;;  %v14814_v51 = vld [vmem:[#allocation5 + $0x156c] sm:$0xf]  ;;  %v12016_v62 = vor.u32 %v14782_v13, %v12013_v59 }
 0x3c5   :  { %7907 = vmatpush.bf16.msrb.mxu1 %v12208_v10  ;;  %7850 = vmatmul.bf16.vlgmr.msra.gmra.mxu0 %v15678_v32  ;;  %v12029_v32 = vld [vmem:[#allocation5 + $0x1498] sm:$0xf0]  ;;  %v12288_v15 = vor.u32 %v14850_v58, %v12285_v38  ;;  %v14846_v48 = vld [vmem:[#allocation5 + $0x166c] sm:$0xf]  ;;  %v12144_v29 = vor.u32 %v14814_v51, %v12141_v20 }
 0x3c6   :  { %7876 = vmatmul.bf16.vlgmr.msra.gmra.mxu2 %v15680_v37  ;;  %7889 = vmatmul.bf16.vlgmr.msra.gmra.mxu3 %v15684_v43  ;;  %v12157_v37 = vld [vmem:[#allocation5 + $0x1598] sm:$0xf0]  ;;  %v12032_v43 = vor.u32 %v14786_v49, %v12029_v32  ;;  %v14878_v25 = vld [vmem:[#allocation5 + $0x176c] sm:$0xf] }
 0x3c7   :  { %7920 = vmatpush.bf16.msrb.mxu2 %v12336_v26  ;;  %7933 = vmatpush.bf16.msrb.mxu3 %v12464_v55  ;;  %v12160_v57 = vor.u32 %v14818_v56, %v12157_v37  ;;  %v12269_v14 = vld [vmem:[#allocation5 + $0x1678] sm:$0xf0]  ;;  %v7657_v26 = vadd.f32 %v7656_v21, %v7644_v28  ;;  %v14778_v55 = vld [vmem:[#allocation5 + $0x144c] sm:$0xf] }
 0x3c8   :  { %7895 = vmatpush.bf16.msrb.mxu0 %v12064_v2  ;;  %v12397_v10 = vld [vmem:[#allocation5 + $0x1778] sm:$0xf0]  ;;  %v12272_v45 = vor.u32 %v14846_v48, %v12269_v14  ;;  %v14810_v46 = vld [vmem:[#allocation5 + $0x154c] sm:$0xf] }
 0x3c9   :  { %7908 = vmatpush.bf16.msrb.mxu1 %v12192_v34  ;;  %v11997_v61 = vld [vmem:[#allocation5 + $0x1458] sm:$0xf0]  ;;  %v7669_v52 = vpop.f32.mrf.mxu2  ;;  %v12400_v36 = vor.u32 %v14878_v25, %v12397_v10  ;;  %v14842_v2 = vld [vmem:[#allocation5 + $0x164c] sm:$0xf]  ;;  %v7682_v19 = vpop.f32.mrf.mxu3 }
 0x3ca   :  { %v12125_v16 = vld [vmem:[#allocation5 + $0x1558] sm:$0xf0]  ;;  %v14874_v39 = vld [vmem:[#allocation5 + $0x174c] sm:$0xf]  ;;  %v7645_v24 = vpop.f32.mrf.mxu0 }
 0x3cb   :  { %7921 = vmatpush.bf16.msrb.mxu2 %v12320_v17  ;;  %7934 = vmatpush.bf16.msrb.mxu3 %v12448_v40  ;;  %v12253_v34 = vld [vmem:[#allocation5 + $0x1658] sm:$0xf0]  ;;  %v7670_v17 = vadd.f32 %v7669_v52, %v7657_v26  ;;  %v12000_v40 = vor.u32 %v14778_v55, %v11997_v61  ;;  %v12128_v44 = vor.u32 %v14810_v46, %v12125_v16  ;;  %v14774_v41 = vld [vmem:[#allocation5 + $0x142c] sm:$0xf] }
 0x3cc   :  { %7896 = vmatpush.bf16.msrb.mxu0 %v12048_v31  ;;  %v12381_v63 = vld [vmem:[#allocation5 + $0x1758] sm:$0xf0]  ;;  %v12256_v27 = vor.u32 %v14842_v2, %v12253_v34  ;;  %v14806_v49 = vld [vmem:[#allocation5 + $0x152c] sm:$0xf] }
 0x3cd   :  { %7909 = vmatpush.bf16.msrb.mxu1 %v12176_v30  ;;  %v15893_v18 = vadd.f32 %v7682_v19, %v7670_v17  ;;  %v11981_v31 = vld [vmem:[#allocation5 + $0x1438] sm:$0xf0]  ;;  %v7658_v30 = vpop.f32.mrf.mxu1  ;;  %v14838_v56 = vld [vmem:[#allocation5 + $0x162c] sm:$0xf] }
 0x3ce   :  { %v12109_v32 = vld [vmem:[#allocation5 + $0x1538] sm:$0xf0]  ;;  %v14870_v53 = vld [vmem:[#allocation5 + $0x172c] sm:$0xf]  ;;  %v11984_v37 = vor.u32 %v14774_v41, %v11981_v31 }
 0x3cf   :  { %7922 = vmatpush.bf16.msrb.mxu2 %v12304_v60  ;;  %7935 = vmatpush.bf16.msrb.mxu3 %v12432_v5  ;;  %v12384_v60 = vor.u32 %v14874_v39, %v12381_v63  ;;  %v12237_v4 = vld [vmem:[#allocation5 + $0x1638] sm:$0xf0]  ;;  %v14770_v58 = vld [vmem:[#allocation5 + $0x140c] sm:$0xf]  ;;  %v12112_v50 = vor.u32 %v14806_v49, %v12109_v32 }
 0x3d0   :  { %7897 = vmatpush.bf16.msrb.mxu0 %v12032_v43  ;;  %v12365_v5 = vld [vmem:[#allocation5 + $0x1738] sm:$0xf0]  ;;  %v12240_v22 = vor.u32 %v14838_v56, %v12237_v4  ;;  %v14802_v43 = vld [vmem:[#allocation5 + $0x150c] sm:$0xf] }
 0x3d1   :  { %7910 = vmatpush.bf16.msrb.mxu1 %v12160_v57  ;;  %v11965_v38 = vld [vmem:[#allocation5 + $0x1418] sm:$0xf0]  ;;  %v14834_v57 = vld [vmem:[#allocation5 + $0x160c] sm:$0xf]  ;;  %v12368_v13 = vor.u32 %v14870_v53, %v12365_v5  ;;  %v7684_v21 = vpop.f32.mrf.mxu3 }
 0x3d2   :  { %v12093_v42 = vld [vmem:[#allocation5 + $0x1518] sm:$0xf0]  ;;  %v14866_v51 = vld [vmem:[#allocation5 + $0x170c] sm:$0xf]  ;;  %v11968_v14 = vor.u32 %v14770_v58, %v11965_v38 }
 0x3d3   :  { %7923 = vmatpush.bf16.msrb.mxu2 %v12288_v15  ;;  %7936 = vmatpush.bf16.msrb.mxu3 %v12416_v54  ;;  %v7671_v15 = vpop.f32.mrf.mxu2  ;;  %v12221_v59 = vld [vmem:[#allocation5 + $0x1618] sm:$0xf0]  ;;  %v14926_v54 = vld [vmem:[#allocation5 + $0x18ec] sm:$0xf] }
 0x3d4   :  { %7898 = vmatpush.bf16.msrb.mxu0 %v12016_v62  ;;  %v12349_v28 = vld [vmem:[#allocation5 + $0x1718] sm:$0xf0]  ;;  %v14958_v48 = vld [vmem:[#allocation5 + $0x19ec] sm:$0xf]  ;;  %v12096_v62 = vor.u32 %v14802_v43, %v12093_v42 }
 0x3d5   :  { %7911 = vmatpush.bf16.msrb.mxu1 %v12144_v29  ;;  %v12589_v20 = vld [vmem:[#allocation5 + $0x18f8] sm:$0xf0]  ;;  %v14990_v10 = vld [vmem:[#allocation5 + $0x1aec] sm:$0xf]  ;;  %v12224_v29 = vor.u32 %v14834_v57, %v12221_v59  ;;  %v12352_v61 = vor.u32 %v14866_v51, %v12349_v28 }
 0x3d6   :  { %v12717_v25 = vld [vmem:[#allocation5 + $0x19f8] sm:$0xf0]  ;;  %v12592_v46 = vor.u32 %v14926_v54, %v12589_v20  ;;  %v14922_v16 = vld [vmem:[#allocation5 + $0x18cc] sm:$0xf] }
 0x3d7   :  { %7924 = vmatpush.bf16.msrb.mxu2 %v12272_v45  ;;  %7937 = vmatpush.bf16.msrb.mxu3 %v12400_v36  ;;  %v12845_v26 = vld [vmem:[#allocation5 + $0x1af8] sm:$0xf0]  ;;  %v15022_v45 = vld [vmem:[#allocation5 + $0x1bec] sm:$0xf]  ;;  %v12720_v52 = vor.u32 %v14958_v48, %v12717_v25 }
 0x3d8   :  { %7899 = vmatpush.bf16.msrb.mxu0 %v12000_v40  ;;  %v12973_v55 = vld [vmem:[#allocation5 + $0x1bf8] sm:$0xf0]  ;;  %v12848_v36 = vor.u32 %v14990_v10, %v12845_v26  ;;  %v14954_v34 = vld [vmem:[#allocation5 + $0x19cc] sm:$0xf] }
 0x3d9   :  { %7912 = vmatpush.bf16.msrb.mxu1 %v12128_v44  ;;  %v12573_v2 = vld [vmem:[#allocation5 + $0x18d8] sm:$0xf0]  ;;  %v12976_v17 = vor.u32 %v15022_v45, %v12973_v55  ;;  %v14986_v39 = vld [vmem:[#allocation5 + $0x1acc] sm:$0xf] }
 0x3da   :  { %v12701_v19 = vld [vmem:[#allocation5 + $0x19d8] sm:$0xf0]  ;;  %v15018_v40 = vld [vmem:[#allocation5 + $0x1bcc] sm:$0xf]  ;;  %v12576_v44 = vor.u32 %v14922_v16, %v12573_v2 }
 0x3db   :  { %7925 = vmatpush.bf16.msrb.mxu2 %v12256_v27  ;;  %7938 = vmatpush.bf16.msrb.mxu3 %v12384_v60  ;;  %v12829_v63 = vld [vmem:[#allocation5 + $0x1ad8] sm:$0xf0]  ;;  %v12704_v27 = vor.u32 %v14954_v34, %v12701_v19  ;;  %v14918_v31 = vld [vmem:[#allocation5 + $0x18ac] sm:$0xf] }
 0x3dc   :  { %7900 = vmatpush.bf16.msrb.mxu0 %v11984_v37  ;;  %v12957_v24 = vld [vmem:[#allocation5 + $0x1bd8] sm:$0xf0]  ;;  %v12832_v41 = vor.u32 %v14986_v39, %v12829_v63  ;;  %v14950_v30 = vld [vmem:[#allocation5 + $0x19ac] sm:$0xf] }
 0x3dd   :  { %7913 = vmatpush.bf16.msrb.mxu1 %v12112_v50  ;;  %v12557_v49 = vld [vmem:[#allocation5 + $0x18b8] sm:$0xf0]  ;;  %v12960_v60 = vor.u32 %v15018_v40, %v12957_v24  ;;  %v14982_v56 = vld [vmem:[#allocation5 + $0x1aac] sm:$0xf] }
 0x3de   :  { %v12685_v32 = vld [vmem:[#allocation5 + $0x19b8] sm:$0xf0]  ;;  %v15014_v53 = vld [vmem:[#allocation5 + $0x1bac] sm:$0xf]  ;;  %v12560_v37 = vor.u32 %v14918_v31, %v12557_v49 }
 0x3df   :  { %7926 = vmatpush.bf16.msrb.mxu2 %v12240_v22  ;;  %7939 = vmatpush.bf16.msrb.mxu3 %v12368_v13  ;;  %v12813_v4 = vld [vmem:[#allocation5 + $0x1ab8] sm:$0xf0]  ;;  %v12688_v58 = vor.u32 %v14950_v30, %v12685_v32  ;;  %v14914_v50 = vld [vmem:[#allocation5 + $0x188c] sm:$0xf] }
 0x3e0   :  { %7901 = vmatpush.bf16.msrb.mxu0 %v11968_v14  ;;  %v12941_v5 = vld [vmem:[#allocation5 + $0x1bb8] sm:$0xf0]  ;;  %v12816_v38 = vor.u32 %v14982_v56, %v12813_v4  ;;  %v14946_v22 = vld [vmem:[#allocation5 + $0x198c] sm:$0xf] }
 0x3e1   :  { %7914 = vmatpush.bf16.msrb.mxu1 %v12096_v62  ;;  %v12944_v43 = vor.u32 %v15014_v53, %v12941_v5  ;;  %v12669_v42 = vld [vmem:[#allocation5 + $0x1998] sm:$0xf0]  ;;  %v14978_v57 = vld [vmem:[#allocation5 + $0x1a8c] sm:$0xf]  ;;  %v7708_v48 = vpop.f32.mrf.mxu1 }
 0x3e2   :  { %v15010_v15 = vld [vmem:[#allocation5 + $0x1b8c] sm:$0xf]  ;;  %v7695_v59 = vpop.f32.mrf.mxu0  ;;  %v12525_v21 = vld [vmem:[#allocation5 + $0x1878] sm:$0xf0] }
 0x3e3   :  { %7927 = vmatpush.bf16.msrb.mxu2 %v12224_v29  ;;  %7940 = vmatpush.bf16.msrb.mxu3 %v12352_v61  ;;  %v14910_v28 = vld [vmem:[#allocation5 + $0x186c] sm:$0xf]  ;;  %v7696_v20 = vadd.f32 %v7695_v59, %v15893_v18  ;;  %v12653_v25 = vld [vmem:[#allocation5 + $0x1978] sm:$0xf0] }
 0x3e4   :  { %7946 = vmatpush.bf16.msra.mxu0 %v12592_v46  ;;  %7915 = vmatmul.bf16.vlgmr.msrb.gmra.mxu1 %v15700_v9  ;;  %v12925_v9 = vld [vmem:[#allocation5 + $0x1b98] sm:$0xf0]  ;;  %v14942_v54 = vld [vmem:[#allocation5 + $0x196c] sm:$0xf]  ;;  %v12528_v55 = vor.u32 %v14910_v28, %v12525_v21 }
 0x3e5   :  { %7959 = vmatpush.bf16.msra.mxu1 %v12720_v52  ;;  %7902 = vmatmul.bf16.vlgmr.msrb.gmra.mxu0 %v15696_v3  ;;  %v12541_v3 = vld [vmem:[#allocation5 + $0x1898] sm:$0xf0]  ;;  %v12928_v14 = vor.u32 %v15010_v15, %v12925_v9  ;;  %v14974_v10 = vld [vmem:[#allocation5 + $0x1a6c] sm:$0xf]  ;;  %v7709_v45 = vadd.f32 %v7708_v48, %v7696_v20  ;;  %v12656_v61 = vor.u32 %v14942_v54, %v12653_v25 }
 0x3e6   :  { %7928 = vmatmul.bf16.vlgmr.msrb.gmra.mxu2 %v15698_v8  ;;  %7941 = vmatmul.bf16.vlgmr.msrb.gmra.mxu3 %v15702_v12  ;;  %v12797_v8 = vld [vmem:[#allocation5 + $0x1a98] sm:$0xf0]  ;;  %v12544_v13 = vor.u32 %v14914_v50, %v12541_v3  ;;  %v12672_v12 = vor.u32 %v14946_v22, %v12669_v42  ;;  %v15006_v62 = vld [vmem:[#allocation5 + $0x1b6c] sm:$0xf] }
 0x3e7   :  { %7972 = vmatpush.bf16.msra.mxu2 %v12848_v36  ;;  %7985 = vmatpush.bf16.msra.mxu3 %v12976_v17  ;;  %v12800_v51 = vor.u32 %v14978_v57, %v12797_v8  ;;  %v12781_v26 = vld [vmem:[#allocation5 + $0x1a78] sm:$0xf0]  ;;  %v14906_v52 = vld [vmem:[#allocation5 + $0x184c] sm:$0xf] }
 0x3e8   :  { %7947 = vmatpush.bf16.msra.mxu0 %v12576_v44  ;;  %v12909_v29 = vld [vmem:[#allocation5 + $0x1b78] sm:$0xf0]  ;;  %v12784_v46 = vor.u32 %v14974_v10, %v12781_v26  ;;  %v14938_v16 = vld [vmem:[#allocation5 + $0x194c] sm:$0xf] }
 0x3e9   :  { %7960 = vmatpush.bf16.msra.mxu1 %v12704_v27  ;;  %v12509_v36 = vld [vmem:[#allocation5 + $0x1858] sm:$0xf0]  ;;  %v7721_v2 = vpop.f32.mrf.mxu2  ;;  %v12912_v18 = vor.u32 %v15006_v62, %v12909_v29  ;;  %v14970_v17 = vld [vmem:[#allocation5 + $0x1a4c] sm:$0xf]  ;;  %v7734_v63 = vpop.f32.mrf.mxu3 }
 0x3ea   :  { %v12637_v34 = vld [vmem:[#allocation5 + $0x1958] sm:$0xf0]  ;;  %v7722_v39 = vadd.f32 %v7721_v2, %v7709_v45  ;;  %v15002_v40 = vld [vmem:[#allocation5 + $0x1b4c] sm:$0xf]  ;;  %v12512_v44 = vor.u32 %v14906_v52, %v12509_v36  ;;  %v7710_v56 = vpop.f32.mrf.mxu1 }
 0x3eb   :  { %7973 = vmatpush.bf16.msra.mxu2 %v12832_v41  ;;  %7986 = vmatpush.bf16.msra.mxu3 %v12960_v60  ;;  %v12765_v19 = vld [vmem:[#allocation5 + $0x1a58] sm:$0xf0]  ;;  %v7697_v41 = vpop.f32.mrf.mxu0  ;;  %v12640_v31 = vor.u32 %v14938_v16, %v12637_v34  ;;  %v14902_v30 = vld [vmem:[#allocation5 + $0x182c] sm:$0xf] }
 0x3ec   :  { %7948 = vmatpush.bf16.msra.mxu0 %v12560_v37  ;;  %v12893_v24 = vld [vmem:[#allocation5 + $0x1b58] sm:$0xf0]  ;;  %v15900_v27 = vadd.f32 %v7734_v63, %v7722_v39  ;;  %v12768_v49 = vor.u32 %v14970_v17, %v12765_v19  ;;  %v14934_v32 = vld [vmem:[#allocation5 + $0x192c] sm:$0xf] }
 0x3ed   :  { %7961 = vmatpush.bf16.msra.mxu1 %v12688_v58  ;;  %v12493_v60 = vld [vmem:[#allocation5 + $0x1838] sm:$0xf0]  ;;  %v12896_v4 = vor.u32 %v15002_v40, %v12893_v24  ;;  %v14966_v5 = vld [vmem:[#allocation5 + $0x1a2c] sm:$0xf] }
 0x3ee   :  { %v12621_v53 = vld [vmem:[#allocation5 + $0x1938] sm:$0xf0]  ;;  %v14998_v58 = vld [vmem:[#allocation5 + $0x1b2c] sm:$0xf]  ;;  %v12496_v50 = vor.u32 %v14902_v30, %v12493_v60 }
 0x3ef   :  { %7974 = vmatpush.bf16.msra.mxu2 %v12816_v38  ;;  %7987 = vmatpush.bf16.msra.mxu3 %v12944_v43  ;;  %v12749_v37 = vld [vmem:[#allocation5 + $0x1a38] sm:$0xf0]  ;;  %v14898_v3 = vld [vmem:[#allocation5 + $0x180c] sm:$0xf]  ;;  %v12624_v43 = vor.u32 %v14934_v32, %v12621_v53 }
 0x3f0   :  { %7949 = vmatpush.bf16.msra.mxu0 %v12544_v13  ;;  %v12877_v38 = vld [vmem:[#allocation5 + $0x1b38] sm:$0xf0]  ;;  %v12752_v42 = vor.u32 %v14966_v5, %v12749_v37  ;;  %v14930_v57 = vld [vmem:[#allocation5 + $0x190c] sm:$0xf] }
 0x3f1   :  { %7962 = vmatpush.bf16.msra.mxu1 %v12672_v12  ;;  %v12477_v22 = vld [vmem:[#allocation5 + $0x1818] sm:$0xf0]  ;;  %v14962_v15 = vld [vmem:[#allocation5 + $0x1a0c] sm:$0xf]  ;;  %v7723_v9 = vpop.f32.mrf.mxu2  ;;  %v12880_v13 = vor.u32 %v14998_v58, %v12877_v38  ;;  %v7736_v28 = vpop.f32.mrf.mxu3 }
 0x3f2   :  { %v12605_v8 = vld [vmem:[#allocation5 + $0x1918] sm:$0xf0]  ;;  %v14994_v12 = vld [vmem:[#allocation5 + $0x1b0c] sm:$0xf]  ;;  %v12480_v48 = vor.u32 %v14898_v3, %v12477_v22 }
 0x3f3   :  { %7975 = vmatpush.bf16.msra.mxu2 %v12800_v51  ;;  %7988 = vmatpush.bf16.msra.mxu3 %v12928_v14  ;;  %v12733_v59 = vld [vmem:[#allocation5 + $0x1a18] sm:$0xf0]  ;;  %v15054_v21 = vld [vmem:[#allocation5 + $0x1cec] sm:$0xf]  ;;  %v12608_v26 = vor.u32 %v14930_v57, %v12605_v8 }
 0x3f4   :  { %7950 = vmatpush.bf16.msra.mxu0 %v12528_v55  ;;  %v12861_v51 = vld [vmem:[#allocation5 + $0x1b18] sm:$0xf0]  ;;  %v15086_v20 = vld [vmem:[#allocation5 + $0x1dec] sm:$0xf]  ;;  %v12736_v62 = vor.u32 %v14962_v15, %v12733_v59 }
 0x3f5   :  { %7963 = vmatpush.bf16.msra.mxu1 %v12656_v61  ;;  %v13101_v54 = vld [vmem:[#allocation5 + $0x1cf8] sm:$0xf0]  ;;  %v15118_v25 = vld [vmem:[#allocation5 + $0x1eec] sm:$0xf]  ;;  %v12864_v55 = vor.u32 %v14994_v12, %v12861_v51 }
 0x3f6   :  { %v13229_v14 = vld [vmem:[#allocation5 + $0x1df8] sm:$0xf0]  ;;  %v15150_v29 = vld [vmem:[#allocation5 + $0x1fec] sm:$0xf]  ;;  %v13104_v61 = vor.u32 %v15054_v21, %v13101_v54 }
 0x3f7   :  { %7976 = vmatpush.bf16.msra.mxu2 %v12784_v46  ;;  %7989 = vmatpush.bf16.msra.mxu3 %v12912_v18  ;;  %v13357_v10 = vld [vmem:[#allocation5 + $0x1ef8] sm:$0xf0]  ;;  %v13232_v46 = vor.u32 %v15086_v20, %v13229_v14  ;;  %v15050_v36 = vld [vmem:[#allocation5 + $0x1ccc] sm:$0xf] }
 0x3f8   :  { %7951 = vmatpush.bf16.msra.mxu0 %v12512_v44  ;;  %v13485_v45 = vld [vmem:[#allocation5 + $0x1ff8] sm:$0xf0]  ;;  %v13360_v52 = vor.u32 %v15118_v25, %v13357_v10  ;;  %v15082_v2 = vld [vmem:[#allocation5 + $0x1dcc] sm:$0xf] }
 0x3f9   :  { %7964 = vmatpush.bf16.msra.mxu1 %v12640_v31  ;;  %v13085_v16 = vld [vmem:[#allocation5 + $0x1cd8] sm:$0xf0]  ;;  %v13488_v18 = vor.u32 %v15150_v29, %v13485_v45  ;;  %v15114_v17 = vld [vmem:[#allocation5 + $0x1ecc] sm:$0xf] }
 0x3fa   :  { %v13213_v34 = vld [vmem:[#allocation5 + $0x1dd8] sm:$0xf0]  ;;  %v15146_v39 = vld [vmem:[#allocation5 + $0x1fcc] sm:$0xf]  ;;  %v13088_v40 = vor.u32 %v15050_v36, %v13085_v16 }
 0x3fb   :  { %7977 = vmatpush.bf16.msra.mxu2 %v12768_v49  ;;  %7990 = vmatpush.bf16.msra.mxu3 %v12896_v4  ;;  %v13341_v19 = vld [vmem:[#allocation5 + $0x1ed8] sm:$0xf0]  ;;  %v13216_v24 = vor.u32 %v15082_v2, %v13213_v34  ;;  %v15046_v41 = vld [vmem:[#allocation5 + $0x1cac] sm:$0xf] }
 0x3fc   :  { %7952 = vmatpush.bf16.msra.mxu0 %v12496_v50  ;;  %v13469_v63 = vld [vmem:[#allocation5 + $0x1fd8] sm:$0xf0]  ;;  %v13344_v44 = vor.u32 %v15114_v17, %v13341_v19  ;;  %v15078_v49 = vld [vmem:[#allocation5 + $0x1dac] sm:$0xf] }
 0x3fd   :  { %7965 = vmatpush.bf16.msra.mxu1 %v12624_v43  ;;  %v13069_v31 = vld [vmem:[#allocation5 + $0x1cb8] sm:$0xf0]  ;;  %v13472_v30 = vor.u32 %v15146_v39, %v13469_v63  ;;  %v15110_v32 = vld [vmem:[#allocation5 + $0x1eac] sm:$0xf] }
 0x3fe   :  { %v13197_v60 = vld [vmem:[#allocation5 + $0x1db8] sm:$0xf0]  ;;  %v15142_v4 = vld [vmem:[#allocation5 + $0x1fac] sm:$0xf]  ;;  %v13072_v5 = vor.u32 %v15046_v41, %v13069_v31 }
 0x3ff   :  { %7978 = vmatpush.bf16.msra.mxu2 %v12752_v42  ;;  %7991 = vmatpush.bf16.msra.mxu3 %v12880_v13  ;;  %v13325_v56 = vld [vmem:[#allocation5 + $0x1eb8] sm:$0xf0]  ;;  %v13200_v37 = vor.u32 %v15078_v49, %v13197_v60  ;;  %v15042_v38 = vld [vmem:[#allocation5 + $0x1c8c] sm:$0xf] }
 0x400   :  { %7953 = vmatpush.bf16.msra.mxu0 %v12480_v48  ;;  %v13453_v53 = vld [vmem:[#allocation5 + $0x1fb8] sm:$0xf0]  ;;  %v13328_v58 = vor.u32 %v15110_v32, %v13325_v56  ;;  %v15074_v50 = vld [vmem:[#allocation5 + $0x1d8c] sm:$0xf] }
 0x401   :  { %7966 = vmatpush.bf16.msra.mxu1 %v12608_v26  ;;  %v13456_v3 = vor.u32 %v15142_v4, %v13453_v53  ;;  %v13181_v22 = vld [vmem:[#allocation5 + $0x1d98] sm:$0xf0]  ;;  %v15106_v43 = vld [vmem:[#allocation5 + $0x1e8c] sm:$0xf]  ;;  %v7760_v15 = vpop.f32.mrf.mxu1 }
 0x402   :  { %v7747_v42 = vpop.f32.mrf.mxu0  ;;  %v13437_v57 = vld [vmem:[#allocation5 + $0x1f98] sm:$0xf0]  ;;  %v13184_v9 = vor.u32 %v15074_v50, %v13181_v22  ;;  %v15038_v59 = vld [vmem:[#allocation5 + $0x1c6c] sm:$0xf] }
 0x403   :  { %7979 = vmatpush.bf16.msra.mxu2 %v12736_v62  ;;  %7992 = vmatpush.bf16.msra.mxu3 %v12864_v55  ;;  %v13037_v12 = vld [vmem:[#allocation5 + $0x1c78] sm:$0xf0]  ;;  %v15070_v51 = vld [vmem:[#allocation5 + $0x1d6c] sm:$0xf] }
 0x404   :  { %7998 = vmatpush.bf16.msrb.mxu0 %v13104_v61  ;;  %7967 = vmatmul.bf16.vlgmr.msra.gmra.mxu1 %v15721_v7  ;;  %v15138_v7 = vld [vmem:[#allocation5 + $0x1f8c] sm:$0xf]  ;;  %v13165_v54 = vld [vmem:[#allocation5 + $0x1d78] sm:$0xf0]  ;;  %v13040_v10 = vor.u32 %v15038_v59, %v13037_v12  ;;  %v13859_v59 = vld [vmem:[#allocation8 + $0x2e0] sm:$0xf] }
 0x405   :  { %8011 = vmatpush.bf16.msrb.mxu1 %v13232_v46  ;;  %7954 = vmatmul.bf16.vlgmr.msra.gmra.mxu0 %v15717_v0  ;;  %v13053_v0 = vld [vmem:[#allocation5 + $0x1c98] sm:$0xf0]  ;;  %v13440_v28 = vor.u32 %v15138_v7, %v13437_v57  ;;  %v15102_v20 = vld [vmem:[#allocation5 + $0x1e6c] sm:$0xf]  ;;  %v13603_v57 = vld [vmem:[#allocation8 + $0xe0] sm:$0xf] }
 0x406   :  { %7980 = vmatmul.bf16.vlgmr.msra.gmra.mxu2 %v15719_v6  ;;  %7993 = vmatmul.bf16.vlgmr.msra.gmra.mxu3 %v15723_v11  ;;  %v13309_v6 = vld [vmem:[#allocation5 + $0x1e98] sm:$0xf0]  ;;  %v7748_v11 = vadd.f32 %v7747_v42, %v15900_v27  ;;  %v13056_v8 = vor.u32 %v15042_v38, %v13053_v0  ;;  %v15134_v14 = vld [vmem:[#allocation5 + $0x1f6c] sm:$0xf]  ;;  %v13168_v27 = vor.u32 %v15070_v51, %v13165_v54  ;;  %v15247_v12 = vld [vmem:[#allocation8 + $0x2ec] sm:$0xf0] }
 0x407   :  { %8024 = vmatpush.bf16.msrb.mxu2 %v13360_v52  ;;  %8037 = vmatpush.bf16.msrb.mxu3 %v13488_v18  ;;  %v13312_v13 = vor.u32 %v15106_v43, %v13309_v6  ;;  %v13293_v48 = vld [vmem:[#allocation5 + $0x1e78] sm:$0xf0]  ;;  %v15034_v62 = vld [vmem:[#allocation5 + $0x1c4c] sm:$0xf] }
 0x408   :  { %7999 = vmatpush.bf16.msrb.mxu0 %v13088_v40  ;;  %v7761_v21 = vadd.f32 %v7760_v15, %v7748_v11  ;;  %v13421_v25 = vld [vmem:[#allocation5 + $0x1f78] sm:$0xf0]  ;;  %v13296_v26 = vor.u32 %v15102_v20, %v13293_v48  ;;  %v15066_v45 = vld [vmem:[#allocation5 + $0x1d4c] sm:$0xf]  ;;  %v15183_v11 = vld [vmem:[#allocation8 + $0xec] sm:$0xf0]  ;;  %v13860_v48 = vor.u32 %v15247_v12, %v13859_v59 }
 0x409   :  { %8012 = vmatpush.bf16.msrb.mxu1 %v13216_v24  ;;  %v13021_v29 = vld [vmem:[#allocation5 + $0x1c58] sm:$0xf0]  ;;  %v13424_v55 = vor.u32 %v15134_v14, %v13421_v25  ;;  %v7773_v61 = vpop.f32.mrf.mxu2  ;;  %v15098_v52 = vld [vmem:[#allocation5 + $0x1e4c] sm:$0xf]  ;;  %v7786_v2 = vpop.f32.mrf.mxu3  ;;  %v13604_v54 = vor.u32 %v15183_v11, %v13603_v57  ;;  %v13587_v14 = vld [vmem:[#allocation8 + $0xc0] sm:$0xf] }
 0x40a   :  { %v13149_v46 = vld [vmem:[#allocation5 + $0x1d58] sm:$0xf0]  ;;  %v7774_v16 = vadd.f32 %v7773_v61, %v7761_v21  ;;  %v15130_v18 = vld [vmem:[#allocation5 + $0x1f4c] sm:$0xf]  ;;  %v7749_v17 = vpop.f32.mrf.mxu0  ;;  %v13024_v19 = vor.u32 %v15034_v62, %v13021_v29  ;;  %v7762_v39 = vpop.f32.mrf.mxu1  ;;  %v15179_v25 = vld [vmem:[#allocation8 + $0xcc] sm:$0xf0] }
 0x40b   :  { %8025 = vmatpush.bf16.msrb.mxu2 %v13344_v44  ;;  %8038 = vmatpush.bf16.msrb.mxu3 %v13472_v30  ;;  %v13277_v36 = vld [vmem:[#allocation5 + $0x1e58] sm:$0xf0]  ;;  %v13152_v40 = vor.u32 %v15066_v45, %v13149_v46  ;;  %v15030_v44 = vld [vmem:[#allocation5 + $0x1c2c] sm:$0xf]  ;;  %v15243_v62 = vld [vmem:[#allocation8 + $0x2cc] sm:$0xf0]  ;;  %v13588_v29 = vor.u32 %v15179_v25, %v13587_v14 }
 0x40c   :  { %8000 = vmatpush.bf16.msrb.mxu0 %v13072_v5  ;;  %v13405_v34 = vld [vmem:[#allocation5 + $0x1f58] sm:$0xf0]  ;;  %v15907_v63 = vadd.f32 %v7786_v2, %v7774_v16  ;;  %v13280_v24 = vor.u32 %v15098_v52, %v13277_v36  ;;  %v15062_v31 = vld [vmem:[#allocation5 + $0x1d2c] sm:$0xf]  ;;  %v13571_v61 = vld [vmem:[#allocation8 + $0xa0] sm:$0xf] }
 0x40d   :  { %8013 = vmatpush.bf16.msrb.mxu1 %v13200_v37  ;;  %v13005_v41 = vld [vmem:[#allocation5 + $0x1c38] sm:$0xf0]  ;;  %v13408_v49 = vor.u32 %v15130_v18, %v13405_v34  ;;  %v15094_v60 = vld [vmem:[#allocation5 + $0x1e2c] sm:$0xf]  ;;  %v15175_v46 = vld [vmem:[#allocation8 + $0xac] sm:$0xf0] }
 0x40e   :  { %v13133_v30 = vld [vmem:[#allocation5 + $0x1d38] sm:$0xf0]  ;;  %v15126_v56 = vld [vmem:[#allocation5 + $0x1f2c] sm:$0xf]  ;;  %v13008_v53 = vor.u32 %v15030_v44, %v13005_v41  ;;  %v13699_v52 = vld [vmem:[#allocation8 + $0x1a0] sm:$0xf]  ;;  %v13572_v18 = vor.u32 %v15175_v46, %v13571_v61 }
 0x40f   :  { %8026 = vmatpush.bf16.msrb.mxu2 %v13328_v58  ;;  %8039 = vmatpush.bf16.msrb.mxu3 %v13456_v3  ;;  %v13261_v32 = vld [vmem:[#allocation5 + $0x1e38] sm:$0xf0]  ;;  %v15026_v5 = vld [vmem:[#allocation5 + $0x1c0c] sm:$0xf]  ;;  %v13136_v58 = vor.u32 %v15062_v31, %v13133_v30  ;;  %v15207_v36 = vld [vmem:[#allocation8 + $0x1ac] sm:$0xf0] }
 0x410   :  { %8001 = vmatpush.bf16.msrb.mxu0 %v13056_v8  ;;  %v13389_v4 = vld [vmem:[#allocation5 + $0x1f38] sm:$0xf0]  ;;  %v13264_v38 = vor.u32 %v15094_v60, %v13261_v32  ;;  %v15058_v0 = vld [vmem:[#allocation5 + $0x1d0c] sm:$0xf]  ;;  %v13731_v8 = vld [vmem:[#allocation8 + $0x1e0] sm:$0xf]  ;;  %v13700_v34 = vor.u32 %v15207_v36, %v13699_v52 }
 0x411   :  { %8014 = vmatpush.bf16.msrb.mxu1 %v13184_v9  ;;  %v12989_v37 = vld [vmem:[#allocation5 + $0x1c18] sm:$0xf0]  ;;  %v15090_v3 = vld [vmem:[#allocation5 + $0x1e0c] sm:$0xf]  ;;  %v13392_v22 = vor.u32 %v15126_v56, %v13389_v4  ;;  %v7775_v7 = vpop.f32.mrf.mxu2  ;;  %v7788_v15 = vpop.f32.mrf.mxu3  ;;  %v13827_v16 = vld [vmem:[#allocation8 + $0x2a0] sm:$0xf] }
 0x412   :  { %v13117_v50 = vld [vmem:[#allocation5 + $0x1d18] sm:$0xf0]  ;;  %v15122_v6 = vld [vmem:[#allocation5 + $0x1f0c] sm:$0xf]  ;;  %v12992_v9 = vor.u32 %v15026_v5, %v12989_v37  ;;  %v15239_v2 = vld [vmem:[#allocation8 + $0x2ac] sm:$0xf0] }
 0x413   :  { %8027 = vmatpush.bf16.msrb.mxu2 %v13312_v13  ;;  %8040 = vmatpush.bf16.msrb.mxu3 %v13440_v28  ;;  %v13245_v43 = vld [vmem:[#allocation5 + $0x1e18] sm:$0xf0]  ;;  %v15215_v13 = vld [vmem:[#allocation8 + $0x1ec] sm:$0xf0]  ;;  %v13120_v51 = vor.u32 %v15058_v0, %v13117_v50  ;;  %v13828_v17 = vor.u32 %v15239_v2, %v13827_v16  ;;  %v13539_v30 = vld [vmem:[#allocation8 + $0x60] sm:$0xf] }
 0x414   :  { %8002 = vmatpush.bf16.msrb.mxu0 %v13040_v10  ;;  %v13373_v42 = vld [vmem:[#allocation5 + $0x1f18] sm:$0xf0]  ;;  %v13248_v28 = vor.u32 %v15090_v3, %v13245_v43  ;;  %v13732_v20 = vor.u32 %v15215_v13, %v13731_v8  ;;  %v13715_v10 = vld [vmem:[#allocation8 + $0x1c0] sm:$0xf]  ;;  %v15171_v39 = vld [vmem:[#allocation8 + $0x8c] sm:$0xf0] }
 0x415   :  { %8015 = vmatpush.bf16.msrb.mxu1 %v13168_v27  ;;  %v13376_v21 = vor.u32 %v15122_v6, %v13373_v42  ;;  %v15211_v27 = vld [vmem:[#allocation8 + $0x1cc] sm:$0xf0]  ;;  %v13667_v32 = vld [vmem:[#allocation8 + $0x160] sm:$0xf]  ;;  %v16002_v14 = vld [vmem:[#allocation21_spill] sm:$0xff] }
 0x416   :  { %v13716_v45 = vor.u32 %v15211_v27, %v13715_v10  ;;  %v15235_v44 = vld [vmem:[#allocation8 + $0x28c] sm:$0xf0]  ;;  %v13651_v50 = vld [vmem:[#allocation8 + $0x140] sm:$0xf]  ;;  %v8051_v25 = vmul.f32 0.2, %v16002_v14 }
 0x417   :  { %8028 = vmatpush.bf16.msrb.mxu2 %v13296_v26  ;;  %8041 = vmatpush.bf16.msrb.mxu3 %v13424_v55  ;;  %v13843_v26 = vld [vmem:[#allocation8 + $0x2c0] sm:$0xf]  ;;  %v15167_v60 = vld [vmem:[#allocation8 + $0x6c] sm:$0xf0]  ;;  %v8052_v10 = vmul.f32 0.2, %v15887_v1 }
 0x418   :  { %8003 = vmatpush.bf16.msrb.mxu0 %v13024_v19  ;;  %v13844_v55 = vor.u32 %v15243_v62, %v13843_v26  ;;  %v13555_v19 = vld [vmem:[#allocation8 + $0x80] sm:$0xf]  ;;  %v15199_v4 = vld [vmem:[#allocation8 + $0x16c] sm:$0xf0]  ;;  %v13540_v37 = vor.u32 %v15167_v60, %v13539_v30  ;;  %v15181_v36 = vld [vmem:[#allocation8 + $0xe4] sm:$0xf] }
 0x419   :  { %8016 = vmatpush.bf16.msrb.mxu1 %v13152_v40  ;;  %v13683_v40 = vld [vmem:[#allocation8 + $0x180] sm:$0xf]  ;;  %v13556_v31 = vor.u32 %v15171_v39, %v13555_v19  ;;  %v15231_v5 = vld [vmem:[#allocation8 + $0x26c] sm:$0xf0]  ;;  %v13605_v2 = vld [vmem:[#allocation8 + $0xf0] sm:$0xf0] }
 0x41a   :  { %v15163_v0 = vld [vmem:[#allocation8 + $0x4c] sm:$0xf0]  ;;  %v13779_v43 = vld [vmem:[#allocation8 + $0x240] sm:$0xf]  ;;  %v13589_v30 = vld [vmem:[#allocation8 + $0xd0] sm:$0xf0] }
 0x41b   :  { %8029 = vmatpush.bf16.msrb.mxu2 %v13280_v24  ;;  %8042 = vmatpush.bf16.msrb.mxu3 %v13408_v49  ;;  %v15203_v24 = vld [vmem:[#allocation8 + $0x18c] sm:$0xf0]  ;;  %v13507_v59 = vld [vmem:[#allocation8 + $0x20] sm:$0xf]  ;;  %v15209_v60 = vld [vmem:[#allocation8 + $0x1c4] sm:$0xf] }
 0x41c   :  { %8004 = vmatpush.bf16.msrb.mxu0 %v13008_v53  ;;  %v13795_v53 = vld [vmem:[#allocation8 + $0x260] sm:$0xf]  ;;  %v15227_v6 = vld [vmem:[#allocation8 + $0x24c] sm:$0xf0] }
 0x41d   :  { %8017 = vmatpush.bf16.msrb.mxu1 %v13136_v58  ;;  %v13668_v58 = vor.u32 %v15199_v4, %v13667_v32  ;;  %v13780_v13 = vor.u32 %v15227_v6, %v13779_v43  ;;  %v15159_v12 = vld [vmem:[#allocation8 + $0x2c] sm:$0xf0]  ;;  %v13491_v26 = vld [vmem:[#allocation8] sm:$0xf]  ;;  %v13717_v32 = vld [vmem:[#allocation8 + $0x1d0] sm:$0xf0] }
 0x41e   :  { %v13508_v27 = vor.u32 %v15159_v12, %v13507_v59  ;;  %v15187_v61 = vld [vmem:[#allocation8 + $0x10c] sm:$0xf0]  ;;  %v13747_v46 = vld [vmem:[#allocation8 + $0x200] sm:$0xf]  ;;  %v13845_v4 = vld [vmem:[#allocation8 + $0x2d0] sm:$0xf0] }
 0x41f   :  { %8030 = vmatpush.bf16.msrb.mxu2 %v13264_v38  ;;  %8043 = vmatpush.bf16.msrb.mxu3 %v13392_v22  ;;  %v13796_v38 = vor.u32 %v15231_v5, %v13795_v53  ;;  %v15195_v22 = vld [vmem:[#allocation8 + $0x14c] sm:$0xf0]  ;;  %v13829_v43 = vld [vmem:[#allocation8 + $0x2b0] sm:$0xf0] }
 0x420   :  { %8005 = vmatpush.bf16.msrb.mxu0 %v12992_v9  ;;  %v13652_v9 = vor.u32 %v15195_v22, %v13651_v50  ;;  %v15219_v52 = vld [vmem:[#allocation8 + $0x20c] sm:$0xf0]  ;;  %v15205_v50 = vld [vmem:[#allocation8 + $0x1a4] sm:$0xf]  ;;  %v13813_v59 = vld [vmem:[#allocation8 + $0x290] sm:$0xf0] }
 0x421   :  { %8018 = vmatpush.bf16.msrb.mxu1 %v13120_v51  ;;  %v13635_v51 = vld [vmem:[#allocation8 + $0x120] sm:$0xf]  ;;  %v15237_v22 = vld [vmem:[#allocation8 + $0x2a4] sm:$0xf] }
 0x423   :  { %8031 = vmatpush.bf16.msrb.mxu2 %v13248_v28  ;;  %8044 = vmatpush.bf16.msrb.mxu3 %v13376_v21  ;;  %v15191_v28 = vld [vmem:[#allocation8 + $0x12c] sm:$0xf0]  ;;  %v13763_v21 = vld [vmem:[#allocation8 + $0x220] sm:$0xf] }
 0x424   :  { %8840 = vmatpush.bf16.msra.mxu0 %v13604_v54  ;;  %8019 = vmatmul.bf16.vlgmr.msrb.gmra.mxu1 %v15740_v47  ;;  %v7799_v47 = vpop.f32.mrf.mxu0  ;;  %v15223_v54 = vld [vmem:[#allocation8 + $0x22c] sm:$0xf0]  ;;  %v13636_v62 = vor.u32 %v15191_v28, %v13635_v51 }
 0x425   :  { %8853 = vmatpush.bf16.msra.mxu1 %v13732_v20  ;;  %8006 = vmatmul.bf16.vlgmr.msrb.gmra.mxu0 %v15736_v23  ;;  %v13811_v23 = vld [vmem:[#allocation8 + $0x280] sm:$0xf]  ;;  %v7800_v41 = vadd.f32 %v7799_v47, %v15907_v63  ;;  %v16001_v20 = vld [vmem:[#allocation20_spill] sm:$0xff]  ;;  %v13748_v47 = vor.u32 %v15219_v52, %v13747_v46  ;;  %v15193_v46 = vld [vmem:[#allocation8 + $0x144] sm:$0xf] }
 0x426   :  { %8032 = vmatmul.bf16.vlgmr.msrb.gmra.mxu2 %v15738_v33  ;;  %8045 = vmatmul.bf16.vlgmr.msrb.gmra.mxu3 %v15742_v35  ;;  %v7812_v33 = vpop.f32.mrf.mxu1  ;;  %v13684_v35 = vor.u32 %v15203_v24, %v13683_v40  ;;  %v13812_v49 = vor.u32 %v15235_v44, %v13811_v23  ;;  %v13523_v63 = vld [vmem:[#allocation8 + $0x40] sm:$0xf]  ;;  %v15245_v40 = vld [vmem:[#allocation8 + $0x2e4] sm:$0xf]  ;;  %v13861_v24 = vld [vmem:[#allocation8 + $0x2f0] sm:$0xf0]  ;;  %v8055_v23 = vmax.f32 %v16002_v14, %v8051_v25 }
 0x427   :  { %8866 = vmatpush.bf16.msra.mxu2 %v13860_v48  ;;  %v7813_v56 = vadd.f32 %v7812_v33, %v7800_v41  ;;  %v13524_v11 = vor.u32 %v15163_v0, %v13523_v63  ;;  %v8050_v48 = vmul.f32 0.2, %v16001_v20  ;;  %v8056_v41 = vmax.f32 %v15887_v1, %v8052_v10  ;;  %v13573_v0 = vld [vmem:[#allocation8 + $0xb0] sm:$0xf0]  ;;  %v15197_v25 = vld [vmem:[#allocation8 + $0x164] sm:$0xf] }
 0x428   :  { %8841 = vmatpush.bf16.msra.mxu0 %v13588_v29  ;;  %v13764_v29 = vor.u32 %v15223_v54, %v13763_v21  ;;  %v15924_v5 = vpack.c.bf16 %v8055_v23, %v8055_v23  ;;  %v13541_v14 = vld [vmem:[#allocation8 + $0x70] sm:$0xf0] }
 0x429   :  { %8854 = vmatpush.bf16.msra.mxu1 %v13716_v45  ;;  %v7825_v3 = vpop.f32.mrf.mxu2  ;;  %v7838_v7 = vpop.f32.mrf.mxu3  ;;  %v15155_v45 = vld [vmem:[#allocation8 + $0xc] sm:$0xf0]  ;;  %v8054_v19 = vmax.f32 %v16001_v20, %v8050_v48  ;;  %v15165_v20 = vld [vmem:[#allocation8 + $0x64] sm:$0xf]  ;;  %v13669_v10 = vld [vmem:[#allocation8 + $0x170] sm:$0xf0] }
 0x42a   :  { %v7826_v42 = vadd.f32 %v7825_v3, %v7813_v56  ;;  %v13492_v39 = vor.u32 %v15155_v45, %v13491_v26  ;;  %v15241_v56 = vld [vmem:[#allocation8 + $0x2c4] sm:$0xf]  ;;  %v13701_v3 = vld [vmem:[#allocation8 + $0x1b0] sm:$0xf0]  ;;  %v13672_v45 = vor.u32 %v15197_v25, %v13669_v10  ;;  %v13971_v25 = vld [vmem:[#allocation8 + $0x3c0] sm:$0xf] }
 0x42b   :  { %8867 = vmatpush.bf16.msra.mxu2 %v13844_v55  ;;  %v13619_v55 = vld [vmem:[#allocation8 + $0x100] sm:$0xf]  ;;  %v15922_v53 = vpack.c.bf16 %v8054_v19, %v8054_v19  ;;  %v13848_v63 = vor.u32 %v15241_v56, %v13845_v4  ;;  %v15229_v26 = vld [vmem:[#allocation8 + $0x264] sm:$0xf]  ;;  %v13653_v52 = vld [vmem:[#allocation8 + $0x150] sm:$0xf0] }
 0x42c   :  { %8842 = vmatpush.bf16.msra.mxu0 %v13572_v18  ;;  %v7801_v57 = vpop.f32.mrf.mxu0  ;;  %v15914_v15 = vadd.f32 %v7838_v7, %v7826_v42  ;;  %v15213_v18 = vld [vmem:[#allocation8 + $0x1e4] sm:$0xf]  ;;  %v13620_v44 = vor.u32 %v15187_v61, %v13619_v55  ;;  %v13704_v42 = vor.u32 %v15205_v50, %v13701_v3  ;;  %v13621_v4 = vld [vmem:[#allocation8 + $0x110] sm:$0xf0]  ;;  %v13739_v50 = vld [vmem:[#allocation8 + $0x1e8] sm:$0xf] }
 0x42d   :  { %8855 = vmatpush.bf16.msra.mxu1 %v13700_v34  ;;  %v13733_v34 = vld [vmem:[#allocation8 + $0x1f0] sm:$0xf0]  ;;  %v15169_v7 = vld [vmem:[#allocation8 + $0x84] sm:$0xf]  ;;  %v13832_v57 = vor.u32 %v15237_v22, %v13829_v43  ;;  %v13987_v22 = vld [vmem:[#allocation8 + $0x3e0] sm:$0xf] }
 0x42e   :  { %v7814_v8 = vpop.f32.mrf.mxu1  ;;  %v13736_v33 = vor.u32 %v15213_v18, %v13733_v34  ;;  %v15161_v55 = vld [vmem:[#allocation8 + $0x44] sm:$0xf]  ;;  %v15279_v43 = vld [vmem:[#allocation8 + $0x3ec] sm:$0xf0] }
 0x42f   :  { %8868 = vmatpush.bf16.msra.mxu2 %v13828_v17  ;;  %v15201_v8 = vld [vmem:[#allocation8 + $0x184] sm:$0xf]  ;;  %v15275_v10 = vld [vmem:[#allocation8 + $0x3cc] sm:$0xf0] }
 0x430   :  { %8843 = vmatpush.bf16.msra.mxu0 %v13556_v31  ;;  %v13608_v31 = vor.u32 %v15181_v36, %v13605_v2  ;;  %v13781_v2 = vld [vmem:[#allocation8 + $0x250] sm:$0xf0]  ;;  %v15185_v56 = vld [vmem:[#allocation8 + $0x104] sm:$0xf] }
 0x431   :  { %8856 = vmatpush.bf16.msra.mxu1 %v13684_v35  ;;  %v7827_v16 = vpop.f32.mrf.mxu2  ;;  %v7840_v17 = vpop.f32.mrf.mxu3  ;;  %v15177_v35 = vld [vmem:[#allocation8 + $0xc4] sm:$0xf] }
 0x432   :  { %v13592_v1 = vor.u32 %v15177_v35, %v13589_v30  ;;  %v15225_v16 = vld [vmem:[#allocation8 + $0x244] sm:$0xf]  ;;  %v13765_v35 = vld [vmem:[#allocation8 + $0x230] sm:$0xf0] }
 0x433   :  { %8869 = vmatpush.bf16.msra.mxu2 %v13812_v49  ;;  %v13864_v49 = vor.u32 %v15245_v40, %v13861_v24  ;;  %v15157_v40 = vld [vmem:[#allocation8 + $0x24] sm:$0xf]  ;;  %v13493_v30 = vld [vmem:[#allocation8 + $0x10] sm:$0xf0] }
 0x434   :  { %8844 = vmatpush.bf16.msra.mxu0 %v13540_v37  ;;  %v15926_v37 = vpack.c.bf16 %v8056_v41, %v8056_v41  ;;  %v15189_v41 = vld [vmem:[#allocation8 + $0x124] sm:$0xf] }
 0x435   :  { %8857 = vmatpush.bf16.msra.mxu1 %v13668_v58  ;;  %v13720_v58 = vor.u32 %v15209_v60, %v13717_v32 }
 0x437   :  { %8870 = vmatpush.bf16.msra.mxu2 %v13796_v38  ;;  %v15173_v38 = vld [vmem:[#allocation8 + $0xa4] sm:$0xf] }
 0x438   :  { %8845 = vmatpush.bf16.msra.mxu0 %v13524_v11  ;;  %v13576_v6 = vor.u32 %v15173_v38, %v13573_v0  ;;  %v13557_v11 = vld [vmem:[#allocation8 + $0x90] sm:$0xf0]  ;;  %v15184_v0 = vld [vmem:[#allocation8 + $0xf4] sm:$0xf0] }
 0x439   :  { %8858 = vmatpush.bf16.msra.mxu1 %v13652_v9  ;;  %v13685_v9 = vld [vmem:[#allocation8 + $0x190] sm:$0xf0]  ;;  %v13560_v28 = vor.u32 %v15169_v7, %v13557_v11  ;;  %v15248_v7 = vld [vmem:[#allocation8 + $0x2f4] sm:$0xf0]  ;;  %v13988_v11 = vor.u32 %v15279_v43, %v13987_v22 }
 0x43a   :  { %v13688_v21 = vor.u32 %v15201_v8, %v13685_v9  ;;  %v13749_v38 = vld [vmem:[#allocation8 + $0x210] sm:$0xf0]  ;;  %v13624_v9 = vor.u32 %v15185_v56, %v13621_v4  ;;  %v13547_v56 = vld [vmem:[#allocation8 + $0x68] sm:$0xf]  ;;  %v15168_v4 = vld [vmem:[#allocation8 + $0x74] sm:$0xf0] }
 0x43b   :  { %8871 = vmatpush.bf16.msra.mxu2 %v13780_v13  ;;  %v15233_v13 = vld [vmem:[#allocation8 + $0x284] sm:$0xf]  ;;  %8879 = vmatpush.bf16.msra.mxu3 %v13988_v11  ;;  %v15196_v11 = vld [vmem:[#allocation8 + $0x154] sm:$0xf0] }
 0x43c   :  { %8846 = vmatpush.bf16.msra.mxu0 %v13508_v27  ;;  %v13816_v48 = vor.u32 %v15233_v13, %v13813_v59 }
 0x43d   :  { %8859 = vmatpush.bf16.msra.mxu1 %v13636_v62  ;;  %v13797_v62 = vld [vmem:[#allocation8 + $0x270] sm:$0xf0] }
 0x43e   :  { %v13800_v61 = vor.u32 %v15229_v26, %v13797_v62  ;;  %v13972_v26 = vor.u32 %v15275_v10, %v13971_v25  ;;  %v15160_v25 = vld [vmem:[#allocation8 + $0x34] sm:$0xf0]  ;;  %v13643_v10 = vld [vmem:[#allocation8 + $0x128] sm:$0xf] }
 0x43f   :  { %8872 = vmatpush.bf16.msra.mxu2 %v13764_v29  ;;  %v13544_v29 = vor.u32 %v15165_v20, %v13541_v14  ;;  %v15212_v20 = vld [vmem:[#allocation8 + $0x1d4] sm:$0xf0] }
 0x440   :  { %8847 = vmatpush.bf16.msra.mxu0 %v13492_v39  ;;  %v13656_v39 = vor.u32 %v15193_v46, %v13653_v52  ;;  %v15244_v14 = vld [vmem:[#allocation8 + $0x2d4] sm:$0xf0]  ;;  %v13835_v46 = vld [vmem:[#allocation8 + $0x2a8] sm:$0xf]  ;;  %8880 = vmatpush.bf16.msra.mxu3 %v13972_v26 }
 0x441   :  { %8860 = vmatpush.bf16.msra.mxu1 %v13620_v44  ;;  %v7864_v54 = vpop.f32.mrf.mxu1  ;;  %v13784_v44 = vor.u32 %v15225_v16, %v13781_v2  ;;  %v15240_v52 = vld [vmem:[#allocation8 + $0x2b4] sm:$0xf0]  ;;  %v15271_v16 = vld [vmem:[#allocation8 + $0x3ac] sm:$0xf0] }
 0x442   :  { %v7851_v12 = vpop.f32.mrf.mxu0  ;;  %v15192_v26 = vld [vmem:[#allocation8 + $0x134] sm:$0xf0] }
 0x443   :  { %8873 = vmatpush.bf16.msra.mxu2 %v13748_v47  ;;  %8848 = vmatmul.bf16.vlgmr.msra.gmra.mxu0 %v15922_v53  ;;  %v7852_v51 = vadd.f32 %v7851_v12, %v15914_v15  ;;  %v13525_v15 = vld [vmem:[#allocation8 + $0x50] sm:$0xf0] }
 0x444   :  { %8892 = vmatpush.bf16.msrb.mxu0 %v13608_v31  ;;  %8861 = vmatmul.bf16.vlgmr.msra.gmra.mxu1 %v15924_v5  ;;  %v13528_v19 = vor.u32 %v15161_v55, %v13525_v15  ;;  %v13509_v47 = vld [vmem:[#allocation8 + $0x30] sm:$0xf0]  ;;  %v15176_v55 = vld [vmem:[#allocation8 + $0xb4] sm:$0xf0] }
 0x445   :  { %8905 = vmatpush.bf16.msrb.mxu1 %v13736_v33  ;;  %v7865_v27 = vadd.f32 %v7864_v54, %v7852_v51  ;;  %v13637_v31 = vld [vmem:[#allocation8 + $0x130] sm:$0xf0]  ;;  %v15221_v33 = vld [vmem:[#allocation8 + $0x224] sm:$0xf]  ;;  %v13512_v60 = vor.u32 %v15157_v40, %v13509_v47  ;;  %v13723_v54 = vld [vmem:[#allocation8 + $0x1c8] sm:$0xf] }
 0x446   :  { %8874 = vmatmul.bf16.vlgmr.msra.gmra.mxu2 %v15926_v37  ;;  %v13640_v32 = vor.u32 %v15189_v41, %v13637_v31  ;;  %v13724_v62 = vor.u32 %v15212_v20, %v13723_v54  ;;  %v15208_v15 = vld [vmem:[#allocation8 + $0x1b4] sm:$0xf0]  ;;  %v13691_v40 = vld [vmem:[#allocation8 + $0x188] sm:$0xf]  ;;  %v13939_v41 = vld [vmem:[#allocation8 + $0x380] sm:$0xf] }
 0x447   :  { %8918 = vmatpush.bf16.msrb.mxu2 %v13864_v49  ;;  %v15153_v49 = vld [vmem:[#allocation8 + $0x4] sm:$0xf]  ;;  %v15236_v47 = vld [vmem:[#allocation8 + $0x294] sm:$0xf0]  ;;  %v15267_v31 = vld [vmem:[#allocation8 + $0x38c] sm:$0xf0] }
 0x448   :  { %8893 = vmatpush.bf16.msrb.mxu0 %v13592_v1  ;;  %v15217_v1 = vld [vmem:[#allocation8 + $0x204] sm:$0xf]  ;;  %v13496_v8 = vor.u32 %v15153_v49, %v13493_v30  ;;  %v13940_v49 = vor.u32 %v15267_v31, %v13939_v41  ;;  %v15251_v41 = vld [vmem:[#allocation8 + $0x30c] sm:$0xf0] }
 0x449   :  { %8906 = vmatpush.bf16.msrb.mxu1 %v13720_v58  ;;  %v7877_v36 = vpop.f32.mrf.mxu2  ;;  %v7890_v34 = vpop.f32.mrf.mxu3  ;;  %v13768_v58 = vor.u32 %v15221_v33, %v13765_v35  ;;  %v13752_v13 = vor.u32 %v15217_v1, %v13749_v38  ;;  %v13675_v1 = vld [vmem:[#allocation8 + $0x168] sm:$0xf]  ;;  %v15277_v31 = vld [vmem:[#allocation8 + $0x3e4] sm:$0xf] }
 0x44a   :  { %v7878_v18 = vadd.f32 %v7877_v36, %v7865_v27  ;;  %v7853_v17 = vpop.f32.mrf.mxu0  ;;  %v7866_v24 = vpop.f32.mrf.mxu1  ;;  %v13955_v36 = vld [vmem:[#allocation8 + $0x3a0] sm:$0xf]  ;;  %v13803_v38 = vld [vmem:[#allocation8 + $0x268] sm:$0xf] }
 0x44b   :  { %8919 = vmatpush.bf16.msrb.mxu2 %v13848_v63  ;;  %v13611_v63 = vld [vmem:[#allocation8 + $0xe8] sm:$0xf]  ;;  %v13836_v17 = vor.u32 %v15240_v52, %v13835_v46  ;;  %v15204_v24 = vld [vmem:[#allocation8 + $0x194] sm:$0xf0] }
 0x44c   :  { %8894 = vmatpush.bf16.msrb.mxu0 %v13576_v6  ;;  %v15932_v23 = vadd.f32 %v7890_v34, %v7878_v18  ;;  %v15216_v6 = vld [vmem:[#allocation8 + $0x1f4] sm:$0xf0]  ;;  %v13612_v59 = vor.u32 %v15184_v0, %v13611_v63  ;;  %v13956_v18 = vor.u32 %v15271_v16, %v13955_v36  ;;  %v13692_v30 = vor.u32 %v15204_v24, %v13691_v40  ;;  %v13923_v0 = vld [vmem:[#allocation8 + $0x360] sm:$0xf]  ;;  %v13627_v52 = vld [vmem:[#allocation8 + $0x108] sm:$0xf] }
 0x44d   :  { %8907 = vmatpush.bf16.msrb.mxu1 %v13704_v42  ;;  %v13867_v42 = vld [vmem:[#allocation8 + $0x2e8] sm:$0xf]  ;;  %v13740_v12 = vor.u32 %v15216_v6, %v13739_v50  ;;  %v15232_v63 = vld [vmem:[#allocation8 + $0x274] sm:$0xf0]  ;;  %v15263_v50 = vld [vmem:[#allocation8 + $0x36c] sm:$0xf0] }
 0x44e   :  { %v13868_v51 = vor.u32 %v15248_v7, %v13867_v42  ;;  %8881 = vmatpush.bf16.msra.mxu3 %v13956_v18  ;;  %v13924_v22 = vor.u32 %v15263_v50, %v13923_v0  ;;  %v13804_v6 = vor.u32 %v15232_v63, %v13803_v38  ;;  %v13531_v42 = vld [vmem:[#allocation8 + $0x48] sm:$0xf]  ;;  %v15164_v7 = vld [vmem:[#allocation8 + $0x54] sm:$0xf0]  ;;  %v15214_v40 = vld [vmem:[#allocation8 + $0x1ec] sm:$0xf] }
 0x44f   :  { %8920 = vmatpush.bf16.msrb.mxu2 %v13832_v57  ;;  %v15156_v46 = vld [vmem:[#allocation8 + $0x14] sm:$0xf0]  ;;  %v13741_v24 = vld [vmem:[#allocation8 + $0x1f8] sm:$0xf0]  ;;  %v15178_v50 = vld [vmem:[#allocation8 + $0xcc] sm:$0xf] }
 0x450   :  { %8895 = vmatpush.bf16.msrb.mxu0 %v13560_v28  ;;  %v13595_v28 = vld [vmem:[#allocation8 + $0xc8] sm:$0xf]  ;;  %v15188_v36 = vld [vmem:[#allocation8 + $0x114] sm:$0xf0]  ;;  %v13744_v0 = vor.u32 %v15214_v40, %v13741_v24  ;;  %v15198_v40 = vld [vmem:[#allocation8 + $0x16c] sm:$0xf] }
 0x451   :  { %8908 = vmatpush.bf16.msrb.mxu1 %v13688_v21  ;;  %v7879_v3 = vpop.f32.mrf.mxu2  ;;  %v7892_v57 = vpop.f32.mrf.mxu3  ;;  %v15180_v21 = vld [vmem:[#allocation8 + $0xd4] sm:$0xf0] }
 0x452   :  { %v13596_v27 = vor.u32 %v15180_v21, %v13595_v28  ;;  %8882 = vmatpush.bf16.msra.mxu3 %v13940_v49  ;;  %v13548_v3 = vor.u32 %v15168_v4, %v13547_v56  ;;  %v13659_v57 = vld [vmem:[#allocation8 + $0x148] sm:$0xf]  ;;  %v13532_v28 = vor.u32 %v15164_v7, %v13531_v42  ;;  %v15246_v49 = vld [vmem:[#allocation8 + $0x2ec] sm:$0xf]  ;;  %v13989_v4 = vld [vmem:[#allocation8 + $0x3f0] sm:$0xf0] }
 0x453   :  { %8921 = vmatpush.bf16.msrb.mxu2 %v13816_v48  ;;  %v13851_v48 = vld [vmem:[#allocation8 + $0x2c8] sm:$0xf]  ;;  %v13660_v20 = vor.u32 %v15196_v11, %v13659_v57  ;;  %v13992_v38 = vor.u32 %v15277_v31, %v13989_v4  ;;  %v15242_v42 = vld [vmem:[#allocation8 + $0x2cc] sm:$0xf]  ;;  %v13853_v7 = vld [vmem:[#allocation8 + $0x2d8] sm:$0xf0] }
 0x454   :  { %8896 = vmatpush.bf16.msrb.mxu0 %v13544_v29  ;;  %v13852_v29 = vor.u32 %v15244_v14, %v13851_v48  ;;  %v13515_v14 = vld [vmem:[#allocation8 + $0x28] sm:$0xf]  ;;  %v15273_v57 = vld [vmem:[#allocation8 + $0x3c4] sm:$0xf]  ;;  %v13973_v11 = vld [vmem:[#allocation8 + $0x3d0] sm:$0xf0] }
 0x455   :  { %8909 = vmatpush.bf16.msrb.mxu1 %v13672_v45  ;;  %v13579_v45 = vld [vmem:[#allocation8 + $0xa8] sm:$0xf]  ;;  %v13925_v31 = vld [vmem:[#allocation8 + $0x370] sm:$0xf0]  ;;  %v15162_v4 = vld [vmem:[#allocation8 + $0x4c] sm:$0xf] }
 0x456   :  { %v13580_v2 = vor.u32 %v15176_v55, %v13579_v45  ;;  %8883 = vmatpush.bf16.msra.mxu3 %v13924_v22  ;;  %v13499_v45 = vld [vmem:[#allocation8 + $0x8] sm:$0xf]  ;;  %v13891_v55 = vld [vmem:[#allocation8 + $0x320] sm:$0xf] }
 0x457   :  { %8922 = vmatpush.bf16.msrb.mxu2 %v13800_v61  ;;  %v13707_v61 = vld [vmem:[#allocation8 + $0x1a8] sm:$0xf] }
 0x458   :  { %8897 = vmatpush.bf16.msrb.mxu0 %v13528_v19  ;;  %v13708_v34 = vor.u32 %v15208_v15, %v13707_v61  ;;  %v13563_v19 = vld [vmem:[#allocation8 + $0x88] sm:$0xf]  ;;  %v15255_v61 = vld [vmem:[#allocation8 + $0x32c] sm:$0xf0]  ;;  %v13516_v15 = vor.u32 %v15160_v25, %v13515_v14  ;;  %v13709_v14 = vld [vmem:[#allocation8 + $0x1b8] sm:$0xf0] }
 0x459   :  { %8910 = vmatpush.bf16.msrb.mxu1 %v13656_v39  ;;  %v15172_v39 = vld [vmem:[#allocation8 + $0x94] sm:$0xf0]  ;;  %v13892_v16 = vor.u32 %v15255_v61, %v13891_v55  ;;  %v15238_v25 = vld [vmem:[#allocation8 + $0x2ac] sm:$0xf] }
 0x45a   :  { %v13564_v35 = vor.u32 %v15172_v39, %v13563_v19  ;;  %v15182_v19 = vld [vmem:[#allocation8 + $0xec] sm:$0xf]  ;;  %v13613_v39 = vld [vmem:[#allocation8 + $0xf8] sm:$0xf0] }
 0x45b   :  { %8923 = vmatpush.bf16.msrb.mxu2 %v13784_v44  ;;  %v13819_v44 = vld [vmem:[#allocation8 + $0x288] sm:$0xf]  ;;  %v13616_v63 = vor.u32 %v15182_v19, %v13613_v39  ;;  %v15202_v61 = vld [vmem:[#allocation8 + $0x18c] sm:$0xf]  ;;  %v13549_v39 = vld [vmem:[#allocation8 + $0x78] sm:$0xf0] }
 0x45c   :  { %8898 = vmatpush.bf16.msrb.mxu0 %v13512_v60  ;;  %v13820_v60 = vor.u32 %v15236_v47, %v13819_v44  ;;  %v13875_v47 = vld [vmem:[#allocation8 + $0x300] sm:$0xf]  ;;  %v15166_v19 = vld [vmem:[#allocation8 + $0x6c] sm:$0xf] }
 0x45d   :  { %8911 = vmatpush.bf16.msrb.mxu1 %v13640_v32  ;;  %v13876_v56 = vor.u32 %v15251_v41, %v13875_v47  ;;  %v13677_v47 = vld [vmem:[#allocation8 + $0x178] sm:$0xf0]  ;;  %v15261_v41 = vld [vmem:[#allocation8 + $0x364] sm:$0xf] }
 0x45f   :  { %8924 = vmatpush.bf16.msrb.mxu2 %v13768_v58  ;;  %v15200_v58 = vld [vmem:[#allocation8 + $0x174] sm:$0xf0] }
 0x460   :  { %8899 = vmatpush.bf16.msrb.mxu0 %v13496_v8  ;;  %v13676_v43 = vor.u32 %v15200_v58, %v13675_v1  ;;  %v13787_v8 = vld [vmem:[#allocation8 + $0x248] sm:$0xf]  ;;  %v13628_v1 = vor.u32 %v15188_v36, %v13627_v52  ;;  %v13821_v52 = vld [vmem:[#allocation8 + $0x298] sm:$0xf0]  ;;  %v15265_v36 = vld [vmem:[#allocation8 + $0x384] sm:$0xf] }
 0x461   :  { %8912 = vmatpush.bf16.msrb.mxu1 %v13624_v9  ;;  %v15939_v32 = vpop.f32.mrf.mxu1  ;;  %v15228_v9 = vld [vmem:[#allocation8 + $0x254] sm:$0xf0] }
 0x462   :  { %v15937_v33 = vpop.f32.mrf.mxu0  ;;  %v13788_v48 = vor.u32 %v15228_v9, %v13787_v8  ;;  %v13976_v8 = vor.u32 %v15273_v57, %v13973_v11 }
 0x463   :  { %8925 = vmatpush.bf16.msrb.mxu2 %v13752_v13  ;;  %8900 = vmatmul.bf16.vlgmr.msrb.gmra.mxu0 %v15922_v53 }
 0x464   :  { %8944 = vmatpush.bf16.msra.mxu0 %v13612_v59  ;;  %8913 = vmatmul.bf16.vlgmr.msrb.gmra.mxu1 %v15924_v5  ;;  %v13907_v59 = vld [vmem:[#allocation8 + $0x340] sm:$0xf] }
 0x465   :  { %8957 = vmatpush.bf16.msra.mxu1 %v13740_v12  ;;  %v15259_v12 = vld [vmem:[#allocation8 + $0x34c] sm:$0xf0] }
 0x466   :  { %8926 = vmatmul.bf16.vlgmr.msrb.gmra.mxu2 %v15926_v37  ;;  %v13908_v54 = vor.u32 %v15259_v12, %v13907_v59  ;;  %v15174_v12 = vld [vmem:[#allocation8 + $0xac] sm:$0xf] }
 0x467   :  { %8970 = vmatpush.bf16.msra.mxu2 %v13868_v51 }
 0x468   :  { %8945 = vmatpush.bf16.msra.mxu0 %v13596_v27  ;;  %8884 = vmatpush.bf16.msra.mxu3 %v13908_v54  ;;  %v13856_v54 = vor.u32 %v15242_v42, %v13853_v7  ;;  %v7904_v42 = vadd.f32 %v15937_v33, %v15932_v23 }
 0x469   :  { %8958 = vmatpush.bf16.msra.mxu1 %v13724_v62  ;;  %v15941_v13 = vpop.f32.mrf.mxu2  ;;  %v15943_v51 = vpop.f32.mrf.mxu3  ;;  %v13771_v62 = vld [vmem:[#allocation8 + $0x228] sm:$0xf] }
 0x46a   :  { %v7905_v21 = vpop.f32.mrf.mxu0  ;;  %v7918_v27 = vpop.f32.mrf.mxu1  ;;  %v7917_v23 = vadd.f32 %v15939_v32, %v7904_v42  ;;  %v15965_v42 = vld [vmem:[#allocation10] sm:$0xf] }
 0x46b   :  { %8971 = vmatpush.bf16.msra.mxu2 %v13852_v29  ;;  %v15224_v29 = vld [vmem:[#allocation8 + $0x234] sm:$0xf0]  ;;  %v13957_v21 = vld [vmem:[#allocation8 + $0x3b0] sm:$0xf0] }
 0x46c   :  { %8946 = vmatpush.bf16.msra.mxu0 %v13580_v2  ;;  %v13644_v2 = vor.u32 %v15192_v26, %v13643_v10  ;;  %v13772_v18 = vor.u32 %v15224_v29, %v13771_v62  ;;  %8885 = vmatpush.bf16.msra.mxu3 %v13892_v16  ;;  %v13837_v10 = vld [vmem:[#allocation8 + $0x2b8] sm:$0xf0]  ;;  %v15170_v29 = vld [vmem:[#allocation8 + $0x8c] sm:$0xf]  ;;  %v13941_v16 = vld [vmem:[#allocation8 + $0x390] sm:$0xf0] }
 0x46d   :  { %8959 = vmatpush.bf16.msra.mxu1 %v13708_v34  ;;  %v13755_v34 = vld [vmem:[#allocation8 + $0x208] sm:$0xf]  ;;  %v13840_v55 = vor.u32 %v15238_v25, %v13837_v10  ;;  %v13893_v25 = vld [vmem:[#allocation8 + $0x330] sm:$0xf0] }
 0x46f   :  { %8972 = vmatpush.bf16.msra.mxu2 %v13836_v17  ;;  %v15220_v17 = vld [vmem:[#allocation8 + $0x214] sm:$0xf0] }
 0x470   :  { %8947 = vmatpush.bf16.msra.mxu0 %v13564_v35  ;;  %v13500_v35 = vor.u32 %v15156_v46, %v13499_v45  ;;  %v13756_v58 = vor.u32 %v15220_v17, %v13755_v34  ;;  %8886 = vmatpush.bf16.msra.mxu3 %v13876_v56  ;;  %v13565_v45 = vld [vmem:[#allocation8 + $0x98] sm:$0xf0]  ;;  %v15234_v46 = vld [vmem:[#allocation8 + $0x28c] sm:$0xf]  ;;  %v13680_v56 = vor.u32 %v15198_v40, %v13677_v47 }
 0x471   :  { %8960 = vmatpush.bf16.msra.mxu1 %v13692_v30  ;;  %v7931_v44 = vpop.f32.mrf.mxu2  ;;  %v13869_v30 = vld [vmem:[#allocation8 + $0x2f8] sm:$0xf0]  ;;  %v13568_v34 = vor.u32 %v15170_v29, %v13565_v45  ;;  %v13824_v24 = vor.u32 %v15234_v46, %v13821_v52  ;;  %v15186_v45 = vld [vmem:[#allocation8 + $0x10c] sm:$0xf]  ;;  %v15249_v52 = vld [vmem:[#allocation8 + $0x304] sm:$0xf] }
 0x472   :  { %v13872_v22 = vor.u32 %v15246_v49, %v13869_v30  ;;  %v13805_v49 = vld [vmem:[#allocation8 + $0x278] sm:$0xf0]  ;;  %v13928_v30 = vor.u32 %v15261_v41, %v13925_v31 }
 0x473   :  { %8973 = vmatpush.bf16.msra.mxu2 %v13820_v60  ;;  %v7944_v60 = vpop.f32.mrf.mxu3  ;;  %v13757_v46 = vld [vmem:[#allocation8 + $0x218] sm:$0xf0] }
 0x474   :  { %8948 = vmatpush.bf16.msra.mxu0 %v13548_v3  ;;  %v13597_v3 = vld [vmem:[#allocation8 + $0xd8] sm:$0xf0]  ;;  %8931 = vmatpush.bf16.msrb.mxu3 %v13992_v38  ;;  %v13552_v60 = vor.u32 %v15166_v19, %v13549_v39  ;;  %v15194_v38 = vld [vmem:[#allocation8 + $0x14c] sm:$0xf] }
 0x475   :  { %8961 = vmatpush.bf16.msra.mxu1 %v13676_v43  ;;  %v15210_v43 = vld [vmem:[#allocation8 + $0x1cc] sm:$0xf]  ;;  %v13600_v9 = vor.u32 %v15178_v50, %v13597_v3  ;;  %v13789_v50 = vld [vmem:[#allocation8 + $0x258] sm:$0xf0]  ;;  %v15257_v3 = vld [vmem:[#allocation8 + $0x344] sm:$0xf] }
 0x477   :  { %8974 = vmatpush.bf16.msra.mxu2 %v13804_v6  ;;  %v13725_v6 = vld [vmem:[#allocation8 + $0x1d8] sm:$0xf0] }
 0x478   :  { %8949 = vmatpush.bf16.msra.mxu0 %v13532_v28  ;;  %v13728_v59 = vor.u32 %v15210_v43, %v13725_v6  ;;  %v15269_v28 = vld [vmem:[#allocation8 + $0x3a4] sm:$0xf]  ;;  %8932 = vmatpush.bf16.msrb.mxu3 %v13976_v8  ;;  %v15158_v8 = vld [vmem:[#allocation8 + $0x2c] sm:$0xf] }
 0x479   :  { %8962 = vmatpush.bf16.msra.mxu1 %v13660_v20  ;;  %v13581_v20 = vld [vmem:[#allocation8 + $0xb8] sm:$0xf0]  ;;  %v13960_v27 = vor.u32 %v15269_v28, %v13957_v21  ;;  %v15190_v28 = vld [vmem:[#allocation8 + $0x12c] sm:$0xf] }
 0x47a   :  { %v13584_v26 = vor.u32 %v15174_v12, %v13581_v20  ;;  %v13645_v21 = vld [vmem:[#allocation8 + $0x138] sm:$0xf0] }
 0x47b   :  { %8975 = vmatpush.bf16.msra.mxu2 %v13788_v48  ;;  %v15206_v48 = vld [vmem:[#allocation8 + $0x1ac] sm:$0xf] }
 0x47c   :  { %8950 = vmatpush.bf16.msra.mxu0 %v13516_v15  ;;  %v13712_v62 = vor.u32 %v15206_v48, %v13709_v14  ;;  %v13693_v15 = vld [vmem:[#allocation8 + $0x198] sm:$0xf0]  ;;  %8933 = vmatpush.bf16.msrb.mxu3 %v13960_v27  ;;  %v15253_v14 = vld [vmem:[#allocation8 + $0x324] sm:$0xf]  ;;  %v13648_v27 = vor.u32 %v15190_v28, %v13645_v21 }
 0x47d   :  { %8963 = vmatpush.bf16.msra.mxu1 %v13644_v2  ;;  %v13944_v2 = vor.u32 %v15265_v36, %v13941_v16  ;;  %v13696_v17 = vor.u32 %v15202_v61, %v13693_v15  ;;  %v13773_v48 = vld [vmem:[#allocation8 + $0x238] sm:$0xf0]  ;;  %v13896_v10 = vor.u32 %v15253_v14, %v13893_v25  ;;  %v15218_v61 = vld [vmem:[#allocation8 + $0x20c] sm:$0xf]  ;;  %v7930_v15 = vadd.f32 %v15941_v13, %v7917_v23  ;;  %v13877_v36 = vld [vmem:[#allocation8 + $0x310] sm:$0xf0] }
 0x47e   :  { %v13760_v19 = vor.u32 %v15218_v61, %v13757_v46  ;;  %v15260_v14 = vld [vmem:[#allocation8 + $0x354] sm:$0xf0]  ;;  %v13899_v23 = vld [vmem:[#allocation8 + $0x328] sm:$0xf]  ;;  %v15278_v61 = vld [vmem:[#allocation8 + $0x3ec] sm:$0xf] }
 0x47f   :  { %8976 = vmatpush.bf16.msra.mxu2 %v13772_v18  ;;  %v7943_v39 = vadd.f32 %v15943_v51, %v7930_v15  ;;  %v13997_v15 = vld [vmem:[#allocation8 + $0x3f8] sm:$0xf0] }
 0x480   :  { %8951 = vmatpush.bf16.msra.mxu0 %v13500_v35  ;;  %v15230_v35 = vld [vmem:[#allocation8 + $0x26c] sm:$0xf]  ;;  %8934 = vmatpush.bf16.msrb.mxu3 %v13944_v2  ;;  %v13880_v2 = vor.u32 %v15249_v52, %v13877_v36  ;;  %v14000_v36 = vor.u32 %v15278_v61, %v13997_v15  ;;  %v15293_v61 = vld [vmem:[#allocation11 + $0x60] sm:$0xff] }
 0x481   :  { %8964 = vmatpush.bf16.msra.mxu1 %v13628_v1  ;;  %v15950_v44 = vpop.f32.mrf.mxu1  ;;  %v13533_v1 = vld [vmem:[#allocation8 + $0x58] sm:$0xf0] }
 0x482   :  { %v15948_v18 = vpop.f32.mrf.mxu0  ;;  %v13536_v57 = vor.u32 %v15162_v4, %v13533_v1 }
 0x483   :  { %8977 = vmatpush.bf16.msra.mxu2 %v13756_v58  ;;  %8952 = vmatmul.bf16.vlgmr.msra.gmra.mxu0 %v15922_v53  ;;  %v13808_v58 = vor.u32 %v15230_v35, %v13805_v49  ;;  %v7956_v40 = vadd.f32 %v15948_v18, %v7943_v39  ;;  %v15266_v39 = vld [vmem:[#allocation8 + $0x38c] sm:$0xf] }
 0x484   :  { %8996 = vmatpush.bf16.msrb.mxu0 %v13616_v63  ;;  %8965 = vmatmul.bf16.vlgmr.msra.gmra.mxu1 %v15924_v5  ;;  %v13661_v63 = vld [vmem:[#allocation8 + $0x158] sm:$0xf0] }
 0x485   :  { %9009 = vmatpush.bf16.msrb.mxu1 %v13744_v0  ;;  %v15226_v0 = vld [vmem:[#allocation8 + $0x24c] sm:$0xf]  ;;  %8935 = vmatpush.bf16.msrb.mxu3 %v13928_v30  ;;  %v13664_v11 = vor.u32 %v15194_v38, %v13661_v63  ;;  %v7969_v13 = vadd.f32 %v15950_v44, %v7956_v40  ;;  %v13949_v40 = vld [vmem:[#allocation8 + $0x398] sm:$0xf0] }
 0x486   :  { %8978 = vmatmul.bf16.vlgmr.msra.gmra.mxu2 %v15926_v37  ;;  %v13792_v12 = vor.u32 %v15226_v0, %v13789_v50  ;;  %v13979_v0 = vld [vmem:[#allocation8 + $0x3c8] sm:$0xf]  ;;  %v15276_v50 = vld [vmem:[#allocation8 + $0x3d4] sm:$0xf0] }
 0x487   :  { %9022 = vmatpush.bf16.msrb.mxu2 %v13872_v22  ;;  %v13909_v22 = vld [vmem:[#allocation8 + $0x350] sm:$0xf0] }
 0x488   :  { %8997 = vmatpush.bf16.msrb.mxu0 %v13600_v9  ;;  %v13912_v6 = vor.u32 %v15257_v3, %v13909_v22  ;;  %v13517_v9 = vld [vmem:[#allocation8 + $0x38] sm:$0xf0]  ;;  %v13980_v3 = vor.u32 %v15276_v50, %v13979_v0  ;;  %v13963_v22 = vld [vmem:[#allocation8 + $0x3a8] sm:$0xf] }
 0x489   :  { %9010 = vmatpush.bf16.msrb.mxu1 %v13728_v59  ;;  %v7981_v43 = vpop.f32.mrf.mxu2  ;;  %v7994_v7 = vpop.f32.mrf.mxu3  ;;  %v13520_v33 = vor.u32 %v15158_v8, %v13517_v9  ;;  %v13931_v9 = vld [vmem:[#allocation8 + $0x368] sm:$0xf]  ;;  %v13885_v0 = vld [vmem:[#allocation8 + $0x318] sm:$0xf0] }
 0x48a   :  { %v7957_v59 = vpop.f32.mrf.mxu0  ;;  %v7970_v20 = vpop.f32.mrf.mxu1  ;;  %8936 = vmatpush.bf16.msrb.mxu3 %v13912_v6 }
 0x48b   :  { %9023 = vmatpush.bf16.msrb.mxu2 %v13856_v54  ;;  %v15222_v54 = vld [vmem:[#allocation8 + $0x22c] sm:$0xf]  ;;  %v15264_v59 = vld [vmem:[#allocation8 + $0x374] sm:$0xf0] }
 0x48c   :  { %8998 = vmatpush.bf16.msrb.mxu0 %v13584_v26  ;;  %v15154_v26 = vld [vmem:[#allocation8 + $0xc] sm:$0xf]  ;;  %v13776_v29 = vor.u32 %v15222_v54, %v13773_v48  ;;  %v13932_v54 = vor.u32 %v15264_v59, %v13931_v9  ;;  %v13915_v48 = vld [vmem:[#allocation8 + $0x348] sm:$0xf] }
 0x48d   :  { %9011 = vmatpush.bf16.msrb.mxu1 %v13712_v62  ;;  %v13501_v62 = vld [vmem:[#allocation8 + $0x18] sm:$0xf0]  ;;  %v13916_v25 = vor.u32 %v15260_v14, %v13915_v48  ;;  %v15285_v48 = vld [vmem:[#allocation11 + $0x20] sm:$0xff] }
 0x48e   :  { %8937 = vmatpush.bf16.msrb.mxu3 %v13896_v10  ;;  %v13504_v32 = vor.u32 %v15154_v26, %v13501_v62  ;;  %v15284_v14 = vld [vmem:[#allocation11 + $0x18] sm:$0xff] }
 0x48f   :  { %9024 = vmatpush.bf16.msrb.mxu2 %v13840_v55  ;;  %v13629_v55 = vld [vmem:[#allocation8 + $0x118] sm:$0xf0] }
 0x490   :  { %8999 = vmatpush.bf16.msrb.mxu0 %v13568_v34  ;;  %v13632_v34 = vor.u32 %v15186_v45, %v13629_v55  ;;  %v13883_v45 = vld [vmem:[#allocation8 + $0x308] sm:$0xf]  ;;  %v15252_v55 = vld [vmem:[#allocation8 + $0x314] sm:$0xf0] }
 0x491   :  { %9012 = vmatpush.bf16.msrb.mxu1 %v13696_v17  ;;  %v7983_v16 = vpop.f32.mrf.mxu2  ;;  %v7996_v17 = vpop.f32.mrf.mxu3  ;;  %v13884_v46 = vor.u32 %v15252_v55, %v13883_v45  ;;  %v15281_v55 = vld [vmem:[#allocation11] sm:$0xff] }
 0x492   :  { %8938 = vmatpush.bf16.msrb.mxu3 %v13880_v2  ;;  %v15274_v16 = vld [vmem:[#allocation8 + $0x3cc] sm:$0xf]  ;;  %v13981_v2 = vld [vmem:[#allocation8 + $0x3d8] sm:$0xf0] }
 0x493   :  { %9025 = vmatpush.bf16.msrb.mxu2 %v13824_v24  ;;  %v7982_v24 = vadd.f32 %v7981_v43, %v7969_v13  ;;  %v15272_v43 = vld [vmem:[#allocation8 + $0x3b4] sm:$0xf0]  ;;  %v13965_v17 = vld [vmem:[#allocation8 + $0x3b8] sm:$0xf0]  ;;  %v8193_v13 = vperm.slane %v15965_v42, 1 }
 0x494   :  { %9000 = vmatpush.bf16.msrb.mxu0 %v13552_v60  ;;  %v13964_v6 = vor.u32 %v15272_v43, %v13963_v22  ;;  %v8194_v22 = vperm.slane %v15965_v42, 2 }
 0x495   :  { %9013 = vmatpush.bf16.msrb.mxu1 %v13680_v56  ;;  %v7995_v47 = vadd.f32 %v7994_v7, %v7982_v24  ;;  %v13947_v7 = vld [vmem:[#allocation8 + $0x388] sm:$0xf]  ;;  %v13952_v24 = vor.u32 %v15266_v39, %v13949_v40 }
 0x496   :  { %v15289_v39 = vld [vmem:[#allocation11 + $0x40] sm:$0xff] }
 0x497   :  { %9026 = vmatpush.bf16.msrb.mxu2 %v13808_v58  ;;  %v15280_v58 = vld [vmem:[#allocation8 + $0x3f4] sm:$0xf0]  ;;  %v15301_v40 = vld [vmem:[#allocation11 + $0xa0] sm:$0xff] }
 0x498   :  { %9001 = vmatpush.bf16.msrb.mxu0 %v13536_v57  ;;  %v15268_v57 = vld [vmem:[#allocation8 + $0x394] sm:$0xf0] }
 0x499   :  { %9014 = vmatpush.bf16.msrb.mxu1 %v13664_v11  ;;  %v8192_v11 = vperm.slane %v15965_v42, 0  ;;  %v13948_v8 = vor.u32 %v15268_v57, %v13947_v7 }
 0x49b   :  { %9027 = vmatpush.bf16.msrb.mxu2 %v13792_v12 }
 0x49c   :  { %9002 = vmatpush.bf16.msrb.mxu0 %v13520_v33  ;;  %v15256_v33 = vld [vmem:[#allocation8 + $0x334] sm:$0xf0] }
 0x49d   :  { %9015 = vmatpush.bf16.msrb.mxu1 %v13648_v27 }
 0x49f   :  { %9028 = vmatpush.bf16.msrb.mxu2 %v13776_v29  ;;  %v13900_v29 = vor.u32 %v15256_v33, %v13899_v23 }
 0x4a0   :  { %9003 = vmatpush.bf16.msrb.mxu0 %v13504_v32  ;;  %v13984_v32 = vor.u32 %v15274_v16, %v13981_v2  ;;  %v15292_v16 = vld [vmem:[#allocation11 + $0x58] sm:$0xff]  ;;  %v15303_v2 = vld [vmem:[#allocation11 + $0xb0] sm:$0xff] }
 0x4a1   :  { %9016 = vmatpush.bf16.msrb.mxu1 %v13632_v34  ;;  %v8020_v31 = vpop.f32.mrf.mxu1  ;;  %v15270_v34 = vld [vmem:[#allocation8 + $0x3ac] sm:$0xf] }
 0x4a2   :  { %v8007_v41 = vpop.f32.mrf.mxu0 }
 0x4a3   :  { %9029 = vmatpush.bf16.msrb.mxu2 %v13760_v19  ;;  %9004 = vmatmul.bf16.vlgmr.msrb.gmra.mxu0 %v15922_v53  ;;  %v8008_v35 = vadd.f32 %v8007_v41, %v7995_v47  ;;  %v13995_v53 = vld [vmem:[#allocation8 + $0x3e8] sm:$0xf]  ;;  %v13968_v19 = vor.u32 %v15270_v34, %v13965_v17  ;;  %v15262_v47 = vld [vmem:[#allocation8 + $0x36c] sm:$0xf]  ;;  %v13933_v41 = vld [vmem:[#allocation8 + $0x378] sm:$0xf0] }
 0x4a4   :  { %9017 = vmatmul.bf16.vlgmr.msrb.gmra.mxu1 %v15924_v5  ;;  %v13996_v63 = vor.u32 %v15280_v58, %v13995_v53  ;;  %v15290_v17 = vld [vmem:[#allocation11 + $0x48] sm:$0xff] }
 0x4a5   :  { %v8021_v51 = vadd.f32 %v8020_v31, %v8008_v35 }
 0x4a6   :  { %9030 = vmatmul.bf16.vlgmr.msrb.gmra.mxu2 %v15926_v37 }
 0x4a9   :  { %v8033_v49 = vpop.f32.mrf.mxu2  ;;  %v8046_v30 = vpop.f32.mrf.mxu3 }
 0x4aa   :  { %v8034_v18 = vadd.f32 %v8033_v49, %v8021_v51  ;;  %v8009_v60 = vpop.f32.mrf.mxu0  ;;  %v8022_v56 = vpop.f32.mrf.mxu1  ;;  %v13936_v49 = vor.u32 %v15262_v47, %v13933_v41 }
 0x4ac   :  { %v8047_v4 = vadd.f32 %v8046_v30, %v8034_v18  ;;  %v15258_v30 = vld [vmem:[#allocation8 + $0x34c] sm:$0xf]  ;;  %v13917_v18 = vld [vmem:[#allocation8 + $0x358] sm:$0xf0] }
 0x4ad   :  { %v13920_v56 = vor.u32 %v15258_v30, %v13917_v18  ;;  %v15312_v30 = vld [vmem:[#allocation11 + $0xf8] sm:$0xff] }
 0x4ae   :  { %v8053_v1 = vmul.f32 0.2, %v8047_v4 }
 0x4b0   :  { %v8057_v5 = vmax.f32 %v8047_v4, %v8053_v1  ;;  %v15254_v4 = vld [vmem:[#allocation8 + $0x32c] sm:$0xf]  ;;  %v13901_v1 = vld [vmem:[#allocation8 + $0x338] sm:$0xf0] }
 0x4b1   :  { %v8035_v38 = vpop.f32.mrf.mxu2  ;;  %v8048_v44 = vpop.f32.mrf.mxu3 }
 0x4b2   :  { %v15962_v37 = vpack.c.bf16 %v8057_v5, %v8057_v5  ;;  %v13904_v44 = vor.u32 %v15254_v4, %v13901_v1  ;;  %v15310_v4 = vld [vmem:[#allocation11 + $0xe8] sm:$0xff] }
 0x4b4   :  { %8887 = vmatmul.bf16.vlgmr.msra.gmra.mxu3 %v15962_v37 }
 0x4b5   :  { %8983 = vmatpush.bf16.msra.mxu3 %v13996_v63  ;;  %v15250_v63 = vld [vmem:[#allocation8 + $0x30c] sm:$0xf] }
 0x4b6   :  { %v13888_v50 = vor.u32 %v15250_v63, %v13885_v0 }
 0x4b9   :  { %8984 = vmatpush.bf16.msra.mxu3 %v13980_v3 }
 0x4bd   :  { %8985 = vmatpush.bf16.msra.mxu3 %v13964_v6 }
 0x4c0   :  { %v8849_v12 = vpop.f32.mrf.mxu0 }
 0x4c1   :  { %v8850_v28 = vadd.f32 %v8849_v12, %v8192_v11  ;;  %v8862_v21 = vpop.f32.mrf.mxu1  ;;  %8986 = vmatpush.bf16.msra.mxu3 %v13948_v8  ;;  %v15288_v11 = vld [vmem:[#allocation11 + $0x38] sm:$0xff] }
 0x4c2   :  { %9320 = vmatpush.bf16.msra.mxu0 %v15288_v11 }
 0x4c3   :  { %v8863_v20 = vadd.f32 %v8862_v21, %v8850_v28  ;;  %v15287_v28 = vld [vmem:[#allocation11 + $0x30] sm:$0xff]  ;;  %v15286_v21 = vld [vmem:[#allocation11 + $0x28] sm:$0xff] }
 0x4c4   :  { %8939 = vmatmul.bf16.vlgmr.msrb.gmra.mxu3 %v15962_v37 }
 0x4c5   :  { %8987 = vmatpush.bf16.msra.mxu3 %v13932_v54  ;;  %v15296_v54 = vld [vmem:[#allocation11 + $0x78] sm:$0xff] }
 0x4c6   :  { %9321 = vmatpush.bf16.msra.mxu0 %v15287_v28  ;;  %9333 = vmatpush.bf16.msra.mxu1 %v15296_v54 }
 0x4c8   :  { %v8851_v26 = vpop.f32.mrf.mxu0 }
 0x4c9   :  { %v8875_v10 = vpop.f32.mrf.mxu2  ;;  %v8864_v62 = vpop.f32.mrf.mxu1  ;;  %8988 = vmatpush.bf16.msra.mxu3 %v13916_v25  ;;  %v15283_v25 = vld [vmem:[#allocation11 + $0x10] sm:$0xff] }
 0x4ca   :  { %v15969_v27 = vadd.f32 %v8875_v10, %v8863_v20  ;;  %9322 = vmatpush.bf16.msra.mxu0 %v15286_v21  ;;  %v8195_v10 = vperm.slane %v15965_v42, 3  ;;  %v15282_v62 = vld [vmem:[#allocation11 + $0x8] sm:$0xff]  ;;  %v15304_v42 = vld [vmem:[#allocation11 + $0xb8] sm:$0xff] }
 0x4cb   :  { %9346 = vmatpush.bf16.msra.mxu2 %v15304_v42 }
 0x4cd   :  { %8989 = vmatpush.bf16.msra.mxu3 %v13900_v29  ;;  %v15294_v29 = vld [vmem:[#allocation11 + $0x68] sm:$0xff] }
 0x4ce   :  { %9323 = vmatpush.bf16.msra.mxu0 %v15285_v48 }
 0x4cf   :  { %9347 = vmatpush.bf16.msra.mxu2 %v15303_v2 }
 0x4d1   :  { %v8877_v52 = vpop.f32.mrf.mxu2  ;;  %8990 = vmatpush.bf16.msra.mxu3 %v13884_v46 }
 0x4d2   :  { %9324 = vmatpush.bf16.msra.mxu0 %v15284_v14 }
 0x4d4   :  { %8991 = vmatmul.bf16.vlgmr.msra.gmra.mxu3 %v15962_v37 }
 0x4d5   :  { %9035 = vmatpush.bf16.msrb.mxu3 %v14000_v36 }
 0x4d6   :  { %9325 = vmatpush.bf16.msra.mxu0 %v15283_v25 }
 0x4d9   :  { %9036 = vmatpush.bf16.msrb.mxu3 %v13984_v32  ;;  %v15291_v32 = vld [vmem:[#allocation11 + $0x50] sm:$0xff] }
 0x4da   :  { %9326 = vmatpush.bf16.msra.mxu0 %v15282_v62 }
 0x4dd   :  { %9037 = vmatpush.bf16.msrb.mxu3 %v13968_v19  ;;  %v15302_v19 = vld [vmem:[#allocation11 + $0xa8] sm:$0xff] }
 0x4de   :  { %9327 = vmatpush.bf16.msra.mxu0 %v15281_v55  ;;  %9348 = vmatpush.bf16.msra.mxu2 %v15302_v19 }
 0x4e0   :  { %v8901_v31 = vpop.f32.mrf.mxu0 }
 0x4e1   :  { %v8914_v35 = vpop.f32.mrf.mxu1  ;;  %v8902_v51 = vadd.f32 %v8901_v31, %v8193_v13  ;;  %9038 = vmatpush.bf16.msrb.mxu3 %v13952_v24  ;;  %v15300_v13 = vld [vmem:[#allocation11 + $0x98] sm:$0xff]  ;;  %v15299_v24 = vld [vmem:[#allocation11 + $0x90] sm:$0xff]  ;;  %v15298_v31 = vld [vmem:[#allocation11 + $0x88] sm:$0xff] }
 0x4e2   :  { %9349 = vmatpush.bf16.msra.mxu2 %v15301_v40 }
 0x4e3   :  { %v8915_v60 = vadd.f32 %v8914_v35, %v8902_v51 }
 0x4e5   :  { %9039 = vmatpush.bf16.msrb.mxu3 %v13936_v49  ;;  %v15297_v49 = vld [vmem:[#allocation11 + $0x80] sm:$0xff] }
 0x4e6   :  { %9350 = vmatpush.bf16.msra.mxu2 %v15300_v13 }
 0x4e8   :  { %v8903_v5 = vpop.f32.mrf.mxu0 }
 0x4e9   :  { %v8927_v53 = vpop.f32.mrf.mxu2  ;;  %v8916_v38 = vpop.f32.mrf.mxu1  ;;  %9040 = vmatpush.bf16.msrb.mxu3 %v13920_v56  ;;  %v15311_v56 = vld [vmem:[#allocation11 + $0xf0] sm:$0xff] }
 0x4ea   :  { %v15973_v58 = vadd.f32 %v8927_v53, %v8915_v60  ;;  %9351 = vmatpush.bf16.msra.mxu2 %v15299_v24  ;;  %v15309_v53 = vld [vmem:[#allocation11 + $0xe0] sm:$0xff]  ;;  %v15308_v38 = vld [vmem:[#allocation11 + $0xd8] sm:$0xff] }
 0x4ed   :  { %9041 = vmatpush.bf16.msrb.mxu3 %v13904_v44 }
 0x4ee   :  { %9352 = vmatpush.bf16.msra.mxu2 %v15298_v31 }
 0x4f1   :  { %v8929_v3 = vpop.f32.mrf.mxu2  ;;  %9042 = vmatpush.bf16.msrb.mxu3 %v13888_v50  ;;  %v15307_v50 = vld [vmem:[#allocation11 + $0xd0] sm:$0xff] }
 0x4f2   :  { %9353 = vmatpush.bf16.msra.mxu2 %v15297_v49  ;;  %v15306_v3 = vld [vmem:[#allocation11 + $0xc8] sm:$0xff] }
 0x4f4   :  { %9043 = vmatmul.bf16.vlgmr.msrb.gmra.mxu3 %v15962_v37  ;;  %v15295_v37 = vld [vmem:[#allocation11 + $0x70] sm:$0xff] }
 0x4f5   :  { %9334 = vmatpush.bf16.msra.mxu1 %v15295_v37  ;;  %9359 = vmatpush.bf16.msra.mxu3 %v15312_v30 }
 0x4f9   :  { %9335 = vmatpush.bf16.msra.mxu1 %v15294_v29  ;;  %9360 = vmatpush.bf16.msra.mxu3 %v15311_v56 }
 0x4fd   :  { %9336 = vmatpush.bf16.msra.mxu1 %v15293_v61  ;;  %9361 = vmatpush.bf16.msra.mxu3 %v15310_v4 }
 0x500   :  { %v8953_v43 = vpop.f32.mrf.mxu0 }
 0x501   :  { %v8954_v6 = vadd.f32 %v8953_v43, %v8194_v22  ;;  %v8966_v7 = vpop.f32.mrf.mxu1  ;;  %9337 = vmatpush.bf16.msra.mxu1 %v15292_v16  ;;  %9362 = vmatpush.bf16.msra.mxu3 %v15309_v53 }
 0x503   :  { %v8967_v57 = vadd.f32 %v8966_v7, %v8954_v6  ;;  %v15305_v6 = vld [vmem:[#allocation11 + $0xc0] sm:$0xff] }
 0x505   :  { %9338 = vmatpush.bf16.msra.mxu1 %v15291_v32  ;;  %9363 = vmatpush.bf16.msra.mxu3 %v15308_v38 }
 0x508   :  { %v8955_v59 = vpop.f32.mrf.mxu0 }
 0x509   :  { %v8979_v8 = vpop.f32.mrf.mxu2  ;;  %v8968_v12 = vpop.f32.mrf.mxu1  ;;  %9339 = vmatpush.bf16.msra.mxu1 %v15290_v17  ;;  %9364 = vmatpush.bf16.msra.mxu3 %v15307_v50 }
 0x50a   :  { %v15977_v9 = vadd.f32 %v8979_v8, %v8967_v57 }
 0x50d   :  { %9340 = vmatpush.bf16.msra.mxu1 %v15289_v39  ;;  %9365 = vmatpush.bf16.msra.mxu3 %v15306_v3 }
 0x511   :  { %v8981_v20 = vpop.f32.mrf.mxu2  ;;  %9366 = vmatpush.bf16.msra.mxu3 %v15305_v6 }
 0x520   :  { %v9005_v23 = vpop.f32.mrf.mxu0 }
 0x521   :  { %v9018_v33 = vpop.f32.mrf.mxu1  ;;  %v9006_v26 = vadd.f32 %v9005_v23, %v8195_v10  ;;  %v15325_v10 = vld [vmem:[#allocation13] ss:$0 sm:$0xff] }
 0x523   :  { %v9019_v45 = vadd.f32 %v9018_v33, %v9006_v26 }
 0x528   :  { %v9007_v52 = vpop.f32.mrf.mxu0 }
 0x529   :  { %v9031_v15 = vpop.f32.mrf.mxu2  ;;  %v9020_v36 = vpop.f32.mrf.mxu1 }
 0x52a   :  { %v15980_v46 = vadd.f32 %v9031_v15, %v9019_v45 }
 0x531   :  { %v9033_v34 = vpop.f32.mrf.mxu2 }
 0x537   :  { %v8888_v47 = vpop.f32.mrf.mxu3 }
 0x538   :  { %v8889_v41 = vadd.f32 %v8888_v47, %v15969_v27 }
 0x53a   :  { %v9048_v35 = vmul.f32 0.2, %v8889_v41 }
 0x53c   :  { %v9052_v51 = vmax.f32 %v8889_v41, %v9048_v35 }
 0x53e   :  { %v9056_v18 = vpack.c.bf16 %v9052_v51, %v9052_v51 }
 0x53f   :  { %v8890_v60 = vpop.f32.mrf.mxu3 }
 0x540   :  { %9328 = vmatmul.bf16.vlgmr.msra.gmra.mxu0 %v9056_v18 }
 0x547   :  { %v8940_v1 = vpop.f32.mrf.mxu3 }
 0x548   :  { %v8941_v5 = vadd.f32 %v8940_v1, %v15973_v58 }
 0x54a   :  { %v9049_v27 = vmul.f32 0.2, %v8941_v5 }
 0x54c   :  { %v9053_v44 = vmax.f32 %v8941_v5, %v9049_v27 }
 0x54e   :  { %v9057_v63 = vpack.c.bf16 %v9053_v44, %v9053_v44 }
 0x54f   :  { %v8942_v0 = vpop.f32.mrf.mxu3 }
 0x550   :  { %9341 = vmatmul.bf16.vlgmr.msra.gmra.mxu1 %v9057_v63 }
 0x557   :  { %v8992_v22 = vpop.f32.mrf.mxu3 }
 0x558   :  { %v8993_v43 = vadd.f32 %v8992_v22, %v15977_v9 }
 0x55a   :  { %v9050_v7 = vmul.f32 0.2, %v8993_v43 }
 0x55c   :  { %v9054_v57 = vmax.f32 %v8993_v43, %v9050_v7 }
 0x55e   :  { %v9058_v58 = vpack.c.bf16 %v9054_v57, %v9054_v57 }
 0x55f   :  { %v8994_v11 = vpop.f32.mrf.mxu3 }
 0x560   :  { %9354 = vmatmul.bf16.vlgmr.msra.gmra.mxu2 %v9058_v58 }
 0x577   :  { %v9044_v8 = vpop.f32.mrf.mxu3 }
 0x578   :  { %v9045_v59 = vadd.f32 %v9044_v8, %v15980_v46 }
 0x57a   :  { %v9051_v12 = vmul.f32 0.2, %v9045_v59 }
 0x57c   :  { %v9055_v28 = vmax.f32 %v9045_v59, %v9051_v12 }
 0x57e   :  { %v9059_v21 = vpack.c.bf16 %v9055_v28, %v9055_v28 }
 0x57f   :  { %v9046_v54 = vpop.f32.mrf.mxu3 }
 0x580   :  { %9367 = vmatmul.bf16.vlgmr.msra.gmra.mxu3 %v9059_v21 }
 0x5bd   :  { %v9329_v20 = vpop.f32.mrf.mxu0 }
 0x5be   :  { %v9330_v23 = vadd.f32 %v15325_v10, %v9329_v20 }
 0x5c5   :  { %v9331_v37 = vpop.f32.mrf.mxu0 }
 0x5cd   :  { %v9342_v48 = vpop.f32.mrf.mxu1 }
 0x5ce   :  { %v9343_v33 = vadd.f32 %v9342_v48, %v9330_v23 }
 0x5d5   :  { %v9344_v14 = vpop.f32.mrf.mxu1 }
 0x5e3   :  { %v9355_v9 = vpop.f32.mrf.mxu2 }
 0x5e4   :  { %v9356_v26 = vadd.f32 %v9355_v9, %v9343_v33 }
 0x5eb   :  { %v9357_v25 = vpop.f32.mrf.mxu2 }
 0x603   :  { %v9368_v62 = vpop.f32.mrf.mxu3 }
 0x604   :  { %v9369_v29 = vadd.f32 %v9368_v62, %v9356_v26 }
 0x606   :  { %9372 = vst [vmem:[#allocation14] sm:$0xff] %v9369_v29 }
 0x607   :  { %9383 = dma.vmem_to_hbm [thread:$0]  %s9379_s6, 128, %s9381_s14, [#allocation4]  }
 0x60b   :  { %v9370_v45 = vpop.f32.mrf.mxu3 }
 0x60c   :  { %15529 = dma.done.wait [#allocation4], 128  }
 0x60d   :  { %15530 = vsyncadd [#allocation4], 4294967168 }
 0x60e   :  { %9388 = vsyncpa [#allocation3], 1 }
 0x60f   :  { %9389 = vsyncpa [#allocation6], 1 }
 0x610   :  { %9390 = vsyncpa [#allocation9], 1 }
 0x611   :  { %9391 = vsyncpa [#allocation12], 1 }
 0x612   :  { %9392 = vsyncpa [#allocation4], 1 }

</bundles_post_ra>
